<compile_context>
chip_gen: v5e
topology: v5e:2x2
jax: 0.10.0
libtpu: 0.0.40
codegen_flags: <defaults>
</compile_context>

<pallas_src>
import functools

import numpy as np

import jax
import jax.numpy as jnp
from jax.experimental import pallas as pl
from jax.experimental.pallas import tpu as pltpu


def _pe_kernel(scale_ref, x_ref, p_ref, o_ref, *, N, D):
    """One row-tile of the positional encoding.

    scale_ref : SMEM (1,) f32            -- the (learnable) scale parameter
    x_ref     : VMEM (TM, D) f32         -- tile of flattened input rows
    p_ref     : VMEM (2, N, D, dim_out)  -- resident MXU placement matrices:
                p[0, k, d, D + d*N + k]       = 1/((k+1)*scale)   (cos slab)
                p[1, k, d, D + D*N + d*N + k] = 1/((k+1)*scale)   (sin slab)
    o_ref     : VMEM (TM, dim_out) f32
    """
    x = x_ref[...]
    theta = x * scale_ref[0]
    c1 = jnp.cos(theta)                      # only 2 transcendentals per
    s1 = jnp.sin(theta)                      # element, independent of N

    dot = functools.partial(jnp.dot, preferred_element_type=jnp.float32,
                            precision=jax.lax.Precision.HIGHEST)

    # Harmonic 1, placed straight into its final output columns via the MXU.
    acc = dot(c1, p_ref[0, 0]) + dot(s1, p_ref[1, 0])

    # Harmonics 2..N via the Chebyshev / angle-addition recurrence (VPU only).
    two_c1 = 2.0 * c1
    c_prev, c_cur = 1.0, c1
    s_prev, s_cur = 0.0, s1
    for k in range(1, N):
        c_next = two_c1 * c_cur - c_prev     # cos((k+1)*theta)
        s_next = two_c1 * s_cur - s_prev     # sin((k+1)*theta)
        acc = acc + dot(c_next, p_ref[0, k]) + dot(s_next, p_ref[1, k])
        c_prev, c_cur = c_cur, c_next
        s_prev, s_cur = s_cur, s_next

    # Single lane-dense full-width store; then the passthrough x columns
    # (lane offset 0, no shift -> cheap masked store).
    o_ref[...] = acc.astype(o_ref.dtype)
    o_ref[:, 0:D] = x.astype(o_ref.dtype)


@functools.lru_cache(maxsize=None)
def _placement_base(dim_in, N):
    """(2, N, D, dim_out) placement matrices with 1/(k+1) weights.

    Multiplying a (TM, D) harmonic slab by base[i, k] (times 1/scale) lands
    element d into output column  cos: D + d*N + k,  sin: D + D*N + d*N + k,
    matching torch.cat([x, cos.reshape(-1, D*N), sin.reshape(-1, D*N)], 1).
    """
    D = dim_in
    dn = D * N
    dim_out = D + 2 * dn
    base = np.zeros((2, N, D, dim_out), dtype=np.float32)
    for k in range(N):
        w = np.float32(1.0 / (k + 1))
        for d in range(D):
            base[0, k, d, D + d * N + k] = w
            base[1, k, d, D + dn + d * N + k] = w
    return base


def _select_tm(M, dim_in, dim_out, tm_max):
    """Row-tile size: VMEM-budgeted (v7x-safe), megacore-friendly step count."""
    bytes_per_row = 4 * (dim_in + dim_out)
    # Keep double-buffered in+out tiles under ~24 MiB (v7x scoped default 32).
    budget_rows = (24 * 1024 * 1024) // (2 * bytes_per_row)
    tm = min(tm_max, budget_rows)
    tm = max(8, (tm // 8) * 8)
    if M <= tm:
        # Whole problem fits in one tile: split in two so the v7x megacore
        # "parallel" axis has something to shard; harmless on v5e/v6e.
        if M >= 16 and (M // 2) % 8 == 0:
            return M // 2
        return M
    # Large M: prefer an even grid of >= 4 steps (balanced across the two v7x
    # TensorCores) while keeping the tile big enough that the ~0.35us/step
    # overhead stays small.
    steps = pl.cdiv(M, tm)
    while (steps < 4 or steps % 2 != 0) and tm >= 2048:
        tm = max(8, ((tm // 2) // 8) * 8)
        steps = pl.cdiv(M, tm)
    return tm


def positional_encoding(x, scale, N, *, tm_max=4096):
    """Pallas implementation of PositionalEncoding.forward.

    x     : f32 array of shape (..., dim_in)
    scale : f32 scalar (the nn.Parameter)
    N     : int, number of frequencies
    """
    shape = x.shape
    dim_in = shape[-1]
    dn = dim_in * N
    dim_out = dim_in + 2 * dn

    x2d = x.reshape(-1, dim_in).astype(jnp.float32)
    M = x2d.shape[0]

    scale32 = jnp.asarray(scale, dtype=jnp.float32)
    scale_arr = scale32.reshape((1,))
    # Cached structure (per dim_in, N); only the 1/scale factor is per-call.
    p_tab = jnp.asarray(_placement_base(dim_in, N)) * (1.0 / scale32)

    tm = _select_tm(M, dim_in, dim_out, tm_max)
    grid = (pl.cdiv(M, tm),)

    kernel = functools.partial(_pe_kernel, N=N, D=dim_in)

    cost = pl.CostEstimate(
        flops=4 * N * M * dim_in * dim_out + 8 * M * dim_in,
        transcendentals=2 * M * dim_in,
        bytes_accessed=4 * (M * (dim_in + dim_out) + int(p_tab.size) + 1),
    )

    out = pl.pallas_call(
        kernel,
        out_shape=jax.ShapeDtypeStruct((M, dim_out), jnp.float32),
        grid_spec=pltpu.PrefetchScalarGridSpec(
            num_scalar_prefetch=0,
            grid=grid,
            in_specs=[
                pl.BlockSpec(memory_space=pltpu.MemorySpace.SMEM),      # scale
                pl.BlockSpec((tm, dim_in), lambda i: (i, 0)),           # x rows
                pl.BlockSpec((2, N, dim_in, dim_out),
                             lambda i: (0, 0, 0, 0)),                   # P table
            ],
            out_specs=pl.BlockSpec((tm, dim_out), lambda i: (i, 0)),
        ),
        compiler_params=pltpu.CompilerParams(
            dimension_semantics=("parallel",)),
        cost_estimate=cost,
    )(scale_arr, x2d, p_tab)

    return out.reshape(*shape[:-1], dim_out)


def positional_encoding_ref(x, scale, N):
    """Pure-JAX reference mirroring the PyTorch forward."""
    shape = x.shape
    dim_in = shape[-1]
    x2d = x.reshape(-1, dim_in)
    c = jnp.arange(1, N + 1, dtype=jnp.float32).reshape(1, 1, -1) * scale
    x_n = x2d.reshape(-1, dim_in, 1) * c
    sin = (jnp.sin(x_n) / c).reshape(-1, dim_in * N)
    cos = (jnp.cos(x_n) / c).reshape(-1, dim_in * N)
    out = jnp.concatenate([x2d, cos, sin], axis=1)
    return out.reshape(*shape[:-1], 2 * dim_in * N + dim_in)


if __name__ == "__main__":
    N = 4
    # Deterministic "parameter" init, matching torch.tensor(3.14) in __init__.
    scale = jnp.float32(3.14)

    key = jax.random.PRNGKey(0)
    x = jax.random.normal(key, (2, 4, 16, 16), dtype=jnp.float32)

    out = jax.block_until_ready(positional_encoding(x, scale, N))
    ref = positional_encoding_ref(x, scale, N)
    assert out.shape == (2, 4, 16, 2 * 16 * N + 16), out.shape
    assert jnp.allclose(out, ref, atol=1e-5, rtol=1e-5), (
        float(jnp.max(jnp.abs(out - ref))))

    # Exercise the multi-step grid / partial-last-block path (no wrapper pad).
    x2 = jax.random.normal(jax.random.PRNGKey(1), (3, 40, 16), jnp.float32)
    out2 = jax.block_until_ready(positional_encoding(x2, scale, N, tm_max=64))
    ref2 = positional_encoding_ref(x2, scale, N)
    assert out2.shape == ref2.shape, out2.shape
    assert jnp.allclose(out2, ref2, atol=1e-5, rtol=1e-5), (
        float(jnp.max(jnp.abs(out2 - ref2))))

    print("KERNEL_OK")
</pallas_src>

<mosaic_0001>
module attributes {stable_mosaic.version = 11 : i64} {
  func.func @_pe_kernel(%arg0: i32, %arg1: memref<1xf32, #tpu.memory_space<smem>>, %arg2: memref<64x16xf32, #tpu.memory_space<vmem>>, %arg3: memref<2x4x16x144xf32, #tpu.memory_space<vmem>>, %arg4: memref<64x144xf32, #tpu.memory_space<vmem>>) attributes {dimension_semantics = [#tpu.dimension_semantics<parallel>], iteration_bounds = array<i64: 2>, scalar_prefetch = 0 : i64, scratch_operands = 0 : i64, tpu.core_type = #tpu.core_type<tc>, window_params = [{transform_indices = @transform_0, window_bounds = array<i64: 1>}, {transform_indices = @transform_1, window_bounds = array<i64: 64, 16>}, {pipeline_mode = #tpu.pipeline_mode<synchronous>, transform_indices = @transform_2, window_bounds = array<i64: 2, 4, 16, 144>}, {transform_indices = @transform_3, window_bounds = array<i64: 64, 144>}]} {
    %c0 = arith.constant 0 : index
    %c0_0 = arith.constant 0 : index
    %0 = vector.load %arg2[%c0, %c0_0] : memref<64x16xf32, #tpu.memory_space<vmem>>, vector<64x16xf32>
    %c0_1 = arith.constant 0 : index
    %1 = memref.load %arg1[%c0_1] : memref<1xf32, #tpu.memory_space<smem>>
    %2 = vector.broadcast %1 : f32 to vector<64x16xf32>
    %3 = arith.mulf %0, %2 : vector<64x16xf32>
    %4 = math.cos %3 : vector<64x16xf32>
    %5 = math.sin %3 : vector<64x16xf32>
    %c0_2 = arith.constant 0 : index
    %c0_3 = arith.constant 0 : index
    %c0_4 = arith.constant 0 : index
    %c0_5 = arith.constant 0 : index
    %6 = vector.load %arg3[%c0_2, %c0_3, %c0_4, %c0_5] : memref<2x4x16x144xf32, #tpu.memory_space<vmem>>, vector<1x1x16x144xf32>
    %7 = vector.shape_cast %6 : vector<1x1x16x144xf32> to vector<16x144xf32>
    %cst = arith.constant dense<0.000000e+00> : vector<64x144xf32>
    %8 = tpu.matmul %4, %7, %cst {dimension_numbers = #tpu.dot_dimension_numbers<[1], [0], [0], [1], [0, 0, 1, 1], [], []>, precision = #tpu.contract_precision<fp32>} : vector<64x16xf32>, vector<16x144xf32>, vector<64x144xf32> -> vector<64x144xf32>
    %c1 = arith.constant 1 : index
    %c0_6 = arith.constant 0 : index
    %c0_7 = arith.constant 0 : index
    %c0_8 = arith.constant 0 : index
    %9 = vector.load %arg3[%c1, %c0_6, %c0_7, %c0_8] : memref<2x4x16x144xf32, #tpu.memory_space<vmem>>, vector<1x1x16x144xf32>
    %10 = vector.shape_cast %9 : vector<1x1x16x144xf32> to vector<16x144xf32>
    %cst_9 = arith.constant dense<0.000000e+00> : vector<64x144xf32>
    %11 = tpu.matmul %5, %10, %cst_9 {dimension_numbers = #tpu.dot_dimension_numbers<[1], [0], [0], [1], [0, 0, 1, 1], [], []>, precision = #tpu.contract_precision<fp32>} : vector<64x16xf32>, vector<16x144xf32>, vector<64x144xf32> -> vector<64x144xf32>
    %12 = arith.addf %8, %11 : vector<64x144xf32>
    %cst_10 = arith.constant 2.000000e+00 : f32
    %13 = vector.broadcast %cst_10 : f32 to vector<64x16xf32>
    %14 = arith.mulf %13, %4 : vector<64x16xf32>
    %15 = arith.mulf %14, %4 : vector<64x16xf32>
    %cst_11 = arith.constant 1.000000e+00 : f32
    %16 = vector.broadcast %cst_11 : f32 to vector<64x16xf32>
    %17 = arith.subf %15, %16 : vector<64x16xf32>
    %18 = arith.mulf %14, %5 : vector<64x16xf32>
    %cst_12 = arith.constant 0.000000e+00 : f32
    %19 = vector.broadcast %cst_12 : f32 to vector<64x16xf32>
    %20 = arith.subf %18, %19 : vector<64x16xf32>
    %c0_13 = arith.constant 0 : index
    %c1_14 = arith.constant 1 : index
    %c0_15 = arith.constant 0 : index
    %c0_16 = arith.constant 0 : index
    %21 = vector.load %arg3[%c0_13, %c1_14, %c0_15, %c0_16] : memref<2x4x16x144xf32, #tpu.memory_space<vmem>>, vector<1x1x16x144xf32>
    %22 = vector.shape_cast %21 : vector<1x1x16x144xf32> to vector<16x144xf32>
    %cst_17 = arith.constant dense<0.000000e+00> : vector<64x144xf32>
    %23 = tpu.matmul %17, %22, %cst_17 {dimension_numbers = #tpu.dot_dimension_numbers<[1], [0], [0], [1], [0, 0, 1, 1], [], []>, precision = #tpu.contract_precision<fp32>} : vector<64x16xf32>, vector<16x144xf32>, vector<64x144xf32> -> vector<64x144xf32>
    %24 = arith.addf %12, %23 : vector<64x144xf32>
    %c1_18 = arith.constant 1 : index
    %c1_19 = arith.constant 1 : index
    %c0_20 = arith.constant 0 : index
    %c0_21 = arith.constant 0 : index
    %25 = vector.load %arg3[%c1_18, %c1_19, %c0_20, %c0_21] : memref<2x4x16x144xf32, #tpu.memory_space<vmem>>, vector<1x1x16x144xf32>
    %26 = vector.shape_cast %25 : vector<1x1x16x144xf32> to vector<16x144xf32>
    %cst_22 = arith.constant dense<0.000000e+00> : vector<64x144xf32>
    %27 = tpu.matmul %20, %26, %cst_22 {dimension_numbers = #tpu.dot_dimension_numbers<[1], [0], [0], [1], [0, 0, 1, 1], [], []>, precision = #tpu.contract_precision<fp32>} : vector<64x16xf32>, vector<16x144xf32>, vector<64x144xf32> -> vector<64x144xf32>
    %28 = arith.addf %24, %27 : vector<64x144xf32>
    %29 = arith.mulf %14, %17 : vector<64x16xf32>
    %30 = arith.subf %29, %4 : vector<64x16xf32>
    %31 = arith.mulf %14, %20 : vector<64x16xf32>
    %32 = arith.subf %31, %5 : vector<64x16xf32>
    %c0_23 = arith.constant 0 : index
    %c2 = arith.constant 2 : index
    %c0_24 = arith.constant 0 : index
    %c0_25 = arith.constant 0 : index
    %33 = vector.load %arg3[%c0_23, %c2, %c0_24, %c0_25] : memref<2x4x16x144xf32, #tpu.memory_space<vmem>>, vector<1x1x16x144xf32>
    %34 = vector.shape_cast %33 : vector<1x1x16x144xf32> to vector<16x144xf32>
    %cst_26 = arith.constant dense<0.000000e+00> : vector<64x144xf32>
    %35 = tpu.matmul %30, %34, %cst_26 {dimension_numbers = #tpu.dot_dimension_numbers<[1], [0], [0], [1], [0, 0, 1, 1], [], []>, precision = #tpu.contract_precision<fp32>} : vector<64x16xf32>, vector<16x144xf32>, vector<64x144xf32> -> vector<64x144xf32>
    %36 = arith.addf %28, %35 : vector<64x144xf32>
    %c1_27 = arith.constant 1 : index
    %c2_28 = arith.constant 2 : index
    %c0_29 = arith.constant 0 : index
    %c0_30 = arith.constant 0 : index
    %37 = vector.load %arg3[%c1_27, %c2_28, %c0_29, %c0_30] : memref<2x4x16x144xf32, #tpu.memory_space<vmem>>, vector<1x1x16x144xf32>
    %38 = vector.shape_cast %37 : vector<1x1x16x144xf32> to vector<16x144xf32>
    %cst_31 = arith.constant dense<0.000000e+00> : vector<64x144xf32>
    %39 = tpu.matmul %32, %38, %cst_31 {dimension_numbers = #tpu.dot_dimension_numbers<[1], [0], [0], [1], [0, 0, 1, 1], [], []>, precision = #tpu.contract_precision<fp32>} : vector<64x16xf32>, vector<16x144xf32>, vector<64x144xf32> -> vector<64x144xf32>
    %40 = arith.addf %36, %39 : vector<64x144xf32>
    %41 = arith.mulf %14, %30 : vector<64x16xf32>
    %42 = arith.subf %41, %17 : vector<64x16xf32>
    %43 = arith.mulf %14, %32 : vector<64x16xf32>
    %44 = arith.subf %43, %20 : vector<64x16xf32>
    %c0_32 = arith.constant 0 : index
    %c3 = arith.constant 3 : index
    %c0_33 = arith.constant 0 : index
    %c0_34 = arith.constant 0 : index
    %45 = vector.load %arg3[%c0_32, %c3, %c0_33, %c0_34] : memref<2x4x16x144xf32, #tpu.memory_space<vmem>>, vector<1x1x16x144xf32>
    %46 = vector.shape_cast %45 : vector<1x1x16x144xf32> to vector<16x144xf32>
    %cst_35 = arith.constant dense<0.000000e+00> : vector<64x144xf32>
    %47 = tpu.matmul %42, %46, %cst_35 {dimension_numbers = #tpu.dot_dimension_numbers<[1], [0], [0], [1], [0, 0, 1, 1], [], []>, precision = #tpu.contract_precision<fp32>} : vector<64x16xf32>, vector<16x144xf32>, vector<64x144xf32> -> vector<64x144xf32>
    %48 = arith.addf %40, %47 : vector<64x144xf32>
    %c1_36 = arith.constant 1 : index
    %c3_37 = arith.constant 3 : index
    %c0_38 = arith.constant 0 : index
    %c0_39 = arith.constant 0 : index
    %49 = vector.load %arg3[%c1_36, %c3_37, %c0_38, %c0_39] : memref<2x4x16x144xf32, #tpu.memory_space<vmem>>, vector<1x1x16x144xf32>
    %50 = vector.shape_cast %49 : vector<1x1x16x144xf32> to vector<16x144xf32>
    %cst_40 = arith.constant dense<0.000000e+00> : vector<64x144xf32>
    %51 = tpu.matmul %44, %50, %cst_40 {dimension_numbers = #tpu.dot_dimension_numbers<[1], [0], [0], [1], [0, 0, 1, 1], [], []>, precision = #tpu.contract_precision<fp32>} : vector<64x16xf32>, vector<16x144xf32>, vector<64x144xf32> -> vector<64x144xf32>
    %52 = arith.addf %48, %51 : vector<64x144xf32>
    %c0_41 = arith.constant 0 : index
    %c0_42 = arith.constant 0 : index
    %53 = vector.load %arg4[%c0_41, %c0_42] : memref<64x144xf32, #tpu.memory_space<vmem>>, vector<64x144xf32>
    tpu.vector_store %arg4[%c0_41, %c0_42], %52 {strides = array<i32>} : memref<64x144xf32, #tpu.memory_space<vmem>>, vector<64x144xf32>,
    %c0_43 = arith.constant 0 : index
    %c0_44 = arith.constant 0 : index
    %54 = vector.load %arg4[%c0_43, %c0_44] : memref<64x144xf32, #tpu.memory_space<vmem>>, vector<64x16xf32>
    tpu.vector_store %arg4[%c0_43, %c0_44], %0 {strides = array<i32>} : memref<64x144xf32, #tpu.memory_space<vmem>>, vector<64x16xf32>,
    return
  }
  func.func @transform_0(%arg0: i32) -> i32 {
    %c0_i32 = arith.constant 0 : i32
    %c0_i32_0 = arith.constant 0 : i32
    return %c0_i32 : i32
  }
  func.func @transform_1(%arg0: i32) -> (i32, i32) {
    %c0_i32 = arith.constant 0 : i32
    %c0_i32_0 = arith.constant 0 : i32
    return %arg0, %c0_i32 : i32, i32
  }
  func.func @transform_2(%arg0: i32) -> (i32, i32, i32, i32) {
    %c0_i32 = arith.constant 0 : i32
    %c0_i32_0 = arith.constant 0 : i32
    %c0_i32_1 = arith.constant 0 : i32
    %c0_i32_2 = arith.constant 0 : i32
    %c0_i32_3 = arith.constant 0 : i32
    return %c0_i32, %c0_i32_0, %c0_i32_1, %c0_i32_2 : i32, i32, i32, i32
  }
  func.func @transform_3(%arg0: i32) -> (i32, i32) {
    %c0_i32 = arith.constant 0 : i32
    %c0_i32_0 = arith.constant 0 : i32
    return %arg0, %c0_i32 : i32, i32
  }
}

</mosaic_0001>

<bundles_post_ra>
// kernel: tpu_custom_call.1
= control target key start
LH: loop header
LB: loop body
LE: loop exit
PB: predicated region body
PF: predicated region fallthrough
CT: control target
= control target key end

     0   :  { %s13581_s0 = inlined_call_operand.<no memory space> [shape: f32[1], index: 0, kind: input, shape index: {}]   ;;  %s13582_s1 = inlined_call_operand.vmem [shape: f32[128,16], index: 1, kind: input, shape index: {}]   ;;  %s13583_s2 = inlined_call_operand.hbm [shape: f32[2,4,16,144], index: 2, kind: input, shape index: {}]   ;;  %s13584_s3 = inlined_call_operand.vmem [shape: f32[128,144], index: 3, kind: output, shape index: {}]  }
   0x1   :  { %8 = sst [smem:[#allocation2]] %s13581_s0 }
   0x2   :  { %9 = vsyncpa [#allocation4], 0  ;;  %s9392_s14 = smov 0  }
   0x3 LB: > { %s128_s17 = sshll.u32 %s13583_s2, 4  ;;  %s9218_s18 = sadd.s32 4294967295, %s9357_s14   ;;  %s9357_s14 = sphi %s9392_s14, %s15_s14   ;;  %s129_s17 = int_to_ptr.hbm [resolvable:$true] %s128_s17 }
   0x4   : > { %p9220_p0 = scmp.ge.s32.totalorder %s9357_s14, 1  ;;  %p114_p1 = scmp.lt.s32.totalorder %s9357_s14, 3 }
   0x5   : > { %p9297_p2 = scmp.eq.s32.totalorder %s9218_s18, 0  ;;  %s9359_s0 = smov [#allocation3]  }
   0x6   : > { %p115_p3 = pnand %p9220_p0, %p114_p1  ;;  %s130_s19 = sshll.u32 %s9359_s0, 4  ;;  %s131_s19 = int_to_ptr.vmem [resolvable:$true] %s130_s19 }
   0x7   : > { %s9360_s20 = smov 256   ;;  %s9361_s21 = smov 16  }
   0x8   : > { %p9293_p4 = pneg %p115_p3  ;;  %155 = sbr.rel (%p115_p3) target bundleno = 2004 (0x7d4), region = 32 }
   0xa   : > { %p9294_p5 = pnand %p9297_p2, %p9293_p4 }
   0xc   : > { %9296 = dma.hbm_to_vmem [thread:$0]  (!%p9294_p5), %s129_s17, 4096, %s131_s19, [#allocation4], %s9360_s20, %s9360_s20, %s9361_s21  }
   0xd   : > { %9352 = dma.done.wait (%p9297_p2), [#allocation4], 4096  }
   0xe   : > { %9354 = vsyncadd (%p9297_p2), [#allocation4], 4294963200  ;;  %s9225_s22 = sshll.u32 %s9218_s18, 3  ;;  %s202_s23 = sld [smem:[#allocation2]]  ;;  %v2691_v0 = vld [vmem:[#allocation3 + $0x90] sm:$0xff]  ;;  %v2689_v1 = vld [vmem:[#allocation3 + $0x80] sm:$0xff] }
   0xf   : > { %p182_p6 = scmp.lt.s32.totalorder %s9225_s22, 15  ;;  %v9416_v4 = vand.u32 4294901760, %v2691_v0  ;;  %v9418_v5 = vand.u32 4294901760, %v2689_v1  ;;  %v13589_v38 = vmov 683565275  }
  0x10   : > { %v13599_v40 = vmov 2475754826   ;;  %v13597_v42 = vmov 2131351028   ;;  %v13595_v44 = vmov 2102212464  }
  0x11   : > { %s14144_s22 = smov (!%p182_p6, %s9225_s22), 15  ;;  %v9439_v11 = vsub.f32 %v2691_v0, %v9416_v4  ;;  %v9442_v12 = vsub.f32 %v2689_v1, %v9418_v5  ;;  %2936 = vmatpush.msra.mxu3 %v9416_v4  ;;  %2733 = vmatpush.msra.mxu0 %v9416_v4  ;;  %v13593_v46 = vmov 920167782   ;;  %v13591_v55 = vmov 1326507024  }
  0x12   : > { %s9226_s24 = sshll.u32 %s14144_s22, 3  ;;  %s9288_s28 = sshll.u32 %s14144_s22, 4 }
  0x13   : > { %s9409_s27 = scalar_lea.vmem %s13582_s1, %s9226_s24  ;;  %2876 = vmatpush.msra.mxu2 %v9439_v11  ;;  %2938 = vmatpush.msra.mxu3 %v9418_v5  ;;  %s13444_s4 = scalar_lea.vmem %s13584_s3, %s9288_s28 }
  0x14   : > { %v9412_v2 = vld [vmem:[%s9409_s27] sm:$0xff]  ;;  %v9414_v3 = vstv %s202_s23  ;;  %v9425_v7 = vld [vmem:[%s9409_s27 + $0x8] sm:$0xff]  ;;  %v9428_v8 = vld [vmem:[%s9409_s27 + $0x10] sm:$0xff]  ;;  %2735 = vmatpush.msra.mxu0 %v9418_v5 }
  0x15   : > { %13762 = vst [vmem:[#allocation6_spill] sm:$0xff] %v9412_v2  ;;  %v9422_v6 = vmul.f32 %v9414_v3, %v9412_v2  ;;  %v9432_v9 = vmul.f32 %v9414_v3, %v9425_v7  ;;  %v9436_v10 = vmul.f32 %v9414_v3, %v9428_v8  ;;  %2879 = vmatpush.msra.mxu2 %v9442_v12 }
  0x16   : > { %13763 = vst [vmem:[#allocation7_spill] sm:$0xff] %v9425_v7 }
  0x17   : > { %13764 = vst [vmem:[#allocation8_spill] sm:$0xff] %v9428_v8  ;;  %v212_v13 = vand.u32 2147483647, %v9422_v6  ;;  %v215_v14 = vand.u32 2139095040, %v9422_v6  ;;  %v366_v15 = vand.u32 2147483647, %v9432_v9 }
  0x18   : > { %13765 = vst [vmem:[#allocation9_spill] sm:$0xff] %v9432_v9  ;;  %v369_v16 = vand.u32 2139095040, %v9432_v9  ;;  %v523_v18 = vand.u32 2139095040, %v9436_v10 }
  0x19   : > { %13766 = vst [vmem:[#allocation10_spill] sm:$0xff] %v9436_v10  ;;  %v219_v17 = vand.u32 8388607, %v212_v13  ;;  %v216_v19 = vshrl.u32 %v215_v14, 23  ;;  %v373_v21 = vand.u32 8388607, %v366_v15 }
  0x1a   : > { %v370_v20 = vshrl.u32 %v369_v16, 23  ;;  %v524_v25 = vshrl.u32 %v523_v18, 23 }
  0x1b   : > { %v9230_v22 = vadd.s32 4294967169, %v216_v19  ;;  %v220_v24 = vor.u32 8388608, %v219_v17  ;;  %v374_v28 = vor.u32 8388608, %v373_v21 }
  0x1c   : > { %v9233_v23 = vadd.s32 4294967169, %v370_v20  ;;  %v9236_v32 = vadd.s32 4294967169, %v524_v25 }
  0x1d   : > { %v222_v26 = vadd.s32 1, %v9230_v22  ;;  %v9459_v30 = vshll.u32 %v220_v24, 8  ;;  %v9465_v36 = vshll.u32 %v374_v28, 8 }
  0x1e   : > { %v376_v27 = vadd.s32 1, %v9233_v23  ;;  %v9473_v49 = vadd.s32 1, %v9236_v32 }
  0x1f   : > { %vm223_vm0 = vcmp.gt.s32.totalorder %v222_v26, 0  ;;  %v261_v48 = vand.u32 65535, %v9459_v30  ;;  %v262_v53 = vshrl.u32 %v9459_v30, 16 }
  0x20   : > { %vm377_vm1 = vcmp.gt.s32.totalorder %v376_v27, 0  ;;  %v224_v29 = vsel %vm223_vm0, %v222_v26, 0  ;;  %vm531_vm15 = vcmp.gt.s32.totalorder %v9473_v49, 0 }
  0x21   : > { %v378_v31 = vsel %vm377_vm1, %v376_v27, 0  ;;  %v226_v33 = vand.u32 31, %v224_v29  ;;  %v9461_v34 = vshrl.u32 %v224_v29, 5 }
  0x22   : > { %v9463_v35 = vand.u32 31, %v378_v31  ;;  %v9493_v14 = vshrl.u32 %v378_v31, 5 }
  0x23   : > { %v227_v37 = vsub.s32 32, %v226_v33  ;;  %v229_v39 = vshll.u32 %v13589_v38, %v226_v33  ;;  %v232_v41 = vshll.u32 %v13599_v40, %v226_v33  ;;  %v235_v43 = vshll.u32 %v13597_v42, %v226_v33 }
  0x24   : > { %v238_v45 = vshll.u32 %v13595_v44, %v226_v33  ;;  %v241_v47 = vshll.u32 %v13593_v46, %v226_v33  ;;  %vm244_vm2 = vcmp.lt.s32.totalorder %v9461_v34, 1  ;;  %vm247_vm3 = vcmp.lt.s32.totalorder %v9461_v34, 4 }
  0x25   : > { %v230_v50 = vshrl.u32 %v13599_v40, %v227_v37  ;;  %v233_v51 = vshrl.u32 %v13597_v42, %v227_v37  ;;  %v236_v52 = vshrl.u32 %v13595_v44, %v227_v37  ;;  %v239_v54 = vshrl.u32 %v13593_v46, %v227_v37 }
  0x26   : > { %v242_v56 = vshrl.u32 %v13591_v55, %v227_v37  ;;  %v9484_v60 = vsub.s32 32, %v9463_v35  ;;  %v228_v61 = vshrl.u32 %v13589_v38, %v227_v37  ;;  %vm246_vm4 = vcmp.lt.s32.totalorder %v9461_v34, 3 }
  0x27   : > { %v231_v57 = vor.u32 %v230_v50, %v229_v39  ;;  %v234_v58 = vor.u32 %v233_v51, %v232_v41  ;;  %v237_v59 = vor.u32 %v236_v52, %v235_v43  ;;  %v240_v62 = vor.u32 %v239_v54, %v238_v45 }
  0x28   : > { %v243_v63 = vor.u32 %v242_v56, %v241_v47  ;;  %vm245_vm5 = vcmp.lt.s32.totalorder %v9461_v34, 2  ;;  %v383_v18 = vshll.u32 %v13589_v38, %v9463_v35  ;;  %v386_v19 = vshll.u32 %v13599_v40, %v9463_v35 }
  0x29   : > { %v252_v0 = vsel %vm244_vm2, %v231_v57, %v234_v58  ;;  %v256_v1 = vsel %vm244_vm2, %v234_v58, %v237_v59  ;;  %v253_v16 = vsel %vm247_vm3, %v240_v62, 920167782  ;;  %v249_v20 = vsel %vm247_vm3, %v237_v59, 2102212464 }
  0x2a   : > { %v257_v17 = vsel %vm247_vm3, %v243_v63, 1326507024  ;;  %v254_v21 = vsel %vm246_vm4, %v237_v59, %v253_v16  ;;  %v384_v23 = vshrl.u32 %v13599_v40, %v9484_v60  ;;  %v248_v24 = vsel %vm244_vm2, %v228_v61, %v231_v57 }
  0x2b   : > { %v258_v22 = vsel %vm246_vm4, %v240_v62, %v257_v17  ;;  %v255_v25 = vsel %vm245_vm5, %v252_v0, %v254_v21  ;;  %v387_v27 = vshrl.u32 %v13597_v42, %v9484_v60  ;;  %v250_v33 = vsel %vm246_vm4, %v234_v58, %v249_v20 }
  0x2c   : > { %v259_v26 = vsel %vm245_vm5, %v256_v1, %v258_v22  ;;  %v285_v31 = vand.u32 65535, %v255_v25  ;;  %v286_v32 = vshrl.u32 %v255_v25, 16  ;;  %v9521_v37 = vor.u32 %v384_v23, %v383_v18 }
  0x2d   : > { %v263_v28 = vand.u32 65535, %v259_v26  ;;  %v264_v29 = vshrl.u32 %v259_v26, 16  ;;  %v9523_v39 = vor.u32 %v387_v27, %v386_v19  ;;  %v389_v41 = vshll.u32 %v13597_v42, %v9463_v35 }
  0x2e   : > { %v390_v50 = vshrl.u32 %v13595_v44, %v9484_v60  ;;  %v287_v52 = vmul.u32 %v285_v31, %v261_v48  ;;  %v288_v54 = vmul.u32 %v286_v32, %v261_v48  ;;  %v289_v56 = vmul.u32 %v285_v31, %v262_v53 }
  0x2f   : > { %v265_v43 = vmul.u32 %v263_v28, %v261_v48  ;;  %v266_v45 = vmul.u32 %v264_v29, %v261_v48  ;;  %v267_v47 = vmul.u32 %v263_v28, %v262_v53  ;;  %v268_v51 = vmul.u32 %v264_v29, %v262_v53 }
  0x30   : > { %v290_v61 = vmul.u32 %v286_v32, %v262_v53  ;;  %v291_v63 = vshll.u32 %v288_v54, 16  ;;  %v292_v0 = vshrl.u32 %v288_v54, 16  ;;  %v293_v1 = vshll.u32 %v289_v56, 16 }
  0x31   : > { %v269_v57 = vshll.u32 %v266_v45, 16  ;;  %v270_v59 = vshrl.u32 %v266_v45, 16  ;;  %v271_v58 = vshll.u32 %v267_v47, 16  ;;  %v272_v62 = vshrl.u32 %v267_v47, 16 }
  0x32   : > { %v294_v17 = vshrl.u32 %v289_v56, 16  ;;  %v392_v18 = vshll.u32 %v13595_v44, %v9463_v35  ;;  %v13602_v19 = vmov 0   ;;  %vm295_vm7 = vc.u32 %v287_v52, %v291_v63 }
  0x33   : > { %vm273_vm6 = vc.u32 %v265_v43, %v269_v57  ;;  %v275_v16 = vadd.s32 %v269_v57, %v265_v43  ;;  %v297_v48 = vadd.s32 %v291_v63, %v287_v52  ;;  %v393_v21 = vshrl.u32 %v13593_v46, %v9484_v60 }
  0x34   : > { %v274_v20 = vsel %vm273_vm6, 1, %v13602_v19  ;;  %v296_v53 = vsel %vm295_vm7, 1, %v13602_v19  ;;  %v395_v23 = vshll.u32 %v13593_v46, %v9463_v35  ;;  %v391_v27 = vor.u32 %v390_v50, %v389_v41 }
  0x35   : > { %v276_v22 = vadd.s32 %v274_v20, %v268_v51  ;;  %vm277_vm8 = vc.u32 %v275_v16, %v271_v58  ;;  %v298_v26 = vadd.s32 %v296_v53, %v290_v61  ;;  %vm299_vm9 = vc.u32 %v297_v48, %v293_v1 }
  0x36   : > { %v278_v25 = vsel %vm277_vm8, 1, %v13602_v19  ;;  %v300_v29 = vsel %vm299_vm9, 1, %v13602_v19  ;;  %v394_v31 = vor.u32 %v393_v21, %v392_v18  ;;  %v396_v32 = vshrl.u32 %v13591_v55, %v9484_v60 }
  0x37   : > { %v280_v28 = vadd.s32 %v278_v25, %v276_v22  ;;  %v9541_v43 = vadd.s32 %v297_v48, %v293_v1  ;;  %v302_v45 = vadd.s32 %v300_v29, %v298_v26  ;;  %vm398_vm10 = vcmp.lt.s32.totalorder %v9493_v14, 1 }
  0x38   : > { %vm400_vm11 = vcmp.lt.s32.totalorder %v9493_v14, 3  ;;  %v397_v47 = vor.u32 %v396_v32, %v395_v23  ;;  %vm399_vm12 = vcmp.lt.s32.totalorder %v9493_v14, 2  ;;  %vm401_vm13 = vcmp.lt.s32.totalorder %v9493_v14, 4 }
  0x39   : > { %v281_v35 = vadd.s32 %v280_v28, %v270_v59  ;;  %v251_v41 = vsel %vm245_vm5, %v248_v24, %v250_v33  ;;  %v303_v50 = vadd.s32 %v302_v45, %v292_v0  ;;  %v406_v51 = vsel %vm398_vm10, %v9521_v37, %v9523_v39 }
  0x3a   : > { %v407_v52 = vsel %vm401_vm13, %v394_v31, 920167782  ;;  %v410_v57 = vsel %vm398_vm10, %v9523_v39, %v391_v27  ;;  %v416_v34 = vshrl.u32 %v9465_v36, 16  ;;  %v411_v59 = vsel %vm401_vm13, %v397_v47, 1326507024 }
  0x3b   : > { %v9555_v54 = vadd.s32 %v281_v35, %v272_v62  ;;  %v408_v56 = vsel %vm400_vm11, %v391_v27, %v407_v52  ;;  %v304_v24 = vadd.s32 %v303_v50, %v294_v17  ;;  %v415_v58 = vand.u32 65535, %v9465_v36 }
  0x3c   : > { %v409_v33 = vsel %vm399_vm12, %v406_v51, %v408_v56  ;;  %v305_v61 = vmul.u32 %v9459_v30, %v251_v41  ;;  %v412_v62 = vsel %vm400_vm11, %v394_v31, %v411_v59  ;;  %v382_v47 = vshrl.u32 %v13589_v38, %v9484_v60 }
  0x3d   : > { %vm307_vm14 = vc.u32 %v9555_v54, %v9541_v43  ;;  %v439_v63 = vand.u32 65535, %v409_v33  ;;  %v308_v0 = vadd.s32 1, %v304_v24  ;;  %v413_v1 = vsel %vm399_vm12, %v410_v57, %v412_v62 }
  0x3e   : > { %v440_v16 = vshrl.u32 %v409_v33, 16  ;;  %v417_v17 = vand.u32 65535, %v413_v1  ;;  %v418_v18 = vshrl.u32 %v413_v1, 16  ;;  %v532_v50 = vsel %vm531_vm15, %v9473_v49, 0 }
  0x3f   : > { %v443_v20 = vmul.u32 %v439_v63, %v416_v34  ;;  %v309_v48 = vsel %vm307_vm14, %v308_v0, %v304_v24  ;;  %v441_v21 = vmul.u32 %v439_v63, %v415_v58  ;;  %v403_v57 = vsel %vm401_vm13, %v391_v27, 2102212464 }
  0x40   : > { %v442_v22 = vmul.u32 %v440_v16, %v415_v58  ;;  %v310_v30 = vadd.s32 %v309_v48, %v305_v61  ;;  %v419_v53 = vmul.u32 %v417_v17, %v415_v58  ;;  %v420_v23 = vmul.u32 %v418_v18, %v415_v58 }
  0x41   : > { %v421_v25 = vmul.u32 %v417_v17, %v416_v34  ;;  %v444_v26 = vmul.u32 %v440_v16, %v416_v34  ;;  %v447_v29 = vshll.u32 %v443_v20, 16  ;;  %v422_v32 = vmul.u32 %v418_v18, %v416_v34 }
  0x42   : > { %v445_v28 = vshll.u32 %v442_v22, 16  ;;  %v311_v31 = vadd.s32 536870912, %v310_v30  ;;  %v423_v45 = vshll.u32 %v420_v23, 16  ;;  %v424_v60 = vshrl.u32 %v420_v23, 16 }
  0x43   : > { %v425_v35 = vshll.u32 %v421_v25, 16  ;;  %v402_v49 = vsel %vm398_vm10, %v382_v47, %v9521_v37  ;;  %v446_v61 = vshrl.u32 %v442_v22, 16  ;;  %v404_v27 = vsel %vm400_vm11, %v9523_v39, %v403_v57 }
  0x44   : > { %vm449_vm0 = vc.u32 %v441_v21, %v445_v28  ;;  %v451_v41 = vadd.s32 %v445_v28, %v441_v21  ;;  %v9579_v51 = vshrl.u32 %v311_v31, 30  ;;  %vm427_vm1 = vc.u32 %v419_v53, %v423_v45 }
  0x45   : > { %v429_v52 = vadd.s32 %v423_v45, %v419_v53  ;;  %v450_v56 = vsel %vm449_vm0, 1, %v13602_v19  ;;  %v428_v34 = vsel %vm427_vm1, 1, %v13602_v19  ;;  %v426_v0 = vshrl.u32 %v421_v25, 16 }
  0x46   : > { %v452_v24 = vadd.s32 %v450_v56, %v444_v26  ;;  %vm453_vm2 = vc.u32 %v451_v41, %v447_v29  ;;  %v313_v33 = vshll.u32 %v9579_v51, 30  ;;  %v430_v59 = vadd.s32 %v428_v34, %v422_v32 }
  0x47   : > { %vm431_vm3 = vc.u32 %v429_v52, %v425_v35  ;;  %v454_v62 = vsel %vm453_vm2, 1, %v13602_v19  ;;  %v448_v16 = vshrl.u32 %v443_v20, 16  ;;  %v9594_v17 = vadd.s32 %v451_v41, %v447_v29 }
  0x48   : > { %v432_v58 = vsel %vm431_vm3, 1, %v13602_v19  ;;  %v314_v63 = vsub.s32 %v310_v30, %v313_v33  ;;  %v456_v18 = vadd.s32 %v454_v62, %v452_v24  ;;  %v534_v37 = vand.u32 31, %v532_v50 }
  0x49   : > { %v434_v1 = vadd.s32 %v432_v58, %v430_v59  ;;  %v405_v22 = vsel %vm399_vm12, %v402_v49, %v404_v27  ;;  %v520_v39 = vand.u32 2147483647, %v9436_v10  ;;  %vm214_vm6 = vcmp.lt.s32.totalorder %v9422_v6, 0 }
  0x4a   : > { %vm315_vm4 = vcmp.lt.s32.totalorder %v314_v63, 0  ;;  %v316_v48 = vsub.s32 0, %v314_v63  ;;  %v457_v53 = vadd.s32 %v456_v18, %v446_v61  ;;  %v459_v25 = vmul.u32 %v9465_v36, %v405_v22 }
  0x4b   : > { %v435_v21 = vadd.s32 %v434_v1, %v424_v60  ;;  %v9601_v20 = vsub.s32 32, %v534_v37  ;;  %v306_v14 = vadd.s32 %v9541_v43, %v9555_v54  ;;  %v9608_v45 = vand.u32 8388607, %v520_v39 }
  0x4c   : > { %v317_v23 = vsel %vm315_vm4, %v316_v48, %v314_v63  ;;  %v458_v28 = vadd.s32 %v457_v53, %v448_v16  ;;  %v540_v35 = vshll.u32 %v13599_v40, %v534_v37  ;;  %v543_v52 = vshll.u32 %v13597_v42, %v534_v37 }
  0x4d   : > { %v436_v30 = vadd.s32 %v435_v21, %v426_v0  ;;  %v318_v26 = vclz %v317_v23  ;;  %v541_v41 = vshrl.u32 %v13597_v42, %v9601_v20  ;;  %v544_v43 = vshrl.u32 %v13595_v44, %v9601_v20 }
  0x4e   : > { %v462_v31 = vadd.s32 1, %v458_v28  ;;  %vm9618_vm8 = vcmp.le.f32.partialorder %v212_v13, 0.7853982  ;;  %v336_v24 = vsub.s32 4, %v9579_v51  ;;  %v9623_v60 = vshrl.u32 %v532_v50, 5 }
  0x4f   : > { %vm461_vm5 = vc.u32 %v436_v30, %v9594_v17  ;;  %v9231_v29 = vadd.s32 4294967294, %v318_v26  ;;  %v528_v58 = vor.u32 8388608, %v9608_v45  ;;  %v549_v61 = vshll.u32 %v13593_v46, %v534_v37 }
  0x50   : > { %v463_v32 = vsel %vm461_vm5, %v462_v31, %v458_v28  ;;  %v547_v13 = vshrl.u32 %v13593_v46, %v9601_v20  ;;  %v550_v27 = vshrl.u32 %v13591_v55, %v9601_v20  ;;  %v9634_v50 = vor.u32 %v541_v41, %v540_v35 }
  0x51   : > { %vm9232_vm7 = vcmp.lt.s32.totalorder %v9231_v29, 0  ;;  %v464_v47 = vadd.s32 %v463_v32, %v459_v25  ;;  %v9636_v16 = vor.u32 %v544_v43, %v543_v52  ;;  %v337_v18 = vsel %vm214_vm6, %v336_v24, %v9579_v51 }
  0x52   : > { %v321_v36 = vsel %vm9232_vm7, 0, %v9231_v29  ;;  %v537_v21 = vshll.u32 %v13589_v38, %v534_v37  ;;  %vm552_vm9 = vcmp.lt.s32.totalorder %v9623_v60, 1  ;;  %v538_v23 = vshrl.u32 %v13599_v40, %v9601_v20 }
  0x53   : > { %v322_v56 = vsub.s32 32, %v321_v36  ;;  %v323_v57 = vshll.u32 %v314_v63, %v321_v36  ;;  %v326_v34 = vsub.s32 4294967266, %v321_v36  ;;  %v465_v33 = vadd.s32 536870912, %v464_v47 }
  0x54   : > { %v546_v63 = vshll.u32 %v13595_v44, %v534_v37  ;;  %v551_v26 = vor.u32 %v550_v27, %v549_v61  ;;  %v2817_v28 = vand.u32 4294901760, %v9439_v11  ;;  %vm555_vm10 = vcmp.lt.s32.totalorder %v9623_v60, 4 }
  0x55   : > { %v324_v59 = vshrl.u32 %v306_v14, %v322_v56  ;;  %v327_v49 = vadd.s32 127, %v326_v34  ;;  %v9627_v62 = vshrl.u32 %v465_v33, 30  ;;  %vm553_vm11 = vcmp.lt.s32.totalorder %v9623_v60, 2 }
  0x56   : > { %v548_v29 = vor.u32 %v547_v13, %v546_v63  ;;  %vm554_vm12 = vcmp.lt.s32.totalorder %v9623_v60, 3  ;;  %v564_v37 = vsel %vm552_vm9, %v9634_v50, %v9636_v16  ;;  %v2818_v31 = vsub.f32 %v9439_v11, %v2817_v28  ;;  %3005 = vmatpush.msrb.mxu0 %v2817_v28 }
  0x57   : > { %v325_v0 = vor.u32 %v324_v59, %v323_v57  ;;  %v328_v1 = vshll.u32 %v327_v49, 23  ;;  %v467_v48 = vshll.u32 %v9627_v62, 30  ;;  %v2823_v14 = vand.u32 4294901760, %v9442_v12 }
  0x58   : > { %v339_v35 = vsel %vm9618_vm8, 0, %v337_v18  ;;  %v460_v36 = vadd.s32 %v9594_v17, %v436_v30  ;;  %v2819_v41 = vand.u32 4294901760, %v2818_v31  ;;  %v9669_v43 = vor.u32 %v538_v23, %v537_v21  ;;  %v2692_v30 = vld [vmem:[#allocation3 + $0x98] sm:$0xff] }
  0x59   : > { %v329_v22 = vor.u32 4788187, %v328_v1  ;;  %v332_v53 = vcvt.s32.f32 %v325_v0  ;;  %v9647_v25 = vsub.s32 %v464_v47, %v467_v48  ;;  %v565_v47 = vsel %vm555_vm10, %v551_v26, 1326507024  ;;  %3009 = vmatpush.msrb.mxu0 %v2823_v14 }
  0x5a   : > { %v2824_v52 = vsub.f32 %v9442_v12, %v2823_v14  ;;  %v566_v56 = vsel %vm554_vm12, %v548_v29, %v565_v47  ;;  %v1588_v17 = vadd.s32 3, %v339_v35  ;;  %2820 = vmatpush.msra.mxu1 %v2819_v41  ;;  %v561_v12 = vsel %vm555_vm10, %v548_v29, 920167782 }
  0x5b   : > { %v330_v51 = vand.u32 2147483647, %v329_v22  ;;  %vm469_vm13 = vcmp.lt.s32.totalorder %v9647_v25, 0  ;;  %v470_v32 = vsub.s32 0, %v9647_v25  ;;  %v567_v24 = vsel %vm553_vm11, %v564_v37, %v566_v56 }
  0x5c   : > { %v2825_v33 = vand.u32 4294901760, %v2824_v52  ;;  %v9675_v59 = vshll.u32 %v528_v58, 8  ;;  %v9679_v61 = vand.u32 4294901760, %v2692_v30  ;;  %v571_v13 = vand.u32 65535, %v567_v24 }
  0x5d   : > { %v333_v45 = vmul.f32 %v332_v53, %v330_v51  ;;  %v471_v11 = vsel %vm469_vm13, %v470_v32, %v9647_v25  ;;  %v572_v58 = vshrl.u32 %v567_v24, 16  ;;  %v9694_v48 = vand.u32 3, %v339_v35 }
  0x5e   : > { %v472_v34 = vclz %v471_v11  ;;  %2826 = vmatpush.msra.mxu1 %v2825_v33  ;;  %v9687_v0 = vand.u32 65535, %v9675_v59  ;;  %v9690_v1 = vshrl.u32 %v9675_v59, 16  ;;  %3109 = vmatpush.msrb.mxu2 %v9679_v61  ;;  %v9698_v21 = vsub.f32 %v2692_v30, %v9679_v61 }
  0x5f   : > { %v334_v57 = vxor.u32 2147483648, %v333_v45  ;;  %v9701_v54 = vand.u32 3, %v1588_v17  ;;  %v560_v53 = vsel %vm552_vm9, %v9669_v43, %v9634_v50  ;;  %v562_v23 = vsel %vm554_vm12, %v9636_v16, %v561_v12 }
  0x60   : > { %v9234_v63 = vadd.s32 4294967294, %v472_v34  ;;  %3058 = vmatpush.msrb.mxu1 %v9416_v4  ;;  %v13587_v29 = vand.u32 4294901760, %v9698_v21  ;;  %v9714_v31 = vmul.u32 %v572_v58, %v9687_v0  ;;  %v9717_v14 = vmul.u32 %v571_v13, %v9690_v1 }
  0x61   : > { %v335_v49 = vsel %vm214_vm6, %v334_v57, %v333_v45  ;;  %vm1594_vm15 = vcmp.eq.s32.totalorder %v9701_v54, 2  ;;  %vm368_vm0 = vcmp.lt.s32.totalorder %v9432_v9, 0  ;;  %vm358_vm1 = vcmp.eq.s32.totalorder %v9694_v48, 0 }
  0x62   : > { %v9684_v27 = vsel %vm9618_vm8, %v9422_v6, %v335_v49  ;;  %vm9235_vm14 = vcmp.lt.s32.totalorder %v9234_v63, 0  ;;  %3060 = vmatpush.msrb.mxu1 %v9418_v5  ;;  %v3194_v35 = vsub.f32 %v9698_v21, %v13587_v29  ;;  %v9725_v5 = vshrl.u32 %v13589_v38, %v9601_v20 }
  0x63   : > { %v340_v18 = vmul.f32 %v9684_v27, %v9684_v27  ;;  %v475_v22 = vsel %vm9235_vm14, 0, %v9234_v63  ;;  %vm361_vm2 = vcmp.eq.s32.totalorder %v9694_v48, 2  ;;  %vm1591_vm3 = vcmp.eq.s32.totalorder %v9701_v54, 0 }
  0x64   : > { %v476_v51 = vsub.s32 32, %v475_v22  ;;  %v477_v4 = vshll.u32 %v9647_v25, %v475_v22  ;;  %v480_v37 = vsub.s32 4294967266, %v475_v22  ;;  %v573_v25 = vmul.u32 %v571_v13, %v9687_v0 }
  0x65   : > { %v341_v26 = vmul.f32 -0.001358992, %v340_v18  ;;  %v348_v28 = vmul.f32 -0.00019511016, %v340_v18  ;;  %v3195_v56 = vand.u32 4294901760, %v3194_v35  ;;  %v563_v34 = vsel %vm553_vm11, %v560_v53, %v562_v23 }
  0x66   : > { %v478_v47 = vshrl.u32 %v460_v36, %v476_v51  ;;  %v481_v41 = vadd.s32 127, %v480_v37  ;;  %vm9734_vm4 = vcmp.le.f32.partialorder %v366_v15, 0.7853982  ;;  %v577_v24 = vshll.u32 %v9714_v31, 16 }
  0x67   : > { %v342_v32 = vadd.f32 0.041655596, %v341_v26  ;;  %v349_v45 = vadd.f32 0.008332121, %v348_v28  ;;  %vm357_vm5 = vcmp.lt.s32.totalorder %v9694_v48, 2  ;;  %vm1590_vm6 = vcmp.lt.s32.totalorder %v9701_v54, 2  ;;  %3196 = vmatpush.msrb.mxu3 %v3195_v56 }
  0x68   : > { %v479_v57 = vor.u32 %v478_v47, %v477_v4  ;;  %v482_v20 = vshll.u32 %v481_v41, 23  ;;  %v576_v33 = vmul.u32 %v572_v58, %v9690_v1  ;;  %v579_v15 = vshll.u32 %v9717_v14, 16 }
  0x69   : > { %v343_v52 = vmul.f32 %v342_v32, %v340_v18  ;;  %v350_v11 = vmul.f32 %v349_v45, %v340_v18  ;;  %vm355_vm7 = vweird.f32 %v9422_v6  ;;  %vm581_vm8 = vc.u32 %v573_v25, %v577_v24 }
  0x6a   : > { %v483_v12 = vor.u32 4788187, %v482_v20  ;;  %v486_v49 = vcvt.s32.f32 %v479_v57  ;;  %v583_v63 = vadd.s32 %v577_v24, %v573_v25  ;;  %v582_v53 = vsel %vm581_vm8, 1, %v13602_v19 }
  0x6b   : > { %v344_v17 = vadd.f32 -0.4999988, %v343_v52  ;;  %v351_v30 = vadd.f32 -0.16666654, %v350_v11  ;;  %v593_v23 = vand.u32 65535, %v563_v34  ;;  %v490_v28 = vsub.s32 4, %v9627_v62 }
  0x6c   : > { %v484_v26 = vand.u32 2147483647, %v483_v12  ;;  %vm585_vm13 = vc.u32 %v583_v63, %v579_v15  ;;  %v594_v51 = vshrl.u32 %v563_v34, 16  ;;  %v584_v37 = vadd.s32 %v582_v53, %v576_v33 }
  0x6d   : > { %v345_v13 = vmul.f32 %v344_v17, %v340_v18  ;;  %v352_v22 = vmul.f32 %v351_v30, %v340_v18  ;;  %v586_v32 = vsel %vm585_vm13, 1, %v13602_v19  ;;  %v595_v35 = vmul.u32 %v593_v23, %v9687_v0 }
  0x6e   : > { %v487_v45 = vmul.f32 %v486_v49, %v484_v26  ;;  %v9751_v47 = vmul.u32 %v594_v51, %v9687_v0  ;;  %v9754_v18 = vmul.u32 %v593_v23, %v9690_v1  ;;  %vm2693_vm14 = vcmask 130048  }
  0x6f   : > { %v346_v4 = vadd.f32 1.0, %v345_v13  ;;  %v353_v58 = vadd.f32 1.0, %v352_v22  ;;  %v557_v52 = vsel %vm555_vm10, %v9636_v16, 2102212464  ;;  %v491_v56 = vsel %vm368_vm0, %v490_v28, %v9627_v62  ;;  %v9786_v13 = vld [vmem:[%s9409_s27 + $0x18] sm:$0xff] }
  0x70   : > { %v488_v11 = vxor.u32 2147483648, %v487_v45  ;;  %v578_v57 = vshrl.u32 %v9714_v31, 16  ;;  %v599_v0 = vshll.u32 %v9751_v47, 16  ;;  %v588_v24 = vadd.s32 %v586_v32, %v584_v37  ;;  %13771 = vst [vmem:[#allocation11_spill] sm:$0xff] %v9786_v13 }
  0x71   : > { %v354_v41 = vmul.f32 %v353_v58, %v9684_v27  ;;  %v362_v25 = vxor.u32 2147483648, %v346_v4  ;;  %v598_v17 = vmul.u32 %v594_v51, %v9690_v1  ;;  %v601_v62 = vshll.u32 %v9754_v18, 16 }
  0x72   : > { %v489_v16 = vsel %vm368_vm0, %v488_v11, %v487_v45  ;;  %vm603_vm10 = vc.u32 %v595_v35, %v599_v0  ;;  %v605_v63 = vadd.s32 %v599_v0, %v595_v35  ;;  %v556_v48 = vsel %vm552_vm9, %v9725_v5, %v9669_v43 }
  0x73   : > { %v359_v20 = vxor.u32 2147483648, %v354_v41  ;;  %v363_v27 = vsel %vm361_vm2, %v362_v25, %v354_v41  ;;  %v1596_v34 = vsel %vm1594_vm15, %v362_v25, %v354_v41  ;;  %v492_v33 = vsel %vm9734_vm4, %v9432_v9, %v489_v16 }
  0x74   : > { %v604_v15 = vsel %vm603_vm10, 1, %v13602_v19  ;;  %v494_v49 = vmul.f32 %v492_v33, %v492_v33  ;;  %v558_v54 = vsel %vm554_vm12, %v9634_v50, %v557_v52  ;;  %v9807_v26 = vsel %vm9734_vm4, 0, %v491_v56 }
  0x75   : > { %v360_v31 = vsel %vm358_vm1, %v346_v4, %v359_v20  ;;  %v1593_v30 = vsel %vm1591_vm3, %v346_v4, %v359_v20  ;;  %13774 = vst [vmem:[#allocation14_spill] sm:$0xff] %v9807_v26  ;;  %v606_v4 = vadd.s32 %v604_v15, %v598_v17  ;;  %vm607_vm15 = vc.u32 %v605_v63, %v601_v62 }
  0x76   : > { %v364_v12 = vsel %vm357_vm5, %v360_v31, %v363_v27  ;;  %v1597_v1 = vsel %vm1590_vm6, %v1593_v30, %v1596_v34  ;;  %v495_v28 = vmul.f32 -0.001358992, %v494_v49  ;;  %v502_v6 = vmul.f32 -0.00019511016, %v494_v49 }
  0x77   : > { %v9790_v22 = vsel %vm355_vm7, nan, %v364_v12  ;;  %v9794_v53 = vsel %vm355_vm7, nan, %v1597_v1  ;;  %v9813_v43 = vmul.f32 %v9414_v3, %v9786_v13  ;;  %v580_v50 = vshrl.u32 %v9717_v14, 16 }
  0x78   : > { %13772 = vst [vmem:[#allocation12_spill] sm:$0xff] %v9790_v22  ;;  %v2695_v23 = vsel %vm2693_vm14, %v9794_v53, 0  ;;  %v496_v5 = vadd.f32 0.041655596, %v495_v28  ;;  %v503_v58 = vadd.f32 0.008332121, %v502_v6  ;;  %v589_v37 = vadd.s32 %v588_v24, %v578_v57 }
  0x79   : > { %13773 = vst [vmem:[#allocation13_spill] sm:$0xff] %v9794_v53  ;;  %v9809_v51 = vand.u32 4294901760, %v2695_v23  ;;  %v1743_v36 = vadd.s32 3, %v9807_v26  ;;  %v600_v45 = vshrl.u32 %v9751_v47, 16  ;;  %v608_v35 = vsel %vm607_vm15, 1, %v13602_v19 }
  0x7a   : > { %13775 = vst [vmem:[#allocation15_spill] sm:$0xff] %v9813_v43  ;;  %v497_v41 = vmul.f32 %v496_v5, %v494_v49  ;;  %v504_v25 = vmul.f32 %v503_v58, %v494_v49  ;;  %v559_v52 = vsel %vm553_vm11, %v556_v48, %v558_v54  ;;  %v602_v11 = vshrl.u32 %v9754_v18, 16 }
  0x7b   : > { %v9817_v32 = vsub.f32 %v2695_v23, %v9809_v51  ;;  %2828 = vmatmul.f32.vlgmr.msra.gmra.mxu1 %v9809_v51  ;;  %v610_v56 = vadd.s32 %v608_v35, %v606_v4  ;;  %v677_v57 = vand.u32 2139095040, %v9813_v43  ;;  %v9832_v20 = vadd.s32 %v589_v37, %v580_v50 }
  0x7c   : > { %3312 = vmatpush.msra.mxu1 %v9679_v61  ;;  %v498_v47 = vadd.f32 -0.4999988, %v497_v41  ;;  %v505_v0 = vadd.f32 -0.16666654, %v504_v25  ;;  %v9834_v27 = vadd.s32 %v605_v63, %v601_v62  ;;  %v1744_v34 = vand.u32 3, %v1743_v36 }
  0x7d   : > { %2882 = vmatmul.f32.vlgmr.msra.gmra.mxu2 %v9817_v32  ;;  %v9828_v14 = vand.u32 4294901760, %v9817_v32  ;;  %v611_v24 = vadd.s32 %v610_v56, %v600_v45  ;;  %v678_v16 = vshrl.u32 %v677_v57, 23  ;;  %v613_v62 = vmul.u32 %v9675_v59, %v559_v52  ;;  %v9874_v57 = vld [vmem:[%s9409_s27 + $0x20] sm:$0xff] }
  0x7e   : > { %v499_v17 = vmul.f32 %v498_v47, %v494_v49  ;;  %v506_v31 = vmul.f32 %v505_v0, %v494_v49  ;;  %vm615_vm9 = vc.u32 %v9832_v20, %v9834_v27  ;;  %vm1749_vm11 = vcmp.eq.s32.totalorder %v1744_v34, 2  ;;  %13779 = vst [vmem:[#allocation19_spill] sm:$0xff] %v9874_v57 }
  0x7f   : > { %2942 = vmatmul.f32.vlgmr.msra.gmra.mxu3 %v9828_v14  ;;  %v2739_v60 = vsub.f32 %v9817_v32, %v9828_v14  ;;  %v612_v30 = vadd.s32 %v611_v24, %v602_v11  ;;  %v9239_v15 = vadd.s32 4294967169, %v678_v16  ;;  %v13588_v23 = vand.u32 2147483647, %v9813_v43 }
  0x80   : > { %v9841_v12 = vadd.f32 1.0, %v499_v17  ;;  %v507_v1 = vadd.f32 1.0, %v506_v31  ;;  %vm1745_vm12 = vcmp.lt.s32.totalorder %v1744_v34, 2  ;;  %vm1746_vm0 = vcmp.eq.s32.totalorder %v1744_v34, 0 }
  0x81   : > { %v9839_v18 = vand.u32 4294901760, %v2739_v60  ;;  %v616_v63 = vadd.s32 1, %v612_v30  ;;  %v684_v48 = vadd.s32 1, %v9239_v15  ;;  %vm509_vm2 = vweird.f32 %v9432_v9 }
  0x82   : > { %13776 = vst [vmem:[#allocation16_spill] sm:$0xff] %v9841_v12  ;;  %v9847_v54 = vmul.f32 %v507_v1, %v492_v33  ;;  %v13585_v49 = vxor.u32 2147483648, %v9841_v12  ;;  %v681_v37 = vand.u32 8388607, %v13588_v23  ;;  %v9889_v1 = vmul.f32 %v9414_v3, %v9874_v57 }
  0x83   : > { %2741 = vmatmul.f32.vlgmr.msra.gmra.mxu0 %v9839_v18  ;;  %v617_v28 = vsel %vm615_vm9, %v616_v63, %v612_v30  ;;  %vm685_vm1 = vcmp.gt.s32.totalorder %v684_v48, 0  ;;  %vm522_vm13 = vcmp.lt.s32.totalorder %v9436_v10, 0  ;;  %vm9948_vm10 = vcmp.le.f32.partialorder %v520_v39, 0.7853982 }
  0x84   : > { %13777 = vst [vmem:[#allocation17_spill] sm:$0xff] %v9847_v54  ;;  %3252 = vmatpush.msra.mxu0 %v9698_v21  ;;  %v13586_v59 = vxor.u32 2147483648, %v9847_v54  ;;  %v1751_v6 = vsel %vm1749_vm11, %v13585_v49, %v9847_v54  ;;  %v618_v4 = vadd.s32 %v617_v28, %v613_v62  ;;  %v686_v33 = vsel %vm685_vm1, %v684_v48, 0 }
  0x85   : > { %v688_v5 = vand.u32 31, %v686_v33  ;;  %v9862_v45 = vshrl.u32 %v686_v33, 5  ;;  %v682_v17 = vor.u32 8388608, %v681_v37  ;;  %13780 = vst [vmem:[#allocation20_spill] sm:$0xff] %v9889_v1 }
  0x86   : > { %v1748_v58 = vsel %vm1746_vm0, %v9841_v12, %v13586_v59  ;;  %v619_v50 = vadd.s32 536870912, %v618_v4 }
  0x87   : > { %v1752_v36 = vsel %vm1745_vm12, %v1748_v58, %v1751_v6  ;;  %v689_v35 = vsub.s32 32, %v688_v5  ;;  %v691_v41 = vshll.u32 %v13589_v38, %v688_v5  ;;  %v694_v11 = vshll.u32 %v13599_v40, %v688_v5 }
  0x88   : > { %v9867_v25 = vsel %vm509_vm2, nan, %v1752_v36  ;;  %v9869_v52 = vshrl.u32 %v619_v50, 30  ;;  %v697_v56 = vshll.u32 %v13597_v42, %v688_v5  ;;  %v700_v34 = vshll.u32 %v13595_v44, %v688_v5 }
  0x89   : > { %13778 = vst [vmem:[#allocation18_spill] sm:$0xff] %v9867_v25  ;;  %v2698_v47 = vsel %vm2693_vm14, %v9867_v25, 0  ;;  %v692_v0 = vshrl.u32 %v13599_v40, %v689_v35  ;;  %v695_v60 = vshrl.u32 %v13597_v42, %v689_v35  ;;  %v698_v31 = vshrl.u32 %v13595_v44, %v689_v35 }
  0x8a   : > { %v9881_v24 = vand.u32 4294901760, %v2698_v47  ;;  %v621_v16 = vshll.u32 %v9869_v52, 30  ;;  %v701_v30 = vshrl.u32 %v13593_v46, %v689_v35  ;;  %v703_v15 = vshll.u32 %v13593_v46, %v688_v5 }
  0x8b   : > { %v693_v48 = vor.u32 %v692_v0, %v691_v41  ;;  %v9897_v28 = vor.u32 %v695_v60, %v694_v11  ;;  %v699_v6 = vor.u32 %v698_v31, %v697_v56  ;;  %v704_v58 = vshrl.u32 %v13591_v55, %v689_v35 }
  0x8c   : > { %v9892_v62 = vsub.f32 %v2698_v47, %v9881_v24  ;;  %2832 = vmatmul.f32.gmra.mxu1 %v9881_v24  ;;  %v9895_v63 = vsub.s32 %v618_v4, %v621_v16  ;;  %v702_v33 = vor.u32 %v701_v30, %v700_v34  ;;  %vm706_vm3 = vcmp.lt.s32.totalorder %v9862_v45, 1 }
  0x8d   : > { %v9907_v4 = vshll.u32 %v682_v17, 8  ;;  %v705_v37 = vor.u32 %v704_v58, %v703_v15  ;;  %vm708_vm5 = vcmp.lt.s32.totalorder %v9862_v45, 3  ;;  %vm709_vm6 = vcmp.lt.s32.totalorder %v9862_v45, 4 }
  0x8e   : > { %2887 = vmatmul.f32.gmra.mxu2 %v9892_v62  ;;  %v9903_v5 = vand.u32 4294901760, %v9892_v62  ;;  %vm623_vm4 = vcmp.lt.s32.totalorder %v9895_v63, 0  ;;  %v624_v50 = vsub.s32 0, %v9895_v63  ;;  %v831_v36 = vand.u32 2139095040, %v9889_v1 }
  0x8f   : > { %vm707_vm7 = vcmp.lt.s32.totalorder %v9862_v45, 2  ;;  %v714_v56 = vsel %vm706_vm3, %v693_v48, %v9897_v28  ;;  %v614_v47 = vadd.s32 %v9834_v27, %v9832_v20  ;;  %v715_v60 = vsel %vm709_vm6, %v702_v33, 920167782 }
  0x90   : > { %2948 = vmatmul.f32.gmra.mxu3 %v9903_v5  ;;  %v2747_v41 = vsub.f32 %v9892_v62, %v9903_v5  ;;  %v625_v11 = vsel %vm623_vm4, %v624_v50, %v9895_v63  ;;  %v718_v34 = vsel %vm706_vm3, %v9897_v28, %v699_v6  ;;  %v716_v17 = vsel %vm708_vm5, %v699_v6, %v715_v60 }
  0x91   : > { %v626_v0 = vclz %v625_v11  ;;  %v719_v31 = vsel %vm709_vm6, %v705_v37, 1326507024  ;;  %v723_v30 = vand.u32 65535, %v9907_v4  ;;  %v717_v20 = vsel %vm707_vm7, %v714_v56, %v716_v17 }
  0x92   : > { %v9927_v16 = vand.u32 4294901760, %v2747_v41  ;;  %v720_v27 = vsel %vm708_vm5, %v702_v33, %v719_v31  ;;  %v832_v58 = vshrl.u32 %v831_v36, 23  ;;  %v644_v50 = vsub.s32 4, %v9869_v52 }
  0x93   : > { %v9237_v15 = vadd.s32 4294967294, %v626_v0  ;;  %v721_v41 = vsel %vm707_vm7, %v718_v34, %v720_v27  ;;  %v724_v11 = vshrl.u32 %v9907_v4, 16  ;;  %v748_v37 = vshrl.u32 %v717_v20, 16 }
  0x94   : > { %2749 = vmatmul.f32.gmra.mxu0 %v9927_v16  ;;  %v690_v0 = vshrl.u32 %v13589_v38, %v689_v35  ;;  %v725_v60 = vand.u32 65535, %v721_v41  ;;  %v726_v49 = vshrl.u32 %v721_v41, 16  ;;  %v747_v33 = vand.u32 65535, %v717_v20 }
  0x95   : > { %vm9238_vm8 = vcmp.lt.s32.totalorder %v9237_v15, 0  ;;  %v9242_v59 = vadd.s32 4294967169, %v832_v58  ;;  %v645_v35 = vsel %vm522_vm13, %v644_v50, %v9869_v52  ;;  %v750_v29 = vmul.u32 %v748_v37, %v723_v30 }
  0x96   : > { %v629_v56 = vsel %vm9238_vm8, 0, %v9237_v15  ;;  %v727_v27 = vmul.u32 %v725_v60, %v723_v30  ;;  %v728_v41 = vmul.u32 %v726_v49, %v723_v30  ;;  %v730_v58 = vmul.u32 %v726_v49, %v724_v11 }
  0x97   : > { %v630_v36 = vsub.s32 32, %v629_v56  ;;  %v631_v17 = vshll.u32 %v9895_v63, %v629_v56  ;;  %v634_v31 = vsub.s32 4294967266, %v629_v56  ;;  %v710_v63 = vsel %vm706_vm3, %v690_v0, %v693_v48 }
  0x98   : > { %v729_v56 = vmul.u32 %v725_v60, %v724_v11  ;;  %v731_v23 = vshll.u32 %v728_v41, 16  ;;  %v749_v38 = vmul.u32 %v747_v33, %v723_v30  ;;  %v751_v39 = vmul.u32 %v747_v33, %v724_v11 }
  0x99   : > { %v632_v15 = vshrl.u32 %v614_v47, %v630_v36  ;;  %v635_v20 = vadd.s32 127, %v634_v31  ;;  %v711_v44 = vsel %vm709_vm6, %v699_v6, 2102212464  ;;  %v752_v50 = vmul.u32 %v748_v37, %v724_v11 }
  0x9a   : > { %v733_v42 = vshll.u32 %v729_v56, 16  ;;  %vm735_vm15 = vc.u32 %v727_v27, %v731_v23  ;;  %v737_v52 = vadd.s32 %v731_v23, %v727_v27  ;;  %v753_v40 = vshll.u32 %v750_v29, 16 }
  0x9b   : > { %v633_v55 = vor.u32 %v632_v15, %v631_v17  ;;  %v636_v46 = vshll.u32 %v635_v20, 23  ;;  %v732_v31 = vshrl.u32 %v728_v41, 16  ;;  %v736_v48 = vsel %vm735_vm15, 1, %v13602_v19 }
  0x9c   : > { %v738_v0 = vadd.s32 %v736_v48, %v730_v58  ;;  %vm739_vm9 = vc.u32 %v737_v52, %v733_v42  ;;  %v755_v49 = vshll.u32 %v751_v39, 16  ;;  %vm757_vm11 = vc.u32 %v749_v38, %v753_v40 }
  0x9d   : > { %v637_v47 = vor.u32 4788187, %v636_v46  ;;  %v640_v36 = vcvt.s32.f32 %v633_v55  ;;  %v712_v60 = vsel %vm708_vm5, %v9897_v28, %v711_v44  ;;  %v740_v6 = vsel %vm739_vm9, 1, %v13602_v19 }
  0x9e   : > { %v758_v23 = vsel %vm757_vm11, 1, %v13602_v19  ;;  %v734_v11 = vshrl.u32 %v729_v56, 16  ;;  %v742_v37 = vadd.s32 %v740_v6, %v738_v0  ;;  %v759_v46 = vadd.s32 %v753_v40, %v749_v38 }
  0x9f   : > { %v638_v30 = vand.u32 2147483647, %v637_v47  ;;  %v760_v55 = vadd.s32 %v758_v23, %v752_v50  ;;  %v9967_v17 = vsel %vm9948_vm10, 0, %v645_v35  ;;  %v13601_v42 = vand.u32 2147483647, %v9889_v1 }
  0xa0   : > { %13783 = vst [vmem:[#allocation21_spill] sm:$0xff] %v9967_v17  ;;  %v838_v27 = vadd.s32 1, %v9242_v59  ;;  %v713_v41 = vsel %vm707_vm7, %v710_v63, %v712_v60  ;;  %v743_v44 = vadd.s32 %v742_v37, %v732_v31  ;;  %v754_v28 = vshrl.u32 %v750_v29, 16 }
  0xa1   : > { %v641_v33 = vmul.f32 %v640_v36, %v638_v30  ;;  %vm761_vm12 = vc.u32 %v759_v46, %v755_v49  ;;  %v756_v20 = vshrl.u32 %v751_v39, 16  ;;  %v9975_v40 = vadd.s32 %v759_v46, %v755_v49 }
  0xa2   : > { %v762_v56 = vsel %vm761_vm12, 1, %v13602_v19  ;;  %vm839_vm0 = vcmp.gt.s32.totalorder %v838_v27, 0  ;;  %v9973_v38 = vadd.s32 %v743_v44, %v734_v11  ;;  %v835_v63 = vand.u32 8388607, %v13601_v42 }
  0xa3   : > { %v642_v15 = vxor.u32 2147483648, %v641_v33  ;;  %v764_v35 = vadd.s32 %v762_v56, %v760_v55  ;;  %v840_v58 = vsel %vm839_vm0, %v838_v27, 0  ;;  %v1898_v50 = vadd.s32 3, %v9967_v17 }
  0xa4   : > { %v842_v52 = vand.u32 31, %v840_v58  ;;  %v767_v47 = vmul.u32 %v9907_v4, %v713_v41  ;;  %vm769_vm1 = vc.u32 %v9973_v38, %v9975_v40  ;;  %v13784_v48 = vmov 2475754826  }
  0xa5   : > { %v643_v59 = vsel %vm522_vm13, %v642_v15, %v641_v33  ;;  %v765_v45 = vadd.s32 %v764_v35, %v754_v28  ;;  %v13785_v49 = vmov 2131351028   ;;  %v13786_v6 = vmov 2102212464  }
  0xa6   : > { %v646_v29 = vsel %vm9948_vm10, %v9436_v10, %v643_v59  ;;  %v843_v36 = vsub.s32 32, %v842_v52  ;;  %v848_v0 = vshll.u32 %v13784_v48, %v842_v52  ;;  %v851_v30 = vshll.u32 %v13785_v49, %v842_v52 }
  0xa7   : > { %v648_v39 = vmul.f32 %v646_v29, %v646_v29  ;;  %v766_v31 = vadd.s32 %v765_v45, %v756_v20  ;;  %v854_v23 = vshll.u32 %v13786_v6, %v842_v52  ;;  %v13787_v11 = vmov 920167782  }
  0xa8   : > { %v857_v37 = vshll.u32 %v13787_v11, %v842_v52  ;;  %v849_v55 = vshrl.u32 %v13785_v49, %v843_v36  ;;  %v852_v4 = vshrl.u32 %v13786_v6, %v843_v36  ;;  %v855_v33 = vshrl.u32 %v13787_v11, %v843_v36 }
  0xa9   : > { %v649_v34 = vmul.f32 -0.001358992, %v648_v39  ;;  %v656_v60 = vmul.f32 -0.00019511016, %v648_v39  ;;  %v770_v46 = vadd.s32 1, %v766_v31  ;;  %v9995_v44 = vshrl.u32 %v840_v58, 5 }
  0xaa   : > { %v13788_v28 = vmov 1326507024   ;;  %v1899_v20 = vand.u32 3, %v1898_v50  ;;  %v836_v35 = vor.u32 8388608, %v835_v63  ;;  %v13789_v59 = vmov 683565275  }
  0xab   : > { %v650_v27 = vadd.f32 0.041655596, %v649_v34  ;;  %v657_v41 = vadd.f32 0.008332121, %v656_v60  ;;  %v858_v15 = vshrl.u32 %v13788_v28, %v843_v36  ;;  %v771_v56 = vsel %vm769_vm1, %v770_v46, %v766_v31 }
  0xac   : > { %v845_v45 = vshll.u32 %v13789_v59, %v842_v52  ;;  %v772_v57 = vadd.s32 %v771_v56, %v767_v47  ;;  %v846_v13 = vshrl.u32 %v13784_v48, %v843_v36  ;;  %v10003_v8 = vor.u32 %v849_v55, %v848_v0  ;;  %v10014_v0 = vld [vmem:[%s9409_s27 + $0x28] sm:$0xff] }
  0xad   : > { %v651_v42 = vmul.f32 %v650_v27, %v648_v39  ;;  %v658_v19 = vmul.f32 %v657_v41, %v648_v39  ;;  %v853_v34 = vor.u32 %v852_v4, %v851_v30  ;;  %v856_v58 = vor.u32 %v855_v33, %v854_v23  ;;  %13790 = vst [vmem:[#allocation22_spill] sm:$0xff] %v10014_v0 }
  0xae   : > { %v859_v60 = vor.u32 %v858_v15, %v857_v37  ;;  %v773_v2 = vadd.s32 536870912, %v772_v57  ;;  %vm863_vm3 = vcmp.lt.s32.totalorder %v9995_v44, 4  ;;  %vm663_vm4 = vweird.f32 %v9436_v10 }
  0xaf   : > { %v652_v7 = vadd.f32 -0.4999988, %v651_v42  ;;  %v659_v50 = vadd.f32 -0.16666654, %v658_v19  ;;  %vm1900_vm5 = vcmp.lt.s32.totalorder %v1899_v20, 2  ;;  %vm1901_vm6 = vcmp.eq.s32.totalorder %v1899_v20, 0 }
  0xb0   : > { %vm860_vm7 = vcmp.lt.s32.totalorder %v9995_v44, 1  ;;  %v10008_v52 = vshll.u32 %v836_v35, 8  ;;  %v10010_v31 = vshrl.u32 %v773_v2, 30  ;;  %vm862_vm8 = vcmp.lt.s32.totalorder %v9995_v44, 3 }
  0xb1   : > { %v653_v63 = vmul.f32 %v652_v7, %v648_v39  ;;  %v660_v47 = vmul.f32 %v659_v50, %v648_v39  ;;  %v847_v19 = vor.u32 %v846_v13, %v845_v45  ;;  %vm861_vm13 = vcmp.lt.s32.totalorder %v9995_v44, 2 }
  0xb2   : > { %v869_v42 = vsel %vm863_vm3, %v856_v58, 920167782  ;;  %v873_v30 = vsel %vm863_vm3, %v859_v60, 1326507024  ;;  %v775_v7 = vshll.u32 %v10010_v31, 30  ;;  %v872_v2 = vsel %vm860_vm7, %v10003_v8, %v853_v34 }
  0xb3   : > { %v10021_v23 = vadd.f32 1.0, %v653_v63  ;;  %v661_v37 = vadd.f32 1.0, %v660_v47  ;;  %vm1904_vm10 = vcmp.eq.s32.totalorder %v1899_v20, 2  ;;  %v874_v13 = vsel %vm862_vm8, %v856_v58, %v873_v30 }
  0xb4   : > { %v877_v39 = vand.u32 65535, %v10008_v52  ;;  %v10032_v46 = vmul.f32 %v9414_v3, %v10014_v0  ;;  %v10037_v33 = vsub.s32 %v772_v57, %v775_v7  ;;  %v878_v27 = vshrl.u32 %v10008_v52, 16 }
  0xb5   : > { %13791 = vst [vmem:[#allocation23_spill] sm:$0xff] %v10021_v23  ;;  %v10034_v55 = vmul.f32 %v661_v37, %v646_v29  ;;  %v13609_v4 = vxor.u32 2147483648, %v10021_v23  ;;  %v844_v41 = vshrl.u32 %v13789_v59, %v843_v36  ;;  %v868_v15 = vsel %vm860_vm7, %v847_v19, %v10003_v8 }
  0xb6   : > { %13792 = vst [vmem:[#allocation24_spill] sm:$0xff] %v10032_v46  ;;  %v870_v56 = vsel %vm862_vm8, %v853_v34, %v869_v42  ;;  %v875_v35 = vsel %vm861_vm13, %v872_v2, %v874_v13  ;;  %vm777_vm15 = vcmp.lt.s32.totalorder %v10037_v33, 0  ;;  %v778_v36 = vsub.s32 0, %v10037_v33 }
  0xb7   : > { %13793 = vst [vmem:[#allocation25_spill] sm:$0xff] %v10034_v55  ;;  %v13610_v29 = vxor.u32 2147483648, %v10034_v55  ;;  %v1906_v57 = vsel %vm1904_vm10, %v13609_v4, %v10034_v55  ;;  %v768_v45 = vadd.s32 %v9975_v40, %v9973_v38  ;;  %v879_v58 = vand.u32 65535, %v875_v35 }
  0xb8   : > { %v880_v60 = vshrl.u32 %v875_v35, 16  ;;  %v779_v47 = vsel %vm777_vm15, %v778_v36, %v10037_v33  ;;  %v871_v42 = vsel %vm861_vm13, %v868_v15, %v870_v56  ;;  %v985_v30 = vand.u32 2139095040, %v10032_v46 }
  0xb9   : > { %v1903_v63 = vsel %vm1901_vm6, %v10021_v23, %v13610_v29  ;;  %v780_v7 = vclz %v779_v47  ;;  %v881_v38 = vmul.u32 %v879_v58, %v877_v39  ;;  %v864_v13 = vsel %vm860_vm7, %v844_v41, %v847_v19 }
  0xba   : > { %v1907_v37 = vsel %vm1900_vm5, %v1903_v63, %v1906_v57  ;;  %v882_v40 = vmul.u32 %v880_v60, %v877_v39  ;;  %v865_v35 = vsel %vm863_vm3, %v853_v34, 2102212464  ;;  %v883_v36 = vmul.u32 %v879_v58, %v878_v27 }
  0xbb   : > { %v10068_v2 = vsel %vm663_vm4, nan, %v1907_v37  ;;  %v9240_v56 = vadd.s32 4294967294, %v780_v7  ;;  %v884_v20 = vmul.u32 %v880_v60, %v878_v27  ;;  %v901_v47 = vand.u32 65535, %v871_v42 }
  0xbc   : > { %13794 = vst [vmem:[#allocation26_spill] sm:$0xff] %v10068_v2  ;;  %v2701_v15 = vsel %vm2693_vm14, %v10068_v2, 0  ;;  %v885_v57 = vshll.u32 %v882_v40, 16  ;;  %v902_v4 = vshrl.u32 %v871_v42, 16  ;;  %v986_v29 = vshrl.u32 %v985_v30, 23 }
  0xbd   : > { %v10076_v63 = vand.u32 4294901760, %v2701_v15  ;;  %vm676_vm9 = vcmp.lt.s32.totalorder %v9813_v43, 0  ;;  %vm9241_vm11 = vcmp.lt.s32.totalorder %v9240_v56, 0  ;;  %v887_v37 = vshll.u32 %v883_v36, 16 }
  0xbe   : > { %vm889_vm12 = vc.u32 %v881_v38, %v885_v57  ;;  %v891_v19 = vadd.s32 %v885_v57, %v881_v38  ;;  %v783_v41 = vsel %vm9241_vm11, 0, %v9240_v56  ;;  %v798_v58 = vsub.s32 4, %v10010_v31 }
  0xbf   : > { %v10080_v34 = vsub.f32 %v2701_v15, %v10076_v63  ;;  %2836 = vmatmul.f32.gmra.mxu1 %v10076_v63  ;;  %v13796_v60 = vmov 0   ;;  %v784_v50 = vsub.s32 32, %v783_v41  ;;  %v785_v42 = vshll.u32 %v10037_v33, %v783_v41 }
  0xc0   : > { %v890_v7 = vsel %vm889_vm12, 1, %v13796_v60  ;;  %v788_v30 = vsub.s32 4294967266, %v783_v41  ;;  %v13797_v38 = vand.u32 2147483647, %v9813_v43  ;;  %v886_v56 = vshrl.u32 %v882_v40, 16 }
  0xc1   : > { %13795 = vst [vmem:[#allocation27_spill] sm:$0xff] %v10080_v34  ;;  %v892_v0 = vadd.s32 %v890_v7, %v884_v20  ;;  %2892 = vmatmul.f32.gmra.mxu2 %v10080_v34  ;;  %v10088_v2 = vand.u32 4294901760, %v10080_v34  ;;  %v903_v57 = vmul.u32 %v901_v47, %v877_v39  ;;  %v9245_v25 = vadd.s32 4294967169, %v986_v29 }
  0xc2   : > { %vm10092_vm0 = vcmp.le.f32.partialorder %v13797_v38, 0.7853982  ;;  %v786_v53 = vshrl.u32 %v768_v45, %v784_v50  ;;  %v789_v10 = vadd.s32 127, %v788_v30  ;;  %vm893_vm1 = vc.u32 %v891_v19, %v887_v37 }
  0xc3   : > { %v904_v33 = vmul.u32 %v902_v4, %v877_v39  ;;  %2954 = vmatmul.f32.gmra.mxu3 %v10088_v2  ;;  %v2755_v20 = vsub.f32 %v10080_v34, %v10088_v2  ;;  %v894_v41 = vsel %vm893_vm1, 1, %v13796_v60  ;;  %v905_v7 = vmul.u32 %v901_v47, %v878_v27 }
  0xc4   : > { %v906_v23 = vmul.u32 %v902_v4, %v878_v27  ;;  %v787_v38 = vor.u32 %v786_v53, %v785_v42  ;;  %v790_v55 = vshll.u32 %v789_v10, 23  ;;  %v896_v9 = vadd.s32 %v894_v41, %v892_v0 }
  0xc5   : > { %v907_v17 = vshll.u32 %v904_v33, 16  ;;  %v10100_v40 = vand.u32 4294901760, %v2755_v20  ;;  %v866_v29 = vsel %vm862_vm8, %v10003_v8, %v865_v35  ;;  %v888_v39 = vshrl.u32 %v883_v36, 16 }
  0xc6   : > { %v909_v45 = vshll.u32 %v905_v7, 16  ;;  %v791_v50 = vor.u32 4788187, %v790_v55  ;;  %v794_v37 = vcvt.s32.f32 %v787_v38  ;;  %v897_v19 = vadd.s32 %v896_v9, %v886_v56 }
  0xc7   : > { %vm911_vm3 = vc.u32 %v903_v57, %v907_v17  ;;  %2757 = vmatmul.f32.gmra.mxu0 %v10100_v40  ;;  %v799_v10 = vsel %vm676_vm9, %v798_v58, %v10010_v31  ;;  %v913_v0 = vadd.s32 %v907_v17, %v903_v57  ;;  %v992_v4 = vadd.s32 1, %v9245_v25 }
  0xc8   : > { %v912_v53 = vsel %vm911_vm3, 1, %v13796_v60  ;;  %v792_v27 = vand.u32 2147483647, %v791_v50  ;;  %v867_v8 = vsel %vm861_vm13, %v864_v13, %v866_v29  ;;  %v908_v35 = vshrl.u32 %v904_v33, 16 }
  0xc9   : > { %v914_v36 = vadd.s32 %v912_v53, %v906_v23  ;;  %v10112_v55 = vadd.s32 %v897_v19, %v888_v39  ;;  %vm915_vm5 = vc.u32 %v913_v0, %v909_v45  ;;  %v10114_v9 = vadd.s32 %v913_v0, %v909_v45 }
  0xca   : > { %vm993_vm6 = vcmp.gt.s32.totalorder %v992_v4, 0  ;;  %v795_v47 = vmul.f32 %v794_v37, %v792_v27  ;;  %v10118_v31 = vsel %vm10092_vm0, 0, %v799_v10  ;;  %v916_v17 = vsel %vm915_vm5, 1, %v13796_v60 }
  0xcb   : > { %13800 = vst [vmem:[#allocation28_spill] sm:$0xff] %v10118_v31  ;;  %v994_v25 = vsel %vm993_vm6, %v992_v4, 0  ;;  %v910_v58 = vshrl.u32 %v905_v7, 16  ;;  %v918_v42 = vadd.s32 %v916_v17, %v914_v36  ;;  %v921_v13 = vmul.u32 %v10008_v52, %v867_v8 }
  0xcc   : > { %v796_v44 = vxor.u32 2147483648, %v795_v47  ;;  %v10122_v23 = vshrl.u32 %v994_v25, 5  ;;  %v996_v30 = vand.u32 31, %v994_v25  ;;  %v2053_v56 = vadd.s32 3, %v10118_v31 }
  0xcd   : > { %v919_v57 = vadd.s32 %v918_v42, %v908_v35  ;;  %vm923_vm7 = vc.u32 %v10112_v55, %v10114_v9  ;;  %v13801_v33 = vand.u32 2147483647, %v10032_v46  ;;  %vm830_vm3 = vcmp.lt.s32.totalorder %v9889_v1, 0 }
  0xce   : > { %v797_v41 = vsel %vm676_vm9, %v796_v44, %v795_v47  ;;  %v997_v7 = vsub.s32 32, %v996_v30  ;;  %v999_v38 = vshll.u32 %v13789_v59, %v996_v30  ;;  %v1002_v52 = vshll.u32 %v13784_v48, %v996_v30 }
  0xcf   : > { %v989_v20 = vand.u32 8388607, %v13801_v33  ;;  %v800_v29 = vsel %vm10092_vm0, %v9813_v43, %v797_v41  ;;  %v920_v39 = vadd.s32 %v919_v57, %v910_v58  ;;  %v1005_v45 = vshll.u32 %v13785_v49, %v996_v30 }
  0xd0   : > { %v1008_v50 = vshll.u32 %v13786_v6, %v996_v30  ;;  %v802_v37 = vmul.f32 %v800_v29, %v800_v29  ;;  %v1000_v19 = vshrl.u32 %v13784_v48, %v997_v7  ;;  %v1003_v10 = vshrl.u32 %v13785_v49, %v997_v7 }
  0xd1   : > { %vm1014_vm8 = vcmp.lt.s32.totalorder %v10122_v23, 1  ;;  %v924_v53 = vadd.s32 1, %v920_v39  ;;  %v1006_v0 = vshrl.u32 %v13786_v6, %v997_v7  ;;  %v1009_v4 = vshrl.u32 %v13787_v11, %v997_v7 }
  0xd2   : > { %v1011_v15 = vshll.u32 %v13787_v11, %v996_v30  ;;  %v803_v27 = vmul.f32 -0.001358992, %v802_v37  ;;  %v810_v8 = vmul.f32 -0.00019511016, %v802_v37  ;;  %v1001_v35 = vor.u32 %v1000_v19, %v999_v38 }
  0xd3   : > { %v10144_v36 = vor.u32 %v1003_v10, %v1002_v52  ;;  %v925_v47 = vsel %vm923_vm7, %v924_v53, %v920_v39  ;;  %v10149_v17 = vor.u32 %v1006_v0, %v1005_v45  ;;  %v1010_v25 = vor.u32 %v1009_v4, %v1008_v50  ;;  %v10168_v53 = vld [vmem:[%s9409_s27 + $0x30] sm:$0xff] }
  0xd4   : > { %v1012_v58 = vshrl.u32 %v13788_v28, %v997_v7  ;;  %v804_v42 = vadd.f32 0.041655596, %v803_v27  ;;  %v811_v44 = vadd.f32 0.008332121, %v810_v8  ;;  %v926_v57 = vadd.s32 %v925_v47, %v921_v13  ;;  %13802 = vst [vmem:[#allocation29_spill] sm:$0xff] %v10168_v53 }
  0xd5   : > { %vm1017_vm13 = vcmp.lt.s32.totalorder %v10122_v23, 4  ;;  %v2054_v30 = vand.u32 3, %v2053_v56  ;;  %v990_v33 = vor.u32 8388608, %v989_v20  ;;  %vm1016_vm10 = vcmp.lt.s32.totalorder %v10122_v23, 3 }
  0xd6   : > { %v1013_v41 = vor.u32 %v1012_v58, %v1011_v15  ;;  %v805_v38 = vmul.f32 %v804_v42, %v802_v37  ;;  %v812_v52 = vmul.f32 %v811_v44, %v802_v37  ;;  %v927_v19 = vadd.s32 536870912, %v926_v57 }
  0xd7   : > { %vm1015_vm15 = vcmp.lt.s32.totalorder %v10122_v23, 2  ;;  %v1022_v39 = vsel %vm1014_vm8, %v1001_v35, %v10144_v36  ;;  %v1023_v13 = vsel %vm1017_vm13, %v1010_v25, 920167782  ;;  %vm817_vm9 = vweird.f32 %v9813_v43 }
  0xd8   : > { %v1027_v45 = vsel %vm1017_vm13, %v1013_v41, 1326507024  ;;  %v806_v56 = vadd.f32 -0.4999988, %v805_v38  ;;  %v813_v20 = vadd.f32 -0.16666654, %v812_v52  ;;  %v1024_v10 = vsel %vm1016_vm10, %v10149_v17, %v1023_v13 }
  0xd9   : > { %v10162_v50 = vshrl.u32 %v927_v19, 30  ;;  %vm2055_vm11 = vcmp.lt.s32.totalorder %v2054_v30, 2  ;;  %v1026_v0 = vsel %vm1014_vm8, %v10144_v36, %v10149_v17  ;;  %v1028_v4 = vsel %vm1016_vm10, %v1010_v25, %v1027_v45 }
  0xda   : > { %v10177_v15 = vshll.u32 %v990_v33, 8  ;;  %v807_v27 = vmul.f32 %v806_v56, %v802_v37  ;;  %v814_v8 = vmul.f32 %v813_v20, %v802_v37  ;;  %v1025_v58 = vsel %vm1015_vm15, %v1022_v39, %v1024_v10 }
  0xdb   : > { %v929_v47 = vshll.u32 %v10162_v50, 30  ;;  %vm2056_vm12 = vcmp.eq.s32.totalorder %v2054_v30, 0  ;;  %vm2059_vm0 = vcmp.eq.s32.totalorder %v2054_v30, 2  ;;  %v10185_v44 = vmul.f32 %v9414_v3, %v10168_v53 }
  0xdc   : > { %v1032_v42 = vshrl.u32 %v10177_v15, 16  ;;  %v10187_v41 = vadd.f32 1.0, %v807_v27  ;;  %v815_v25 = vadd.f32 1.0, %v814_v8  ;;  %v1029_v37 = vsel %vm1015_vm15, %v1026_v0, %v1028_v4 }
  0xdd   : > { %v10189_v33 = vsub.s32 %v926_v57, %v929_v47  ;;  %v998_v38 = vshrl.u32 %v13789_v59, %v997_v7  ;;  %v1031_v52 = vand.u32 65535, %v10177_v15  ;;  %v1033_v19 = vand.u32 65535, %v1029_v37 }
  0xde   : > { %13803 = vst [vmem:[#allocation30_spill] sm:$0xff] %v10187_v41  ;;  %v1056_v39 = vshrl.u32 %v1025_v58, 16  ;;  %v10195_v13 = vmul.f32 %v815_v25, %v800_v29  ;;  %v13625_v45 = vxor.u32 2147483648, %v10187_v41  ;;  %v922_v57 = vadd.s32 %v10114_v9, %v10112_v55 }
  0xdf   : > { %vm931_vm1 = vcmp.lt.s32.totalorder %v10189_v33, 0  ;;  %v932_v56 = vsub.s32 0, %v10189_v33  ;;  %v1034_v20 = vshrl.u32 %v1029_v37, 16  ;;  %v1055_v10 = vand.u32 65535, %v1025_v58 }
  0xe0   : > { %13804 = vst [vmem:[#allocation31_spill] sm:$0xff] %v10195_v13  ;;  %v1139_v7 = vand.u32 2139095040, %v10185_v44  ;;  %v13627_v0 = vxor.u32 2147483648, %v10195_v13  ;;  %v2061_v29 = vsel %vm2059_vm0, %v13625_v45, %v10195_v13  ;;  %v10210_v27 = vmul.u32 %v1033_v19, %v1032_v42 }
  0xe1   : > { %v933_v4 = vsel %vm931_vm1, %v932_v56, %v10189_v33  ;;  %v10214_v47 = vsel %vm1014_vm8, %v998_v38, %v1001_v35  ;;  %v1035_v55 = vmul.u32 %v1033_v19, %v1031_v52  ;;  %v1036_v9 = vmul.u32 %v1034_v20, %v1031_v52 }
  0xe2   : > { %v934_v8 = vclz %v933_v4  ;;  %v2058_v58 = vsel %vm2056_vm12, %v10187_v41, %v13627_v0  ;;  %v952_v25 = vsub.s32 4, %v10162_v50  ;;  %v1019_v37 = vsel %vm1017_vm13, %v10149_v17, 2102212464 }
  0xe3   : > { %v10224_v56 = vmul.u32 %v1056_v39, %v1031_v52  ;;  %v2062_v4 = vsel %vm2055_vm11, %v2058_v58, %v2061_v29  ;;  %v1039_v35 = vshll.u32 %v1036_v9, 16  ;;  %v1140_v38 = vshrl.u32 %v1139_v7, 23 }
  0xe4   : > { %v9243_v45 = vadd.s32 4294967294, %v934_v8  ;;  %v10229_v19 = vsel %vm817_vm9, nan, %v2062_v4  ;;  %v1038_v53 = vmul.u32 %v1034_v20, %v1032_v42  ;;  %v1041_v0 = vshll.u32 %v10210_v27, 16 }
  0xe5   : > { %13805 = vst [vmem:[#allocation32_spill] sm:$0xff] %v10229_v19  ;;  %v1057_v41 = vmul.u32 %v1055_v10, %v1031_v52  ;;  %v2704_v13 = vsel %vm2693_vm14, %v10229_v19, 0  ;;  %vm1043_vm6 = vc.u32 %v1035_v55, %v1039_v35  ;;  %v1059_v17 = vmul.u32 %v1055_v10, %v1032_v42 }
  0xe6   : > { %vm9244_vm5 = vcmp.lt.s32.totalorder %v9243_v45, 0  ;;  %v10234_v31 = vand.u32 4294901760, %v2704_v13  ;;  %v13806_v30 = vand.u32 2147483647, %v9889_v1  ;;  %v1044_v20 = vsel %vm1043_vm6, 1, %v13796_v60 }
  0xe7   : > { %v937_v29 = vsel %vm9244_vm5, 0, %v9243_v45  ;;  %v1061_v8 = vshll.u32 %v10224_v56, 16  ;;  %v1045_v19 = vadd.s32 %v1039_v35, %v1035_v55  ;;  %v1040_v43 = vshrl.u32 %v1036_v9, 16 }
  0xe8   : > { %vm10238_vm7 = vcmp.le.f32.partialorder %v13806_v30, 0.7853982  ;;  %v938_v52 = vsub.s32 32, %v937_v29  ;;  %v939_v58 = vshll.u32 %v10189_v33, %v937_v29  ;;  %v942_v4 = vsub.s32 4294967266, %v937_v29  ;;  %2840 = vmatmul.f32.gmra.mxu1 %v10234_v31 }
  0xe9   : > { %v10246_v10 = vsub.f32 %v2704_v13, %v10234_v31  ;;  %v953_v30 = vsel %vm830_vm3, %v952_v25, %v10162_v50  ;;  %v1060_v45 = vmul.u32 %v1056_v39, %v1032_v42  ;;  %v1046_v22 = vadd.s32 %v1044_v20, %v1038_v53 }
  0xea   : > { %v940_v12 = vshrl.u32 %v922_v57, %v938_v52  ;;  %v943_v54 = vadd.s32 127, %v942_v4  ;;  %vm1047_vm8 = vc.u32 %v1045_v19, %v1041_v0  ;;  %v1042_v13 = vshrl.u32 %v10210_v27, 16  ;;  %v2690_v4 = vld [vmem:[#allocation3 + $0x88] sm:$0xff] }
  0xeb   : > { %2897 = vmatmul.f32.gmra.mxu2 %v10246_v10  ;;  %v10254_v33 = vand.u32 4294901760, %v10246_v10  ;;  %v1048_v55 = vsel %vm1047_vm8, 1, %v13796_v60  ;;  %v1063_v35 = vshll.u32 %v1059_v17, 16  ;;  %vm1065_vm13 = vc.u32 %v1057_v41, %v1061_v8 }
  0xec   : > { %v941_v29 = vor.u32 %v940_v12, %v939_v58  ;;  %v944_v26 = vshll.u32 %v943_v54, 23  ;;  %v1050_v34 = vadd.s32 %v1048_v55, %v1046_v22  ;;  %v1066_v53 = vsel %vm1065_vm13, 1, %v13796_v60 }
  0xed   : > { %2960 = vmatmul.f32.gmra.mxu3 %v10254_v33  ;;  %v2763_v50 = vsub.f32 %v10246_v10, %v10254_v33  ;;  %v1067_v42 = vadd.s32 %v1061_v8, %v1057_v41  ;;  %v9248_v39 = vadd.s32 4294967169, %v1140_v38  ;;  %v1068_v27 = vadd.s32 %v1066_v53, %v1060_v45 }
  0xee   : > { %v945_v57 = vor.u32 4788187, %v944_v26  ;;  %v948_v0 = vcvt.s32.f32 %v941_v29  ;;  %v1051_v9 = vadd.s32 %v1050_v34, %v1040_v43  ;;  %v1020_v22 = vsel %vm1016_vm10, %v10144_v36, %v1019_v37 }
  0xef   : > { %v10262_v25 = vand.u32 4294901760, %v2763_v50  ;;  %v1062_v12 = vshrl.u32 %v10224_v56, 16  ;;  %vm1069_vm11 = vc.u32 %v1067_v42, %v1063_v35  ;;  %v10270_v19 = vsel %vm10238_vm7, 0, %v953_v30 }
  0xf0   : > { %v946_v54 = vand.u32 2147483647, %v945_v57  ;;  %v1070_v41 = vsel %vm1069_vm11, 1, %v13796_v60  ;;  %v1146_v26 = vadd.s32 1, %v9248_v39  ;;  %v1064_v43 = vshrl.u32 %v1059_v17, 16 }
  0xf1   : > { %2765 = vmatmul.f32.gmra.mxu0 %v10262_v25  ;;  %v1072_v34 = vadd.s32 %v1070_v41, %v1068_v27  ;;  %v10274_v20 = vadd.s32 %v1051_v9, %v1042_v13  ;;  %v10276_v8 = vadd.s32 %v1067_v42, %v1063_v35  ;;  %v2208_v36 = vadd.s32 3, %v10270_v19 }
  0xf2   : > { %v949_v38 = vmul.f32 %v948_v0, %v946_v54  ;;  %vm1147_vm10 = vcmp.gt.s32.totalorder %v1146_v26, 0  ;;  %v1021_v37 = vsel %vm1015_vm15, %v10214_v47, %v1020_v22  ;;  %v13645_v30 = vand.u32 2147483647, %v10185_v44 }
  0xf3   : > { %v1073_v56 = vadd.s32 %v1072_v34, %v1062_v12  ;;  %v1148_v52 = vsel %vm1147_vm10, %v1146_v26, 0  ;;  %v10283_v45 = vand.u32 4294901760, %v2690_v4  ;;  %v1075_v35 = vmul.u32 %v10177_v15, %v1021_v37 }
  0xf4   : > { %v950_v58 = vxor.u32 2147483648, %v949_v38  ;;  %v1150_v17 = vand.u32 31, %v1148_v52  ;;  %vm1077_vm12 = vc.u32 %v10274_v20, %v10276_v8  ;;  %v10297_v29 = vand.u32 3, %v2208_v36 }
  0xf5   : > { %v1074_v13 = vadd.s32 %v1073_v56, %v1064_v43  ;;  %3111 = vmatpush.msrb.mxu2 %v10283_v45  ;;  %3314 = vmatpush.msra.mxu1 %v10283_v45  ;;  %v3198_v53 = vsub.f32 %v2690_v4, %v10283_v45  ;;  %v1143_v42 = vand.u32 8388607, %v13645_v30  ;;  %v10306_v39 = vshrl.u32 %v1148_v52, 5 }
  0xf6   : > { %v951_v55 = vsel %vm830_vm3, %v950_v58, %v949_v38  ;;  %v10290_v23 = vsub.s32 32, %v1150_v17  ;;  %v13809_v7 = vand.u32 4294901760, %v9698_v21  ;;  %v1153_v0 = vshll.u32 %v13789_v59, %v1150_v17 }
  0xf7   : > { %v10295_v47 = vsel %vm10238_vm7, %v9889_v1, %v951_v55  ;;  %v1078_v50 = vadd.s32 1, %v1074_v13  ;;  %v1162_v9 = vshll.u32 %v13786_v6, %v1150_v17  ;;  %v3199_v54 = vand.u32 4294901760, %v3198_v53  ;;  %3255 = vmatpush.msra.mxu0 %v3198_v53 }
  0xf8   : > { %v956_v15 = vmul.f32 %v10295_v47, %v10295_v47  ;;  %3381 = vmatpush.msra.mxu2 %v13809_v7  ;;  %v1163_v27 = vshrl.u32 %v13787_v11, %v10290_v23  ;;  %v1154_v26 = vshrl.u32 %v13784_v48, %v10290_v23  ;;  %v1156_v43 = vshll.u32 %v13784_v48, %v1150_v17 }
  0xf9   : > { %v1079_v57 = vsel %vm1077_vm12, %v1078_v50, %v1074_v13  ;;  %v1157_v21 = vshrl.u32 %v13785_v49, %v10290_v23  ;;  %v1159_v34 = vshll.u32 %v13785_v49, %v1150_v17  ;;  %v3200_v37 = vsub.f32 %v3198_v53, %v3199_v54 }
  0xfa   : > { %v957_v22 = vmul.f32 -0.001358992, %v956_v15  ;;  %v964_v12 = vmul.f32 -0.00019511016, %v956_v15  ;;  %v1080_v41 = vadd.s32 %v1079_v57, %v1075_v35  ;;  %3385 = vmatpush.msra.mxu2 %v3199_v54  ;;  %v1160_v52 = vshrl.u32 %v13786_v6, %v10290_v23 }
  0xfb   : > { %v1164_v58 = vor.u32 %v1163_v27, %v1162_v9  ;;  %v1165_v4 = vshll.u32 %v13787_v11, %v1150_v17  ;;  %v1166_v13 = vshrl.u32 %v13788_v28, %v10290_v23  ;;  %v3201_v50 = vand.u32 4294901760, %v3200_v37 }
  0xfc   : > { %v958_v38 = vadd.f32 0.041655596, %v957_v22  ;;  %v965_v36 = vadd.f32 0.008332121, %v964_v12  ;;  %v1081_v56 = vadd.s32 536870912, %v1080_v41  ;;  %v1144_v57 = vor.u32 8388608, %v1143_v42 }
  0xfd   : > { %v1155_v22 = vor.u32 %v1154_v26, %v1153_v0  ;;  %v10327_v12 = vor.u32 %v1157_v21, %v1156_v43  ;;  %vm1171_vm15 = vcmp.lt.s32.totalorder %v10306_v39, 4  ;;  %vm2210_vm0 = vcmp.lt.s32.totalorder %v10297_v29, 2  ;;  %3202 = vmatpush.msrb.mxu3 %v3201_v50  ;;  %v10342_v21 = vld [vmem:[%s9409_s27 + $0x38] sm:$0xff] }
  0xfe   : > { %v959_v55 = vmul.f32 %v958_v38, %v956_v15  ;;  %v966_v35 = vmul.f32 %v965_v36, %v956_v15  ;;  %v10325_v7 = vshrl.u32 %v1081_v56, 30  ;;  %vm1168_vm1 = vcmp.lt.s32.totalorder %v10306_v39, 1  ;;  %13810 = vst [vmem:[#allocation33_spill] sm:$0xff] %v10342_v21 }
  0xff   : > { %vm971_vm3 = vweird.f32 %v9889_v1  ;;  %vm2211_vm5 = vcmp.eq.s32.totalorder %v10297_v29, 0  ;;  %v1161_v42 = vor.u32 %v1160_v52, %v1159_v34  ;;  %v1167_v0 = vor.u32 %v1166_v13, %v1165_v4  ;;  %3434 = vmatpush.msra.mxu3 %v9679_v61 }
 0x100   : > { %v960_v53 = vadd.f32 -0.4999988, %v959_v55  ;;  %v967_v54 = vadd.f32 -0.16666654, %v966_v35  ;;  %v1083_v17 = vshll.u32 %v10325_v7, 30  ;;  %vm1170_vm6 = vcmp.lt.s32.totalorder %v10306_v39, 3 }
 0x101   : > { %v1177_v43 = vsel %vm1171_vm15, %v1164_v58, 920167782  ;;  %vm2214_vm7 = vcmp.eq.s32.totalorder %v10297_v29, 2  ;;  %vm1169_vm8 = vcmp.lt.s32.totalorder %v10306_v39, 2  ;;  %v1176_v34 = vsel %vm1168_vm1, %v1155_v22, %v10327_v12  ;;  %3436 = vmatpush.msra.mxu3 %v10283_v45 }
 0x102   : > { %v961_v9 = vmul.f32 %v960_v53, %v956_v15  ;;  %v968_v27 = vmul.f32 %v967_v54, %v956_v15  ;;  %v10337_v26 = vsub.s32 %v1080_v41, %v1083_v17  ;;  %v10349_v38 = vshll.u32 %v1144_v57, 8 }
 0x103   : > { %v1178_v36 = vsel %vm1170_vm6, %v1161_v42, %v1177_v43  ;;  %v1180_v37 = vsel %vm1168_vm1, %v10327_v12, %v1161_v42  ;;  %v1181_v56 = vsel %vm1171_vm15, %v1167_v0, 1326507024  ;;  %v10365_v45 = vmul.f32 %v9414_v3, %v10342_v21 }
 0x104   : > { %v10352_v61 = vadd.f32 1.0, %v961_v9  ;;  %v969_v15 = vadd.f32 1.0, %v968_v27  ;;  %vm1085_vm13 = vcmp.lt.s32.totalorder %v10337_v26, 0  ;;  %v1086_v41 = vsub.s32 0, %v10337_v26 }
 0x105   : > { %v1152_v55 = vshrl.u32 %v13789_v59, %v10290_v23  ;;  %v1076_v35 = vadd.s32 %v10276_v8, %v10274_v20  ;;  %v1179_v57 = vsel %vm1169_vm8, %v1176_v34, %v1178_v36  ;;  %v1182_v3 = vsel %vm1170_vm6, %v1164_v58, %v1181_v56 }
 0x106   : > { %13811 = vst [vmem:[#allocation34_spill] sm:$0xff] %v10352_v61  ;;  %v10368_v52 = vmul.f32 %v969_v15, %v10295_v47  ;;  %v13643_v4 = vxor.u32 2147483648, %v10352_v61  ;;  %v1087_v13 = vsel %vm1085_vm13, %v1086_v41, %v10337_v26  ;;  %v1183_v23 = vsel %vm1169_vm8, %v1180_v37, %v1182_v3 }
 0x107   : > { %v1088_v50 = vclz %v1087_v13  ;;  %v1185_v20 = vand.u32 65535, %v10349_v38  ;;  %v1186_v54 = vshrl.u32 %v10349_v38, 16  ;;  %v1188_v17 = vshrl.u32 %v1183_v23, 16 }
 0x108   : > { %13812 = vst [vmem:[#allocation35_spill] sm:$0xff] %v10368_v52  ;;  %v13644_v47 = vxor.u32 2147483648, %v10368_v52  ;;  %v2216_v53 = vsel %vm2214_vm7, %v13643_v4, %v10368_v52  ;;  %v1293_v0 = vand.u32 2139095040, %v10365_v45  ;;  %v10398_v9 = vsel %vm1168_vm1, %v1152_v55, %v1155_v22 }
 0x109   : > { %v9246_v8 = vadd.s32 4294967294, %v1088_v50  ;;  %v1187_v27 = vand.u32 65535, %v1183_v23  ;;  %v1210_v43 = vshrl.u32 %v1179_v57, 16  ;;  %v1106_v15 = vsub.s32 4, %v10325_v7 }
 0x10a   : > { %v2213_v58 = vsel %vm2211_vm5, %v10352_v61, %v13644_v47  ;;  %v1209_v41 = vand.u32 65535, %v1179_v57  ;;  %vm984_vm10 = vcmp.lt.s32.totalorder %v10032_v46, 0  ;;  %v1173_v22 = vsel %vm1171_vm15, %v1161_v42, 2102212464 }
 0x10b   : > { %v2217_v34 = vsel %vm2210_vm0, %v2213_v58, %v2216_v53  ;;  %vm9247_vm11 = vcmp.lt.s32.totalorder %v9246_v8, 0  ;;  %v1190_v56 = vmul.u32 %v1188_v17, %v1185_v20  ;;  %v1189_v57 = vmul.u32 %v1187_v27, %v1185_v20 }
 0x10c   : > { %v10405_v36 = vsel %vm971_vm3, nan, %v2217_v34  ;;  %v1091_v37 = vsel %vm9247_vm11, 0, %v9246_v8  ;;  %v1212_v53 = vmul.u32 %v1210_v43, %v1185_v20  ;;  %v1294_v23 = vshrl.u32 %v1293_v0, 23 }
 0x10d   : > { %13813 = vst [vmem:[#allocation36_spill] sm:$0xff] %v10405_v36  ;;  %v2707_v13 = vsel %vm2693_vm14, %v10405_v36, 0  ;;  %v1092_v29 = vsub.s32 32, %v1091_v37  ;;  %v1093_v55 = vshll.u32 %v10337_v26, %v1091_v37  ;;  %v1096_v50 = vsub.s32 4294967266, %v1091_v37 }
 0x10e   : > { %v10413_v3 = vand.u32 4294901760, %v2707_v13  ;;  %v13814_v58 = vand.u32 2147483647, %v10032_v46  ;;  %v1191_v4 = vmul.u32 %v1187_v27, %v1186_v54  ;;  %v1211_v47 = vmul.u32 %v1209_v41, %v1185_v20 }
 0x10f   : > { %v1094_v42 = vshrl.u32 %v1076_v35, %v1092_v29  ;;  %v1097_v34 = vadd.s32 127, %v1096_v50  ;;  %v1192_v26 = vmul.u32 %v1188_v17, %v1186_v54  ;;  %v1193_v37 = vshll.u32 %v1190_v56, 16 }
 0x110   : > { %vm10417_vm12 = vcmp.le.f32.partialorder %v13814_v58, 0.7853982  ;;  %v10422_v30 = vsub.f32 %v2707_v13, %v10413_v3  ;;  %2844 = vmatmul.f32.gmra.mxu1 %v10413_v3  ;;  %v1213_v21 = vmul.u32 %v1209_v41, %v1186_v54  ;;  %v1194_v1 = vshrl.u32 %v1190_v56, 16 }
 0x111   : > { %v1095_v36 = vor.u32 %v1094_v42, %v1093_v55  ;;  %v1098_v0 = vshll.u32 %v1097_v34, 23  ;;  %v1195_v61 = vshll.u32 %v1191_v4, 16  ;;  %vm1197_vm15 = vc.u32 %v1189_v57, %v1193_v37 }
 0x112   : > { %2902 = vmatmul.f32.gmra.mxu2 %v10422_v30  ;;  %v10427_v58 = vand.u32 4294901760, %v10422_v30  ;;  %v1199_v35 = vadd.s32 %v1193_v37, %v1189_v57  ;;  %v1215_v20 = vshll.u32 %v1212_v53, 16  ;;  %v1198_v29 = vsel %vm1197_vm15, 1, %v13796_v60 }
 0x113   : > { %v1099_v27 = vor.u32 4788187, %v1098_v0  ;;  %v1102_v13 = vcvt.s32.f32 %v1095_v36  ;;  %v1214_v50 = vmul.u32 %v1210_v43, %v1186_v54  ;;  %v1200_v41 = vadd.s32 %v1198_v29, %v1192_v26 }
 0x114   : > { %2966 = vmatmul.f32.gmra.mxu3 %v10427_v58  ;;  %v2771_v17 = vsub.f32 %v10422_v30, %v10427_v58  ;;  %vm1201_vm0 = vc.u32 %v1199_v35, %v1195_v61  ;;  %v1217_v56 = vshll.u32 %v1213_v21, 16  ;;  %v1107_v42 = vsel %vm984_vm10, %v1106_v15, %v10325_v7 }
 0x115   : > { %v1100_v55 = vand.u32 2147483647, %v1099_v27  ;;  %v1202_v57 = vsel %vm1201_vm0, 1, %v13796_v60  ;;  %vm1219_vm1 = vc.u32 %v1211_v47, %v1215_v20  ;;  %v1221_v43 = vadd.s32 %v1215_v20, %v1211_v47 }
 0x116   : > { %v10437_v36 = vand.u32 4294901760, %v2771_v17  ;;  %v1204_v34 = vadd.s32 %v1202_v57, %v1200_v41  ;;  %v1220_v54 = vsel %vm1219_vm1, 1, %v13796_v60  ;;  %v1196_v0 = vshrl.u32 %v1191_v4, 16 }
 0x117   : > { %v1103_v37 = vmul.f32 %v1102_v13, %v1100_v55  ;;  %v1222_v52 = vadd.s32 %v1220_v54, %v1214_v50  ;;  %v9251_v26 = vadd.s32 4294967169, %v1294_v23  ;;  %v10443_v61 = vsel %vm10417_vm12, 0, %v1107_v42 }
 0x118   : > { %2773 = vmatmul.f32.gmra.mxu0 %v10437_v36  ;;  %v1205_v7 = vadd.s32 %v1204_v34, %v1194_v1  ;;  %v1216_v15 = vshrl.u32 %v1212_v53, 16  ;;  %vm1223_vm5 = vc.u32 %v1221_v43, %v1217_v56  ;;  %v1174_v27 = vsel %vm1170_vm6, %v10327_v12, %v1173_v22 }
 0x119   : > { %v1104_v35 = vxor.u32 2147483648, %v1103_v37  ;;  %v1224_v47 = vsel %vm1223_vm5, 1, %v13796_v60  ;;  %v1300_v20 = vadd.s32 1, %v9251_v26  ;;  %v1218_v4 = vshrl.u32 %v1213_v21, 16 }
 0x11a   : > { %v1226_v13 = vadd.s32 %v1224_v47, %v1222_v52  ;;  %v10451_v29 = vadd.s32 %v1205_v7, %v1196_v0  ;;  %v10453_v50 = vadd.s32 %v1221_v43, %v1217_v56  ;;  %v2363_v53 = vadd.s32 3, %v10443_v61 }
 0x11b   : > { %v1105_v23 = vsel %vm984_vm10, %v1104_v35, %v1103_v37  ;;  %vm1301_vm7 = vcmp.gt.s32.totalorder %v1300_v20, 0  ;;  %v1175_v12 = vsel %vm1169_vm8, %v10398_v9, %v1174_v27  ;;  %v13656_v22 = vand.u32 2147483647, %v10365_v45 }
 0x11c   : > { %v1108_v1 = vsel %vm10417_vm12, %v10032_v46, %v1105_v23  ;;  %v1227_v21 = vadd.s32 %v1226_v13, %v1216_v15  ;;  %v1302_v17 = vsel %vm1301_vm7, %v1300_v20, 0  ;;  %v1229_v57 = vmul.u32 %v10349_v38, %v1175_v12 }
 0x11d   : > { %v1110_v52 = vmul.f32 %v1108_v1, %v1108_v1  ;;  %v1304_v55 = vand.u32 31, %v1302_v17  ;;  %vm1231_vm6 = vc.u32 %v10451_v29, %v10453_v50  ;;  %v10466_v8 = vand.u32 3, %v2363_v53 }
 0x11e   : > { %v1228_v41 = vadd.s32 %v1227_v21, %v1218_v4  ;;  %v1297_v43 = vand.u32 8388607, %v13656_v22  ;;  %v10472_v0 = vshrl.u32 %v1302_v17, 5  ;;  %vm1125_vm13 = vweird.f32 %v10032_v46 }
 0x11f   : > { %v1111_v56 = vmul.f32 -0.001358992, %v1110_v52  ;;  %v1118_v42 = vmul.f32 -0.00019511016, %v1110_v52  ;;  %v10468_v54 = vsub.s32 32, %v1304_v55  ;;  %v1310_v26 = vshll.u32 %v13784_v48, %v1304_v55 }
 0x120   : > { %v1232_v34 = vadd.s32 1, %v1228_v41  ;;  %v1313_v38 = vshll.u32 %v13785_v49, %v1304_v55  ;;  %v1316_v20 = vshll.u32 %v13786_v6, %v1304_v55  ;;  %v1319_v13 = vshll.u32 %v13787_v11, %v1304_v55 }
 0x121   : > { %v1112_v39 = vadd.f32 0.041655596, %v1111_v56  ;;  %v1119_v9 = vadd.f32 0.008332121, %v1118_v42  ;;  %v1311_v27 = vshrl.u32 %v13785_v49, %v10468_v54  ;;  %v1314_v47 = vshrl.u32 %v13786_v6, %v10468_v54 }
 0x122   : > { %v1233_v37 = vsel %vm1231_vm6, %v1232_v34, %v1228_v41  ;;  %v1317_v4 = vshrl.u32 %v13787_v11, %v10468_v54  ;;  %vm2365_vm8 = vcmp.lt.s32.totalorder %v10466_v8, 2  ;;  %v1298_v21 = vor.u32 8388608, %v1297_v43 }
 0x123   : > { %v1113_v7 = vmul.f32 %v1112_v39, %v1110_v52  ;;  %v1120_v15 = vmul.f32 %v1119_v9, %v1110_v52  ;;  %v1234_v35 = vadd.s32 %v1233_v37, %v1229_v57  ;;  %v1307_v49 = vshll.u32 %v13789_v59, %v1304_v55 }
 0x124   : > { %v1308_v17 = vshrl.u32 %v13784_v48, %v10468_v54  ;;  %v1320_v6 = vshrl.u32 %v13788_v28, %v10468_v54  ;;  %v10493_v11 = vor.u32 %v1311_v27, %v1310_v26  ;;  %v10495_v57 = vor.u32 %v1314_v47, %v1313_v38 }
 0x125   : > { %v1114_v23 = vadd.f32 -0.4999988, %v1113_v7  ;;  %v1121_v53 = vadd.f32 -0.16666654, %v1120_v15  ;;  %v1235_v12 = vadd.s32 536870912, %v1234_v35  ;;  %v1318_v34 = vor.u32 %v1317_v4, %v1316_v20 }
 0x126   : > { %v1321_v39 = vor.u32 %v1320_v6, %v1319_v13  ;;  %vm1325_vm11 = vcmp.lt.s32.totalorder %v10472_v0, 4  ;;  %vm1322_vm10 = vcmp.lt.s32.totalorder %v10472_v0, 1  ;;  %vm2369_vm12 = vcmp.eq.s32.totalorder %v10466_v8, 2 }
 0x127   : > { %v1115_v41 = vmul.f32 %v1114_v23, %v1110_v52  ;;  %v1122_v56 = vmul.f32 %v1121_v53, %v1110_v52  ;;  %v10491_v42 = vshrl.u32 %v1235_v12, 30  ;;  %v10503_v28 = vor.u32 %v1308_v17, %v1307_v49 }
 0x128   : > { %vm1324_vm15 = vcmp.lt.s32.totalorder %v10472_v0, 3  ;;  %v10506_v52 = vshll.u32 %v1298_v21, 8  ;;  %v1335_v38 = vsel %vm1325_vm11, %v1321_v39, 1326507024  ;;  %vm2366_vm0 = vcmp.eq.s32.totalorder %v10466_v8, 0 }
 0x129   : > { %v10498_v9 = vadd.f32 1.0, %v1115_v41  ;;  %v1123_v55 = vadd.f32 1.0, %v1122_v56  ;;  %v1237_v48 = vshll.u32 %v10491_v42, 30  ;;  %vm1323_vm1 = vcmp.lt.s32.totalorder %v10472_v0, 2 }
 0x12a   : > { %v1331_v7 = vsel %vm1325_vm11, %v1318_v34, 920167782  ;;  %v1334_v15 = vsel %vm1322_vm10, %v10493_v11, %v10495_v57  ;;  %v1330_v47 = vsel %vm1322_vm10, %v10503_v28, %v10493_v11  ;;  %v1336_v20 = vsel %vm1324_vm15, %v1318_v34, %v1335_v38 }
 0x12b   : > { %13817 = vst [vmem:[#allocation37_spill] sm:$0xff] %v10498_v9  ;;  %v10508_v43 = vmul.f32 %v1123_v55, %v1108_v1  ;;  %v13654_v37 = vxor.u32 2147483648, %v10498_v9  ;;  %v1238_v26 = vsub.s32 %v1234_v35, %v1237_v48  ;;  %v1339_v4 = vand.u32 65535, %v10506_v52 }
 0x12c   : > { %v1340_v13 = vshrl.u32 %v10506_v52, 16  ;;  %v1332_v12 = vsel %vm1324_vm15, %v10495_v57, %v1331_v7  ;;  %v1337_v21 = vsel %vm1323_vm1, %v1334_v15, %v1336_v20  ;;  %v1230_v8 = vadd.s32 %v10453_v50, %v10451_v29 }
 0x12d   : > { %v13655_v1 = vxor.u32 2147483648, %v10508_v43  ;;  %v2371_v35 = vsel %vm2369_vm12, %v13654_v37, %v10508_v43  ;;  %vm1239_vm5 = vcmp.lt.s32.totalorder %v1238_v26, 0  ;;  %v1240_v27 = vsub.s32 0, %v1238_v26 }
 0x12e   : > { %v1341_v6 = vand.u32 65535, %v1337_v21  ;;  %v1342_v41 = vshrl.u32 %v1337_v21, 16  ;;  %v1333_v55 = vsel %vm1323_vm1, %v1330_v47, %v1332_v12 }
 0x12f   : > { %v2368_v23 = vsel %vm2366_vm0, %v10498_v9, %v13655_v1  ;;  %v1241_v53 = vsel %vm1239_vm5, %v1240_v27, %v1238_v26  ;;  %v1363_v27 = vand.u32 65535, %v1333_v55  ;;  %v1364_v21 = vshrl.u32 %v1333_v55, 16 }
 0x130   : > { %v2372_v49 = vsel %vm2365_vm8, %v2368_v23, %v2371_v35  ;;  %v1242_v17 = vclz %v1241_v53  ;;  %v1344_v48 = vmul.u32 %v1342_v41, %v1339_v4  ;;  %v1345_v7 = vmul.u32 %v1341_v6, %v1340_v13 }
 0x131   : > { %v10545_v56 = vsel %vm1125_vm13, nan, %v2372_v49  ;;  %v1343_v15 = vmul.u32 %v1341_v6, %v1339_v4  ;;  %v1346_v53 = vmul.u32 %v1342_v41, %v1340_v13  ;;  %v1366_v55 = vmul.u32 %v1364_v21, %v1339_v4 }
 0x132   : > { %13818 = vst [vmem:[#allocation38_spill] sm:$0xff] %v10545_v56  ;;  %v2710_v34 = vsel %vm2693_vm14, %v10545_v56, 0  ;;  %v9249_v39 = vadd.s32 4294967294, %v1242_v17  ;;  %v1347_v35 = vshll.u32 %v1344_v48, 16  ;;  %v1349_v17 = vshll.u32 %v1345_v7, 16 }
 0x133   : > { %v10551_v38 = vand.u32 4294901760, %v2710_v34  ;;  %v1348_v50 = vshrl.u32 %v1344_v48, 16  ;;  %v1369_v46 = vshll.u32 %v1366_v55, 16  ;;  %v1306_v9 = vshrl.u32 %v13789_v59, %v10468_v54 }
 0x134   : > { %vm9250_vm7 = vcmp.lt.s32.totalorder %v9249_v39, 0  ;;  %vm1351_vm6 = vc.u32 %v1343_v15, %v1347_v35  ;;  %vm1138_vm0 = vcmp.lt.s32.totalorder %v10185_v44, 0  ;;  %v1260_v59 = vsub.s32 4, %v10491_v42 }
 0x135   : > { %v10556_v20 = vsub.f32 %v2710_v34, %v10551_v38  ;;  %2848 = vmatmul.f32.gmra.mxu1 %v10551_v38  ;;  %v1245_v23 = vsel %vm9250_vm7, 0, %v9249_v39  ;;  %v1353_v34 = vadd.s32 %v1347_v35, %v1343_v15  ;;  %v1352_v39 = vsel %vm1351_vm6, 1, %v13796_v60 }
 0x136   : > { %v1246_v47 = vsub.s32 32, %v1245_v23  ;;  %v1247_v12 = vshll.u32 %v1238_v26, %v1245_v23  ;;  %v1250_v49 = vsub.s32 4294967266, %v1245_v23  ;;  %v1365_v26 = vmul.u32 %v1363_v27, %v1339_v4 }
 0x137   : > { %2907 = vmatmul.f32.gmra.mxu2 %v10556_v20  ;;  %v10561_v29 = vand.u32 4294901760, %v10556_v20  ;;  %v1354_v22 = vadd.s32 %v1352_v39, %v1346_v53  ;;  %vm1355_vm8 = vc.u32 %v1353_v34, %v1349_v17  ;;  %v1326_v54 = vsel %vm1322_vm10, %v1306_v9, %v10503_v28 }
 0x138   : > { %v1248_v6 = vshrl.u32 %v1230_v8, %v1246_v47  ;;  %v1251_v37 = vadd.s32 127, %v1250_v49  ;;  %v1356_v48 = vsel %vm1355_vm8, 1, %v13796_v60  ;;  %v1367_v8 = vmul.u32 %v1363_v27, %v1340_v13 }
 0x139   : > { %2972 = vmatmul.f32.gmra.mxu3 %v10561_v29  ;;  %v2779_v41 = vsub.f32 %v10556_v20, %v10561_v29  ;;  %v1368_v47 = vmul.u32 %v1364_v21, %v1340_v13  ;;  %v1358_v49 = vadd.s32 %v1356_v48, %v1354_v22  ;;  %vm1373_vm12 = vc.u32 %v1365_v26, %v1369_v46 }
 0x13a   : > { %v1249_v23 = vor.u32 %v1248_v6, %v1247_v12  ;;  %v1252_v1 = vshll.u32 %v1251_v37, 23  ;;  %v1371_v4 = vshll.u32 %v1367_v8, 16  ;;  %v1327_v37 = vsel %vm1325_vm11, %v10495_v57, 2102212464 }
 0x13b   : > { %v10567_v56 = vand.u32 4294901760, %v2779_v41  ;;  %v1375_v53 = vadd.s32 %v1369_v46, %v1365_v26  ;;  %v1350_v13 = vshrl.u32 %v1345_v7, 16  ;;  %v1374_v22 = vsel %vm1373_vm12, 1, %v13796_v60 }
 0x13c   : > { %v1253_v15 = vor.u32 4788187, %v1252_v1  ;;  %v1256_v35 = vcvt.s32.f32 %v1249_v23  ;;  %v1359_v1 = vadd.s32 %v1358_v49, %v1348_v50  ;;  %v1370_v21 = vshrl.u32 %v1366_v55, 16 }
 0x13d   : > { %2781 = vmatmul.f32.gmra.mxu0 %v10567_v56  ;;  %v1376_v17 = vadd.s32 %v1374_v22, %v1368_v47  ;;  %vm1377_vm5 = vc.u32 %v1375_v53, %v1371_v4  ;;  %v1328_v46 = vsel %vm1324_vm15, %v10493_v11, %v1327_v37  ;;  %v13819_v7 = vand.u32 2147483647, %v10185_v44 }
 0x13e   : > { %v1254_v12 = vand.u32 2147483647, %v1253_v15  ;;  %v1378_v57 = vsel %vm1377_vm5, 1, %v13796_v60  ;;  %v1372_v6 = vshrl.u32 %v1367_v8, 16  ;;  %v1360_v41 = vadd.s32 %v1359_v1, %v1350_v13 }
 0x13f   : > { %vm1137_vm11 = vcmp.le.f32.partialorder %v13819_v7, 0.7853982  ;;  %v1380_v34 = vadd.s32 %v1378_v57, %v1376_v17  ;;  %v1379_v39 = vadd.s32 %v1375_v53, %v1371_v4  ;;  %v1329_v9 = vsel %vm1323_vm1, %v1326_v54, %v1328_v46 }
 0x140   : > { %v1257_v27 = vmul.f32 %v1256_v35, %v1254_v12  ;;  %v1261_v11 = vsel %vm1138_vm0, %v1260_v59, %v10491_v42  ;;  %v1383_v48 = vmul.u32 %v10506_v52, %v1329_v9  ;;  %vm1279_vm8 = vweird.f32 %v10185_v44 }
 0x141   : > { %v1381_v28 = vadd.s32 %v1380_v34, %v1370_v21  ;;  %vm1385_vm10 = vc.u32 %v1360_v41, %v1379_v39  ;;  %v10597_v8 = vsel %vm1137_vm11, 0, %v1261_v11 }
 0x142   : > { %v1258_v50 = vxor.u32 2147483648, %v1257_v27  ;;  %v2518_v12 = vadd.s32 3, %v10597_v8 }
 0x143   : > { %v1382_v23 = vadd.s32 %v1381_v28, %v1372_v6 }
 0x144   : > { %v1259_v26 = vsel %vm1138_vm0, %v1258_v50, %v1257_v27  ;;  %v2519_v27 = vand.u32 3, %v2518_v12  ;;  %vm1292_vm0 = vcmp.lt.s32.totalorder %v10365_v45, 0 }
 0x145   : > { %v1262_v60 = vsel %vm1137_vm11, %v10185_v44, %v1259_v26  ;;  %v1386_v35 = vadd.s32 1, %v1382_v23 }
 0x146   : > { %v1264_v55 = vmul.f32 %v1262_v60, %v1262_v60  ;;  %vm2524_vm15 = vcmp.eq.s32.totalorder %v2519_v27, 2  ;;  %vm2521_vm1 = vcmp.eq.s32.totalorder %v2519_v27, 0  ;;  %vm2520_vm6 = vcmp.lt.s32.totalorder %v2519_v27, 2 }
 0x147   : > { %v1387_v4 = vsel %vm1385_vm10, %v1386_v35, %v1382_v23 }
 0x148   : > { %v1265_v47 = vmul.f32 -0.001358992, %v1264_v55  ;;  %v1272_v15 = vmul.f32 -0.00019511016, %v1264_v55  ;;  %v1388_v37 = vadd.s32 %v1387_v4, %v1383_v48 }
 0x14a   : > { %v1266_v49 = vadd.f32 0.041655596, %v1265_v47  ;;  %v1273_v0 = vadd.f32 0.008332121, %v1272_v15  ;;  %v1389_v13 = vadd.s32 536870912, %v1388_v37  ;;  %v1384_v15 = vadd.s32 %v1379_v39, %v1360_v41 }
 0x14c   : > { %v1267_v53 = vmul.f32 %v1266_v49, %v1264_v55  ;;  %v1274_v42 = vmul.f32 %v1273_v0, %v1264_v55  ;;  %v1390_v21 = vshrl.u32 %v1389_v13, 30 }
 0x14e   : > { %v1268_v1 = vadd.f32 -0.4999988, %v1267_v53  ;;  %v1275_v22 = vadd.f32 -0.16666654, %v1274_v42  ;;  %v1391_v59 = vshll.u32 %v1390_v21, 30 }
 0x150   : > { %v1269_v52 = vmul.f32 %v1268_v1, %v1264_v55  ;;  %v1276_v17 = vmul.f32 %v1275_v22, %v1264_v55  ;;  %v1392_v57 = vsub.s32 %v1388_v37, %v1391_v59  ;;  %v1414_v59 = vsub.s32 4, %v1390_v21 }
 0x152   : > { %v10600_v54 = vadd.f32 1.0, %v1269_v52  ;;  %v1277_v46 = vadd.f32 1.0, %v1276_v17  ;;  %vm1393_vm7 = vcmp.lt.s32.totalorder %v1392_v57, 0  ;;  %v1394_v6 = vsub.s32 0, %v1392_v57 }
 0x154   : > { %v10602_v7 = vmul.f32 %v1277_v46, %v1262_v60  ;;  %v13664_v50 = vxor.u32 2147483648, %v10600_v54  ;;  %v1395_v9 = vsel %vm1393_vm7, %v1394_v6, %v1392_v57  ;;  %v13821_v46 = vand.u32 2147483647, %v10365_v45 }
 0x155   : > { %v1396_v11 = vclz %v1395_v9 }
 0x156   : > { %v13665_v34 = vxor.u32 2147483648, %v10602_v7  ;;  %v2526_v26 = vsel %vm2524_vm15, %v13664_v50, %v10602_v7  ;;  %vm1291_vm5 = vcmp.le.f32.partialorder %v13821_v46, 0.7853982 }
 0x157   : > { %v9252_v23 = vadd.s32 4294967294, %v1396_v11 }
 0x158   : > { %v2523_v28 = vsel %vm2521_vm1, %v10600_v54, %v13665_v34  ;;  %vm1433_vm1 = vweird.f32 %v10365_v45  ;;  %v13848_v34 = vld [vmem:[#allocation28_spill] sm:$0xff] }
 0x159   : > { %v2527_v60 = vsel %vm2520_vm6, %v2523_v28, %v2526_v26  ;;  %vm9253_vm12 = vcmp.lt.s32.totalorder %v9252_v23, 0  ;;  %v1415_v26 = vsel %vm1292_vm0, %v1414_v59, %v1390_v21 }
 0x15a   : > { %v10615_v55 = vsel %vm1279_vm8, nan, %v2527_v60  ;;  %v1399_v35 = vsel %vm9253_vm12, 0, %v9252_v23  ;;  %v10639_v11 = vsel %vm1291_vm5, 0, %v1415_v26 }
 0x15b   : > { %13820 = vst [vmem:[#allocation39_spill] sm:$0xff] %v10615_v55  ;;  %v2713_v48 = vsel %vm2693_vm14, %v10615_v55, 0  ;;  %v1400_v0 = vsub.s32 32, %v1399_v35  ;;  %v1401_v4 = vshll.u32 %v1392_v57, %v1399_v35  ;;  %v1404_v12 = vsub.s32 4294967266, %v1399_v35 }
 0x15c   : > { %v10619_v47 = vand.u32 4294901760, %v2713_v48  ;;  %v2673_v35 = vadd.s32 3, %v10639_v11 }
 0x15d   : > { %v1402_v53 = vshrl.u32 %v1384_v15, %v1400_v0  ;;  %v1405_v42 = vadd.s32 127, %v1404_v12 }
 0x15e   : > { %v10622_v49 = vsub.f32 %v2713_v48, %v10619_v47  ;;  %2852 = vmatmul.f32.gmra.mxu1 %v10619_v47 }
 0x15f   : > { %v1403_v39 = vor.u32 %v1402_v53, %v1401_v4  ;;  %v1406_v13 = vshll.u32 %v1405_v42, 23  ;;  %v2674_v42 = vand.u32 3, %v2673_v35  ;;  %v10703_v35 = vpop.f32.mrf.mxu0 }
 0x160   : > { %2912 = vmatmul.f32.gmra.mxu2 %v10622_v49  ;;  %v10627_v37 = vand.u32 4294901760, %v10622_v49 }
 0x161   : > { %v1407_v22 = vor.u32 4788187, %v1406_v13  ;;  %v1410_v27 = vcvt.s32.f32 %v1403_v39  ;;  %vm2679_vm11 = vcmp.eq.s32.totalorder %v2674_v42, 2  ;;  %vm2676_vm10 = vcmp.eq.s32.totalorder %v2674_v42, 0 }
 0x162   : > { %2978 = vmatmul.f32.gmra.mxu3 %v10627_v37  ;;  %v2787_v41 = vsub.f32 %v10622_v49, %v10627_v37  ;;  %vm2675_vm15 = vcmp.lt.s32.totalorder %v2674_v42, 2 }
 0x163   : > { %v1408_v52 = vand.u32 2147483647, %v1407_v22 }
 0x164   : > { %v10632_v1 = vand.u32 4294901760, %v2787_v41 }
 0x165   : > { %v1411_v17 = vmul.f32 %v1410_v27, %v1408_v52 }
 0x166   : > { %2789 = vmatmul.f32.gmra.mxu0 %v10632_v1 }
 0x167   : > { %v1412_v57 = vxor.u32 2147483648, %v1411_v17 }
 0x169   : > { %v1413_v6 = vsel %vm1292_vm0, %v1412_v57, %v1411_v17 }
 0x16a   : > { %v1416_v9 = vsel %vm1291_vm5, %v10365_v45, %v1413_v6 }
 0x16b   : > { %v1418_v28 = vmul.f32 %v1416_v9, %v1416_v9 }
 0x16d   : > { %v1419_v60 = vmul.f32 -0.001358992, %v1418_v28  ;;  %v1426_v23 = vmul.f32 -0.00019511016, %v1418_v28 }
 0x16f   : > { %v1420_v48 = vadd.f32 0.041655596, %v1419_v60  ;;  %v1427_v15 = vadd.f32 0.008332121, %v1426_v23 }
 0x171   : > { %v1421_v0 = vmul.f32 %v1420_v48, %v1418_v28  ;;  %v1428_v4 = vmul.f32 %v1427_v15, %v1418_v28 }
 0x173   : > { %v1422_v12 = vadd.f32 -0.4999988, %v1421_v0  ;;  %v1429_v53 = vadd.f32 -0.16666654, %v1428_v4  ;;  %v10705_v0 = vpop.f32.mrf.mxu2 }
 0x175   : > { %v1423_v41 = vmul.f32 %v1422_v12, %v1418_v28  ;;  %v1430_v39 = vmul.f32 %v1429_v53, %v1418_v28 }
 0x177   : > { %v10642_v13 = vadd.f32 1.0, %v1423_v41  ;;  %v1431_v21 = vadd.f32 1.0, %v1430_v39  ;;  %v2684_v41 = vld [vmem:[#allocation3] sm:$0xff] }
 0x178   : > { %v3510_v39 = vand.u32 4294901760, %v2684_v41 }
 0x179   : > { %v10644_v22 = vmul.f32 %v1431_v21, %v1416_v9  ;;  %v13662_v27 = vxor.u32 2147483648, %v10642_v13 }
 0x17a   : > { %v3598_v21 = vsub.f32 %v2684_v41, %v3510_v39  ;;  %v13833_v41 = vld [vmem:[#allocation12_spill] sm:$0xff] }
 0x17b   : > { %v13663_v52 = vxor.u32 2147483648, %v10644_v22  ;;  %v2681_v17 = vsel %vm2679_vm11, %v13662_v27, %v10644_v22  ;;  %v10718_v12 = vpop.f32.mrf.mxu2 }
 0x17d   : > { %v2678_v59 = vsel %vm2676_vm10, %v10642_v13, %v13663_v52 }
 0x17e   : > { %v2682_v46 = vsel %vm2675_vm15, %v2678_v59, %v2681_v17 }
 0x17f   : > { %v10657_v57 = vsel %vm1433_vm1, nan, %v2682_v46 }
 0x180   : > { %13822 = vst [vmem:[#allocation40_spill] sm:$0xff] %v10657_v57  ;;  %v2716_v6 = vsel %vm2693_vm14, %v10657_v57, 0 }
 0x181   : > { %v10661_v26 = vand.u32 4294901760, %v2716_v6 }
 0x183   : > { %v10664_v9 = vsub.f32 %v2716_v6, %v10661_v26  ;;  %2856 = vmatmul.f32.gmra.mxu1 %v10661_v26  ;;  %v10731_v59 = vpop.f32.mrf.mxu2 }
 0x185   : > { %2917 = vmatmul.f32.gmra.mxu2 %v10664_v9  ;;  %v10669_v28 = vand.u32 4294901760, %v10664_v9 }
 0x187   : > { %2984 = vmatmul.f32.gmra.mxu3 %v10669_v28  ;;  %v2795_v60 = vsub.f32 %v10664_v9, %v10669_v28 }
 0x189   : > { %v2796_v23 = vand.u32 4294901760, %v2795_v60 }
 0x18b   : > { %2797 = vmatmul.f32.gmra.mxu0 %v2796_v23  ;;  %3062 = vmatmul.f32.vlgmr.msrb.gmra.mxu1 %v9809_v51 }
 0x18d   : > { %3117 = vmatmul.f32.vlgmr.msrb.gmra.mxu2 %v9839_v18  ;;  %v2686_v18 = vld [vmem:[#allocation3 + $0x10] sm:$0xff] }
 0x18f   : > { %3204 = vmatmul.f32.vlgmr.msrb.gmra.mxu3 %v9809_v51 }
 0x193   : > { %3011 = vmatmul.f32.vlgmr.msrb.gmra.mxu0 %v9809_v51  ;;  %3066 = vmatmul.f32.gmra.mxu1 %v9881_v24 }
 0x195   : > { %3125 = vmatmul.f32.gmra.mxu2 %v9927_v16  ;;  %v3508_v16 = vand.u32 4294901760, %v2686_v18 }
 0x197   : > { %3208 = vmatmul.f32.gmra.mxu3 %v9881_v24  ;;  %3509 = vmatpush.msrb.mxu0 %v3508_v16 }
 0x198   : > { %3712 = vmatpush.msrb.mxu3 %v3508_v16 }
 0x199   : > { %3511 = vmatpush.msrb.mxu0 %v3510_v39 }
 0x19a   : > { %3714 = vmatpush.msrb.mxu3 %v3510_v39 }
 0x19b   : > { %3015 = vmatmul.f32.gmra.mxu0 %v9881_v24  ;;  %3070 = vmatmul.f32.gmra.mxu1 %v10076_v63 }
 0x19d   : > { %3133 = vmatmul.f32.gmra.mxu2 %v10100_v40  ;;  %v3592_v40 = vsub.f32 %v2686_v18, %v3508_v16  ;;  %v13824_v18 = vld [vmem:[#allocation27_spill] sm:$0xff] }
 0x19f   : > { %3212 = vmatmul.f32.gmra.mxu3 %v10076_v63  ;;  %3652 = vmatpush.msrb.mxu2 %v3592_v40 }
 0x1a1   : > { %3655 = vmatpush.msrb.mxu2 %v3598_v21 }
 0x1a3   : > { %3019 = vmatmul.f32.gmra.mxu0 %v10076_v63  ;;  %3074 = vmatmul.f32.gmra.mxu1 %v10234_v31 }
 0x1a5   : > { %3141 = vmatmul.f32.gmra.mxu2 %v10262_v25  ;;  %v3593_v25 = vand.u32 4294901760, %v3592_v40 }
 0x1a7   : > { %3216 = vmatmul.f32.gmra.mxu3 %v10234_v31  ;;  %v3594_v48 = vsub.f32 %v3592_v40, %v3593_v25 }
 0x1a9   : > { %v3595_v15 = vand.u32 4294901760, %v3594_v48 }
 0x1ab   : > { %3023 = vmatmul.f32.gmra.mxu0 %v10234_v31  ;;  %3078 = vmatmul.f32.gmra.mxu1 %v10413_v3 }
 0x1ac   : > { %3596 = vmatpush.msrb.mxu1 %v3595_v15 }
 0x1ad   : > { %3149 = vmatmul.f32.gmra.mxu2 %v10437_v36  ;;  %v10697_v36 = vpop.f32.mrf.mxu1 }
 0x1af   : > { %3220 = vmatmul.f32.gmra.mxu3 %v10413_v3 }
 0x1b3   : > { %3027 = vmatmul.f32.gmra.mxu0 %v10413_v3  ;;  %3082 = vmatmul.f32.gmra.mxu1 %v10551_v38 }
 0x1b5   : > { %3157 = vmatmul.f32.gmra.mxu2 %v10567_v56  ;;  %v10709_v56 = vpop.f32.mrf.mxu3  ;;  %v10711_v4 = vpop.f32.mrf.mxu1 }
 0x1b7   : > { %3224 = vmatmul.f32.gmra.mxu3 %v10551_v38 }
 0x1bb   : > { %3031 = vmatmul.f32.gmra.mxu0 %v10551_v38  ;;  %3086 = vmatmul.f32.gmra.mxu1 %v10619_v47 }
 0x1bd   : > { %3165 = vmatmul.f32.gmra.mxu2 %v10632_v1  ;;  %v10716_v1 = vpop.f32.mrf.mxu0  ;;  %v10721_v53 = vpop.f32.mrf.mxu3 }
 0x1be   : > { %v10723_v42 = vpop.f32.mrf.mxu1 }
 0x1bf   : > { %3228 = vmatmul.f32.gmra.mxu3 %v10619_v47 }
 0x1c3   : > { %3035 = vmatmul.f32.gmra.mxu0 %v10619_v47  ;;  %3090 = vmatmul.f32.gmra.mxu1 %v10661_v26 }
 0x1c5   : > { %3173 = vmatmul.f32.gmra.mxu2 %v2796_v23  ;;  %v10729_v17 = vpop.f32.mrf.mxu0  ;;  %v10734_v46 = vpop.f32.mrf.mxu3 }
 0x1c6   : > { %v10736_v6 = vpop.f32.mrf.mxu1 }
 0x1c7   : > { %3232 = vmatmul.f32.gmra.mxu3 %v10661_v26 }
 0x1cb   : > { %3039 = vmatmul.f32.gmra.mxu0 %v10661_v26  ;;  %3318 = vmatmul.f32.vlgmr.msra.gmra.mxu1 %v9828_v14  ;;  %v3599_v14 = vand.u32 4294901760, %v3598_v21 }
 0x1cd   : > { %3387 = vmatmul.f32.vlgmr.msra.gmra.mxu2 %v9809_v51  ;;  %v10746_v60 = vpop.f32.mrf.mxu3 }
 0x1ce   : > { %v10748_v23 = vpop.f32.mrf.mxu1 }
 0x1cf   : > { %3438 = vmatmul.f32.vlgmr.msra.gmra.mxu3 %v9809_v51  ;;  %v3600_v51 = vsub.f32 %v3598_v21, %v3599_v14  ;;  %13823 = vst [vmem:[#allocation41_spill] sm:$0xff] %v10748_v23  ;;  %v13834_v21 = vld [vmem:[#allocation17_spill] sm:$0xff] }
 0x1d3   : > { %3258 = vmatmul.f32.vlgmr.msra.gmra.mxu0 %v9817_v32  ;;  %3324 = vmatmul.f32.gmra.mxu1 %v9903_v5  ;;  %v3601_v32 = vand.u32 4294901760, %v3600_v51  ;;  %v10742_v5 = vpop.f32.mrf.mxu0  ;;  %v13836_v51 = vld [vmem:[#allocation16_spill] sm:$0xff] }
 0x1d4   : > { %3781 = vmatpush.msra.mxu0 %v3593_v25 }
 0x1d5   : > { %3391 = vmatmul.f32.gmra.mxu2 %v9881_v24  ;;  %3602 = vmatpush.msrb.mxu1 %v3601_v32  ;;  %v13837_v32 = vxor.u32 2147483648, %v13836_v51 }
 0x1d6   : > { %3785 = vmatpush.msra.mxu0 %v3599_v14  ;;  %v13835_v14 = vxor.u32 2147483648, %v13834_v21 }
 0x1d7   : > { %3442 = vmatmul.f32.gmra.mxu3 %v9881_v24  ;;  %3834 = vmatpush.msra.mxu1 %v3508_v16  ;;  %v10744_v24 = vpop.f32.mrf.mxu2  ;;  %v10762_v16 = vpop.f32.mrf.mxu1 }
 0x1d8   : > { %13827 = vst [vmem:[#allocation43_spill] sm:$0xff] %v10762_v16 }
 0x1d9   : > { %3836 = vmatpush.msra.mxu1 %v3510_v39  ;;  %v3471_v39 = vsel %vm2693_vm14, %v13833_v41, 0 }
 0x1da   : > { %v10805_v52 = vand.u32 4294901760, %v3471_v39 }
 0x1db   : > { %3263 = vmatmul.f32.gmra.mxu0 %v9892_v62  ;;  %3330 = vmatmul.f32.gmra.mxu1 %v10088_v2  ;;  %v10754_v62 = vpop.f32.mrf.mxu0 }
 0x1dd   : > { %3395 = vmatmul.f32.gmra.mxu2 %v10076_v63 }
 0x1df   : > { %3446 = vmatmul.f32.gmra.mxu3 %v10076_v63  ;;  %v10756_v2 = vpop.f32.mrf.mxu2  ;;  %v10760_v63 = vpop.f32.mrf.mxu3 }
 0x1e0   : > { %13825 = vst [vmem:[#allocation27_spill] sm:$0xff] %v10756_v2  ;;  %v10778_v15 = vpop.f32.mrf.mxu1  ;;  %v1434_v2 = vand.u32 3, %v10639_v11 }
 0x1e1   : > { %13826 = vst [vmem:[#allocation42_spill] sm:$0xff] %v10760_v63 }
 0x1e2   : > { %13832 = vst [vmem:[#allocation46_spill] sm:$0xff] %v10778_v15  ;;  %v1126_v15 = vand.u32 3, %v10443_v61 }
 0x1e3   : > { %3268 = vmatmul.f32.gmra.mxu0 %v13824_v18  ;;  %3336 = vmatmul.f32.gmra.mxu1 %v10254_v33  ;;  %v10768_v33 = vpop.f32.mrf.mxu0 }
 0x1e4   : > { %13828 = vst [vmem:[#allocation44_spill] sm:$0xff] %v10768_v33 }
 0x1e5   : > { %3399 = vmatmul.f32.gmra.mxu2 %v10234_v31 }
 0x1e7   : > { %3450 = vmatmul.f32.gmra.mxu3 %v10234_v31  ;;  %v2687_v31 = vld [vmem:[#allocation3 + $0x18] sm:$0xff]  ;;  %v10770_v40 = vpop.f32.mrf.mxu2  ;;  %v10776_v48 = vpop.f32.mrf.mxu3 }
 0x1e8   : > { %13829 = vst [vmem:[#allocation45_spill] sm:$0xff] %v10770_v40  ;;  %v13866_v40 = vld [vmem:[#allocation37_spill] sm:$0xff] }
 0x1eb   : > { %3273 = vmatmul.f32.gmra.mxu0 %v10246_v10  ;;  %3342 = vmatmul.f32.gmra.mxu1 %v10427_v58  ;;  %v10772_v10 = vand.u32 4294901760, %v2687_v31  ;;  %v13830_v58 = vld [vmem:[#allocation14_spill] sm:$0xff] }
 0x1ec   : > { %v510_v25 = vand.u32 3, %v13830_v58  ;;  %13831 = vst [vmem:[#allocation14_spill] sm:$0xff] %v10776_v48  ;;  %v13838_v58 = vld [vmem:[#allocation21_spill] sm:$0xff] }
 0x1ed   : > { %3403 = vmatmul.f32.gmra.mxu2 %v10413_v3  ;;  %v664_v27 = vand.u32 3, %v13838_v58 }
 0x1ee   : > { %3885 = vmatpush.msra.mxu2 %v10772_v10  ;;  %vm512_vm7 = vcmp.eq.s32.totalorder %v510_v25, 0  ;;  %vm515_vm6 = vcmp.eq.s32.totalorder %v510_v25, 2  ;;  %vm511_vm12 = vcmp.lt.s32.totalorder %v510_v25, 2 }
 0x1ef   : > { %3454 = vmatmul.f32.gmra.mxu3 %v10413_v3  ;;  %v517_v18 = vsel %vm515_vm6, %v13837_v32, %v13834_v21  ;;  %vm666_vm0 = vcmp.eq.s32.totalorder %v664_v27, 0  ;;  %vm669_vm5 = vcmp.eq.s32.totalorder %v664_v27, 2  ;;  %vm665_vm11 = vcmp.lt.s32.totalorder %v664_v27, 2 }
 0x1f3   : > { %3278 = vmatmul.f32.gmra.mxu0 %v10422_v30  ;;  %3348 = vmatmul.f32.gmra.mxu1 %v10561_v29  ;;  %v10782_v30 = vsub.f32 %v2687_v31, %v10772_v10 }
 0x1f5   : > { %3407 = vmatmul.f32.gmra.mxu2 %v10551_v38  ;;  %v13666_v3 = vand.u32 4294901760, %v10782_v30 }
 0x1f7   : > { %3458 = vmatmul.f32.gmra.mxu3 %v10551_v38  ;;  %v3970_v29 = vsub.f32 %v10782_v30, %v13666_v3  ;;  %v514_v38 = vsel %vm512_vm7, %v13836_v51, %v13835_v14  ;;  %v10808_v14 = vpop.f32.mrf.mxu3  ;;  %v10815_v51 = vsub.f32 %v3471_v39, %v10805_v52 }
 0x1f8   : > { %v518_v25 = vsel %vm511_vm12, %v514_v38, %v517_v18  ;;  %13841 = vst [vmem:[#allocation21_spill] sm:$0xff] %v10808_v14  ;;  %v13844_v38 = vld [vmem:[#allocation25_spill] sm:$0xff]  ;;  %vm1131_vm12 = vcmp.eq.s32.totalorder %v1126_v15, 2 }
 0x1f9   : > { %v3971_v31 = vand.u32 4294901760, %v3970_v29  ;;  %v10812_v21 = vsel %vm509_vm2, nan, %v518_v25  ;;  %v13845_v32 = vxor.u32 2147483648, %v13844_v38  ;;  %v818_v29 = vand.u32 3, %v13848_v34 }
 0x1fa   : > { %13843 = vst [vmem:[#allocation9_spill] sm:$0xff] %v10812_v21  ;;  %v3474_v25 = vsel %vm2693_vm14, %v10812_v21, 0 }
 0x1fb   : > { %3283 = vmatmul.f32.gmra.mxu0 %v10556_v20  ;;  %3354 = vmatmul.f32.gmra.mxu1 %v10627_v37  ;;  %v10801_v20 = vpop.f32.mrf.mxu0  ;;  %v10803_v37 = vpop.f32.mrf.mxu2  ;;  %v10833_v27 = vand.u32 4294901760, %v3474_v25  ;;  %vm820_vm2 = vcmp.eq.s32.totalorder %v818_v29, 0  ;;  %vm823_vm10 = vcmp.eq.s32.totalorder %v818_v29, 2  ;;  %vm819_vm15 = vcmp.lt.s32.totalorder %v818_v29, 2 }
 0x1fc   : > { %13839 = vst [vmem:[#allocation17_spill] sm:$0xff] %v10801_v20  ;;  %3972 = vmatpush.msra.mxu3 %v3971_v31 }
 0x1fd   : > { %3411 = vmatmul.f32.gmra.mxu2 %v10619_v47  ;;  %13840 = vst [vmem:[#allocation16_spill] sm:$0xff] %v10803_v37 }
 0x1ff   : > { %3462 = vmatmul.f32.gmra.mxu3 %v10619_v47  ;;  %v13846_v47 = vld [vmem:[#allocation23_spill] sm:$0xff] }
 0x200   : > { %v2857_v50 = vpop.f32.mrf.mxu1  ;;  %v668_v18 = vsel %vm666_vm0, %v13846_v47, %v13845_v32  ;;  %v13847_v31 = vxor.u32 2147483648, %v13846_v47  ;;  %vm1127_vm0 = vcmp.lt.s32.totalorder %v1126_v15, 2 }
 0x202   : > { %v671_v58 = vsel %vm669_vm5, %v13847_v31, %v13844_v38 }
 0x203   : > { %3288 = vmatmul.f32.gmra.mxu0 %v10622_v49  ;;  %3360 = vmatmul.f32.gmra.mxu1 %v10669_v28  ;;  %v10830_v49 = vand.u32 4294901760, %v10815_v51  ;;  %v672_v28 = vsel %vm665_vm11, %v668_v18, %v671_v58  ;;  %v13851_v18 = vld [vmem:[#allocation31_spill] sm:$0xff]  ;;  %v13853_v58 = vld [vmem:[#allocation30_spill] sm:$0xff]  ;;  %vm1436_vm11 = vcmp.eq.s32.totalorder %v1434_v2, 0 }
 0x204   : > { %v10839_v31 = vsel %vm663_vm4, nan, %v672_v28  ;;  %v13854_v14 = vxor.u32 2147483648, %v13853_v58  ;;  %v10852_v28 = vsub.f32 %v3474_v25, %v10833_v27 }
 0x205   : > { %3415 = vmatmul.f32.gmra.mxu2 %v10661_v26  ;;  %13850 = vst [vmem:[#allocation25_spill] sm:$0xff] %v10839_v31  ;;  %v3515_v57 = vsub.f32 %v10815_v51, %v10830_v49  ;;  %v3477_v29 = vsel %vm2693_vm14, %v10839_v31, 0 }
 0x206   : > { %v825_v21 = vsel %vm823_vm10, %v13854_v14, %v13851_v18  ;;  %v10867_v25 = vand.u32 4294901760, %v3477_v29  ;;  %vm1435_vm10 = vcmp.lt.s32.totalorder %v1434_v2, 2 }
 0x207   : > { %3466 = vmatmul.f32.gmra.mxu3 %v10661_v26  ;;  %v13852_v26 = vxor.u32 2147483648, %v13851_v18 }
 0x208   : > { %v2798_v39 = vpop.f32.mrf.mxu0  ;;  %v2918_v32 = vpop.f32.mrf.mxu2 }
 0x209   : > { %v2858_v38 = vadd.f32 %v2857_v50, %v2798_v39  ;;  %v10835_v47 = vpop.f32.mrf.mxu1  ;;  %v822_v55 = vsel %vm820_vm2, %v13853_v58, %v13852_v26  ;;  %v972_v39 = vand.u32 3, %v10270_v19  ;;  %v13859_v58 = vld [vmem:[#allocation34_spill] sm:$0xff]  ;;  %vm1439_vm2 = vcmp.eq.s32.totalorder %v1434_v2, 2 }
 0x20a   : > { %v2985_v3 = vpop.f32.mrf.mxu3  ;;  %v826_v14 = vsel %vm819_vm15, %v822_v55, %v825_v21  ;;  %v13860_v31 = vxor.u32 2147483648, %v13859_v58 }
 0x20b   : > { %v2919_v50 = vadd.f32 %v2918_v32, %v2858_v38  ;;  %3293 = vmatmul.f32.gmra.mxu0 %v10664_v9  ;;  %3604 = vmatmul.f32.vlgmr.msrb.gmra.mxu1 %v10805_v52  ;;  %v10861_v32 = vand.u32 4294901760, %v3515_v57  ;;  %v10865_v9 = vand.u32 4294901760, %v10852_v28  ;;  %vm974_vm4 = vcmp.eq.s32.totalorder %v972_v39, 0  ;;  %v13857_v57 = vld [vmem:[#allocation35_spill] sm:$0xff] }
 0x20c   : > { %4088 = vmatpush.msrb.mxu1 %v10772_v10  ;;  %vm977_vm7 = vcmp.eq.s32.totalorder %v972_v39, 2  ;;  %vm973_vm6 = vcmp.lt.s32.totalorder %v972_v39, 2  ;;  %v13858_v21 = vxor.u32 2147483648, %v13857_v57  ;;  %v10891_v39 = vsub.f32 %v3477_v29, %v10867_v25 }
 0x20d   : > { %v10858_v34 = vadd.f32 %v2985_v3, %v2919_v50  ;;  %3658 = vmatmul.f32.vlgmr.msrb.gmra.mxu2 %v10815_v51  ;;  %v10873_v3 = vsel %vm817_vm9, nan, %v826_v14  ;;  %v979_v37 = vsel %vm977_vm7, %v13860_v31, %v13857_v57  ;;  %v3523_v14 = vsub.f32 %v10852_v28, %v10865_v9 }
 0x20e   : > { %13856 = vst [vmem:[#allocation23_spill] sm:$0xff] %v10873_v3  ;;  %v976_v50 = vsel %vm974_vm4, %v13859_v58, %v13858_v21  ;;  %v3480_v18 = vsel %vm2693_vm14, %v10873_v3, 0  ;;  %v2685_v21 = vld [vmem:[#allocation3 + $0x8] sm:$0xff]  ;;  %vm1128_vm9 = vcmp.eq.s32.totalorder %v1126_v15, 0  ;;  %v13862_v57 = vand.u32 4294901760, %v10782_v30 }
 0x20f   : > { %3718 = vmatmul.f32.vlgmr.msrb.gmra.mxu3 %v10830_v49  ;;  %13861 = vst [vmem:[#allocation28_spill] sm:$0xff] %v10891_v39  ;;  %v3886_v58 = vand.u32 4294901760, %v2685_v21  ;;  %v980_v61 = vsel %vm973_vm6, %v976_v50, %v979_v37  ;;  %v10897_v31 = vand.u32 4294901760, %v3480_v18  ;;  %v10900_v29 = vand.u32 4294901760, %v3523_v14 }
 0x210   : > { %v10869_v19 = vpop.f32.mrf.mxu0  ;;  %v3118_v38 = vpop.f32.mrf.mxu2  ;;  %v10911_v48 = vsel %vm971_vm3, nan, %v980_v61  ;;  %v13865_v14 = vxor.u32 2147483648, %v10508_v43 }
 0x211   : > { %v10875_v26 = vpop.f32.mrf.mxu1  ;;  %3887 = vmatpush.msra.mxu2 %v3886_v58  ;;  %4090 = vmatpush.msrb.mxu1 %v3886_v58  ;;  %13864 = vst [vmem:[#allocation10_spill] sm:$0xff] %v10911_v48  ;;  %v10922_v63 = vsub.f32 %v3480_v18, %v10897_v31 }
 0x212   : > { %v3205_v55 = vpop.f32.mrf.mxu3  ;;  %v1130_v16 = vsel %vm1128_vm9, %v13866_v40, %v13865_v14  ;;  %v3483_v14 = vsel %vm2693_vm14, %v10911_v48, 0 }
 0x213   : > { %v10884_v20 = vadd.f32 %v3205_v55, %v3118_v38  ;;  %3517 = vmatmul.f32.vlgmr.msrb.gmra.mxu0 %v10861_v32  ;;  %3608 = vmatmul.f32.gmra.mxu1 %v10833_v27  ;;  %v3974_v38 = vsub.f32 %v2685_v21, %v3886_v58  ;;  %v10903_v55 = vand.u32 4294901760, %v10891_v39  ;;  %13868 = vst [vmem:[#allocation31_spill] sm:$0xff] %v10922_v63  ;;  %v10935_v18 = vand.u32 4294901760, %v10922_v63 }
 0x214   : > { %4028 = vmatpush.msrb.mxu0 %v10782_v30  ;;  %4157 = vmatpush.msrb.mxu2 %v13862_v57  ;;  %v13867_v30 = vxor.u32 2147483648, %v13866_v40 }
 0x215   : > { %3663 = vmatmul.f32.gmra.mxu2 %v10852_v28  ;;  %v3975_v21 = vand.u32 4294901760, %v3974_v38  ;;  %v3531_v15 = vsub.f32 %v10891_v39, %v10903_v55  ;;  %13869 = vst [vmem:[#allocation30_spill] sm:$0xff] %v10935_v18 }
 0x216   : > { %4031 = vmatpush.msrb.mxu0 %v3974_v38  ;;  %v1133_v57 = vsel %vm1131_vm12, %v13867_v30, %v10508_v43  ;;  %v1280_v30 = vand.u32 3, %v10597_v8 }
 0x217   : > { %3724 = vmatmul.f32.gmra.mxu3 %v10865_v9  ;;  %v3976_v50 = vsub.f32 %v3974_v38, %v3975_v21  ;;  %4161 = vmatpush.msrb.mxu2 %v3975_v21  ;;  %v1134_v43 = vsel %vm1127_vm0, %v1130_v16, %v1133_v57  ;;  %v10940_v38 = vand.u32 4294901760, %v3531_v15 }
 0x218   : > { %v10907_v3 = vpop.f32.mrf.mxu0  ;;  %v3126_v37 = vpop.f32.mrf.mxu2  ;;  %v10944_v21 = vsel %vm1125_vm13, nan, %v1134_v43  ;;  %vm1282_vm3 = vcmp.eq.s32.totalorder %v1280_v30, 0  ;;  %vm1285_vm5 = vcmp.eq.s32.totalorder %v1280_v30, 2  ;;  %vm1281_vm13 = vcmp.lt.s32.totalorder %v1280_v30, 2 }
 0x219   : > { %v10913_v41 = vpop.f32.mrf.mxu1  ;;  %v3977_v40 = vand.u32 4294901760, %v3976_v50  ;;  %13871 = vst [vmem:[#allocation15_spill] sm:$0xff] %v10944_v21  ;;  %v3486_v43 = vsel %vm2693_vm14, %v10944_v21, 0 }
 0x21a   : > { %v3209_v33 = vpop.f32.mrf.mxu3 }
 0x21b   : > { %v10924_v61 = vadd.f32 %v3209_v33, %v3126_v37  ;;  %3525 = vmatmul.f32.gmra.mxu0 %v10900_v29  ;;  %3612 = vmatmul.f32.gmra.mxu1 %v10867_v25  ;;  %v10937_v33 = vand.u32 4294901760, %v3483_v14 }
 0x21c   : > { %3978 = vmatpush.msra.mxu3 %v3977_v40  ;;  %v3539_v40 = vsub.f32 %v10922_v63, %v10935_v18 }
 0x21d   : > { %3668 = vmatmul.f32.gmra.mxu2 %v10891_v39  ;;  %v10954_v15 = vsub.f32 %v3483_v14, %v10937_v33 }
 0x21e   : > { %4210 = vmatpush.msrb.mxu3 %v10772_v10  ;;  %v13874_v10 = vxor.u32 2147483648, %v10602_v7  ;;  %v10976_v30 = vand.u32 4294901760, %v3539_v40 }
 0x21f   : > { %3730 = vmatmul.f32.gmra.mxu3 %v10903_v55  ;;  %13873 = vst [vmem:[#allocation34_spill] sm:$0xff] %v10954_v15 }
 0x220   : > { %v10946_v50 = vpop.f32.mrf.mxu0  ;;  %v3134_v16 = vpop.f32.mrf.mxu2  ;;  %4212 = vmatpush.msrb.mxu3 %v3886_v58  ;;  %v1284_v48 = vsel %vm1282_vm3, %v10600_v54, %v13874_v10  ;;  %v10971_v58 = vand.u32 4294901760, %v10954_v15 }
 0x221   : > { %v10949_v8 = vpop.f32.mrf.mxu1 }
 0x222   : > { %13872 = vst [vmem:[#allocation35_spill] sm:$0xff] %v10949_v8  ;;  %v3213_v57 = vpop.f32.mrf.mxu3  ;;  %v13875_v8 = vxor.u32 2147483648, %v10600_v54 }
 0x223   : > { %v10958_v37 = vadd.f32 %v3213_v57, %v3134_v16  ;;  %3533 = vmatmul.f32.gmra.mxu0 %v10940_v38  ;;  %3616 = vmatmul.f32.gmra.mxu1 %v10897_v31  ;;  %13876 = vst [vmem:[#allocation20_spill] sm:$0xff] %v10971_v58  ;;  %v10973_v16 = vand.u32 4294901760, %v3486_v43 }
 0x224   : > { %v1287_v14 = vsel %vm1285_vm5, %v13875_v8, %v10602_v7  ;;  %v3547_v8 = vsub.f32 %v10954_v15, %v10971_v58 }
 0x225   : > { %3673 = vmatmul.f32.gmra.mxu2 %v10922_v63  ;;  %v1288_v57 = vsel %vm1281_vm13, %v1284_v48, %v1287_v14  ;;  %v10989_v48 = vsub.f32 %v3486_v43, %v10973_v16  ;;  %v13881_v14 = vxor.u32 2147483648, %v10644_v22 }
 0x226   : > { %v10984_v7 = vsel %vm1279_vm8, nan, %v1288_v57  ;;  %v13882_v57 = vxor.u32 2147483648, %v10642_v13 }
 0x227   : > { %3736 = vmatmul.f32.gmra.mxu3 %v10935_v18  ;;  %13879 = vst [vmem:[#allocation47_spill] sm:$0xff] %v10984_v7  ;;  %v1438_v44 = vsel %vm1436_vm11, %v10642_v13, %v13881_v14  ;;  %v3489_v63 = vsel %vm2693_vm14, %v10984_v7, 0  ;;  %v11008_v2 = vand.u32 4294901760, %v10989_v48 }
 0x228   : > { %v10978_v21 = vpop.f32.mrf.mxu0  ;;  %v3142_v10 = vpop.f32.mrf.mxu2  ;;  %13880 = vst [vmem:[#allocation48_spill] sm:$0xff] %v10989_v48 }
 0x229   : > { %13877 = vst [vmem:[#allocation37_spill] sm:$0xff] %v10978_v21  ;;  %v10980_v54 = vpop.f32.mrf.mxu1 }
 0x22a   : > { %13878 = vst [vmem:[#allocation24_spill] sm:$0xff] %v10980_v54  ;;  %v3217_v11 = vpop.f32.mrf.mxu3  ;;  %v1441_v54 = vsel %vm1439_vm2, %v13882_v57, %v10644_v22 }
 0x22b   : > { %v10991_v40 = vadd.f32 %v3217_v11, %v3142_v10  ;;  %3541 = vmatmul.f32.gmra.mxu0 %v10976_v30  ;;  %3620 = vmatmul.f32.gmra.mxu1 %v10937_v33  ;;  %v1442_v43 = vsel %vm1435_vm10, %v1438_v44, %v1441_v54  ;;  %v11005_v10 = vand.u32 4294901760, %v3547_v8  ;;  %13883 = vst [vmem:[#allocation49_spill] sm:$0xff] %v11008_v2  ;;  %v11010_v11 = vand.u32 4294901760, %v3489_v63 }
 0x22c   : > { %v11018_v22 = vsel %vm1433_vm1, nan, %v1442_v43  ;;  %v3555_v8 = vsub.f32 %v10989_v48, %v11008_v2 }
 0x22d   : > { %3678 = vmatmul.f32.gmra.mxu2 %v10954_v15  ;;  %13886 = vst [vmem:[#allocation52_spill] sm:$0xff] %v11018_v22  ;;  %v11027_v44 = vsub.f32 %v3489_v63, %v11010_v11  ;;  %v3492_v7 = vsel %vm2693_vm14, %v11018_v22, 0 }
 0x22e   : > { %v11033_v45 = vand.u32 4294901760, %v3555_v8  ;;  %v11038_v43 = vand.u32 4294901760, %v3492_v7 }
 0x22f   : > { %3742 = vmatmul.f32.gmra.mxu3 %v10971_v58  ;;  %13887 = vst [vmem:[#allocation53_spill] sm:$0xff] %v11027_v44 }
 0x230   : > { %v11012_v14 = vpop.f32.mrf.mxu0  ;;  %v3150_v18 = vpop.f32.mrf.mxu2  ;;  %v11051_v8 = vsub.f32 %v3492_v7, %v11038_v43 }
 0x231   : > { %13884 = vst [vmem:[#allocation50_spill] sm:$0xff] %v11012_v14  ;;  %v11014_v13 = vpop.f32.mrf.mxu1 }
 0x232   : > { %13885 = vst [vmem:[#allocation51_spill] sm:$0xff] %v11014_v13  ;;  %v3221_v57 = vpop.f32.mrf.mxu3 }
 0x233   : > { %v11020_v54 = vadd.f32 %v3221_v57, %v3150_v18  ;;  %3549 = vmatmul.f32.gmra.mxu0 %v11005_v10  ;;  %3624 = vmatmul.f32.gmra.mxu1 %v10973_v16  ;;  %v11036_v18 = vand.u32 4294901760, %v11027_v44  ;;  %13891 = vst [vmem:[#allocation57_spill] sm:$0xff] %v11051_v8 }
 0x235   : > { %3683 = vmatmul.f32.gmra.mxu2 %v10989_v48  ;;  %13888 = vst [vmem:[#allocation54_spill] sm:$0xff] %v11036_v18  ;;  %v3563_v22 = vsub.f32 %v11027_v44, %v11036_v18 }
 0x237   : > { %3748 = vmatmul.f32.gmra.mxu3 %v11008_v2  ;;  %v11055_v48 = vand.u32 4294901760, %v3563_v22 }
 0x238   : > { %v11040_v57 = vpop.f32.mrf.mxu0  ;;  %v3158_v13 = vpop.f32.mrf.mxu2 }
 0x239   : > { %13889 = vst [vmem:[#allocation55_spill] sm:$0xff] %v11040_v57  ;;  %v11042_v15 = vpop.f32.mrf.mxu1 }
 0x23a   : > { %13890 = vst [vmem:[#allocation56_spill] sm:$0xff] %v11042_v15  ;;  %v3225_v63 = vpop.f32.mrf.mxu3  ;;  %v11058_v15 = vand.u32 4294901760, %v11051_v8 }
 0x23b   : > { %v11044_v58 = vadd.f32 %v3225_v63, %v3158_v13  ;;  %3557 = vmatmul.f32.gmra.mxu0 %v11033_v45  ;;  %3628 = vmatmul.f32.gmra.mxu1 %v11010_v11 }
 0x23c   : > { %13892 = vst [vmem:[#allocation58_spill] sm:$0xff] %v11058_v15  ;;  %v3571_v7 = vsub.f32 %v11051_v8, %v11058_v15 }
 0x23d   : > { %3688 = vmatmul.f32.gmra.mxu2 %v11027_v44 }
 0x23e   : > { %v11070_v22 = vand.u32 4294901760, %v3571_v7 }
 0x23f   : > { %3754 = vmatmul.f32.gmra.mxu3 %v11036_v18 }
 0x240   : > { %v11060_v13 = vpop.f32.mrf.mxu0  ;;  %v3166_v63 = vpop.f32.mrf.mxu2 }
 0x241   : > { %13893 = vst [vmem:[#allocation59_spill] sm:$0xff] %v11060_v13  ;;  %v3091_v2 = vpop.f32.mrf.mxu1 }
 0x242   : > { %v3229_v57 = vpop.f32.mrf.mxu3 }
 0x243   : > { %v11062_v14 = vadd.f32 %v3229_v57, %v3166_v63  ;;  %3565 = vmatmul.f32.gmra.mxu0 %v11055_v48  ;;  %3632 = vmatmul.f32.gmra.mxu1 %v11038_v43 }
 0x245   : > { %3693 = vmatmul.f32.gmra.mxu2 %v11051_v8 }
 0x247   : > { %3760 = vmatmul.f32.gmra.mxu3 %v11058_v15 }
 0x248   : > { %v3040_v44 = vpop.f32.mrf.mxu0  ;;  %v3174_v18 = vpop.f32.mrf.mxu2 }
 0x249   : > { %v3041_v13 = vadd.f32 %v3040_v44, %v10858_v34  ;;  %v3319_v39 = vpop.f32.mrf.mxu1 }
 0x24a   : > { %v3233_v57 = vpop.f32.mrf.mxu3 }
 0x24b   : > { %v11073_v63 = vadd.f32 %v3091_v2, %v3041_v13  ;;  %v11075_v21 = vadd.f32 %v3233_v57, %v3174_v18  ;;  %3573 = vmatmul.f32.gmra.mxu0 %v11070_v22  ;;  %3838 = vmatmul.f32.vlgmr.msra.gmra.mxu1 %v10805_v52 }
 0x24d   : > { %13894 = vst [vmem:[#allocation60_spill] sm:$0xff] %v11073_v63  ;;  %3893 = vmatmul.f32.vlgmr.msra.gmra.mxu2 %v10861_v32 }
 0x24f   : > { %3980 = vmatmul.f32.vlgmr.msra.gmra.mxu3 %v10805_v52 }
 0x250   : > { %v3259_v7 = vpop.f32.mrf.mxu0  ;;  %v3388_v8 = vpop.f32.mrf.mxu2 }
 0x251   : > { %v3260_v15 = vadd.f32 %v3259_v7, %v10884_v20  ;;  %v3325_v23 = vpop.f32.mrf.mxu1 }
 0x252   : > { %v3439_v34 = vpop.f32.mrf.mxu3 }
 0x253   : > { %v3320_v44 = vadd.f32 %v3319_v39, %v3260_v15  ;;  %3787 = vmatmul.f32.vlgmr.msra.gmra.mxu0 %v10805_v52  ;;  %3842 = vmatmul.f32.gmra.mxu1 %v10833_v27 }
 0x255   : > { %v3389_v2 = vadd.f32 %v3388_v8, %v3320_v44  ;;  %3901 = vmatmul.f32.gmra.mxu2 %v10900_v29 }
 0x257   : > { %v11085_v18 = vadd.f32 %v3439_v34, %v3389_v2  ;;  %3984 = vmatmul.f32.gmra.mxu3 %v10833_v27 }
 0x258   : > { %v3264_v32 = vpop.f32.mrf.mxu0  ;;  %v3392_v13 = vpop.f32.mrf.mxu2 }
 0x259   : > { %v3265_v57 = vadd.f32 %v3264_v32, %v10924_v61  ;;  %v3331_v63 = vpop.f32.mrf.mxu1 }
 0x25a   : > { %v3443_v20 = vpop.f32.mrf.mxu3 }
 0x25b   : > { %v3326_v7 = vadd.f32 %v3325_v23, %v3265_v57  ;;  %3791 = vmatmul.f32.gmra.mxu0 %v10833_v27  ;;  %3846 = vmatmul.f32.gmra.mxu1 %v10867_v25 }
 0x25d   : > { %v3393_v39 = vadd.f32 %v3392_v13, %v3326_v7  ;;  %3909 = vmatmul.f32.gmra.mxu2 %v10940_v38 }
 0x25f   : > { %v11092_v15 = vadd.f32 %v3443_v20, %v3393_v39  ;;  %3988 = vmatmul.f32.gmra.mxu3 %v10867_v25 }
 0x260   : > { %v3269_v29 = vpop.f32.mrf.mxu0  ;;  %v3396_v8 = vpop.f32.mrf.mxu2 }
 0x261   : > { %v3270_v34 = vadd.f32 %v3269_v29, %v10958_v37  ;;  %v3337_v44 = vpop.f32.mrf.mxu1 }
 0x262   : > { %v3447_v61 = vpop.f32.mrf.mxu3 }
 0x263   : > { %v3332_v2 = vadd.f32 %v3331_v63, %v3270_v34  ;;  %3795 = vmatmul.f32.gmra.mxu0 %v10867_v25  ;;  %3850 = vmatmul.f32.gmra.mxu1 %v10897_v31 }
 0x265   : > { %v3397_v23 = vadd.f32 %v3396_v8, %v3332_v2  ;;  %3917 = vmatmul.f32.gmra.mxu2 %v10976_v30  ;;  %v4281_v2 = vld [vmem:[#allocation3 + $0x30] sm:$0xff] }
 0x267   : > { %v11099_v32 = vadd.f32 %v3447_v61, %v3397_v23  ;;  %3992 = vmatmul.f32.gmra.mxu3 %v10897_v31 }
 0x268   : > { %v3274_v38 = vpop.f32.mrf.mxu0  ;;  %v3400_v13 = vpop.f32.mrf.mxu2 }
 0x269   : > { %v3275_v57 = vadd.f32 %v3274_v38, %v10991_v40  ;;  %v3343_v20 = vpop.f32.mrf.mxu1 }
 0x26a   : > { %v3451_v37 = vpop.f32.mrf.mxu3 }
 0x26b   : > { %v3338_v7 = vadd.f32 %v3337_v44, %v3275_v57  ;;  %3799 = vmatmul.f32.gmra.mxu0 %v10897_v31  ;;  %3854 = vmatmul.f32.gmra.mxu1 %v10937_v33 }
 0x26d   : > { %v3401_v63 = vadd.f32 %v3400_v13, %v3338_v7  ;;  %3925 = vmatmul.f32.gmra.mxu2 %v11005_v10  ;;  %v11113_v10 = vand.u32 4294901760, %v4281_v2 }
 0x26f   : > { %v11106_v39 = vadd.f32 %v3451_v37, %v3401_v63  ;;  %3996 = vmatmul.f32.gmra.mxu3 %v10937_v33  ;;  %4322 = vmatpush.msra.mxu0 %v11113_v10 }
 0x270   : > { %v3279_v30 = vpop.f32.mrf.mxu0  ;;  %v3404_v29 = vpop.f32.mrf.mxu2  ;;  %4525 = vmatpush.msra.mxu3 %v11113_v10 }
 0x271   : > { %v3280_v8 = vadd.f32 %v3279_v30, %v11020_v54  ;;  %v3349_v34 = vpop.f32.mrf.mxu1  ;;  %v11119_v54 = vsub.f32 %v4281_v2, %v11113_v10 }
 0x272   : > { %v3455_v40 = vpop.f32.mrf.mxu3 }
 0x273   : > { %v3344_v61 = vadd.f32 %v3343_v20, %v3280_v8  ;;  %3803 = vmatmul.f32.gmra.mxu0 %v10937_v33  ;;  %3858 = vmatmul.f32.gmra.mxu1 %v10973_v16  ;;  %v4406_v37 = vand.u32 4294901760, %v11119_v54 }
 0x274   : > { %4465 = vmatpush.msra.mxu2 %v11119_v54 }
 0x275   : > { %v3405_v44 = vadd.f32 %v3404_v29, %v3344_v61  ;;  %3933 = vmatmul.f32.gmra.mxu2 %v11033_v45  ;;  %v4407_v63 = vsub.f32 %v11119_v54, %v4406_v37 }
 0x277   : > { %v11115_v23 = vadd.f32 %v3455_v40, %v3405_v44  ;;  %4000 = vmatmul.f32.gmra.mxu3 %v10973_v16  ;;  %v4408_v29 = vand.u32 4294901760, %v4407_v63 }
 0x278   : > { %v3284_v38 = vpop.f32.mrf.mxu0  ;;  %v3408_v13 = vpop.f32.mrf.mxu2 }
 0x279   : > { %v3285_v57 = vadd.f32 %v3284_v38, %v11044_v58  ;;  %v3355_v20 = vpop.f32.mrf.mxu1  ;;  %4409 = vmatpush.msra.mxu1 %v4408_v29 }
 0x27a   : > { %v3459_v45 = vpop.f32.mrf.mxu3 }
 0x27b   : > { %v3350_v7 = vadd.f32 %v3349_v34, %v3285_v57  ;;  %3807 = vmatmul.f32.gmra.mxu0 %v10973_v16  ;;  %3862 = vmatmul.f32.gmra.mxu1 %v11010_v11  ;;  %v2830_v34 = vadd.f32 %v10697_v36, %v10703_v35 }
 0x27d   : > { %v3409_v30 = vadd.f32 %v3408_v13, %v3350_v7  ;;  %3941 = vmatmul.f32.gmra.mxu2 %v11055_v48  ;;  %v2884_v48 = vadd.f32 %v10705_v0, %v2830_v34 }
 0x27f   : > { %v11132_v58 = vadd.f32 %v3459_v45, %v3409_v30  ;;  %4004 = vmatmul.f32.gmra.mxu3 %v11010_v11  ;;  %v2944_v35 = vadd.f32 %v10709_v56, %v2884_v48 }
 0x280   : > { %v3289_v8 = vpop.f32.mrf.mxu0  ;;  %v3412_v40 = vpop.f32.mrf.mxu2 }
 0x281   : > { %v3290_v61 = vadd.f32 %v3289_v8, %v11062_v14  ;;  %v3361_v44 = vpop.f32.mrf.mxu1  ;;  %v2834_v14 = vadd.f32 %v10711_v4, %v10716_v1  ;;  %v3013_v0 = vadd.f32 %v10869_v19, %v2944_v35 }
 0x282   : > { %v3463_v2 = vpop.f32.mrf.mxu3 }
 0x283   : > { %v3356_v38 = vadd.f32 %v3355_v20, %v3290_v61  ;;  %3811 = vmatmul.f32.gmra.mxu0 %v11010_v11  ;;  %3866 = vmatmul.f32.gmra.mxu1 %v11038_v43  ;;  %v3064_v56 = vadd.f32 %v10835_v47, %v3013_v0 }
 0x285   : > { %v3413_v13 = vadd.f32 %v3412_v40, %v3356_v38  ;;  %3949 = vmatmul.f32.gmra.mxu2 %v11070_v22  ;;  %v2889_v22 = vadd.f32 %v10718_v12, %v2834_v14 }
 0x287   : > { %v11142_v57 = vadd.f32 %v3463_v2, %v3413_v13  ;;  %4008 = vmatmul.f32.gmra.mxu3 %v11038_v43  ;;  %v2950_v19 = vadd.f32 %v10721_v53, %v2889_v22  ;;  %v13898_v22 = vld [vmem:[#allocation30_spill] sm:$0xff] }
 0x288   : > { %v3294_v45 = vpop.f32.mrf.mxu0  ;;  %v3416_v36 = vpop.f32.mrf.mxu2 }
 0x289   : > { %v3295_v20 = vadd.f32 %v3294_v45, %v11075_v21  ;;  %v3605_v7 = vpop.f32.mrf.mxu1  ;;  %v2838_v21 = vadd.f32 %v10723_v42, %v10729_v17  ;;  %v3017_v12 = vadd.f32 %v10907_v3, %v2950_v19  ;;  %v13901_v19 = vld [vmem:[#allocation42_spill] sm:$0xff] }
 0x28a   : > { %v3467_v63 = vpop.f32.mrf.mxu3 }
 0x28b   : > { %v3362_v30 = vadd.f32 %v3361_v44, %v3295_v20  ;;  %3815 = vmatmul.f32.gmra.mxu0 %v11038_v43  ;;  %4094 = vmatmul.f32.vlgmr.msrb.gmra.mxu1 %v10830_v49  ;;  %v2894_v47 = vadd.f32 %v10731_v59, %v2838_v21  ;;  %v4279_v44 = vld [vmem:[#allocation3 + $0x20] sm:$0xff]  ;;  %v3068_v2 = vadd.f32 %v10875_v26, %v3017_v12 }
 0x28c   : > { %v4323_v53 = vand.u32 4294901760, %v4279_v44  ;;  %v2842_v59 = vadd.f32 %v10736_v6, %v10742_v5 }
 0x28d   : > { %v3417_v29 = vadd.f32 %v3416_v36, %v3362_v30  ;;  %4163 = vmatmul.f32.vlgmr.msrb.gmra.mxu2 %v10805_v52  ;;  %v13897_v30 = vld [vmem:[#allocation28_spill] sm:$0xff] }
 0x28e   : > { %v4411_v38 = vsub.f32 %v4279_v44, %v4323_v53  ;;  %4324 = vmatpush.msra.mxu0 %v4323_v53  ;;  %4527 = vmatpush.msra.mxu3 %v4323_v53 }
 0x28f   : > { %v11155_v8 = vadd.f32 %v3467_v63, %v3417_v29  ;;  %4214 = vmatmul.f32.vlgmr.msrb.gmra.mxu3 %v10805_v52  ;;  %v13896_v63 = vld [vmem:[#allocation37_spill] sm:$0xff] }
 0x290   : > { %v3518_v4 = vpop.f32.mrf.mxu0  ;;  %v3659_v1 = vpop.f32.mrf.mxu2  ;;  %4468 = vmatpush.msra.mxu2 %v4411_v38  ;;  %v4412_v13 = vand.u32 4294901760, %v4411_v38 }
 0x291   : > { %v3519_v40 = vadd.f32 %v3518_v4, %v3064_v56  ;;  %v3609_v49 = vpop.f32.mrf.mxu1 }
 0x292   : > { %v3719_v34 = vpop.f32.mrf.mxu3  ;;  %v4413_v36 = vsub.f32 %v4411_v38, %v4412_v13 }
 0x293   : > { %v3606_v61 = vadd.f32 %v3605_v7, %v3519_v40  ;;  %4034 = vmatmul.f32.vlgmr.msrb.gmra.mxu0 %v10815_v51  ;;  %4100 = vmatmul.f32.gmra.mxu1 %v10865_v9  ;;  %v2956_v51 = vadd.f32 %v10734_v46, %v2894_v47  ;;  %v2899_v46 = vadd.f32 %v10744_v24, %v2842_v59  ;;  %v13902_v40 = vld [vmem:[#allocation44_spill] sm:$0xff] }
 0x294   : > { %4594 = vmatpush.msrb.mxu0 %v4406_v37  ;;  %v4414_v5 = vand.u32 4294901760, %v4413_v36 }
 0x295   : > { %v3660_v52 = vadd.f32 %v3659_v1, %v3606_v61  ;;  %4167 = vmatmul.f32.gmra.mxu2 %v10833_v27 }
 0x296   : > { %4598 = vmatpush.msrb.mxu0 %v4412_v13  ;;  %4415 = vmatpush.msra.mxu1 %v4414_v5 }
 0x297   : > { %v11167_v42 = vadd.f32 %v3719_v34, %v3660_v52  ;;  %4218 = vmatmul.f32.gmra.mxu3 %v10833_v27  ;;  %v3021_v27 = vadd.f32 %v10946_v50, %v2956_v51  ;;  %v13904_v52 = vld [vmem:[#allocation50_spill] sm:$0xff]  ;;  %v13908_v51 = vld [vmem:[#allocation24_spill] sm:$0xff] }
 0x298   : > { %v3526_v17 = vpop.f32.mrf.mxu0  ;;  %v3664_v3 = vpop.f32.mrf.mxu2  ;;  %4647 = vmatpush.msrb.mxu1 %v11113_v10 }
 0x299   : > { %v3527_v9 = vadd.f32 %v3526_v17, %v3068_v2  ;;  %v3613_v48 = vpop.f32.mrf.mxu1  ;;  %v3072_v54 = vadd.f32 %v10913_v41, %v3021_v27  ;;  %v13905_v2 = vld [vmem:[#allocation31_spill] sm:$0xff]  ;;  %v13906_v17 = vld [vmem:[#allocation20_spill] sm:$0xff] }
 0x29a   : > { %v3725_v26 = vpop.f32.mrf.mxu3  ;;  %4649 = vmatpush.msrb.mxu1 %v4323_v53 }
 0x29b   : > { %v3610_v45 = vadd.f32 %v3609_v49, %v3527_v9  ;;  %4039 = vmatmul.f32.gmra.mxu0 %v10852_v28  ;;  %4106 = vmatmul.f32.gmra.mxu1 %v10903_v55  ;;  %v2962_v28 = vadd.f32 %v10746_v60, %v2899_v46  ;;  %v13895_v55 = vld [vmem:[#allocation41_spill] sm:$0xff]  ;;  %v13900_v60 = vld [vmem:[#allocation35_spill] sm:$0xff] }
 0x29c   : > { %v2846_v14 = vadd.f32 %v13895_v55, %v10754_v62  ;;  %v13903_v49 = vld [vmem:[#allocation43_spill] sm:$0xff]  ;;  %v13911_v46 = vld [vmem:[#allocation17_spill] sm:$0xff] }
 0x29d   : > { %v3665_v6 = vadd.f32 %v3664_v3, %v3610_v45  ;;  %4171 = vmatmul.f32.gmra.mxu2 %v10867_v25  ;;  %v3025_v0 = vadd.f32 %v13896_v63, %v2962_v28  ;;  %v2850_v34 = vadd.f32 %v13903_v49, %v13902_v40  ;;  %v13907_v3 = vld [vmem:[#allocation45_spill] sm:$0xff]  ;;  %v13910_v45 = vld [vmem:[#allocation14_spill] sm:$0xff]  ;;  %v13913_v28 = vld [vmem:[#allocation55_spill] sm:$0xff] }
 0x29e   : > { %v13920_v40 = vld [vmem:[#allocation21_spill] sm:$0xff] }
 0x29f   : > { %v11181_v37 = vadd.f32 %v3725_v26, %v3665_v6  ;;  %4222 = vmatmul.f32.gmra.mxu3 %v10867_v25  ;;  %v13899_v25 = vld [vmem:[#allocation27_spill] sm:$0xff]  ;;  %v3076_v62 = vadd.f32 %v13900_v60, %v3025_v0  ;;  %v2909_v38 = vadd.f32 %v13907_v3, %v2850_v34  ;;  %v13912_v6 = vld [vmem:[#allocation46_spill] sm:$0xff]  ;;  %v13916_v0 = vld [vmem:[#allocation16_spill] sm:$0xff] }
 0x2a0   : > { %v3534_v50 = vpop.f32.mrf.mxu0  ;;  %v3669_v35 = vpop.f32.mrf.mxu2  ;;  %v2904_v29 = vadd.f32 %v13899_v25, %v2846_v14  ;;  %v2854_v5 = vadd.f32 %v13912_v6, %v13911_v46  ;;  %v13917_v25 = vld [vmem:[#allocation9_spill] sm:$0xff] }
 0x2a1   : > { %v3535_v20 = vadd.f32 %v3534_v50, %v3072_v54  ;;  %v3617_v24 = vpop.f32.mrf.mxu1  ;;  %v2974_v36 = vadd.f32 %v13910_v45, %v2909_v38 }
 0x2a2   : > { %v3731_v7 = vpop.f32.mrf.mxu3  ;;  %v2968_v21 = vadd.f32 %v13901_v19, %v2904_v29  ;;  %v11229_v29 = vmul.f32 2.0, %v13917_v25 }
 0x2a3   : > { %v3614_v41 = vadd.f32 %v3613_v48, %v3535_v20  ;;  %4044 = vmatmul.f32.gmra.mxu0 %v13897_v30  ;;  %4112 = vmatmul.f32.gmra.mxu1 %v13898_v22  ;;  %v13909_v48 = vld [vmem:[#allocation12_spill] sm:$0xff]  ;;  %v3033_v55 = vadd.f32 %v13913_v28, %v2974_v36  ;;  %v13914_v20 = vld [vmem:[#allocation34_spill] sm:$0xff] }
 0x2a4   : > { %v3029_v44 = vadd.f32 %v13904_v52, %v2968_v21  ;;  %v11210_v26 = vmul.f32 2.0, %v13909_v48  ;;  %v13921_v52 = vld [vmem:[#allocation59_spill] sm:$0xff] }
 0x2a5   : > { %v3670_v56 = vadd.f32 %v3669_v35, %v3614_v41  ;;  %4175 = vmatmul.f32.gmra.mxu2 %v10897_v31  ;;  %v2914_v41 = vadd.f32 %v13916_v0, %v2854_v5  ;;  %v13929_v0 = vld [vmem:[#allocation23_spill] sm:$0xff] }
 0x2a6   : > { %v3080_v59 = vadd.f32 %v13908_v51, %v3029_v44  ;;  %v13924_v51 = vld [vmem:[#allocation25_spill] sm:$0xff] }
 0x2a7   : > { %v11194_v4 = vadd.f32 %v3731_v7, %v3670_v56  ;;  %4226 = vmatmul.f32.gmra.mxu3 %v10897_v31  ;;  %v4254_v7 = vmul.f32 %v11210_v26, %v13909_v48  ;;  %v13918_v56 = vld [vmem:[#allocation51_spill] sm:$0xff]  ;;  %v2980_v49 = vadd.f32 %v13920_v40, %v2914_v41  ;;  %v11274_v41 = vmul.f32 2.0, %v13929_v0  ;;  %v13932_v40 = vld [vmem:[#allocation60_spill] sm:$0xff] }
 0x2a8   : > { %v3542_v10 = vpop.f32.mrf.mxu0  ;;  %v3674_v1 = vpop.f32.mrf.mxu2  ;;  %v3084_v60 = vadd.f32 %v13918_v56, %v3033_v55  ;;  %v13927_v55 = vld [vmem:[#allocation53_spill] sm:$0xff] }
 0x2a9   : > { %v3543_v12 = vadd.f32 %v3542_v10, %v3076_v62  ;;  %v3621_v61 = vpop.f32.mrf.mxu1  ;;  %v11235_v10 = vadd.f32 -1.0, %v4254_v7  ;;  %v3037_v44 = vadd.f32 %v13921_v52, %v2980_v49  ;;  %13930 = vst [vmem:[#allocation28_spill] sm:$0xff] %v11274_v41  ;;  %v13933_v52 = vld [vmem:[#allocation57_spill] sm:$0xff] }
 0x2aa   : > { %v3737_v47 = vpop.f32.mrf.mxu3 }
 0x2ab   : > { %v3618_v53 = vadd.f32 %v3617_v24, %v3543_v12  ;;  %4049 = vmatmul.f32.gmra.mxu0 %v13905_v2  ;;  %4118 = vmatmul.f32.gmra.mxu1 %v13906_v17  ;;  %v13915_v24 = vld [vmem:[#allocation49_spill] sm:$0xff]  ;;  %13919 = vst [vmem:[#allocation41_spill] sm:$0xff] %v11235_v10  ;;  %v13922_v2 = vld [vmem:[#allocation48_spill] sm:$0xff]  ;;  %v4255_v17 = vmul.f32 %v11229_v29, %v13917_v25  ;;  %v4284_v3 = vsel %vm2693_vm14, %v11235_v10, 0 }
 0x2ac   : > { %v11257_v36 = vand.u32 4294901760, %v4284_v3 }
 0x2ad   : > { %v3675_v31 = vadd.f32 %v3674_v1, %v3618_v53  ;;  %4179 = vmatmul.f32.gmra.mxu2 %v10937_v33  ;;  %v11259_v46 = vadd.f32 -1.0, %v4255_v17 }
 0x2af   : > { %v11206_v9 = vadd.f32 %v3737_v47, %v3675_v31  ;;  %4230 = vmatmul.f32.gmra.mxu3 %v10937_v33  ;;  %v4282_v33 = vld [vmem:[#allocation3 + $0x38] sm:$0xff]  ;;  %13926 = vst [vmem:[#allocation37_spill] sm:$0xff] %v11259_v46 }
 0x2b0   : > { %v3550_v13 = vpop.f32.mrf.mxu0  ;;  %v3679_v27 = vpop.f32.mrf.mxu2  ;;  %v11220_v63 = vand.u32 4294901760, %v4282_v33 }
 0x2b1   : > { %v3551_v54 = vadd.f32 %v3550_v13, %v3080_v59  ;;  %v3625_v50 = vpop.f32.mrf.mxu1  ;;  %v11251_v59 = vmul.f32 2.0, %v13924_v51  ;;  %v13925_v13 = vld [vmem:[#allocation56_spill] sm:$0xff] }
 0x2b2   : > { %v3743_v35 = vpop.f32.mrf.mxu3  ;;  %4698 = vmatpush.msrb.mxu2 %v11220_v63  ;;  %v11226_v22 = vsub.f32 %v4282_v33, %v11220_v63 }
 0x2b3   : > { %v3622_v14 = vadd.f32 %v3621_v61, %v3551_v54  ;;  %4054 = vmatmul.f32.gmra.mxu0 %v13914_v20  ;;  %4124 = vmatmul.f32.gmra.mxu1 %v13915_v24  ;;  %v11264_v20 = vsub.f32 %v4284_v3, %v11257_v36  ;;  %v4256_v24 = vmul.f32 %v11251_v59, %v13924_v51  ;;  %v13934_v3 = vld [vmem:[#allocation10_spill] sm:$0xff] }
 0x2b4   : > { %v4782_v21 = vand.u32 4294901760, %v11226_v22 }
 0x2b5   : > { %v3680_v30 = vadd.f32 %v3679_v27, %v3622_v14  ;;  %4183 = vmatmul.f32.gmra.mxu2 %v10973_v16  ;;  %v3088_v27 = vadd.f32 %v13925_v13, %v3037_v44  ;;  %v13928_v14 = vld [vmem:[#allocation58_spill] sm:$0xff]  ;;  %v11280_v56 = vand.u32 4294901760, %v11264_v20 }
 0x2b6   : > { %v4783_v47 = vsub.f32 %v11226_v22, %v4782_v21 }
 0x2b7   : > { %v11232_v62 = vadd.f32 %v3743_v35, %v3680_v30  ;;  %4234 = vmatmul.f32.gmra.mxu3 %v10973_v16  ;;  %v13923_v16 = vld [vmem:[#allocation54_spill] sm:$0xff] }
 0x2b8   : > { %v3558_v1 = vpop.f32.mrf.mxu0  ;;  %v3684_v19 = vpop.f32.mrf.mxu2  ;;  %v4784_v38 = vand.u32 4294901760, %v4783_v47 }
 0x2b9   : > { %v3559_v34 = vadd.f32 %v3558_v1, %v3084_v60  ;;  %v3629_v12 = vpop.f32.mrf.mxu1  ;;  %v11282_v60 = vadd.f32 -1.0, %v4256_v24 }
 0x2ba   : > { %v3749_v61 = vpop.f32.mrf.mxu3  ;;  %4785 = vmatpush.msrb.mxu3 %v4784_v38  ;;  %v11304_v38 = vmul.f32 2.0, %v13934_v3 }
 0x2bb   : > { %v3626_v53 = vadd.f32 %v3625_v50, %v3559_v34  ;;  %4059 = vmatmul.f32.gmra.mxu0 %v13922_v2  ;;  %4130 = vmatmul.f32.gmra.mxu1 %v13923_v16  ;;  %13931 = vst [vmem:[#allocation30_spill] sm:$0xff] %v11282_v60  ;;  %v4290_v44 = vsel %vm2693_vm14, %v11282_v60, 0 }
 0x2bc   : > { %v11301_v17 = vand.u32 4294901760, %v4290_v44  ;;  %13935 = vst [vmem:[#allocation27_spill] sm:$0xff] %v11304_v38 }
 0x2bd   : > { %v3685_v31 = vadd.f32 %v3684_v19, %v3626_v53  ;;  %4187 = vmatmul.f32.gmra.mxu2 %v11010_v11  ;;  %v4257_v53 = vmul.f32 %v11274_v41, %v13929_v0 }
 0x2bf   : > { %v11254_v45 = vadd.f32 %v3749_v61, %v3685_v31  ;;  %4238 = vmatmul.f32.gmra.mxu3 %v11010_v11  ;;  %v4287_v11 = vsel %vm2693_vm14, %v11259_v46, 0 }
 0x2c0   : > { %v3566_v6 = vpop.f32.mrf.mxu0  ;;  %v3689_v5 = vpop.f32.mrf.mxu2  ;;  %v11271_v7 = vand.u32 4294901760, %v4287_v11 }
 0x2c1   : > { %v3567_v54 = vadd.f32 %v3566_v6, %v3088_v27  ;;  %v3633_v50 = vpop.f32.mrf.mxu1  ;;  %v11311_v27 = vadd.f32 -1.0, %v4257_v53 }
 0x2c2   : > { %v3755_v35 = vpop.f32.mrf.mxu3  ;;  %v11286_v61 = vsub.f32 %v4287_v11, %v11271_v7 }
 0x2c3   : > { %v3630_v28 = vadd.f32 %v3629_v12, %v3567_v54  ;;  %4064 = vmatmul.f32.gmra.mxu0 %v13927_v55  ;;  %4136 = vmatmul.f32.gmra.mxu1 %v13928_v14  ;;  %13936 = vst [vmem:[#allocation35_spill] sm:$0xff] %v11311_v27  ;;  %v11318_v14 = vsub.f32 %v4290_v44, %v11301_v17 }
 0x2c4   : > { %v11299_v16 = vand.u32 4294901760, %v11286_v61 }
 0x2c5   : > { %v3690_v33 = vadd.f32 %v3689_v5, %v3630_v28  ;;  %4191 = vmatmul.f32.gmra.mxu2 %v11038_v43 }
 0x2c6   : > { %v4336_v55 = vsub.f32 %v11286_v61, %v11299_v16 }
 0x2c7   : > { %v11276_v30 = vadd.f32 %v3755_v35, %v3690_v33  ;;  %4242 = vmatmul.f32.gmra.mxu3 %v11038_v43  ;;  %v4328_v43 = vsub.f32 %v11264_v20, %v11280_v56  ;;  %v4280_v33 = vld [vmem:[#allocation3 + $0x28] sm:$0xff] }
 0x2c8   : > { %v3574_v1 = vpop.f32.mrf.mxu0  ;;  %v3694_v19 = vpop.f32.mrf.mxu2 }
 0x2c9   : > { %v3575_v49 = vadd.f32 %v3574_v1, %v13932_v40  ;;  %v3839_v34 = vpop.f32.mrf.mxu1  ;;  %v11309_v13 = vand.u32 4294901760, %v4328_v43  ;;  %v4699_v1 = vand.u32 4294901760, %v4280_v33 }
 0x2ca   : > { %v3761_v12 = vpop.f32.mrf.mxu3 }
 0x2cb   : > { %v3634_v47 = vadd.f32 %v3633_v50, %v3575_v49  ;;  %4069 = vmatmul.f32.gmra.mxu0 %v13933_v52  ;;  %4417 = vmatmul.f32.vlgmr.msra.gmra.mxu1 %v11257_v36  ;;  %v4787_v40 = vsub.f32 %v4280_v33, %v4699_v1  ;;  %v11335_v49 = vand.u32 4294901760, %v4336_v55  ;;  %v13940_v33 = vld [vmem:[#allocation47_spill] sm:$0xff] }
 0x2cc   : > { %4901 = vmatpush.msra.mxu1 %v11220_v63  ;;  %4700 = vmatpush.msrb.mxu2 %v4699_v1 }
 0x2cd   : > { %v3695_v2 = vadd.f32 %v3694_v19, %v3634_v47  ;;  %4471 = vmatmul.f32.vlgmr.msra.gmra.mxu2 %v11264_v20  ;;  %v13938_v47 = vld [vmem:[#allocation15_spill] sm:$0xff]  ;;  %v4788_v53 = vand.u32 4294901760, %v4787_v40 }
 0x2ce   : > { %4903 = vmatpush.msra.mxu1 %v4699_v1  ;;  %4970 = vmatpush.msra.mxu2 %v4782_v21  ;;  %v11345_v52 = vmul.f32 2.0, %v13938_v47 }
 0x2cf   : > { %v11306_v31 = vadd.f32 %v3761_v12, %v3695_v2  ;;  %4531 = vmatmul.f32.vlgmr.msra.gmra.mxu3 %v11280_v56 }
 0x2d0   : > { %v3788_v6 = vpop.f32.mrf.mxu0  ;;  %v3894_v5 = vpop.f32.mrf.mxu2  ;;  %13939 = vst [vmem:[#allocation44_spill] sm:$0xff] %v11345_v52  ;;  %4974 = vmatpush.msra.mxu2 %v4788_v53 }
 0x2d1   : > { %v3789_v54 = vadd.f32 %v3788_v6, %v11167_v42  ;;  %v3895_v50 = vadd.f32 %v3894_v5, %v11085_v18  ;;  %v3843_v35 = vpop.f32.mrf.mxu1  ;;  %v4293_v42 = vsel %vm2693_vm14, %v11311_v27, 0  ;;  %v4258_v18 = vmul.f32 %v11304_v38, %v13934_v3 }
 0x2d2   : > { %v3981_v28 = vpop.f32.mrf.mxu3  ;;  %v11332_v19 = vand.u32 4294901760, %v4293_v42 }
 0x2d3   : > { %v11320_v11 = vadd.f32 %v3839_v34, %v3789_v54  ;;  %v11322_v24 = vadd.f32 %v3981_v28, %v3895_v50  ;;  %4330 = vmatmul.f32.vlgmr.msra.gmra.mxu0 %v11309_v13  ;;  %4421 = vmatmul.f32.gmra.mxu1 %v11271_v7  ;;  %v11338_v34 = vand.u32 4294901760, %v11318_v14  ;;  %v11340_v12 = vadd.f32 -1.0, %v4258_v18 }
 0x2d4   : > { %4841 = vmatpush.msra.mxu0 %v11226_v22  ;;  %v11350_v50 = vsub.f32 %v4293_v42, %v11332_v19  ;;  %v4789_v28 = vsub.f32 %v4787_v40, %v4788_v53  ;;  %v4259_v42 = vmul.f32 %v11345_v52, %v13938_v47 }
 0x2d5   : > { %4476 = vmatmul.f32.gmra.mxu2 %v11286_v61  ;;  %13937 = vst [vmem:[#allocation42_spill] sm:$0xff] %v11340_v12  ;;  %v4344_v55 = vsub.f32 %v11318_v14, %v11338_v34 }
 0x2d6   : > { %4844 = vmatpush.msra.mxu0 %v4787_v40  ;;  %v11371_v40 = vmul.f32 2.0, %v13940_v33 }
 0x2d7   : > { %4537 = vmatmul.f32.gmra.mxu3 %v11299_v16 }
 0x2d8   : > { %v3792_v43 = vpop.f32.mrf.mxu0  ;;  %v3902_v44 = vpop.f32.mrf.mxu2  ;;  %13941 = vst [vmem:[#allocation43_spill] sm:$0xff] %v11371_v40 }
 0x2d9   : > { %v3793_v2 = vadd.f32 %v3792_v43, %v11181_v37  ;;  %v3903_v6 = vadd.f32 %v3902_v44, %v11092_v15  ;;  %v3847_v5 = vpop.f32.mrf.mxu1  ;;  %v4296_v15 = vsel %vm2693_vm14, %v11340_v12, 0  ;;  %v4790_v37 = vand.u32 4294901760, %v4789_v28 }
 0x2da   : > { %v3985_v54 = vpop.f32.mrf.mxu3  ;;  %v11368_v18 = vand.u32 4294901760, %v4296_v15  ;;  %v11374_v43 = vand.u32 4294901760, %v4344_v55 }
 0x2db   : > { %v11352_v22 = vadd.f32 %v3843_v35, %v3793_v2  ;;  %v11354_v21 = vadd.f32 %v3985_v54, %v3903_v6  ;;  %4338 = vmatmul.f32.gmra.mxu0 %v11335_v49  ;;  %4425 = vmatmul.f32.gmra.mxu1 %v11301_v17  ;;  %v11366_v35 = vand.u32 4294901760, %v11350_v50  ;;  %v11376_v2 = vadd.f32 -1.0, %v4259_v42 }
 0x2dc   : > { %4791 = vmatpush.msrb.mxu3 %v4790_v37  ;;  %v11384_v3 = vsub.f32 %v4296_v15, %v11368_v18  ;;  %v13944_v15 = vld [vmem:[#allocation52_spill] sm:$0xff] }
 0x2dd   : > { %4481 = vmatmul.f32.gmra.mxu2 %v11318_v14  ;;  %13942 = vst [vmem:[#allocation50_spill] sm:$0xff] %v11376_v2  ;;  %v4352_v37 = vsub.f32 %v11350_v50, %v11366_v35  ;;  %v11408_v42 = vmul.f32 2.0, %v13944_v15 }
 0x2de   : > { %5023 = vmatpush.msra.mxu3 %v11220_v63  ;;  %v11398_v63 = vand.u32 4294901760, %v11384_v3 }
 0x2df   : > { %4543 = vmatmul.f32.gmra.mxu3 %v11338_v34  ;;  %13945 = vst [vmem:[#allocation20_spill] sm:$0xff] %v11408_v42 }
 0x2e0   : > { %v3796_v44 = vpop.f32.mrf.mxu0  ;;  %v3910_v53 = vpop.f32.mrf.mxu2  ;;  %5025 = vmatpush.msra.mxu3 %v4699_v1  ;;  %v11401_v1 = vand.u32 4294901760, %v4352_v37  ;;  %v4360_v0 = vsub.f32 %v11384_v3, %v11398_v63 }
 0x2e1   : > { %v3797_v6 = vadd.f32 %v3796_v44, %v11194_v4  ;;  %v3911_v54 = vadd.f32 %v3910_v53, %v11099_v32  ;;  %v3851_v28 = vpop.f32.mrf.mxu1  ;;  %v4260_v32 = vmul.f32 %v11371_v40, %v13940_v33  ;;  %v4299_v4 = vsel %vm2693_vm14, %v11376_v2, 0 }
 0x2e2   : > { %v3989_v47 = vpop.f32.mrf.mxu3 }
 0x2e3   : > { %v11386_v55 = vadd.f32 %v3847_v5, %v3797_v6  ;;  %v11388_v12 = vadd.f32 %v3989_v47, %v3911_v54  ;;  %4346 = vmatmul.f32.gmra.mxu0 %v11374_v43  ;;  %4429 = vmatmul.f32.gmra.mxu1 %v11332_v19  ;;  %v11403_v47 = vand.u32 4294901760, %v4299_v4  ;;  %v11405_v5 = vadd.f32 -1.0, %v4260_v32 }
 0x2e5   : > { %4486 = vmatmul.f32.gmra.mxu2 %v11350_v50  ;;  %13943 = vst [vmem:[#allocation31_spill] sm:$0xff] %v11405_v5  ;;  %v11421_v32 = vsub.f32 %v4299_v4, %v11403_v47 }
 0x2e7   : > { %4549 = vmatmul.f32.gmra.mxu3 %v11366_v35 }
 0x2e8   : > { %v3800_v44 = vpop.f32.mrf.mxu0  ;;  %v3918_v53 = vpop.f32.mrf.mxu2 }
 0x2e9   : > { %v3801_v6 = vadd.f32 %v3800_v44, %v11206_v9  ;;  %v3919_v54 = vadd.f32 %v3918_v53, %v11106_v39  ;;  %v3855_v33 = vpop.f32.mrf.mxu1  ;;  %v4302_v9 = vsel %vm2693_vm14, %v11405_v5, 0  ;;  %v4261_v39 = vmul.f32 %v11408_v42, %v13944_v15 }
 0x2ea   : > { %v3993_v2 = vpop.f32.mrf.mxu3  ;;  %v11428_v44 = vand.u32 4294901760, %v4302_v9 }
 0x2eb   : > { %v11414_v37 = vadd.f32 %v3851_v28, %v3801_v6  ;;  %v11416_v27 = vadd.f32 %v3993_v2, %v3919_v54  ;;  %4354 = vmatmul.f32.gmra.mxu0 %v11401_v1  ;;  %4433 = vmatmul.f32.gmra.mxu1 %v11368_v18  ;;  %v11431_v2 = vand.u32 4294901760, %v4360_v0  ;;  %v11434_v28 = vand.u32 4294901760, %v11421_v32 }
 0x2ec   : > { %v11436_v6 = vadd.f32 -1.0, %v4261_v39  ;;  %v11441_v60 = vsub.f32 %v4302_v9, %v11428_v44 }
 0x2ed   : > { %4491 = vmatmul.f32.gmra.mxu2 %v11384_v3  ;;  %v4368_v46 = vsub.f32 %v11421_v32, %v11434_v28 }
 0x2ee   : > { %13946 = vst [vmem:[#allocation45_spill] sm:$0xff] %v11436_v6 }
 0x2ef   : > { %4555 = vmatmul.f32.gmra.mxu3 %v11398_v63 }
 0x2f0   : > { %v3804_v53 = vpop.f32.mrf.mxu0  ;;  %v3926_v4 = vpop.f32.mrf.mxu2 }
 0x2f1   : > { %v3805_v54 = vadd.f32 %v3804_v53, %v11232_v62  ;;  %v3927_v5 = vadd.f32 %v3926_v4, %v11115_v23  ;;  %v3859_v15 = vpop.f32.mrf.mxu1  ;;  %v4305_v62 = vsel %vm2693_vm14, %v11436_v6, 0  ;;  %v11455_v23 = vand.u32 4294901760, %v11441_v60 }
 0x2f2   : > { %v3997_v51 = vpop.f32.mrf.mxu3 }
 0x2f3   : > { %v11443_v25 = vadd.f32 %v3855_v33, %v3805_v54  ;;  %v11445_v0 = vadd.f32 %v3997_v51, %v3927_v5  ;;  %4362 = vmatmul.f32.gmra.mxu0 %v11431_v2  ;;  %4437 = vmatmul.f32.gmra.mxu1 %v11403_v47  ;;  %v11458_v33 = vand.u32 4294901760, %v4368_v46  ;;  %v11460_v51 = vand.u32 4294901760, %v4305_v62 }
 0x2f4   : > { %v4376_v6 = vsub.f32 %v11441_v60, %v11455_v23 }
 0x2f5   : > { %13947 = vst [vmem:[#allocation24_spill] sm:$0xff] %v11443_v25  ;;  %4496 = vmatmul.f32.gmra.mxu2 %v11421_v32  ;;  %v11473_v46 = vsub.f32 %v4305_v62, %v11460_v51 }
 0x2f7   : > { %4561 = vmatmul.f32.gmra.mxu3 %v11434_v28 }
 0x2f8   : > { %v3808_v5 = vpop.f32.mrf.mxu0  ;;  %v3934_v9 = vpop.f32.mrf.mxu2 }
 0x2f9   : > { %v3809_v39 = vadd.f32 %v3808_v5, %v11254_v45  ;;  %v3935_v53 = vadd.f32 %v3934_v9, %v11132_v58  ;;  %v3863_v4 = vpop.f32.mrf.mxu1  ;;  %v11477_v58 = vand.u32 4294901760, %v4376_v6  ;;  %v11480_v45 = vand.u32 4294901760, %v11473_v46 }
 0x2fa   : > { %v4001_v54 = vpop.f32.mrf.mxu3 }
 0x2fb   : > { %v11466_v48 = vadd.f32 %v3859_v15, %v3809_v39  ;;  %v11468_v10 = vadd.f32 %v4001_v54, %v3935_v53  ;;  %4370 = vmatmul.f32.gmra.mxu0 %v11458_v33  ;;  %4441 = vmatmul.f32.gmra.mxu1 %v11428_v44  ;;  %v4384_v6 = vsub.f32 %v11473_v46, %v11480_v45 }
 0x2fd   : > { %13948 = vst [vmem:[#allocation14_spill] sm:$0xff] %v11466_v48  ;;  %4501 = vmatmul.f32.gmra.mxu2 %v11441_v60 }
 0x2ff   : > { %4567 = vmatmul.f32.gmra.mxu3 %v11455_v23 }
 0x300   : > { %v3812_v15 = vpop.f32.mrf.mxu0  ;;  %v3942_v5 = vpop.f32.mrf.mxu2 }
 0x301   : > { %v3813_v9 = vadd.f32 %v3812_v15, %v11276_v30  ;;  %v3943_v39 = vadd.f32 %v3942_v5, %v11142_v57  ;;  %v3867_v53 = vpop.f32.mrf.mxu1  ;;  %v11494_v30 = vand.u32 4294901760, %v4384_v6 }
 0x302   : > { %v4005_v54 = vpop.f32.mrf.mxu3 }
 0x303   : > { %v11484_v48 = vadd.f32 %v3863_v4, %v3813_v9  ;;  %v11486_v62 = vadd.f32 %v4005_v54, %v3943_v39  ;;  %4378 = vmatmul.f32.gmra.mxu0 %v11477_v58  ;;  %4445 = vmatmul.f32.gmra.mxu1 %v11460_v51 }
 0x305   : > { %13949 = vst [vmem:[#allocation17_spill] sm:$0xff] %v11484_v48  ;;  %4506 = vmatmul.f32.gmra.mxu2 %v11473_v46 }
 0x307   : > { %4573 = vmatmul.f32.gmra.mxu3 %v11480_v45 }
 0x308   : > { %v3816_v57 = vpop.f32.mrf.mxu0  ;;  %v3950_v15 = vpop.f32.mrf.mxu2 }
 0x309   : > { %v3817_v4 = vadd.f32 %v3816_v57, %v11306_v31  ;;  %v3951_v5 = vadd.f32 %v3950_v15, %v11155_v8  ;;  %v4095_v9 = vpop.f32.mrf.mxu1 }
 0x30a   : > { %v4009_v39 = vpop.f32.mrf.mxu3 }
 0x30b   : > { %v11498_v54 = vadd.f32 %v3867_v53, %v3817_v4  ;;  %v11500_v48 = vadd.f32 %v4009_v39, %v3951_v5  ;;  %4386 = vmatmul.f32.gmra.mxu0 %v11494_v30  ;;  %4651 = vmatmul.f32.vlgmr.msrb.gmra.mxu1 %v11257_v36 }
 0x30d   : > { %13950 = vst [vmem:[#allocation46_spill] sm:$0xff] %v11498_v54  ;;  %4706 = vmatmul.f32.vlgmr.msrb.gmra.mxu2 %v11309_v13 }
 0x30f   : > { %4793 = vmatmul.f32.vlgmr.msrb.gmra.mxu3 %v11257_v36 }
 0x310   : > { %v4035_v6 = vpop.f32.mrf.mxu0  ;;  %v4164_v25 = vpop.f32.mrf.mxu2 }
 0x311   : > { %v4036_v31 = vadd.f32 %v4035_v6, %v11322_v24  ;;  %v4101_v57 = vpop.f32.mrf.mxu1 }
 0x312   : > { %v4215_v8 = vpop.f32.mrf.mxu3 }
 0x313   : > { %v4096_v15 = vadd.f32 %v4095_v9, %v4036_v31  ;;  %4600 = vmatmul.f32.vlgmr.msrb.gmra.mxu0 %v11257_v36  ;;  %4655 = vmatmul.f32.gmra.mxu1 %v11271_v7 }
 0x315   : > { %v4165_v53 = vadd.f32 %v4164_v25, %v4096_v15  ;;  %4714 = vmatmul.f32.gmra.mxu2 %v11335_v49 }
 0x317   : > { %v11510_v4 = vadd.f32 %v4215_v8, %v4165_v53  ;;  %4797 = vmatmul.f32.gmra.mxu3 %v11271_v7 }
 0x318   : > { %v4040_v13 = vpop.f32.mrf.mxu0  ;;  %v4168_v5 = vpop.f32.mrf.mxu2 }
 0x319   : > { %v4041_v39 = vadd.f32 %v4040_v13, %v11354_v21  ;;  %v4107_v54 = vpop.f32.mrf.mxu1 }
 0x31a   : > { %v4219_v24 = vpop.f32.mrf.mxu3 }
 0x31b   : > { %v4102_v6 = vadd.f32 %v4101_v57, %v4041_v39  ;;  %4604 = vmatmul.f32.gmra.mxu0 %v11271_v7  ;;  %4659 = vmatmul.f32.gmra.mxu1 %v11301_v17 }
 0x31d   : > { %v4169_v9 = vadd.f32 %v4168_v5, %v4102_v6  ;;  %4722 = vmatmul.f32.gmra.mxu2 %v11374_v43 }
 0x31f   : > { %v11517_v25 = vadd.f32 %v4219_v24, %v4169_v9  ;;  %4801 = vmatmul.f32.gmra.mxu3 %v11301_v17 }
 0x320   : > { %v4045_v49 = vpop.f32.mrf.mxu0  ;;  %v4172_v31 = vpop.f32.mrf.mxu2 }
 0x321   : > { %v4046_v8 = vadd.f32 %v4045_v49, %v11388_v12  ;;  %v4113_v15 = vpop.f32.mrf.mxu1 }
 0x322   : > { %v4223_v21 = vpop.f32.mrf.mxu3 }
 0x323   : > { %v4108_v53 = vadd.f32 %v4107_v54, %v4046_v8  ;;  %4608 = vmatmul.f32.gmra.mxu0 %v11301_v17  ;;  %4663 = vmatmul.f32.gmra.mxu1 %v11332_v19 }
 0x325   : > { %v4173_v57 = vadd.f32 %v4172_v31, %v4108_v53  ;;  %4730 = vmatmul.f32.gmra.mxu2 %v11401_v1 }
 0x327   : > { %v11524_v13 = vadd.f32 %v4223_v21, %v4173_v57  ;;  %4805 = vmatmul.f32.gmra.mxu3 %v11332_v19 }
 0x328   : > { %v4050_v43 = vpop.f32.mrf.mxu0  ;;  %v4176_v5 = vpop.f32.mrf.mxu2 }
 0x329   : > { %v4051_v39 = vadd.f32 %v4050_v43, %v11416_v27  ;;  %v4119_v24 = vpop.f32.mrf.mxu1  ;;  %v5078_v27 = vld [vmem:[#allocation3 + $0xb0] sm:$0xff] }
 0x32a   : > { %v4227_v12 = vpop.f32.mrf.mxu3  ;;  %v11535_v53 = vand.u32 4294901760, %v5078_v27 }
 0x32b   : > { %v4114_v6 = vadd.f32 %v4113_v15, %v4051_v39  ;;  %4612 = vmatmul.f32.gmra.mxu0 %v11332_v19  ;;  %4667 = vmatmul.f32.gmra.mxu1 %v11368_v18 }
 0x32c   : > { %5119 = vmatpush.msrb.mxu0 %v11535_v53  ;;  %5322 = vmatpush.msrb.mxu3 %v11535_v53 }
 0x32d   : > { %v4177_v54 = vadd.f32 %v4176_v5, %v4114_v6  ;;  %4738 = vmatmul.f32.gmra.mxu2 %v11431_v2  ;;  %v11540_v2 = vsub.f32 %v5078_v27, %v11535_v53 }
 0x32f   : > { %v11531_v9 = vadd.f32 %v4227_v12, %v4177_v54  ;;  %4809 = vmatmul.f32.gmra.mxu3 %v11368_v18  ;;  %5262 = vmatpush.msrb.mxu2 %v11540_v2 }
 0x330   : > { %v4055_v1 = vpop.f32.mrf.mxu0  ;;  %v4180_v49 = vpop.f32.mrf.mxu2 }
 0x331   : > { %v4056_v31 = vadd.f32 %v4055_v1, %v11445_v0  ;;  %v4125_v8 = vpop.f32.mrf.mxu1  ;;  %v5203_v0 = vand.u32 4294901760, %v11540_v2 }
 0x332   : > { %v4231_v21 = vpop.f32.mrf.mxu3 }
 0x333   : > { %v4120_v15 = vadd.f32 %v4119_v24, %v4056_v31  ;;  %4616 = vmatmul.f32.gmra.mxu0 %v11368_v18  ;;  %4671 = vmatmul.f32.gmra.mxu1 %v11403_v47  ;;  %v5204_v24 = vsub.f32 %v11540_v2, %v5203_v0 }
 0x335   : > { %v4181_v57 = vadd.f32 %v4180_v49, %v4120_v15  ;;  %4746 = vmatmul.f32.gmra.mxu2 %v11458_v33  ;;  %v5205_v1 = vand.u32 4294901760, %v5204_v24 }
 0x337   : > { %v11547_v43 = vadd.f32 %v4231_v21, %v4181_v57  ;;  %4813 = vmatmul.f32.gmra.mxu3 %v11403_v47  ;;  %5206 = vmatpush.msrb.mxu1 %v5205_v1 }
 0x338   : > { %v4060_v5 = vpop.f32.mrf.mxu0  ;;  %v4184_v39 = vpop.f32.mrf.mxu2 }
 0x339   : > { %v4061_v12 = vadd.f32 %v4060_v5, %v11468_v10  ;;  %v4131_v6 = vpop.f32.mrf.mxu1 }
 0x33a   : > { %v4235_v54 = vpop.f32.mrf.mxu3 }
 0x33b   : > { %v4126_v49 = vadd.f32 %v4125_v8, %v4061_v12  ;;  %4620 = vmatmul.f32.gmra.mxu0 %v11403_v47  ;;  %4675 = vmatmul.f32.gmra.mxu1 %v11428_v44 }
 0x33d   : > { %v4185_v33 = vadd.f32 %v4184_v39, %v4126_v49  ;;  %4754 = vmatmul.f32.gmra.mxu2 %v11477_v58 }
 0x33f   : > { %v11555_v31 = vadd.f32 %v4235_v54, %v4185_v33  ;;  %4817 = vmatmul.f32.gmra.mxu3 %v11428_v44 }
 0x340   : > { %v4065_v27 = vpop.f32.mrf.mxu0  ;;  %v4188_v21 = vpop.f32.mrf.mxu2 }
 0x341   : > { %v4066_v10 = vadd.f32 %v4065_v27, %v11486_v62  ;;  %v4137_v15 = vpop.f32.mrf.mxu1 }
 0x342   : > { %v4239_v2 = vpop.f32.mrf.mxu3 }
 0x343   : > { %v4132_v57 = vadd.f32 %v4131_v6, %v4066_v10  ;;  %4624 = vmatmul.f32.gmra.mxu0 %v11428_v44  ;;  %4679 = vmatmul.f32.gmra.mxu1 %v11460_v51 }
 0x345   : > { %v4189_v8 = vadd.f32 %v4188_v21, %v4132_v57  ;;  %4762 = vmatmul.f32.gmra.mxu2 %v11494_v30  ;;  %v5076_v21 = vld [vmem:[#allocation3 + $0xa0] sm:$0xff] }
 0x346   : > { %v5120_v10 = vand.u32 4294901760, %v5076_v21 }
 0x347   : > { %v11562_v5 = vadd.f32 %v4239_v2, %v4189_v8  ;;  %4821 = vmatmul.f32.gmra.mxu3 %v11460_v51 }
 0x348   : > { %v4070_v58 = vpop.f32.mrf.mxu0  ;;  %v4192_v39 = vpop.f32.mrf.mxu2  ;;  %5121 = vmatpush.msrb.mxu0 %v5120_v10  ;;  %5324 = vmatpush.msrb.mxu3 %v5120_v10 }
 0x349   : > { %v4071_v24 = vadd.f32 %v4070_v58, %v11500_v48  ;;  %v4418_v12 = vpop.f32.mrf.mxu1 }
 0x34a   : > { %v4243_v62 = vpop.f32.mrf.mxu3 }
 0x34b   : > { %v4138_v54 = vadd.f32 %v4137_v15, %v4071_v24  ;;  %4628 = vmatmul.f32.gmra.mxu0 %v11460_v51  ;;  %4907 = vmatmul.f32.vlgmr.msra.gmra.mxu1 %v11280_v56  ;;  %v5208_v56 = vsub.f32 %v5076_v21, %v5120_v10 }
 0x34d   : > { %v4193_v6 = vadd.f32 %v4192_v39, %v4138_v54  ;;  %4976 = vmatmul.f32.vlgmr.msra.gmra.mxu2 %v11257_v36 }
 0x34e   : > { %5265 = vmatpush.msrb.mxu2 %v5208_v56 }
 0x34f   : > { %v11569_v1 = vadd.f32 %v4243_v62, %v4193_v6  ;;  %5027 = vmatmul.f32.vlgmr.msra.gmra.mxu3 %v11257_v36  ;;  %v5209_v36 = vand.u32 4294901760, %v5208_v56 }
 0x350   : > { %v4331_v30 = vpop.f32.mrf.mxu0  ;;  %v4472_v49 = vpop.f32.mrf.mxu2 }
 0x351   : > { %v4419_v33 = vadd.f32 %v4418_v12, %v4331_v30  ;;  %v4422_v27 = vpop.f32.mrf.mxu1  ;;  %v5210_v58 = vsub.f32 %v5208_v56, %v5209_v36 }
 0x352   : > { %v4532_v48 = vpop.f32.mrf.mxu3 }
 0x353   : > { %v4473_v2 = vadd.f32 %v4472_v49, %v4419_v33  ;;  %4847 = vmatmul.f32.vlgmr.msra.gmra.mxu0 %v11264_v20  ;;  %4913 = vmatmul.f32.gmra.mxu1 %v11299_v16  ;;  %v5211_v16 = vand.u32 4294901760, %v5210_v58 }
 0x354   : > { %5391 = vmatpush.msra.mxu0 %v5203_v0 }
 0x355   : > { %v11574_v15 = vadd.f32 %v4532_v48, %v4473_v2  ;;  %4980 = vmatmul.f32.gmra.mxu2 %v11271_v7  ;;  %5212 = vmatpush.msrb.mxu1 %v5211_v16 }
 0x356   : > { %5395 = vmatpush.msra.mxu0 %v5209_v36 }
 0x357   : > { %5031 = vmatmul.f32.gmra.mxu3 %v11271_v7  ;;  %5444 = vmatpush.msra.mxu1 %v11535_v53 }
 0x358   : > { %v4339_v57 = vpop.f32.mrf.mxu0  ;;  %v4477_v8 = vpop.f32.mrf.mxu2 }
 0x359   : > { %v4423_v39 = vadd.f32 %v4422_v27, %v4339_v57  ;;  %v4426_v20 = vpop.f32.mrf.mxu1  ;;  %5446 = vmatpush.msra.mxu1 %v5120_v10 }
 0x35a   : > { %v4538_v24 = vpop.f32.mrf.mxu3 }
 0x35b   : > { %v4478_v12 = vadd.f32 %v4477_v8, %v4423_v39  ;;  %4852 = vmatmul.f32.gmra.mxu0 %v11286_v61  ;;  %4919 = vmatmul.f32.gmra.mxu1 %v11338_v34 }
 0x35d   : > { %v11580_v62 = vadd.f32 %v4538_v24, %v4478_v12  ;;  %4984 = vmatmul.f32.gmra.mxu2 %v11301_v17 }
 0x35f   : > { %5035 = vmatmul.f32.gmra.mxu3 %v11301_v17 }
 0x360   : > { %v4347_v7 = vpop.f32.mrf.mxu0  ;;  %v4482_v0 = vpop.f32.mrf.mxu2 }
 0x361   : > { %v4427_v54 = vadd.f32 %v4426_v20, %v4347_v7  ;;  %v4430_v6 = vpop.f32.mrf.mxu1 }
 0x362   : > { %v4544_v30 = vpop.f32.mrf.mxu3 }
 0x363   : > { %v4483_v49 = vadd.f32 %v4482_v0, %v4427_v54  ;;  %4857 = vmatmul.f32.gmra.mxu0 %v11318_v14  ;;  %4925 = vmatmul.f32.gmra.mxu1 %v11366_v35 }
 0x365   : > { %v11587_v61 = vadd.f32 %v4544_v30, %v4483_v49  ;;  %4988 = vmatmul.f32.gmra.mxu2 %v11332_v19 }
 0x367   : > { %5039 = vmatmul.f32.gmra.mxu3 %v11332_v19 }
 0x368   : > { %v4355_v34 = vpop.f32.mrf.mxu0  ;;  %v4487_v53 = vpop.f32.mrf.mxu2 }
 0x369   : > { %v4431_v17 = vadd.f32 %v4430_v6, %v4355_v34  ;;  %v4434_v33 = vpop.f32.mrf.mxu1 }
 0x36a   : > { %v4550_v27 = vpop.f32.mrf.mxu3 }
 0x36b   : > { %v4488_v21 = vadd.f32 %v4487_v53, %v4431_v17  ;;  %4862 = vmatmul.f32.gmra.mxu0 %v11350_v50  ;;  %4931 = vmatmul.f32.gmra.mxu1 %v11398_v63  ;;  %v5079_v50 = vld [vmem:[#allocation3 + $0xb8] sm:$0xff] }
 0x36c   : > { %v11602_v63 = vand.u32 4294901760, %v5079_v50 }
 0x36d   : > { %v11593_v48 = vadd.f32 %v4550_v27, %v4488_v21  ;;  %4992 = vmatmul.f32.gmra.mxu2 %v11368_v18 }
 0x36e   : > { %5495 = vmatpush.msra.mxu2 %v11602_v63 }
 0x36f   : > { %5043 = vmatmul.f32.gmra.mxu3 %v11368_v18  ;;  %v13951_v18 = vld [vmem:[#allocation13_spill] sm:$0xff] }
 0x370   : > { %v4363_v14 = vpop.f32.mrf.mxu0  ;;  %v4492_v35 = vpop.f32.mrf.mxu2  ;;  %v11607_v57 = vmul.f32 %v11210_v26, %v13951_v18 }
 0x371   : > { %v4435_v10 = vadd.f32 %v4434_v33, %v4363_v14  ;;  %v4438_v19 = vpop.f32.mrf.mxu1 }
 0x372   : > { %v4556_v2 = vpop.f32.mrf.mxu3  ;;  %13952 = vst [vmem:[#allocation55_spill] sm:$0xff] %v11607_v57 }
 0x373   : > { %v4493_v56 = vadd.f32 %v4492_v35, %v4435_v10  ;;  %4867 = vmatmul.f32.gmra.mxu0 %v11384_v3  ;;  %4937 = vmatmul.f32.gmra.mxu1 %v11434_v28  ;;  %v11611_v3 = vsub.f32 %v5079_v50, %v11602_v63 }
 0x375   : > { %v11599_v36 = vadd.f32 %v4556_v2, %v4493_v56  ;;  %4996 = vmatmul.f32.gmra.mxu2 %v11403_v47  ;;  %v5579_v24 = vand.u32 4294901760, %v11611_v3 }
 0x377   : > { %5047 = vmatmul.f32.gmra.mxu3 %v11403_v47  ;;  %v5081_v47 = vsel %vm2693_vm14, %v11607_v57, 0  ;;  %v5580_v12 = vsub.f32 %v11611_v3, %v5579_v24 }
 0x378   : > { %v4371_v8 = vpop.f32.mrf.mxu0  ;;  %v4497_v58 = vpop.f32.mrf.mxu2  ;;  %v11625_v54 = vand.u32 4294901760, %v5081_v47 }
 0x379   : > { %v4439_v28 = vadd.f32 %v4438_v19, %v4371_v8  ;;  %v4442_v39 = vpop.f32.mrf.mxu1  ;;  %v5581_v0 = vand.u32 4294901760, %v5580_v12  ;;  %v13957_v12 = vld [vmem:[#allocation32_spill] sm:$0xff] }
 0x37a   : > { %v4562_v20 = vpop.f32.mrf.mxu3  ;;  %v11634_v33 = vsub.f32 %v5081_v47, %v11625_v54 }
 0x37b   : > { %v4498_v16 = vadd.f32 %v4497_v58, %v4439_v28  ;;  %4872 = vmatmul.f32.gmra.mxu0 %v11421_v32  ;;  %4943 = vmatmul.f32.gmra.mxu1 %v11455_v23  ;;  %v13953_v23 = vld [vmem:[#allocation18_spill] sm:$0xff] }
 0x37c   : > { %5582 = vmatpush.msra.mxu3 %v5581_v0  ;;  %v11629_v30 = vmul.f32 %v11229_v29, %v13953_v23  ;;  %v11643_v21 = vand.u32 4294901760, %v11634_v33  ;;  %v11674_v0 = vmul.f32 %v11274_v41, %v13957_v12 }
 0x37d   : > { %v11621_v7 = vadd.f32 %v4562_v20, %v4498_v16  ;;  %5000 = vmatmul.f32.gmra.mxu2 %v11428_v44 }
 0x37e   : > { %13954 = vst [vmem:[#allocation34_spill] sm:$0xff] %v11629_v30 }
 0x37f   : > { %5051 = vmatmul.f32.gmra.mxu3 %v11428_v44  ;;  %v5084_v44 = vsel %vm2693_vm14, %v11629_v30, 0  ;;  %13958 = vst [vmem:[#allocation16_spill] sm:$0xff] %v11674_v0 }
 0x380   : > { %v4379_v6 = vpop.f32.mrf.mxu0  ;;  %v4502_v32 = vpop.f32.mrf.mxu2  ;;  %v11645_v14 = vand.u32 4294901760, %v5084_v44 }
 0x381   : > { %v4443_v49 = vadd.f32 %v4442_v39, %v4379_v6  ;;  %v4446_v34 = vpop.f32.mrf.mxu1 }
 0x382   : > { %v4568_v53 = vpop.f32.mrf.mxu3  ;;  %v11656_v8 = vsub.f32 %v5084_v44, %v11645_v14 }
 0x383   : > { %v4503_v17 = vadd.f32 %v4502_v32, %v4443_v49  ;;  %4877 = vmatmul.f32.gmra.mxu0 %v11441_v60  ;;  %4949 = vmatmul.f32.gmra.mxu1 %v11480_v45  ;;  %v13955_v60 = vld [vmem:[#allocation26_spill] sm:$0xff] }
 0x384   : > { %v11649_v45 = vmul.f32 %v11251_v59, %v13955_v60  ;;  %v11670_v20 = vand.u32 4294901760, %v11656_v8 }
 0x385   : > { %v11638_v27 = vadd.f32 %v4568_v53, %v4503_v17  ;;  %5004 = vmatmul.f32.gmra.mxu2 %v11460_v51 }
 0x386   : > { %13956 = vst [vmem:[#allocation49_spill] sm:$0xff] %v11649_v45  ;;  %v5087_v58 = vsel %vm2693_vm14, %v11649_v45, 0  ;;  %v5133_v44 = vsub.f32 %v11656_v8, %v11670_v20 }
 0x387   : > { %5055 = vmatmul.f32.gmra.mxu3 %v11460_v51  ;;  %v5125_v51 = vsub.f32 %v11634_v33, %v11643_v21  ;;  %v11664_v39 = vand.u32 4294901760, %v5087_v58 }
 0x388   : > { %v4387_v35 = vpop.f32.mrf.mxu0  ;;  %v4507_v10 = vpop.f32.mrf.mxu2 }
 0x389   : > { %v4447_v19 = vadd.f32 %v4446_v34, %v4387_v35  ;;  %v4652_v2 = vpop.f32.mrf.mxu1  ;;  %v11678_v34 = vsub.f32 %v5087_v58, %v11664_v39  ;;  %v5090_v35 = vsel %vm2693_vm14, %v11674_v0, 0 }
 0x38a   : > { %v4574_v56 = vpop.f32.mrf.mxu3 }
 0x38b   : > { %v4508_v50 = vadd.f32 %v4507_v10, %v4447_v19  ;;  %4882 = vmatmul.f32.gmra.mxu0 %v11473_v46  ;;  %5214 = vmatmul.f32.vlgmr.msrb.gmra.mxu1 %v11625_v54  ;;  %v11667_v46 = vand.u32 4294901760, %v5125_v51  ;;  %v5077_v10 = vld [vmem:[#allocation3 + $0xa8] sm:$0xff]  ;;  %v11694_v19 = vand.u32 4294901760, %v11678_v34  ;;  %v13960_v51 = vld [vmem:[#allocation36_spill] sm:$0xff] }
 0x38c   : > { %5698 = vmatpush.msrb.mxu1 %v11602_v63  ;;  %v11703_v58 = vmul.f32 %v11304_v38, %v13960_v51 }
 0x38d   : > { %v11661_v28 = vadd.f32 %v4574_v56, %v4508_v50  ;;  %5268 = vmatmul.f32.vlgmr.msrb.gmra.mxu2 %v11634_v33  ;;  %v11697_v56 = vand.u32 4294901760, %v5133_v44  ;;  %v11699_v50 = vand.u32 4294901760, %v5090_v35  ;;  %v5141_v44 = vsub.f32 %v11678_v34, %v11694_v19 }
 0x38e   : > { %13961 = vst [vmem:[#allocation21_spill] sm:$0xff] %v11703_v58 }
 0x38f   : > { %5328 = vmatmul.f32.vlgmr.msrb.gmra.mxu3 %v11643_v21 }
 0x390   : > { %v4601_v16 = vpop.f32.mrf.mxu0  ;;  %v4707_v47 = vpop.f32.mrf.mxu2 }
 0x391   : > { %v4602_v6 = vadd.f32 %v4601_v16, %v11574_v15  ;;  %v4656_v32 = vpop.f32.mrf.mxu1 }
 0x392   : > { %v4794_v49 = vpop.f32.mrf.mxu3 }
 0x393   : > { %v4653_v53 = vadd.f32 %v4652_v2, %v4602_v6  ;;  %5127 = vmatmul.f32.vlgmr.msrb.gmra.mxu0 %v11667_v46  ;;  %v11681_v17 = vadd.f32 %v4794_v49, %v4707_v47  ;;  %5218 = vmatmul.f32.gmra.mxu1 %v11645_v14  ;;  %v5496_v2 = vand.u32 4294901760, %v5077_v10 }
 0x394   : > { %5638 = vmatpush.msrb.mxu0 %v11611_v3 }
 0x395   : > { %v11690_v15 = vadd.f32 %v4653_v53, %v11320_v11  ;;  %5273 = vmatmul.f32.gmra.mxu2 %v11656_v8  ;;  %v5584_v47 = vsub.f32 %v5077_v10, %v5496_v2  ;;  %5700 = vmatpush.msrb.mxu1 %v5496_v2  ;;  %v11715_v10 = vsub.f32 %v5090_v35, %v11699_v50 }
 0x396   : > { %5497 = vmatpush.msra.mxu2 %v5496_v2 }
 0x397   : > { %13959 = vst [vmem:[#allocation51_spill] sm:$0xff] %v11690_v15  ;;  %5334 = vmatmul.f32.gmra.mxu3 %v11670_v20  ;;  %v5585_v12 = vand.u32 4294901760, %v5584_v47  ;;  %5641 = vmatpush.msrb.mxu0 %v5584_v47  ;;  %v11729_v35 = vand.u32 4294901760, %v11715_v10 }
 0x398   : > { %v4605_v16 = vpop.f32.mrf.mxu0  ;;  %v4715_v11 = vpop.f32.mrf.mxu2  ;;  %5767 = vmatpush.msrb.mxu2 %v5579_v24 }
 0x399   : > { %v4606_v6 = vadd.f32 %v4605_v16, %v11580_v62  ;;  %v4660_v49 = vpop.f32.mrf.mxu1  ;;  %v5093_v62 = vsel %vm2693_vm14, %v11703_v58, 0  ;;  %v5586_v3 = vsub.f32 %v5584_v47, %v5585_v12  ;;  %v13963_v47 = vld [vmem:[#allocation38_spill] sm:$0xff] }
 0x39a   : > { %v4798_v53 = vpop.f32.mrf.mxu3  ;;  %5771 = vmatpush.msrb.mxu2 %v5585_v12  ;;  %v11733_v12 = vmul.f32 %v11345_v52, %v13963_v47 }
 0x39b   : > { %v4657_v0 = vadd.f32 %v4656_v32, %v4606_v6  ;;  %5135 = vmatmul.f32.gmra.mxu0 %v11697_v56  ;;  %v11711_v51 = vadd.f32 %v4798_v53, %v4715_v11  ;;  %5222 = vmatmul.f32.gmra.mxu1 %v11664_v39  ;;  %v11723_v32 = vand.u32 4294901760, %v5093_v62  ;;  %v5587_v16 = vand.u32 4294901760, %v5586_v3 }
 0x39c   : > { %v11726_v11 = vand.u32 4294901760, %v5141_v44  ;;  %13964 = vst [vmem:[#allocation48_spill] sm:$0xff] %v11733_v12 }
 0x39d   : > { %v11720_v24 = vadd.f32 %v4657_v0, %v11352_v22  ;;  %5278 = vmatmul.f32.gmra.mxu2 %v11678_v34  ;;  %5588 = vmatpush.msra.mxu3 %v5587_v16  ;;  %v11738_v58 = vsub.f32 %v5093_v62, %v11723_v32  ;;  %v5149_v16 = vsub.f32 %v11715_v10, %v11729_v35 }
 0x39f   : > { %13962 = vst [vmem:[#allocation59_spill] sm:$0xff] %v11720_v24  ;;  %5340 = vmatmul.f32.gmra.mxu3 %v11694_v19  ;;  %v11756_v62 = vand.u32 4294901760, %v5149_v16 }
 0x3a0   : > { %v4609_v6 = vpop.f32.mrf.mxu0  ;;  %v4723_v53 = vpop.f32.mrf.mxu2  ;;  %5820 = vmatpush.msrb.mxu3 %v11602_v63 }
 0x3a1   : > { %v4610_v22 = vadd.f32 %v4609_v6, %v11587_v61  ;;  %v4664_v0 = vpop.f32.mrf.mxu1  ;;  %v5096_v61 = vsel %vm2693_vm14, %v11733_v12, 0 }
 0x3a2   : > { %v4802_v3 = vpop.f32.mrf.mxu3  ;;  %5822 = vmatpush.msrb.mxu3 %v5496_v2  ;;  %v11758_v6 = vand.u32 4294901760, %v5096_v61 }
 0x3a3   : > { %v4661_v44 = vadd.f32 %v4660_v49, %v4610_v22  ;;  %5143 = vmatmul.f32.gmra.mxu0 %v11726_v11  ;;  %v11741_v60 = vadd.f32 %v4802_v3, %v4723_v53  ;;  %5226 = vmatmul.f32.gmra.mxu1 %v11699_v50  ;;  %v11753_v49 = vand.u32 4294901760, %v11738_v58  ;;  %v13966_v53 = vld [vmem:[#allocation39_spill] sm:$0xff] }
 0x3a4   : > { %v11762_v22 = vmul.f32 %v11371_v40, %v13966_v53  ;;  %v11772_v23 = vsub.f32 %v5096_v61, %v11758_v6  ;;  %v13973_v40 = vld [vmem:[#allocation14_spill] sm:$0xff] }
 0x3a5   : > { %v11749_v63 = vadd.f32 %v4661_v44, %v11386_v55  ;;  %5283 = vmatmul.f32.gmra.mxu2 %v11715_v10  ;;  %v5157_v12 = vsub.f32 %v11738_v58, %v11753_v49 }
 0x3a6   : > { %13967 = vst [vmem:[#allocation56_spill] sm:$0xff] %v11762_v22  ;;  %v5099_v53 = vsel %vm2693_vm14, %v11762_v22, 0 }
 0x3a7   : > { %13965 = vst [vmem:[#allocation54_spill] sm:$0xff] %v11749_v63  ;;  %5346 = vmatmul.f32.gmra.mxu3 %v11729_v35 }
 0x3a8   : > { %v4613_v3 = vpop.f32.mrf.mxu0  ;;  %v4731_v2 = vpop.f32.mrf.mxu2 }
 0x3a9   : > { %v4614_v55 = vadd.f32 %v4613_v3, %v11593_v48  ;;  %v4668_v44 = vpop.f32.mrf.mxu1  ;;  %v11780_v3 = vand.u32 4294901760, %v5099_v53 }
 0x3aa   : > { %v4806_v47 = vpop.f32.mrf.mxu3 }
 0x3ab   : > { %v4665_v45 = vadd.f32 %v4664_v0, %v4614_v55  ;;  %5151 = vmatmul.f32.gmra.mxu0 %v11756_v62  ;;  %v11768_v16 = vadd.f32 %v4806_v47, %v4731_v2  ;;  %5230 = vmatmul.f32.gmra.mxu1 %v11723_v32  ;;  %v11783_v0 = vand.u32 4294901760, %v5157_v12  ;;  %v11786_v47 = vand.u32 4294901760, %v11772_v23  ;;  %v13969_v55 = vld [vmem:[#allocation40_spill] sm:$0xff] }
 0x3ac   : > { %v11790_v30 = vmul.f32 %v11408_v42, %v13969_v55  ;;  %v11794_v18 = vsub.f32 %v5099_v53, %v11780_v3  ;;  %v13971_v42 = vld [vmem:[#allocation24_spill] sm:$0xff] }
 0x3ad   : > { %v11777_v48 = vadd.f32 %v4665_v45, %v11414_v37  ;;  %5288 = vmatmul.f32.gmra.mxu2 %v11738_v58 }
 0x3ae   : > { %13970 = vst [vmem:[#allocation58_spill] sm:$0xff] %v11790_v30  ;;  %v5102_v55 = vsel %vm2693_vm14, %v11790_v30, 0  ;;  %v11809_v53 = vand.u32 4294901760, %v11794_v18 }
 0x3af   : > { %13968 = vst [vmem:[#allocation53_spill] sm:$0xff] %v11777_v48  ;;  %5352 = vmatmul.f32.gmra.mxu3 %v11753_v49  ;;  %v5165_v48 = vsub.f32 %v11772_v23, %v11786_v47 }
 0x3b0   : > { %v4617_v2 = vpop.f32.mrf.mxu0  ;;  %v4739_v61 = vpop.f32.mrf.mxu2 }
 0x3b1   : > { %v4618_v37 = vadd.f32 %v4617_v2, %v11599_v36  ;;  %v4672_v45 = vpop.f32.mrf.mxu1 }
 0x3b2   : > { %v4810_v22 = vpop.f32.mrf.mxu3 }
 0x3b3   : > { %v4669_v57 = vadd.f32 %v4668_v44, %v4618_v37  ;;  %5159 = vmatmul.f32.gmra.mxu0 %v11783_v0  ;;  %v11797_v12 = vadd.f32 %v4810_v22, %v4739_v61  ;;  %5234 = vmatmul.f32.gmra.mxu1 %v11758_v6  ;;  %v11812_v22 = vand.u32 4294901760, %v5165_v48  ;;  %v11814_v44 = vand.u32 4294901760, %v5102_v55 }
 0x3b5   : > { %v11805_v36 = vadd.f32 %v4669_v57, %v13971_v42  ;;  %5293 = vmatmul.f32.gmra.mxu2 %v11772_v23  ;;  %v5173_v42 = vsub.f32 %v11794_v18, %v11809_v53  ;;  %v11824_v48 = vsub.f32 %v5102_v55, %v11814_v44 }
 0x3b7   : > { %13972 = vst [vmem:[#allocation60_spill] sm:$0xff] %v11805_v36  ;;  %5358 = vmatmul.f32.gmra.mxu3 %v11786_v47 }
 0x3b8   : > { %v4621_v2 = vpop.f32.mrf.mxu0  ;;  %v4747_v61 = vpop.f32.mrf.mxu2 }
 0x3b9   : > { %v4622_v37 = vadd.f32 %v4621_v2, %v11621_v7  ;;  %v4676_v63 = vpop.f32.mrf.mxu1  ;;  %v11831_v7 = vand.u32 4294901760, %v5173_v42  ;;  %v13975_v42 = vld [vmem:[#allocation17_spill] sm:$0xff] }
 0x3ba   : > { %v4814_v30 = vpop.f32.mrf.mxu3 }
 0x3bb   : > { %v4673_v57 = vadd.f32 %v4672_v45, %v4622_v37  ;;  %5167 = vmatmul.f32.gmra.mxu0 %v11812_v22  ;;  %v11820_v36 = vadd.f32 %v4814_v30, %v4747_v61  ;;  %5238 = vmatmul.f32.gmra.mxu1 %v11780_v3  ;;  %v11834_v45 = vand.u32 4294901760, %v11824_v48 }
 0x3bd   : > { %v11827_v24 = vadd.f32 %v4673_v57, %v13973_v40  ;;  %5298 = vmatmul.f32.gmra.mxu2 %v11794_v18  ;;  %v5181_v57 = vsub.f32 %v11824_v48, %v11834_v45 }
 0x3bf   : > { %13974 = vst [vmem:[#allocation57_spill] sm:$0xff] %v11827_v24  ;;  %5364 = vmatmul.f32.gmra.mxu3 %v11809_v53 }
 0x3c0   : > { %v4625_v2 = vpop.f32.mrf.mxu0  ;;  %v4755_v30 = vpop.f32.mrf.mxu2 }
 0x3c1   : > { %v4626_v61 = vadd.f32 %v4625_v2, %v11638_v27  ;;  %v4680_v37 = vpop.f32.mrf.mxu1  ;;  %v11848_v27 = vand.u32 4294901760, %v5181_v57 }
 0x3c2   : > { %v4818_v52 = vpop.f32.mrf.mxu3 }
 0x3c3   : > { %v4677_v55 = vadd.f32 %v4676_v63, %v4626_v61  ;;  %5175 = vmatmul.f32.gmra.mxu0 %v11831_v7  ;;  %v11838_v40 = vadd.f32 %v4818_v52, %v4755_v30  ;;  %5242 = vmatmul.f32.gmra.mxu1 %v11814_v44 }
 0x3c5   : > { %v11844_v24 = vadd.f32 %v4677_v55, %v13975_v42  ;;  %5303 = vmatmul.f32.gmra.mxu2 %v11824_v48  ;;  %v13977_v55 = vld [vmem:[#allocation46_spill] sm:$0xff] }
 0x3c7   : > { %13976 = vst [vmem:[#allocation24_spill] sm:$0xff] %v11844_v24  ;;  %5370 = vmatmul.f32.gmra.mxu3 %v11834_v45 }
 0x3c8   : > { %v4629_v2 = vpop.f32.mrf.mxu0  ;;  %v4763_v63 = vpop.f32.mrf.mxu2 }
 0x3c9   : > { %v4630_v61 = vadd.f32 %v4629_v2, %v11661_v28  ;;  %v4908_v52 = vpop.f32.mrf.mxu1 }
 0x3ca   : > { %v4822_v30 = vpop.f32.mrf.mxu3 }
 0x3cb   : > { %v4681_v15 = vadd.f32 %v4680_v37, %v4630_v61  ;;  %5183 = vmatmul.f32.gmra.mxu0 %v11848_v27  ;;  %v11852_v38 = vadd.f32 %v4822_v30, %v4763_v63  ;;  %5448 = vmatmul.f32.vlgmr.msra.gmra.mxu1 %v11625_v54 }
 0x3cd   : > { %v11856_v42 = vadd.f32 %v4681_v15, %v13977_v55  ;;  %5503 = vmatmul.f32.vlgmr.msra.gmra.mxu2 %v11667_v46 }
 0x3cf   : > { %5590 = vmatmul.f32.vlgmr.msra.gmra.mxu3 %v11625_v54 }
 0x3d0   : > { %v4848_v57 = vpop.f32.mrf.mxu0  ;;  %v4977_v24 = vpop.f32.mrf.mxu2 }
 0x3d1   : > { %v4849_v28 = vadd.f32 %v4848_v57, %v11681_v17  ;;  %v4914_v2 = vpop.f32.mrf.mxu1 }
 0x3d2   : > { %v5028_v41 = vpop.f32.mrf.mxu3 }
 0x3d3   : > { %v4909_v37 = vadd.f32 %v4908_v52, %v4849_v28  ;;  %5397 = vmatmul.f32.vlgmr.msra.gmra.mxu0 %v11625_v54  ;;  %5452 = vmatmul.f32.gmra.mxu1 %v11645_v14 }
 0x3d5   : > { %v4978_v63 = vadd.f32 %v4977_v24, %v4909_v37  ;;  %5511 = vmatmul.f32.gmra.mxu2 %v11697_v56 }
 0x3d7   : > { %v5029_v15 = vadd.f32 %v5028_v41, %v4978_v63  ;;  %5594 = vmatmul.f32.gmra.mxu3 %v11645_v14 }
 0x3d8   : > { %v4853_v46 = vpop.f32.mrf.mxu0  ;;  %v4981_v61 = vpop.f32.mrf.mxu2 }
 0x3d9   : > { %v11866_v30 = vadd.f32 %v5029_v15, %v11510_v4  ;;  %v4854_v17 = vadd.f32 %v4853_v46, %v11711_v51  ;;  %v4920_v55 = vpop.f32.mrf.mxu1 }
 0x3da   : > { %v5032_v57 = vpop.f32.mrf.mxu3 }
 0x3db   : > { %v4915_v52 = vadd.f32 %v4914_v2, %v4854_v17  ;;  %5401 = vmatmul.f32.gmra.mxu0 %v11645_v14  ;;  %5456 = vmatmul.f32.gmra.mxu1 %v11664_v39 }
 0x3dd   : > { %v4982_v24 = vadd.f32 %v4981_v61, %v4915_v52  ;;  %5519 = vmatmul.f32.gmra.mxu2 %v11726_v11 }
 0x3df   : > { %v5033_v41 = vadd.f32 %v5032_v57, %v4982_v24  ;;  %5598 = vmatmul.f32.gmra.mxu3 %v11664_v39 }
 0x3e0   : > { %v4858_v56 = vpop.f32.mrf.mxu0  ;;  %v4985_v28 = vpop.f32.mrf.mxu2 }
 0x3e1   : > { %v11874_v4 = vadd.f32 %v5033_v41, %v11517_v25  ;;  %v4859_v51 = vadd.f32 %v4858_v56, %v11741_v60  ;;  %v4926_v37 = vpop.f32.mrf.mxu1 }
 0x3e2   : > { %v5036_v63 = vpop.f32.mrf.mxu3 }
 0x3e3   : > { %v4921_v2 = vadd.f32 %v4920_v55, %v4859_v51  ;;  %5405 = vmatmul.f32.gmra.mxu0 %v11664_v39  ;;  %5460 = vmatmul.f32.gmra.mxu1 %v11699_v50 }
 0x3e5   : > { %v4986_v15 = vadd.f32 %v4985_v28, %v4921_v2  ;;  %5527 = vmatmul.f32.gmra.mxu2 %v11756_v62  ;;  %v5907_v28 = vld [vmem:[#allocation3 + $0x50] sm:$0xff] }
 0x3e7   : > { %v5037_v11 = vadd.f32 %v5036_v63, %v4986_v15  ;;  %5602 = vmatmul.f32.gmra.mxu3 %v11699_v50 }
 0x3e8   : > { %v4863_v46 = vpop.f32.mrf.mxu0  ;;  %v4989_v61 = vpop.f32.mrf.mxu2 }
 0x3e9   : > { %v11882_v25 = vadd.f32 %v5037_v11, %v11524_v13  ;;  %v4864_v60 = vadd.f32 %v4863_v46, %v11768_v16  ;;  %v4932_v17 = vpop.f32.mrf.mxu1 }
 0x3ea   : > { %v5040_v57 = vpop.f32.mrf.mxu3 }
 0x3eb   : > { %v4927_v55 = vadd.f32 %v4926_v37, %v4864_v60  ;;  %5409 = vmatmul.f32.gmra.mxu0 %v11699_v50  ;;  %5464 = vmatmul.f32.gmra.mxu1 %v11723_v32  ;;  %v11893_v37 = vand.u32 4294901760, %v5907_v28 }
 0x3ed   : > { %v4990_v52 = vadd.f32 %v4989_v61, %v4927_v55  ;;  %5535 = vmatmul.f32.gmra.mxu2 %v11783_v0  ;;  %v11898_v0 = vsub.f32 %v5907_v28, %v11893_v37  ;;  %5948 = vmatpush.msra.mxu0 %v11893_v37 }
 0x3ee   : > { %6151 = vmatpush.msra.mxu3 %v11893_v37 }
 0x3ef   : > { %v5041_v62 = vadd.f32 %v5040_v57, %v4990_v52  ;;  %5606 = vmatmul.f32.gmra.mxu3 %v11723_v32  ;;  %6091 = vmatpush.msra.mxu2 %v11898_v0 }
 0x3f0   : > { %v4868_v24 = vpop.f32.mrf.mxu0  ;;  %v4993_v41 = vpop.f32.mrf.mxu2 }
 0x3f1   : > { %v11890_v13 = vadd.f32 %v5041_v62, %v11531_v9  ;;  %v4869_v16 = vadd.f32 %v4868_v24, %v11797_v12  ;;  %v4938_v56 = vpop.f32.mrf.mxu1  ;;  %v6032_v12 = vand.u32 4294901760, %v11898_v0 }
 0x3f2   : > { %v5044_v51 = vpop.f32.mrf.mxu3 }
 0x3f3   : > { %v4933_v63 = vadd.f32 %v4932_v17, %v4869_v16  ;;  %5413 = vmatmul.f32.gmra.mxu0 %v11723_v32  ;;  %5468 = vmatmul.f32.gmra.mxu1 %v11758_v6  ;;  %v6033_v46 = vsub.f32 %v11898_v0, %v6032_v12 }
 0x3f5   : > { %v4994_v9 = vadd.f32 %v4993_v41, %v4933_v63  ;;  %5543 = vmatmul.f32.gmra.mxu2 %v11812_v22  ;;  %v6034_v55 = vand.u32 4294901760, %v6033_v46 }
 0x3f7   : > { %v5045_v2 = vadd.f32 %v5044_v51, %v4994_v9  ;;  %5610 = vmatmul.f32.gmra.mxu3 %v11758_v6  ;;  %6035 = vmatpush.msra.mxu1 %v6034_v55 }
 0x3f8   : > { %v4873_v15 = vpop.f32.mrf.mxu0  ;;  %v4997_v11 = vpop.f32.mrf.mxu2 }
 0x3f9   : > { %v11908_v61 = vadd.f32 %v5045_v2, %v11547_v43  ;;  %v4874_v60 = vadd.f32 %v4873_v15, %v11820_v36  ;;  %v4944_v17 = vpop.f32.mrf.mxu1 }
 0x3fa   : > { %v5048_v57 = vpop.f32.mrf.mxu3 }
 0x3fb   : > { %v4939_v22 = vadd.f32 %v4938_v56, %v4874_v60  ;;  %5417 = vmatmul.f32.gmra.mxu0 %v11758_v6  ;;  %5472 = vmatmul.f32.gmra.mxu1 %v11780_v3 }
 0x3fd   : > { %v4998_v52 = vadd.f32 %v4997_v11, %v4939_v22  ;;  %5551 = vmatmul.f32.gmra.mxu2 %v11831_v7 }
 0x3ff   : > { %v5049_v62 = vadd.f32 %v5048_v57, %v4998_v52  ;;  %5614 = vmatmul.f32.gmra.mxu3 %v11780_v3  ;;  %v5905_v57 = vld [vmem:[#allocation3 + $0x40] sm:$0xff] }
 0x400   : > { %v4878_v24 = vpop.f32.mrf.mxu0  ;;  %v5001_v43 = vpop.f32.mrf.mxu2  ;;  %v5949_v22 = vand.u32 4294901760, %v5905_v57 }
 0x401   : > { %v11916_v41 = vadd.f32 %v5049_v62, %v11555_v31  ;;  %v4879_v36 = vadd.f32 %v4878_v24, %v11838_v40  ;;  %v4950_v16 = vpop.f32.mrf.mxu1 }
 0x402   : > { %v5052_v56 = vpop.f32.mrf.mxu3  ;;  %5950 = vmatpush.msra.mxu0 %v5949_v22  ;;  %6153 = vmatpush.msra.mxu3 %v5949_v22 }
 0x403   : > { %v4945_v28 = vadd.f32 %v4944_v17, %v4879_v36  ;;  %5421 = vmatmul.f32.gmra.mxu0 %v11780_v3  ;;  %5476 = vmatmul.f32.gmra.mxu1 %v11814_v44 }
 0x405   : > { %v5002_v51 = vadd.f32 %v5001_v43, %v4945_v28  ;;  %5559 = vmatmul.f32.gmra.mxu2 %v11848_v27 }
 0x407   : > { %v5053_v7 = vadd.f32 %v5052_v56, %v5002_v51  ;;  %5618 = vmatmul.f32.gmra.mxu3 %v11814_v44 }
 0x408   : > { %v4883_v63 = vpop.f32.mrf.mxu0  ;;  %v5005_v0 = vpop.f32.mrf.mxu2 }
 0x409   : > { %v11924_v31 = vadd.f32 %v5053_v7, %v11562_v5  ;;  %v4884_v40 = vadd.f32 %v4883_v63, %v11852_v38  ;;  %v5215_v9 = vpop.f32.mrf.mxu1 }
 0x40a   : > { %v5056_v2 = vpop.f32.mrf.mxu3 }
 0x40b   : > { %v4951_v15 = vadd.f32 %v4950_v16, %v4884_v40  ;;  %5425 = vmatmul.f32.gmra.mxu0 %v11814_v44  ;;  %5704 = vmatmul.f32.vlgmr.msrb.gmra.mxu1 %v11643_v21  ;;  %v6037_v21 = vsub.f32 %v5905_v57, %v5949_v22 }
 0x40d   : > { %v5006_v11 = vadd.f32 %v5005_v0, %v4951_v15  ;;  %5773 = vmatmul.f32.vlgmr.msrb.gmra.mxu2 %v11625_v54 }
 0x40e   : > { %6094 = vmatpush.msra.mxu2 %v6037_v21 }
 0x40f   : > { %v5057_v27 = vadd.f32 %v5056_v2, %v5006_v11  ;;  %5824 = vmatmul.f32.vlgmr.msrb.gmra.mxu3 %v11625_v54 }
 0x410   : > { %v5128_v46 = vpop.f32.mrf.mxu0  ;;  %v5269_v60 = vpop.f32.mrf.mxu2 }
 0x411   : > { %v11932_v5 = vadd.f32 %v5057_v27, %v11569_v1  ;;  %v5216_v17 = vadd.f32 %v5215_v9, %v5128_v46  ;;  %v5219_v38 = vpop.f32.mrf.mxu1  ;;  %v6038_v1 = vand.u32 4294901760, %v6037_v21 }
 0x412   : > { %v5329_v55 = vpop.f32.mrf.mxu3 }
 0x413   : > { %v5270_v52 = vadd.f32 %v5269_v60, %v5216_v17  ;;  %5644 = vmatmul.f32.vlgmr.msrb.gmra.mxu0 %v11634_v33  ;;  %5710 = vmatmul.f32.gmra.mxu1 %v11670_v20  ;;  %v6039_v43 = vsub.f32 %v6037_v21, %v6038_v1  ;;  %v5908_v17 = vld [vmem:[#allocation3 + $0x58] sm:$0xff] }
 0x414   : > { %6220 = vmatpush.msrb.mxu0 %v6032_v12 }
 0x415   : > { %v11936_v62 = vadd.f32 %v5329_v55, %v5270_v52  ;;  %5777 = vmatmul.f32.gmra.mxu2 %v11645_v14  ;;  %v6040_v20 = vand.u32 4294901760, %v6039_v43  ;;  %v13979_v55 = vld [vmem:[#allocation12_spill] sm:$0xff] }
 0x416   : > { %6224 = vmatpush.msrb.mxu0 %v6038_v1 }
 0x417   : > { %5828 = vmatmul.f32.gmra.mxu3 %v11645_v14  ;;  %6041 = vmatpush.msra.mxu1 %v6040_v20 }
 0x418   : > { %v5136_v54 = vpop.f32.mrf.mxu0  ;;  %v5274_v24 = vpop.f32.mrf.mxu2 }
 0x419   : > { %v5220_v36 = vadd.f32 %v5219_v38, %v5136_v54  ;;  %v5223_v33 = vpop.f32.mrf.mxu1  ;;  %6273 = vmatpush.msrb.mxu1 %v11893_v37  ;;  %v11966_v38 = vand.u32 4294901760, %v5908_v17 }
 0x41a   : > { %v5335_v16 = vpop.f32.mrf.mxu3 }
 0x41b   : > { %v5275_v56 = vadd.f32 %v5274_v24, %v5220_v36  ;;  %5649 = vmatmul.f32.gmra.mxu0 %v11656_v8  ;;  %5716 = vmatmul.f32.gmra.mxu1 %v11694_v19 }
 0x41c   : > { %6275 = vmatpush.msrb.mxu1 %v5949_v22  ;;  %6324 = vmatpush.msrb.mxu2 %v11966_v38 }
 0x41d   : > { %v11942_v28 = vadd.f32 %v5335_v16, %v5275_v56  ;;  %5781 = vmatmul.f32.gmra.mxu2 %v11664_v39 }
 0x41f   : > { %5832 = vmatmul.f32.gmra.mxu3 %v11664_v39 }
 0x420   : > { %v5144_v14 = vpop.f32.mrf.mxu0  ;;  %v5279_v12 = vpop.f32.mrf.mxu2 }
 0x421   : > { %v5224_v51 = vadd.f32 %v5223_v33, %v5144_v14  ;;  %v5227_v7 = vpop.f32.mrf.mxu1 }
 0x422   : > { %v5341_v63 = vpop.f32.mrf.mxu3 }
 0x423   : > { %v5280_v0 = vadd.f32 %v5279_v12, %v5224_v51  ;;  %5654 = vmatmul.f32.gmra.mxu0 %v11678_v34  ;;  %5722 = vmatmul.f32.gmra.mxu1 %v11729_v35 }
 0x425   : > { %v11949_v8 = vadd.f32 %v5341_v63, %v5280_v0  ;;  %5785 = vmatmul.f32.gmra.mxu2 %v11699_v50 }
 0x427   : > { %5836 = vmatmul.f32.gmra.mxu3 %v11699_v50 }
 0x428   : > { %v5152_v19 = vpop.f32.mrf.mxu0  ;;  %v5284_v37 = vpop.f32.mrf.mxu2 }
 0x429   : > { %v5228_v39 = vadd.f32 %v5227_v7, %v5152_v19  ;;  %v5231_v40 = vpop.f32.mrf.mxu1  ;;  %v13984_v19 = vld [vmem:[#allocation30_spill] sm:$0xff] }
 0x42a   : > { %v5347_v9 = vpop.f32.mrf.mxu3 }
 0x42b   : > { %v5285_v2 = vadd.f32 %v5284_v37, %v5228_v39  ;;  %5659 = vmatmul.f32.gmra.mxu0 %v11715_v10  ;;  %5728 = vmatmul.f32.gmra.mxu1 %v11753_v49  ;;  %v13978_v10 = vld [vmem:[#allocation41_spill] sm:$0xff]  ;;  %v5874_v37 = vmul.f32 %v13984_v19, %v11251_v59 }
 0x42c   : > { %v5872_v60 = vmul.f32 %v13978_v10, %v11210_v26 }
 0x42d   : > { %v11955_v15 = vadd.f32 %v5347_v9, %v5285_v2  ;;  %5789 = vmatmul.f32.gmra.mxu2 %v11723_v32 }
 0x42e   : > { %v11970_v22 = vsub.f32 %v5872_v60, %v13979_v55 }
 0x42f   : > { %5840 = vmatmul.f32.gmra.mxu3 %v11723_v32 }
 0x430   : > { %v5160_v34 = vpop.f32.mrf.mxu0  ;;  %v5289_v35 = vpop.f32.mrf.mxu2  ;;  %13980 = vst [vmem:[#allocation14_spill] sm:$0xff] %v11970_v22  ;;  %v5910_v43 = vsel %vm2693_vm14, %v11970_v22, 0 }
 0x431   : > { %v5232_v11 = vadd.f32 %v5231_v40, %v5160_v34  ;;  %v5235_v50 = vpop.f32.mrf.mxu1 }
 0x432   : > { %v5353_v27 = vpop.f32.mrf.mxu3 }
 0x433   : > { %v5290_v46 = vadd.f32 %v5289_v35, %v5232_v11  ;;  %5664 = vmatmul.f32.gmra.mxu0 %v11738_v58  ;;  %5734 = vmatmul.f32.gmra.mxu1 %v11786_v47  ;;  %v11974_v58 = vsub.f32 %v5908_v17, %v11966_v38  ;;  %v13987_v17 = vld [vmem:[#allocation28_spill] sm:$0xff] }
 0x435   : > { %v11963_v49 = vadd.f32 %v5353_v27, %v5290_v46  ;;  %5793 = vmatmul.f32.gmra.mxu2 %v11758_v6  ;;  %v6408_v1 = vand.u32 4294901760, %v11974_v58 }
 0x437   : > { %5844 = vmatmul.f32.gmra.mxu3 %v11758_v6  ;;  %v13981_v6 = vld [vmem:[#allocation37_spill] sm:$0xff]  ;;  %v6409_v36 = vsub.f32 %v11974_v58, %v6408_v1 }
 0x438   : > { %v5168_v32 = vpop.f32.mrf.mxu0  ;;  %v5294_v57 = vpop.f32.mrf.mxu2  ;;  %v5873_v24 = vmul.f32 %v13981_v6, %v11229_v29 }
 0x439   : > { %v5236_v47 = vadd.f32 %v5235_v50, %v5168_v32  ;;  %v5239_v52 = vpop.f32.mrf.mxu1  ;;  %v6410_v16 = vand.u32 4294901760, %v6409_v36  ;;  %v13988_v32 = vld [vmem:[#allocation35_spill] sm:$0xff] }
 0x43a   : > { %v5359_v21 = vpop.f32.mrf.mxu3 }
 0x43b   : > { %v5295_v54 = vadd.f32 %v5294_v57, %v5236_v47  ;;  %5669 = vmatmul.f32.gmra.mxu0 %v11772_v23  ;;  %5740 = vmatmul.f32.gmra.mxu1 %v11809_v53  ;;  %v11990_v23 = vand.u32 4294901760, %v5910_v43  ;;  %v13982_v53 = vld [vmem:[#allocation9_spill] sm:$0xff]  ;;  %v5875_v57 = vmul.f32 %v13988_v32, %v13987_v17 }
 0x43c   : > { %v11993_v20 = vsub.f32 %v5873_v24, %v13982_v53  ;;  %6411 = vmatpush.msrb.mxu3 %v6410_v16 }
 0x43d   : > { %v11986_v33 = vadd.f32 %v5359_v21, %v5295_v54  ;;  %5797 = vmatmul.f32.gmra.mxu2 %v11780_v3  ;;  %v11998_v0 = vsub.f32 %v5910_v43, %v11990_v23  ;;  %v13989_v21 = vld [vmem:[#allocation23_spill] sm:$0xff] }
 0x43e   : > { %13983 = vst [vmem:[#allocation17_spill] sm:$0xff] %v11993_v20  ;;  %v12040_v54 = vsub.f32 %v5875_v57, %v13989_v21 }
 0x43f   : > { %5848 = vmatmul.f32.gmra.mxu3 %v11780_v3  ;;  %v5913_v3 = vsel %vm2693_vm14, %v11993_v20, 0  ;;  %v14011_v20 = vld [vmem:[#allocation53_spill] sm:$0xff] }
 0x440   : > { %v5176_v56 = vpop.f32.mrf.mxu0  ;;  %v5299_v14 = vpop.f32.mrf.mxu2  ;;  %v12007_v40 = vand.u32 4294901760, %v5913_v3  ;;  %13990 = vst [vmem:[#allocation12_spill] sm:$0xff] %v12040_v54 }
 0x441   : > { %v5240_v12 = vadd.f32 %v5239_v52, %v5176_v56  ;;  %v5243_v51 = vpop.f32.mrf.mxu1 }
 0x442   : > { %v5365_v7 = vpop.f32.mrf.mxu3  ;;  %v12017_v27 = vsub.f32 %v5913_v3, %v12007_v40 }
 0x443   : > { %v5300_v63 = vadd.f32 %v5299_v14, %v5240_v12  ;;  %5674 = vmatmul.f32.gmra.mxu0 %v11794_v18  ;;  %5746 = vmatmul.f32.gmra.mxu1 %v11834_v45  ;;  %v12011_v18 = vand.u32 4294901760, %v11998_v0  ;;  %v13985_v45 = vld [vmem:[#allocation25_spill] sm:$0xff] }
 0x444   : > { %v12014_v9 = vsub.f32 %v5874_v37, %v13985_v45  ;;  %v12032_v47 = vand.u32 4294901760, %v12017_v27  ;;  %v13993_v37 = vld [vmem:[#allocation51_spill] sm:$0xff] }
 0x445   : > { %v12004_v39 = vadd.f32 %v5365_v7, %v5300_v63  ;;  %5801 = vmatmul.f32.gmra.mxu2 %v11814_v44  ;;  %v5919_v7 = vsel %vm2693_vm14, %v12040_v54, 0  ;;  %v13991_v63 = vld [vmem:[#allocation27_spill] sm:$0xff] }
 0x446   : > { %13986 = vst [vmem:[#allocation46_spill] sm:$0xff] %v12014_v9  ;;  %v5916_v60 = vsel %vm2693_vm14, %v12014_v9, 0  ;;  %v5962_v56 = vsub.f32 %v12017_v27, %v12032_v47 }
 0x447   : > { %5852 = vmatmul.f32.gmra.mxu3 %v11814_v44  ;;  %v5954_v44 = vsub.f32 %v11998_v0, %v12011_v18 }
 0x448   : > { %v5184_v2 = vpop.f32.mrf.mxu0  ;;  %v5304_v34 = vpop.f32.mrf.mxu2 }
 0x449   : > { %v5244_v35 = vadd.f32 %v5243_v51, %v5184_v2  ;;  %v5449_v11 = vpop.f32.mrf.mxu1  ;;  %v12037_v52 = vand.u32 4294901760, %v5954_v44  ;;  %v5906_v2 = vld [vmem:[#allocation3 + $0x48] sm:$0xff] }
 0x44a   : > { %v5371_v50 = vpop.f32.mrf.mxu3 }
 0x44b   : > { %v5305_v46 = vadd.f32 %v5304_v34, %v5244_v35  ;;  %5679 = vmatmul.f32.gmra.mxu0 %v11824_v48  ;;  %6043 = vmatmul.f32.vlgmr.msra.gmra.mxu1 %v11990_v23  ;;  %v12034_v48 = vand.u32 4294901760, %v5916_v60  ;;  %v12061_v34 = vand.u32 4294901760, %v5919_v7  ;;  %v6325_v35 = vand.u32 4294901760, %v5906_v2 }
 0x44c   : > { %6527 = vmatpush.msra.mxu1 %v11966_v38 }
 0x44d   : > { %v12028_v55 = vadd.f32 %v5371_v50, %v5305_v46  ;;  %6097 = vmatmul.f32.vlgmr.msra.gmra.mxu2 %v11998_v0  ;;  %v12046_v14 = vsub.f32 %v5916_v60, %v12034_v48  ;;  %v13995_v46 = vld [vmem:[#allocation10_spill] sm:$0xff]  ;;  %v6413_v21 = vsub.f32 %v5906_v2, %v6325_v35 }
 0x44e   : > { %6326 = vmatpush.msrb.mxu2 %v6325_v35  ;;  %6529 = vmatpush.msra.mxu1 %v6325_v35  ;;  %v13998_v2 = vld [vmem:[#allocation50_spill] sm:$0xff] }
 0x44f   : > { %6157 = vmatmul.f32.vlgmr.msra.gmra.mxu3 %v12011_v18  ;;  %v12067_v50 = vand.u32 4294901760, %v12046_v14 }
 0x450   : > { %v5398_v24 = vpop.f32.mrf.mxu0  ;;  %v5504_v43 = vpop.f32.mrf.mxu2  ;;  %6596 = vmatpush.msra.mxu2 %v6408_v1  ;;  %v13997_v1 = vld [vmem:[#allocation44_spill] sm:$0xff] }
 0x451   : > { %v5399_v36 = vadd.f32 %v5398_v24, %v11936_v62  ;;  %v5453_v16 = vpop.f32.mrf.mxu1  ;;  %v13992_v62 = vld [vmem:[#allocation42_spill] sm:$0xff] }
 0x452   : > { %v5591_v53 = vpop.f32.mrf.mxu3  ;;  %v5876_v3 = vmul.f32 %v13992_v62, %v13991_v63 }
 0x453   : > { %v5450_v12 = vadd.f32 %v5449_v11, %v5399_v36  ;;  %5956 = vmatmul.f32.vlgmr.msra.gmra.mxu0 %v12037_v52  ;;  %v12049_v51 = vadd.f32 %v5591_v53, %v5504_v43  ;;  %6047 = vmatmul.f32.gmra.mxu1 %v12007_v40  ;;  %v12064_v11 = vand.u32 4294901760, %v5962_v56  ;;  %v12076_v53 = vsub.f32 %v5919_v7, %v12061_v34 }
 0x454   : > { %6467 = vmatpush.msra.mxu0 %v11974_v58  ;;  %v12070_v44 = vsub.f32 %v5876_v3, %v13995_v46  ;;  %v6414_v56 = vand.u32 4294901760, %v6413_v21  ;;  %v5877_v7 = vmul.f32 %v13998_v2, %v13997_v1  ;;  %v13999_v46 = vld [vmem:[#allocation59_spill] sm:$0xff] }
 0x455   : > { %v12058_v45 = vadd.f32 %v5450_v12, %v13993_v37  ;;  %6102 = vmatmul.f32.gmra.mxu2 %v12017_v27  ;;  %v5970_v37 = vsub.f32 %v12046_v14, %v12067_v50  ;;  %v14001_v2 = vld [vmem:[#allocation15_spill] sm:$0xff] }
 0x456   : > { %13996 = vst [vmem:[#allocation25_spill] sm:$0xff] %v12070_v44  ;;  %6470 = vmatpush.msra.mxu0 %v6413_v21  ;;  %v6415_v58 = vsub.f32 %v6413_v21, %v6414_v56  ;;  %6600 = vmatpush.msra.mxu2 %v6414_v56  ;;  %v12101_v56 = vsub.f32 %v5877_v7, %v14001_v2  ;;  %v14003_v2 = vld [vmem:[#allocation43_spill] sm:$0xff] }
 0x457   : > { %13994 = vst [vmem:[#allocation9_spill] sm:$0xff] %v12058_v45  ;;  %6163 = vmatmul.f32.gmra.mxu3 %v12032_v47  ;;  %v14004_v7 = vld [vmem:[#allocation31_spill] sm:$0xff] }
 0x458   : > { %v5402_v60 = vpop.f32.mrf.mxu0  ;;  %v5512_v57 = vpop.f32.mrf.mxu2  ;;  %14002 = vst [vmem:[#allocation51_spill] sm:$0xff] %v12101_v56 }
 0x459   : > { %v5403_v24 = vadd.f32 %v5402_v60, %v11942_v28  ;;  %v5457_v43 = vpop.f32.mrf.mxu1  ;;  %v5922_v28 = vsel %vm2693_vm14, %v12070_v44, 0 }
 0x45a   : > { %v5595_v36 = vpop.f32.mrf.mxu3 }
 0x45b   : > { %v5454_v12 = vadd.f32 %v5453_v16, %v5403_v24  ;;  %5964 = vmatmul.f32.gmra.mxu0 %v12064_v11  ;;  %v12079_v3 = vadd.f32 %v5595_v36, %v5512_v57  ;;  %6051 = vmatmul.f32.gmra.mxu1 %v12034_v48  ;;  %v12093_v16 = vand.u32 4294901760, %v12076_v53  ;;  %v12095_v57 = vand.u32 4294901760, %v5922_v28 }
 0x45c   : > { %v6416_v24 = vand.u32 4294901760, %v6415_v58  ;;  %v12098_v36 = vand.u32 4294901760, %v5970_v37 }
 0x45d   : > { %v12089_v60 = vadd.f32 %v5454_v12, %v13999_v46  ;;  %6107 = vmatmul.f32.gmra.mxu2 %v12046_v14  ;;  %v5978_v32 = vsub.f32 %v12076_v53, %v12093_v16  ;;  %v12108_v58 = vsub.f32 %v5922_v28, %v12095_v57  ;;  %v14007_v28 = vld [vmem:[#allocation47_spill] sm:$0xff] }
 0x45e   : > { %6417 = vmatpush.msrb.mxu3 %v6416_v24  ;;  %v14005_v24 = vld [vmem:[#allocation54_spill] sm:$0xff] }
 0x45f   : > { %14000 = vst [vmem:[#allocation23_spill] sm:$0xff] %v12089_v60  ;;  %6169 = vmatmul.f32.gmra.mxu3 %v12067_v50  ;;  %v14017_v60 = vld [vmem:[#allocation57_spill] sm:$0xff] }
 0x460   : > { %v5406_v21 = vpop.f32.mrf.mxu0  ;;  %v5520_v62 = vpop.f32.mrf.mxu2  ;;  %6649 = vmatpush.msra.mxu3 %v11966_v38  ;;  %v5925_v38 = vsel %vm2693_vm14, %v12101_v56, 0 }
 0x461   : > { %v5407_v12 = vadd.f32 %v5406_v21, %v11949_v8  ;;  %v5461_v46 = vpop.f32.mrf.mxu1  ;;  %v5878_v8 = vmul.f32 %v14004_v7, %v14003_v2 }
 0x462   : > { %v5599_v44 = vpop.f32.mrf.mxu3  ;;  %6651 = vmatpush.msra.mxu3 %v6325_v35 }
 0x463   : > { %v5458_v37 = vadd.f32 %v5457_v43, %v5407_v12  ;;  %5972 = vmatmul.f32.gmra.mxu0 %v12098_v36  ;;  %v12111_v54 = vadd.f32 %v5599_v44, %v5520_v62  ;;  %6055 = vmatmul.f32.gmra.mxu1 %v12061_v34  ;;  %v12123_v43 = vand.u32 4294901760, %v12108_v58  ;;  %v12126_v62 = vand.u32 4294901760, %v5978_v32 }
 0x464   : > { %v12128_v44 = vand.u32 4294901760, %v5925_v38  ;;  %v12131_v12 = vsub.f32 %v5878_v8, %v14007_v28  ;;  %v14009_v28 = vld [vmem:[#allocation20_spill] sm:$0xff] }
 0x465   : > { %v12119_v21 = vadd.f32 %v5458_v37, %v14005_v24  ;;  %6112 = vmatmul.f32.gmra.mxu2 %v12076_v53  ;;  %v5986_v19 = vsub.f32 %v12108_v58, %v12123_v43 }
 0x466   : > { %14008 = vst [vmem:[#allocation59_spill] sm:$0xff] %v12131_v12  ;;  %v12141_v32 = vsub.f32 %v5925_v38, %v12128_v44  ;;  %v5928_v8 = vsel %vm2693_vm14, %v12131_v12, 0  ;;  %v14013_v12 = vld [vmem:[#allocation52_spill] sm:$0xff] }
 0x467   : > { %14006 = vst [vmem:[#allocation10_spill] sm:$0xff] %v12119_v21  ;;  %6175 = vmatmul.f32.gmra.mxu3 %v12093_v16 }
 0x468   : > { %v5410_v7 = vpop.f32.mrf.mxu0  ;;  %v5528_v56 = vpop.f32.mrf.mxu2  ;;  %v12157_v38 = vand.u32 4294901760, %v12141_v32 }
 0x469   : > { %v5411_v35 = vadd.f32 %v5410_v7, %v11955_v15  ;;  %v5465_v37 = vpop.f32.mrf.mxu1  ;;  %v14010_v15 = vld [vmem:[#allocation45_spill] sm:$0xff] }
 0x46a   : > { %v5603_v24 = vpop.f32.mrf.mxu3  ;;  %v5879_v7 = vmul.f32 %v14010_v15, %v14009_v28  ;;  %v5994_v21 = vsub.f32 %v12141_v32, %v12157_v38 }
 0x46b   : > { %v5462_v9 = vadd.f32 %v5461_v46, %v5411_v35  ;;  %5980 = vmatmul.f32.gmra.mxu0 %v12126_v62  ;;  %v12137_v6 = vadd.f32 %v5603_v24, %v5528_v56  ;;  %6059 = vmatmul.f32.gmra.mxu1 %v12095_v57  ;;  %v12151_v46 = vand.u32 4294901760, %v5928_v8  ;;  %v12154_v56 = vand.u32 4294901760, %v5986_v19 }
 0x46c   : > { %v12160_v22 = vsub.f32 %v5879_v7, %v14013_v12  ;;  %v14015_v7 = vld [vmem:[#allocation60_spill] sm:$0xff] }
 0x46d   : > { %v12148_v10 = vadd.f32 %v5462_v9, %v14011_v20  ;;  %6117 = vmatmul.f32.gmra.mxu2 %v12108_v58 }
 0x46e   : > { %14014 = vst [vmem:[#allocation54_spill] sm:$0xff] %v12160_v22  ;;  %v5931_v12 = vsel %vm2693_vm14, %v12160_v22, 0 }
 0x46f   : > { %14012 = vst [vmem:[#allocation15_spill] sm:$0xff] %v12148_v10  ;;  %6181 = vmatmul.f32.gmra.mxu3 %v12123_v43  ;;  %v12164_v10 = vsub.f32 %v5928_v8, %v12151_v46 }
 0x470   : > { %v5414_v35 = vpop.f32.mrf.mxu0  ;;  %v5536_v24 = vpop.f32.mrf.mxu2 }
 0x471   : > { %v5415_v15 = vadd.f32 %v5414_v35, %v11963_v49  ;;  %v5469_v20 = vpop.f32.mrf.mxu1  ;;  %v12179_v8 = vand.u32 4294901760, %v12164_v10 }
 0x472   : > { %v5607_v9 = vpop.f32.mrf.mxu3 }
 0x473   : > { %v5466_v28 = vadd.f32 %v5465_v37, %v5415_v15  ;;  %5988 = vmatmul.f32.gmra.mxu0 %v12154_v56  ;;  %v12167_v19 = vadd.f32 %v5607_v9, %v5536_v24  ;;  %6063 = vmatmul.f32.gmra.mxu1 %v12128_v44  ;;  %v12182_v37 = vand.u32 4294901760, %v5994_v21  ;;  %v12184_v15 = vand.u32 4294901760, %v5931_v12 }
 0x475   : > { %v12175_v49 = vadd.f32 %v5466_v28, %v14015_v7  ;;  %6122 = vmatmul.f32.gmra.mxu2 %v12141_v32  ;;  %v6002_v28 = vsub.f32 %v12164_v10, %v12179_v8  ;;  %v12194_v21 = vsub.f32 %v5931_v12, %v12184_v15 }
 0x477   : > { %14016 = vst [vmem:[#allocation47_spill] sm:$0xff] %v12175_v49  ;;  %6187 = vmatmul.f32.gmra.mxu3 %v12157_v38 }
 0x478   : > { %v5418_v35 = vpop.f32.mrf.mxu0  ;;  %v5544_v24 = vpop.f32.mrf.mxu2 }
 0x479   : > { %v5419_v9 = vadd.f32 %v5418_v35, %v11986_v33  ;;  %v5473_v2 = vpop.f32.mrf.mxu1  ;;  %v12201_v33 = vand.u32 4294901760, %v6002_v28  ;;  %v14019_v28 = vld [vmem:[#allocation24_spill] sm:$0xff] }
 0x47a   : > { %v5611_v22 = vpop.f32.mrf.mxu3 }
 0x47b   : > { %v5470_v7 = vadd.f32 %v5469_v20, %v5419_v9  ;;  %5996 = vmatmul.f32.gmra.mxu0 %v12182_v37  ;;  %v12190_v49 = vadd.f32 %v5611_v22, %v5544_v24  ;;  %6067 = vmatmul.f32.gmra.mxu1 %v12151_v46  ;;  %v12204_v20 = vand.u32 4294901760, %v12194_v21 }
 0x47d   : > { %v12197_v1 = vadd.f32 %v5470_v7, %v14017_v60  ;;  %6127 = vmatmul.f32.gmra.mxu2 %v12164_v10  ;;  %v6010_v7 = vsub.f32 %v12194_v21, %v12204_v20 }
 0x47f   : > { %14018 = vst [vmem:[#allocation53_spill] sm:$0xff] %v12197_v1  ;;  %6193 = vmatmul.f32.gmra.mxu3 %v12179_v8 }
 0x480   : > { %v5422_v35 = vpop.f32.mrf.mxu0  ;;  %v5552_v22 = vpop.f32.mrf.mxu2 }
 0x481   : > { %v5423_v24 = vadd.f32 %v5422_v35, %v12004_v39  ;;  %v5477_v9 = vpop.f32.mrf.mxu1  ;;  %v12218_v39 = vand.u32 4294901760, %v6010_v7 }
 0x482   : > { %v5615_v45 = vpop.f32.mrf.mxu3 }
 0x483   : > { %v5474_v12 = vadd.f32 %v5473_v2, %v5423_v24  ;;  %6004 = vmatmul.f32.gmra.mxu0 %v12201_v33  ;;  %v12208_v60 = vadd.f32 %v5615_v45, %v5552_v22  ;;  %6071 = vmatmul.f32.gmra.mxu1 %v12184_v15 }
 0x485   : > { %v12214_v1 = vadd.f32 %v5474_v12, %v14019_v28  ;;  %6132 = vmatmul.f32.gmra.mxu2 %v12194_v21 }
 0x487   : > { %14020 = vst [vmem:[#allocation52_spill] sm:$0xff] %v12214_v1  ;;  %6199 = vmatmul.f32.gmra.mxu3 %v12204_v20 }
 0x488   : > { %v5426_v35 = vpop.f32.mrf.mxu0  ;;  %v5560_v2 = vpop.f32.mrf.mxu2 }
 0x489   : > { %v5427_v24 = vadd.f32 %v5426_v35, %v12028_v55  ;;  %v5705_v45 = vpop.f32.mrf.mxu1 }
 0x48a   : > { %v5619_v22 = vpop.f32.mrf.mxu3 }
 0x48b   : > { %v5478_v63 = vadd.f32 %v5477_v9, %v5427_v24  ;;  %6012 = vmatmul.f32.gmra.mxu0 %v12218_v39  ;;  %v12222_v17 = vadd.f32 %v5619_v22, %v5560_v2  ;;  %6277 = vmatmul.f32.vlgmr.msrb.gmra.mxu1 %v11990_v23 }
 0x48d   : > { %v12226_v12 = vadd.f32 %v5478_v63, %v11856_v42  ;;  %6332 = vmatmul.f32.vlgmr.msrb.gmra.mxu2 %v12037_v52 }
 0x48f   : > { %6419 = vmatmul.f32.vlgmr.msrb.gmra.mxu3 %v11990_v23 }
 0x490   : > { %v5645_v7 = vpop.f32.mrf.mxu0  ;;  %v5774_v28 = vpop.f32.mrf.mxu2 }
 0x491   : > { %v5646_v55 = vadd.f32 %v5645_v7, %v12049_v51  ;;  %v5711_v35 = vpop.f32.mrf.mxu1 }
 0x492   : > { %v5825_v1 = vpop.f32.mrf.mxu3 }
 0x493   : > { %v5706_v9 = vadd.f32 %v5705_v45, %v5646_v55  ;;  %6226 = vmatmul.f32.vlgmr.msrb.gmra.mxu0 %v11990_v23  ;;  %6281 = vmatmul.f32.gmra.mxu1 %v12007_v40 }
 0x495   : > { %v5775_v2 = vadd.f32 %v5774_v28, %v5706_v9  ;;  %6340 = vmatmul.f32.gmra.mxu2 %v12064_v11 }
 0x497   : > { %v5826_v42 = vadd.f32 %v5825_v1, %v5775_v2  ;;  %6423 = vmatmul.f32.gmra.mxu3 %v12007_v40 }
 0x498   : > { %v5650_v52 = vpop.f32.mrf.mxu0  ;;  %v5778_v63 = vpop.f32.mrf.mxu2 }
 0x499   : > { %v12236_v24 = vadd.f32 %v5826_v42, %v11866_v30  ;;  %v5651_v51 = vadd.f32 %v5650_v52, %v12079_v3  ;;  %v5717_v22 = vpop.f32.mrf.mxu1 }
 0x49a   : > { %v5829_v7 = vpop.f32.mrf.mxu3 }
 0x49b   : > { %v5712_v45 = vadd.f32 %v5711_v35, %v5651_v51  ;;  %6230 = vmatmul.f32.gmra.mxu0 %v12007_v40  ;;  %6285 = vmatmul.f32.gmra.mxu1 %v12034_v48 }
 0x49d   : > { %v5779_v28 = vadd.f32 %v5778_v63, %v5712_v45  ;;  %6348 = vmatmul.f32.gmra.mxu2 %v12098_v36 }
 0x49f   : > { %v5830_v11 = vadd.f32 %v5829_v7, %v5779_v28  ;;  %6427 = vmatmul.f32.gmra.mxu3 %v12034_v48 }
 0x4a0   : > { %v5655_v1 = vpop.f32.mrf.mxu0  ;;  %v5782_v55 = vpop.f32.mrf.mxu2 }
 0x4a1   : > { %v12244_v30 = vadd.f32 %v5830_v11, %v11874_v4  ;;  %v5656_v3 = vadd.f32 %v5655_v1, %v12111_v54  ;;  %v5723_v9 = vpop.f32.mrf.mxu1 }
 0x4a2   : > { %v5833_v2 = vpop.f32.mrf.mxu3 }
 0x4a3   : > { %v5718_v35 = vadd.f32 %v5717_v22, %v5656_v3  ;;  %6234 = vmatmul.f32.gmra.mxu0 %v12034_v48  ;;  %6289 = vmatmul.f32.gmra.mxu1 %v12061_v34 }
 0x4a5   : > { %v5783_v42 = vadd.f32 %v5782_v55, %v5718_v35  ;;  %6356 = vmatmul.f32.gmra.mxu2 %v12126_v62  ;;  %v6704_v55 = vld [vmem:[#allocation3 + $0xd0] sm:$0xff] }
 0x4a7   : > { %v5834_v36 = vadd.f32 %v5833_v2, %v5783_v42  ;;  %6431 = vmatmul.f32.gmra.mxu3 %v12061_v34 }
 0x4a8   : > { %v5660_v52 = vpop.f32.mrf.mxu0  ;;  %v5786_v63 = vpop.f32.mrf.mxu2 }
 0x4a9   : > { %v12252_v4 = vadd.f32 %v5834_v36, %v11882_v25  ;;  %v5661_v54 = vadd.f32 %v5660_v52, %v12137_v6  ;;  %v5729_v51 = vpop.f32.mrf.mxu1 }
 0x4aa   : > { %v5837_v7 = vpop.f32.mrf.mxu3 }
 0x4ab   : > { %v5724_v22 = vadd.f32 %v5723_v9, %v5661_v54  ;;  %6238 = vmatmul.f32.gmra.mxu0 %v12061_v34  ;;  %6293 = vmatmul.f32.gmra.mxu1 %v12095_v57  ;;  %v12263_v9 = vand.u32 4294901760, %v6704_v55 }
 0x4ad   : > { %v5787_v45 = vadd.f32 %v5786_v63, %v5724_v22  ;;  %6364 = vmatmul.f32.gmra.mxu2 %v12154_v56  ;;  %v12268_v56 = vsub.f32 %v6704_v55, %v12263_v9  ;;  %6745 = vmatpush.msrb.mxu0 %v12263_v9 }
 0x4ae   : > { %6948 = vmatpush.msrb.mxu3 %v12263_v9 }
 0x4af   : > { %v5838_v62 = vadd.f32 %v5837_v7, %v5787_v45  ;;  %6435 = vmatmul.f32.gmra.mxu3 %v12095_v57  ;;  %6888 = vmatpush.msrb.mxu2 %v12268_v56 }
 0x4b0   : > { %v5665_v28 = vpop.f32.mrf.mxu0  ;;  %v5790_v11 = vpop.f32.mrf.mxu2 }
 0x4b1   : > { %v12260_v25 = vadd.f32 %v5838_v62, %v11890_v13  ;;  %v5666_v6 = vadd.f32 %v5665_v28, %v12167_v19  ;;  %v5735_v1 = vpop.f32.mrf.mxu1  ;;  %v6829_v19 = vand.u32 4294901760, %v12268_v56 }
 0x4b2   : > { %v5841_v3 = vpop.f32.mrf.mxu3 }
 0x4b3   : > { %v5730_v2 = vadd.f32 %v5729_v51, %v5666_v6  ;;  %6242 = vmatmul.f32.gmra.mxu0 %v12095_v57  ;;  %6297 = vmatmul.f32.gmra.mxu1 %v12128_v44  ;;  %v6830_v52 = vsub.f32 %v12268_v56, %v6829_v19 }
 0x4b5   : > { %v5791_v13 = vadd.f32 %v5790_v11, %v5730_v2  ;;  %6372 = vmatmul.f32.gmra.mxu2 %v12182_v37  ;;  %v6831_v22 = vand.u32 4294901760, %v6830_v52 }
 0x4b7   : > { %v5842_v35 = vadd.f32 %v5841_v3, %v5791_v13  ;;  %6439 = vmatmul.f32.gmra.mxu3 %v12128_v44  ;;  %6832 = vmatpush.msrb.mxu1 %v6831_v22 }
 0x4b8   : > { %v5670_v42 = vpop.f32.mrf.mxu0  ;;  %v5794_v36 = vpop.f32.mrf.mxu2 }
 0x4b9   : > { %v12278_v63 = vadd.f32 %v5842_v35, %v11908_v61  ;;  %v5671_v54 = vadd.f32 %v5670_v42, %v12190_v49  ;;  %v5741_v51 = vpop.f32.mrf.mxu1 }
 0x4ba   : > { %v5845_v7 = vpop.f32.mrf.mxu3 }
 0x4bb   : > { %v5736_v37 = vadd.f32 %v5735_v1, %v5671_v54  ;;  %6246 = vmatmul.f32.gmra.mxu0 %v12128_v44  ;;  %6301 = vmatmul.f32.gmra.mxu1 %v12151_v46 }
 0x4bd   : > { %v5795_v45 = vadd.f32 %v5794_v36, %v5736_v37  ;;  %6380 = vmatmul.f32.gmra.mxu2 %v12201_v33 }
 0x4bf   : > { %v5846_v62 = vadd.f32 %v5845_v7, %v5795_v45  ;;  %6443 = vmatmul.f32.gmra.mxu3 %v12151_v46  ;;  %v6702_v7 = vld [vmem:[#allocation3 + $0xc0] sm:$0xff] }
 0x4c0   : > { %v5675_v28 = vpop.f32.mrf.mxu0  ;;  %v5798_v61 = vpop.f32.mrf.mxu2  ;;  %v6746_v37 = vand.u32 4294901760, %v6702_v7 }
 0x4c1   : > { %v12286_v11 = vadd.f32 %v5846_v62, %v11916_v41  ;;  %v5676_v49 = vadd.f32 %v5675_v28, %v12208_v60  ;;  %v5747_v6 = vpop.f32.mrf.mxu1 }
 0x4c2   : > { %v5849_v1 = vpop.f32.mrf.mxu3  ;;  %6747 = vmatpush.msrb.mxu0 %v6746_v37  ;;  %6950 = vmatpush.msrb.mxu3 %v6746_v37 }
 0x4c3   : > { %v5742_v55 = vadd.f32 %v5741_v51, %v5676_v49  ;;  %6250 = vmatmul.f32.gmra.mxu0 %v12151_v46  ;;  %6305 = vmatmul.f32.gmra.mxu1 %v12184_v15 }
 0x4c5   : > { %v5799_v3 = vadd.f32 %v5798_v61, %v5742_v55  ;;  %6388 = vmatmul.f32.gmra.mxu2 %v12218_v39 }
 0x4c7   : > { %v5850_v33 = vadd.f32 %v5849_v1, %v5799_v3  ;;  %6447 = vmatmul.f32.gmra.mxu3 %v12184_v15 }
 0x4c8   : > { %v5680_v2 = vpop.f32.mrf.mxu0  ;;  %v5802_v56 = vpop.f32.mrf.mxu2 }
 0x4c9   : > { %v12294_v41 = vadd.f32 %v5850_v33, %v11924_v31  ;;  %v5681_v60 = vadd.f32 %v5680_v2, %v12222_v17  ;;  %v6044_v13 = vpop.f32.mrf.mxu1 }
 0x4ca   : > { %v5853_v35 = vpop.f32.mrf.mxu3 }
 0x4cb   : > { %v5748_v42 = vadd.f32 %v5747_v6, %v5681_v60  ;;  %6254 = vmatmul.f32.gmra.mxu0 %v12184_v15  ;;  %6533 = vmatmul.f32.vlgmr.msra.gmra.mxu1 %v12011_v18  ;;  %v6834_v18 = vsub.f32 %v6702_v7, %v6746_v37 }
 0x4cd   : > { %v5803_v36 = vadd.f32 %v5802_v56, %v5748_v42  ;;  %6602 = vmatmul.f32.vlgmr.msra.gmra.mxu2 %v11990_v23 }
 0x4ce   : > { %6891 = vmatpush.msrb.mxu2 %v6834_v18 }
 0x4cf   : > { %v5854_v39 = vadd.f32 %v5853_v35, %v5803_v36  ;;  %6653 = vmatmul.f32.vlgmr.msra.gmra.mxu3 %v11990_v23 }
 0x4d0   : > { %v5957_v52 = vpop.f32.mrf.mxu0  ;;  %v6098_v54 = vpop.f32.mrf.mxu2 }
 0x4d1   : > { %v12302_v31 = vadd.f32 %v5854_v39, %v11932_v5  ;;  %v6045_v51 = vadd.f32 %v6044_v13, %v5957_v52  ;;  %v6048_v17 = vpop.f32.mrf.mxu1  ;;  %v6835_v5 = vand.u32 4294901760, %v6834_v18 }
 0x4d2   : > { %v6158_v22 = vpop.f32.mrf.mxu3 }
 0x4d3   : > { %v6099_v45 = vadd.f32 %v6098_v54, %v6045_v51  ;;  %6473 = vmatmul.f32.vlgmr.msra.gmra.mxu0 %v11998_v0  ;;  %6539 = vmatmul.f32.gmra.mxu1 %v12032_v47  ;;  %v6836_v61 = vsub.f32 %v6834_v18, %v6835_v5  ;;  %v6705_v51 = vld [vmem:[#allocation3 + $0xd8] sm:$0xff] }
 0x4d4   : > { %7017 = vmatpush.msra.mxu0 %v6829_v19 }
 0x4d5   : > { %v12306_v62 = vadd.f32 %v6158_v22, %v6099_v45  ;;  %6606 = vmatmul.f32.gmra.mxu2 %v12007_v40  ;;  %v6837_v47 = vand.u32 4294901760, %v6836_v61 }
 0x4d6   : > { %7021 = vmatpush.msra.mxu0 %v6835_v5 }
 0x4d7   : > { %6657 = vmatmul.f32.gmra.mxu3 %v12007_v40  ;;  %6838 = vmatpush.msrb.mxu1 %v6837_v47 }
 0x4d8   : > { %v5965_v23 = vpop.f32.mrf.mxu0  ;;  %v6103_v28 = vpop.f32.mrf.mxu2 }
 0x4d9   : > { %v6049_v49 = vadd.f32 %v6048_v17, %v5965_v23  ;;  %v6052_v0 = vpop.f32.mrf.mxu1  ;;  %7070 = vmatpush.msra.mxu1 %v12263_v9  ;;  %v12336_v17 = vand.u32 4294901760, %v6705_v51 }
 0x4da   : > { %v6164_v6 = vpop.f32.mrf.mxu3 }
 0x4db   : > { %v6104_v1 = vadd.f32 %v6103_v28, %v6049_v49  ;;  %6478 = vmatmul.f32.gmra.mxu0 %v12017_v27  ;;  %6545 = vmatmul.f32.gmra.mxu1 %v12067_v50 }
 0x4dc   : > { %7072 = vmatpush.msra.mxu1 %v6746_v37  ;;  %7121 = vmatpush.msra.mxu2 %v12336_v17 }
 0x4dd   : > { %v12312_v55 = vadd.f32 %v6164_v6, %v6104_v1  ;;  %6610 = vmatmul.f32.gmra.mxu2 %v12034_v48 }
 0x4df   : > { %6661 = vmatmul.f32.gmra.mxu3 %v12034_v48 }
 0x4e0   : > { %v5973_v40 = vpop.f32.mrf.mxu0  ;;  %v6108_v19 = vpop.f32.mrf.mxu2 }
 0x4e1   : > { %v6053_v3 = vadd.f32 %v6052_v0, %v5973_v40  ;;  %v6056_v33 = vpop.f32.mrf.mxu1 }
 0x4e2   : > { %v6170_v2 = vpop.f32.mrf.mxu3 }
 0x4e3   : > { %v6109_v56 = vadd.f32 %v6108_v19, %v6053_v3  ;;  %6483 = vmatmul.f32.gmra.mxu0 %v12046_v14  ;;  %6551 = vmatmul.f32.gmra.mxu1 %v12093_v16 }
 0x4e5   : > { %v12319_v27 = vadd.f32 %v6170_v2, %v6109_v56  ;;  %6614 = vmatmul.f32.gmra.mxu2 %v12061_v34 }
 0x4e7   : > { %6665 = vmatmul.f32.gmra.mxu3 %v12061_v34 }
 0x4e8   : > { %v5981_v50 = vpop.f32.mrf.mxu0  ;;  %v6113_v9 = vpop.f32.mrf.mxu2 }
 0x4e9   : > { %v6057_v48 = vadd.f32 %v6056_v33, %v5981_v50  ;;  %v6060_v60 = vpop.f32.mrf.mxu1  ;;  %v14027_v50 = vld [vmem:[#allocation49_spill] sm:$0xff] }
 0x4ea   : > { %v6176_v13 = vpop.f32.mrf.mxu3 }
 0x4eb   : > { %v6114_v35 = vadd.f32 %v6113_v9, %v6057_v48  ;;  %6488 = vmatmul.f32.gmra.mxu0 %v12076_v53  ;;  %6557 = vmatmul.f32.gmra.mxu1 %v12123_v43  ;;  %v14021_v53 = vld [vmem:[#allocation55_spill] sm:$0xff]  ;;  %v5890_v9 = vmul.f32 %v14027_v50, %v11251_v59 }
 0x4ec   : > { %v5888_v54 = vmul.f32 %v14021_v53, %v11210_v26 }
 0x4ed   : > { %v12325_v42 = vadd.f32 %v6176_v13, %v6114_v35  ;;  %6618 = vmatmul.f32.gmra.mxu2 %v12095_v57 }
 0x4ef   : > { %6669 = vmatmul.f32.gmra.mxu3 %v12095_v57  ;;  %v14022_v57 = vld [vmem:[#allocation13_spill] sm:$0xff] }
 0x4f0   : > { %v5989_v14 = vpop.f32.mrf.mxu0  ;;  %v6118_v16 = vpop.f32.mrf.mxu2  ;;  %v12340_v7 = vsub.f32 %v5888_v54, %v14022_v57  ;;  %v14031_v57 = vld [vmem:[#allocation16_spill] sm:$0xff] }
 0x4f1   : > { %v6061_v36 = vadd.f32 %v6060_v60, %v5989_v14  ;;  %v6064_v34 = vpop.f32.mrf.mxu1 }
 0x4f2   : > { %v6182_v39 = vpop.f32.mrf.mxu3  ;;  %14023 = vst [vmem:[#allocation60_spill] sm:$0xff] %v12340_v7  ;;  %v6707_v61 = vsel %vm2693_vm14, %v12340_v7, 0 }
 0x4f3   : > { %v6119_v52 = vadd.f32 %v6118_v16, %v6061_v36  ;;  %6493 = vmatmul.f32.gmra.mxu0 %v12108_v58  ;;  %6563 = vmatmul.f32.gmra.mxu1 %v12157_v38  ;;  %v12344_v58 = vsub.f32 %v6705_v51, %v12336_v17  ;;  %v14030_v51 = vld [vmem:[#allocation28_spill] sm:$0xff] }
 0x4f5   : > { %v12333_v43 = vadd.f32 %v6182_v39, %v6119_v52  ;;  %6622 = vmatmul.f32.gmra.mxu2 %v12128_v44  ;;  %v7205_v5 = vand.u32 4294901760, %v12344_v58 }
 0x4f7   : > { %6673 = vmatmul.f32.gmra.mxu3 %v12128_v44  ;;  %v14024_v44 = vld [vmem:[#allocation34_spill] sm:$0xff]  ;;  %v7206_v49 = vsub.f32 %v12344_v58, %v7205_v5 }
 0x4f8   : > { %v5997_v22 = vpop.f32.mrf.mxu0  ;;  %v6123_v37 = vpop.f32.mrf.mxu2  ;;  %v5889_v28 = vmul.f32 %v14024_v44, %v11229_v29 }
 0x4f9   : > { %v6065_v38 = vadd.f32 %v6064_v34, %v5997_v22  ;;  %v6068_v45 = vpop.f32.mrf.mxu1  ;;  %v7207_v6 = vand.u32 4294901760, %v7206_v49  ;;  %v5891_v22 = vmul.f32 %v14031_v57, %v14030_v51 }
 0x4fa   : > { %v6188_v18 = vpop.f32.mrf.mxu3 }
 0x4fb   : > { %v6124_v23 = vadd.f32 %v6123_v37, %v6065_v38  ;;  %6498 = vmatmul.f32.gmra.mxu0 %v12141_v32  ;;  %6569 = vmatmul.f32.gmra.mxu1 %v12179_v8  ;;  %v12360_v32 = vand.u32 4294901760, %v6707_v61  ;;  %v14025_v8 = vld [vmem:[#allocation18_spill] sm:$0xff] }
 0x4fc   : > { %v12363_v47 = vsub.f32 %v5889_v28, %v14025_v8  ;;  %7208 = vmatpush.msra.mxu3 %v7207_v6 }
 0x4fd   : > { %v12356_v0 = vadd.f32 %v6188_v18, %v6124_v23  ;;  %6626 = vmatmul.f32.gmra.mxu2 %v12151_v46  ;;  %v12368_v56 = vsub.f32 %v6707_v61, %v12360_v32  ;;  %v14032_v18 = vld [vmem:[#allocation32_spill] sm:$0xff] }
 0x4fe   : > { %14026 = vst [vmem:[#allocation57_spill] sm:$0xff] %v12363_v47  ;;  %v12410_v23 = vsub.f32 %v5891_v22, %v14032_v18 }
 0x4ff   : > { %6677 = vmatmul.f32.gmra.mxu3 %v12151_v46  ;;  %v6710_v46 = vsel %vm2693_vm14, %v12363_v47, 0  ;;  %v14054_v47 = vld [vmem:[#allocation15_spill] sm:$0xff] }
 0x500   : > { %v6005_v1 = vpop.f32.mrf.mxu0  ;;  %v6128_v40 = vpop.f32.mrf.mxu2  ;;  %v12377_v60 = vand.u32 4294901760, %v6710_v46  ;;  %14033 = vst [vmem:[#allocation13_spill] sm:$0xff] %v12410_v23 }
 0x501   : > { %v6069_v19 = vadd.f32 %v6068_v45, %v6005_v1  ;;  %v6072_v3 = vpop.f32.mrf.mxu1 }
 0x502   : > { %v6194_v33 = vpop.f32.mrf.mxu3  ;;  %v12387_v39 = vsub.f32 %v6710_v46, %v12377_v60 }
 0x503   : > { %v6129_v2 = vadd.f32 %v6128_v40, %v6069_v19  ;;  %6503 = vmatmul.f32.gmra.mxu0 %v12164_v10  ;;  %6575 = vmatmul.f32.gmra.mxu1 %v12204_v20  ;;  %v12381_v10 = vand.u32 4294901760, %v12368_v56  ;;  %v14028_v20 = vld [vmem:[#allocation26_spill] sm:$0xff] }
 0x504   : > { %v12384_v13 = vsub.f32 %v5890_v9, %v14028_v20  ;;  %v12402_v38 = vand.u32 4294901760, %v12387_v39  ;;  %v14036_v9 = vld [vmem:[#allocation9_spill] sm:$0xff] }
 0x505   : > { %v12374_v48 = vadd.f32 %v6194_v33, %v6129_v2  ;;  %6630 = vmatmul.f32.gmra.mxu2 %v12184_v15  ;;  %v6716_v33 = vsel %vm2693_vm14, %v12410_v23, 0  ;;  %v14034_v2 = vld [vmem:[#allocation27_spill] sm:$0xff] }
 0x506   : > { %14029 = vst [vmem:[#allocation24_spill] sm:$0xff] %v12384_v13  ;;  %v6713_v54 = vsel %vm2693_vm14, %v12384_v13, 0  ;;  %v6759_v1 = vsub.f32 %v12387_v39, %v12402_v38 }
 0x507   : > { %6681 = vmatmul.f32.gmra.mxu3 %v12184_v15  ;;  %v6751_v15 = vsub.f32 %v12368_v56, %v12381_v10 }
 0x508   : > { %v6013_v35 = vpop.f32.mrf.mxu0  ;;  %v6133_v14 = vpop.f32.mrf.mxu2 }
 0x509   : > { %v6073_v16 = vadd.f32 %v6072_v3, %v6013_v35  ;;  %v6278_v36 = vpop.f32.mrf.mxu1  ;;  %v12407_v45 = vand.u32 4294901760, %v6751_v15  ;;  %v6703_v35 = vld [vmem:[#allocation3 + $0xc8] sm:$0xff] }
 0x50a   : > { %v6200_v34 = vpop.f32.mrf.mxu3 }
 0x50b   : > { %v6134_v52 = vadd.f32 %v6133_v14, %v6073_v16  ;;  %6508 = vmatmul.f32.gmra.mxu0 %v12194_v21  ;;  %6840 = vmatmul.f32.vlgmr.msrb.gmra.mxu1 %v12360_v32  ;;  %v12404_v21 = vand.u32 4294901760, %v6713_v54  ;;  %v12431_v14 = vand.u32 4294901760, %v6716_v33  ;;  %v7122_v16 = vand.u32 4294901760, %v6703_v35 }
 0x50c   : > { %7324 = vmatpush.msrb.mxu1 %v12336_v17 }
 0x50d   : > { %v12398_v37 = vadd.f32 %v6200_v34, %v6134_v52  ;;  %6894 = vmatmul.f32.vlgmr.msrb.gmra.mxu2 %v12368_v56  ;;  %v12416_v40 = vsub.f32 %v6713_v54, %v12404_v21  ;;  %v14038_v52 = vld [vmem:[#allocation36_spill] sm:$0xff]  ;;  %v7210_v18 = vsub.f32 %v6703_v35, %v7122_v16 }
 0x50e   : > { %7123 = vmatpush.msra.mxu2 %v7122_v16  ;;  %7326 = vmatpush.msrb.mxu1 %v7122_v16  ;;  %v14041_v35 = vld [vmem:[#allocation48_spill] sm:$0xff] }
 0x50f   : > { %6954 = vmatmul.f32.vlgmr.msrb.gmra.mxu3 %v12381_v10  ;;  %v12437_v34 = vand.u32 4294901760, %v12416_v40 }
 0x510   : > { %v6227_v28 = vpop.f32.mrf.mxu0  ;;  %v6333_v61 = vpop.f32.mrf.mxu2  ;;  %7393 = vmatpush.msrb.mxu2 %v7205_v5  ;;  %v14040_v5 = vld [vmem:[#allocation44_spill] sm:$0xff] }
 0x511   : > { %v6228_v49 = vadd.f32 %v6227_v28, %v12306_v62  ;;  %v6282_v6 = vpop.f32.mrf.mxu1  ;;  %v14035_v62 = vld [vmem:[#allocation21_spill] sm:$0xff] }
 0x512   : > { %v6420_v8 = vpop.f32.mrf.mxu3  ;;  %v5892_v46 = vmul.f32 %v14035_v62, %v14034_v2 }
 0x513   : > { %v6279_v19 = vadd.f32 %v6278_v36, %v6228_v49  ;;  %6753 = vmatmul.f32.vlgmr.msrb.gmra.mxu0 %v12407_v45  ;;  %v12419_v3 = vadd.f32 %v6420_v8, %v6333_v61  ;;  %6844 = vmatmul.f32.gmra.mxu1 %v12377_v60  ;;  %v12434_v36 = vand.u32 4294901760, %v6759_v1  ;;  %v12446_v8 = vsub.f32 %v6716_v33, %v12431_v14 }
 0x514   : > { %7264 = vmatpush.msrb.mxu0 %v12344_v58  ;;  %v12440_v15 = vsub.f32 %v5892_v46, %v14038_v52  ;;  %v7211_v1 = vand.u32 4294901760, %v7210_v18  ;;  %v5893_v33 = vmul.f32 %v14041_v35, %v14040_v5  ;;  %v14042_v52 = vld [vmem:[#allocation23_spill] sm:$0xff]  ;;  %v14044_v35 = vld [vmem:[#allocation38_spill] sm:$0xff] }
 0x515   : > { %v12428_v20 = vadd.f32 %v6279_v19, %v14036_v9  ;;  %6899 = vmatmul.f32.gmra.mxu2 %v12387_v39  ;;  %v6767_v9 = vsub.f32 %v12416_v40, %v12437_v34 }
 0x516   : > { %14039 = vst [vmem:[#allocation26_spill] sm:$0xff] %v12440_v15  ;;  %7267 = vmatpush.msrb.mxu0 %v7210_v18  ;;  %v7212_v58 = vsub.f32 %v7210_v18, %v7211_v1  ;;  %7397 = vmatpush.msrb.mxu2 %v7211_v1  ;;  %v12471_v1 = vsub.f32 %v5893_v33, %v14044_v35  ;;  %v14046_v35 = vld [vmem:[#allocation43_spill] sm:$0xff]  ;;  %v14047_v33 = vld [vmem:[#allocation56_spill] sm:$0xff] }
 0x517   : > { %14037 = vst [vmem:[#allocation18_spill] sm:$0xff] %v12428_v20  ;;  %6960 = vmatmul.f32.gmra.mxu3 %v12402_v38 }
 0x518   : > { %v6231_v54 = vpop.f32.mrf.mxu0  ;;  %v6341_v22 = vpop.f32.mrf.mxu2  ;;  %14045 = vst [vmem:[#allocation9_spill] sm:$0xff] %v12471_v1 }
 0x519   : > { %v6232_v28 = vadd.f32 %v6231_v54, %v12312_v55  ;;  %v6286_v61 = vpop.f32.mrf.mxu1  ;;  %v6719_v55 = vsel %vm2693_vm14, %v12440_v15, 0 }
 0x51a   : > { %v6424_v49 = vpop.f32.mrf.mxu3 }
 0x51b   : > { %v6283_v19 = vadd.f32 %v6282_v6, %v6232_v28  ;;  %6761 = vmatmul.f32.gmra.mxu0 %v12434_v36  ;;  %v12449_v46 = vadd.f32 %v6424_v49, %v6341_v22  ;;  %6848 = vmatmul.f32.gmra.mxu1 %v12404_v21  ;;  %v12463_v6 = vand.u32 4294901760, %v12446_v8  ;;  %v12465_v22 = vand.u32 4294901760, %v6719_v55 }
 0x51c   : > { %v7213_v28 = vand.u32 4294901760, %v7212_v58  ;;  %v12468_v49 = vand.u32 4294901760, %v6767_v9 }
 0x51d   : > { %v12459_v54 = vadd.f32 %v6283_v19, %v14042_v52  ;;  %6904 = vmatmul.f32.gmra.mxu2 %v12416_v40  ;;  %v6775_v57 = vsub.f32 %v12446_v8, %v12463_v6  ;;  %v12478_v58 = vsub.f32 %v6719_v55, %v12465_v22  ;;  %v14050_v55 = vld [vmem:[#allocation39_spill] sm:$0xff] }
 0x51e   : > { %7214 = vmatpush.msra.mxu3 %v7213_v28  ;;  %v14048_v28 = vld [vmem:[#allocation10_spill] sm:$0xff] }
 0x51f   : > { %14043 = vst [vmem:[#allocation32_spill] sm:$0xff] %v12459_v54  ;;  %6966 = vmatmul.f32.gmra.mxu3 %v12437_v34  ;;  %v14060_v54 = vld [vmem:[#allocation53_spill] sm:$0xff] }
 0x520   : > { %v6235_v18 = vpop.f32.mrf.mxu0  ;;  %v6349_v62 = vpop.f32.mrf.mxu2  ;;  %7446 = vmatpush.msrb.mxu3 %v12336_v17  ;;  %v6722_v17 = vsel %vm2693_vm14, %v12471_v1, 0 }
 0x521   : > { %v6236_v19 = vadd.f32 %v6235_v18, %v12319_v27  ;;  %v6290_v52 = vpop.f32.mrf.mxu1  ;;  %v5894_v27 = vmul.f32 %v14047_v33, %v14046_v35 }
 0x522   : > { %v6428_v15 = vpop.f32.mrf.mxu3  ;;  %7448 = vmatpush.msrb.mxu3 %v7122_v16 }
 0x523   : > { %v6287_v9 = vadd.f32 %v6286_v61, %v6236_v19  ;;  %6769 = vmatmul.f32.gmra.mxu0 %v12468_v49  ;;  %v12481_v23 = vadd.f32 %v6428_v15, %v6349_v62  ;;  %6852 = vmatmul.f32.gmra.mxu1 %v12431_v14  ;;  %v12493_v61 = vand.u32 4294901760, %v12478_v58  ;;  %v12496_v62 = vand.u32 4294901760, %v6775_v57 }
 0x524   : > { %v12498_v15 = vand.u32 4294901760, %v6722_v17  ;;  %v12501_v19 = vsub.f32 %v5894_v27, %v14050_v55  ;;  %v14052_v55 = vld [vmem:[#allocation20_spill] sm:$0xff] }
 0x525   : > { %v12489_v18 = vadd.f32 %v6287_v9, %v14048_v28  ;;  %6909 = vmatmul.f32.gmra.mxu2 %v12446_v8  ;;  %v6783_v50 = vsub.f32 %v12478_v58, %v12493_v61 }
 0x526   : > { %14051 = vst [vmem:[#allocation23_spill] sm:$0xff] %v12501_v19  ;;  %v12511_v57 = vsub.f32 %v6722_v17, %v12498_v15  ;;  %v6725_v27 = vsel %vm2693_vm14, %v12501_v19, 0  ;;  %v14056_v19 = vld [vmem:[#allocation40_spill] sm:$0xff] }
 0x527   : > { %14049 = vst [vmem:[#allocation36_spill] sm:$0xff] %v12489_v18  ;;  %6972 = vmatmul.f32.gmra.mxu3 %v12463_v6 }
 0x528   : > { %v6239_v33 = vpop.f32.mrf.mxu0  ;;  %v6357_v1 = vpop.f32.mrf.mxu2  ;;  %v12527_v17 = vand.u32 4294901760, %v12511_v57 }
 0x529   : > { %v6240_v16 = vadd.f32 %v6239_v33, %v12325_v42  ;;  %v6294_v9 = vpop.f32.mrf.mxu1  ;;  %v14053_v42 = vld [vmem:[#allocation58_spill] sm:$0xff] }
 0x52a   : > { %v6432_v28 = vpop.f32.mrf.mxu3  ;;  %v5895_v33 = vmul.f32 %v14053_v42, %v14052_v55  ;;  %v6791_v18 = vsub.f32 %v12511_v57, %v12527_v17 }
 0x52b   : > { %v6291_v13 = vadd.f32 %v6290_v52, %v6240_v16  ;;  %6777 = vmatmul.f32.gmra.mxu0 %v12496_v62  ;;  %v12507_v44 = vadd.f32 %v6432_v28, %v6357_v1  ;;  %6856 = vmatmul.f32.gmra.mxu1 %v12465_v22  ;;  %v12521_v52 = vand.u32 4294901760, %v6725_v27  ;;  %v12524_v1 = vand.u32 4294901760, %v6783_v50 }
 0x52c   : > { %v12530_v7 = vsub.f32 %v5895_v33, %v14056_v19  ;;  %v14058_v33 = vld [vmem:[#allocation47_spill] sm:$0xff] }
 0x52d   : > { %v12518_v53 = vadd.f32 %v6291_v13, %v14054_v47  ;;  %6914 = vmatmul.f32.gmra.mxu2 %v12478_v58 }
 0x52e   : > { %14057 = vst [vmem:[#allocation10_spill] sm:$0xff] %v12530_v7  ;;  %v6728_v19 = vsel %vm2693_vm14, %v12530_v7, 0 }
 0x52f   : > { %14055 = vst [vmem:[#allocation38_spill] sm:$0xff] %v12518_v53  ;;  %6978 = vmatmul.f32.gmra.mxu3 %v12493_v61  ;;  %v12534_v53 = vsub.f32 %v6725_v27, %v12521_v52 }
 0x530   : > { %v6243_v16 = vpop.f32.mrf.mxu0  ;;  %v6365_v28 = vpop.f32.mrf.mxu2 }
 0x531   : > { %v6244_v42 = vadd.f32 %v6243_v16, %v12333_v43  ;;  %v6298_v47 = vpop.f32.mrf.mxu1  ;;  %v12549_v27 = vand.u32 4294901760, %v12534_v53 }
 0x532   : > { %v6436_v13 = vpop.f32.mrf.mxu3 }
 0x533   : > { %v6295_v55 = vadd.f32 %v6294_v9, %v6244_v42  ;;  %6785 = vmatmul.f32.gmra.mxu0 %v12524_v1  ;;  %v12537_v50 = vadd.f32 %v6436_v13, %v6365_v28  ;;  %6860 = vmatmul.f32.gmra.mxu1 %v12498_v15  ;;  %v12552_v9 = vand.u32 4294901760, %v6791_v18  ;;  %v12554_v42 = vand.u32 4294901760, %v6728_v19 }
 0x535   : > { %v12545_v43 = vadd.f32 %v6295_v55, %v14058_v33  ;;  %6919 = vmatmul.f32.gmra.mxu2 %v12511_v57  ;;  %v6799_v55 = vsub.f32 %v12534_v53, %v12549_v27  ;;  %v12564_v18 = vsub.f32 %v6728_v19, %v12554_v42 }
 0x537   : > { %14059 = vst [vmem:[#allocation39_spill] sm:$0xff] %v12545_v43  ;;  %6984 = vmatmul.f32.gmra.mxu3 %v12527_v17 }
 0x538   : > { %v6247_v16 = vpop.f32.mrf.mxu0  ;;  %v6373_v28 = vpop.f32.mrf.mxu2 }
 0x539   : > { %v6248_v13 = vadd.f32 %v6247_v16, %v12356_v0  ;;  %v6302_v35 = vpop.f32.mrf.mxu1  ;;  %v12571_v0 = vand.u32 4294901760, %v6799_v55  ;;  %v14062_v55 = vld [vmem:[#allocation52_spill] sm:$0xff] }
 0x53a   : > { %v6440_v7 = vpop.f32.mrf.mxu3 }
 0x53b   : > { %v6299_v33 = vadd.f32 %v6298_v47, %v6248_v13  ;;  %6793 = vmatmul.f32.gmra.mxu0 %v12552_v9  ;;  %v12560_v43 = vadd.f32 %v6440_v7, %v6373_v28  ;;  %6864 = vmatmul.f32.gmra.mxu1 %v12521_v52  ;;  %v12574_v47 = vand.u32 4294901760, %v12564_v18 }
 0x53d   : > { %v12567_v5 = vadd.f32 %v6299_v33, %v14060_v54  ;;  %6924 = vmatmul.f32.gmra.mxu2 %v12534_v53  ;;  %v6807_v33 = vsub.f32 %v12564_v18, %v12574_v47 }
 0x53f   : > { %14061 = vst [vmem:[#allocation15_spill] sm:$0xff] %v12567_v5  ;;  %6990 = vmatmul.f32.gmra.mxu3 %v12549_v27 }
 0x540   : > { %v6251_v16 = vpop.f32.mrf.mxu0  ;;  %v6381_v7 = vpop.f32.mrf.mxu2 }
 0x541   : > { %v6252_v28 = vadd.f32 %v6251_v16, %v12374_v48  ;;  %v6306_v13 = vpop.f32.mrf.mxu1  ;;  %v12588_v48 = vand.u32 4294901760, %v6807_v33 }
 0x542   : > { %v6444_v20 = vpop.f32.mrf.mxu3 }
 0x543   : > { %v6303_v19 = vadd.f32 %v6302_v35, %v6252_v28  ;;  %6801 = vmatmul.f32.gmra.mxu0 %v12571_v0  ;;  %v12578_v54 = vadd.f32 %v6444_v20, %v6381_v7  ;;  %6868 = vmatmul.f32.gmra.mxu1 %v12554_v42 }
 0x545   : > { %v12584_v5 = vadd.f32 %v6303_v19, %v14062_v55  ;;  %6929 = vmatmul.f32.gmra.mxu2 %v12564_v18 }
 0x547   : > { %14063 = vst [vmem:[#allocation40_spill] sm:$0xff] %v12584_v5  ;;  %6996 = vmatmul.f32.gmra.mxu3 %v12574_v47 }
 0x548   : > { %v6255_v16 = vpop.f32.mrf.mxu0  ;;  %v6389_v35 = vpop.f32.mrf.mxu2 }
 0x549   : > { %v6256_v28 = vadd.f32 %v6255_v16, %v12398_v37  ;;  %v6534_v20 = vpop.f32.mrf.mxu1 }
 0x54a   : > { %v6448_v7 = vpop.f32.mrf.mxu3 }
 0x54b   : > { %v6307_v2 = vadd.f32 %v6306_v13, %v6256_v28  ;;  %6809 = vmatmul.f32.gmra.mxu0 %v12588_v48  ;;  %v12592_v51 = vadd.f32 %v6448_v7, %v6389_v35  ;;  %7074 = vmatmul.f32.vlgmr.msra.gmra.mxu1 %v12360_v32 }
 0x54d   : > { %v12596_v19 = vadd.f32 %v6307_v2, %v12226_v12  ;;  %7129 = vmatmul.f32.vlgmr.msra.gmra.mxu2 %v12407_v45 }
 0x54f   : > { %7216 = vmatmul.f32.vlgmr.msra.gmra.mxu3 %v12360_v32 }
 0x550   : > { %v6474_v33 = vpop.f32.mrf.mxu0  ;;  %v6603_v55 = vpop.f32.mrf.mxu2 }
 0x551   : > { %v6475_v37 = vadd.f32 %v6474_v33, %v12419_v3  ;;  %v6540_v16 = vpop.f32.mrf.mxu1 }
 0x552   : > { %v6654_v5 = vpop.f32.mrf.mxu3 }
 0x553   : > { %v6535_v13 = vadd.f32 %v6534_v20, %v6475_v37  ;;  %7023 = vmatmul.f32.vlgmr.msra.gmra.mxu0 %v12360_v32  ;;  %7078 = vmatmul.f32.gmra.mxu1 %v12377_v60 }
 0x555   : > { %v6604_v35 = vadd.f32 %v6603_v55, %v6535_v13  ;;  %7137 = vmatmul.f32.gmra.mxu2 %v12434_v36 }
 0x557   : > { %v6655_v12 = vadd.f32 %v6654_v5, %v6604_v35  ;;  %7220 = vmatmul.f32.gmra.mxu3 %v12377_v60 }
 0x558   : > { %v6479_v45 = vpop.f32.mrf.mxu0  ;;  %v6607_v2 = vpop.f32.mrf.mxu2 }
 0x559   : > { %v12606_v28 = vadd.f32 %v6655_v12, %v12236_v24  ;;  %v6480_v3 = vadd.f32 %v6479_v45, %v12449_v46  ;;  %v6546_v7 = vpop.f32.mrf.mxu1 }
 0x55a   : > { %v6658_v33 = vpop.f32.mrf.mxu3 }
 0x55b   : > { %v6541_v20 = vadd.f32 %v6540_v16, %v6480_v3  ;;  %7027 = vmatmul.f32.gmra.mxu0 %v12377_v60  ;;  %7082 = vmatmul.f32.gmra.mxu1 %v12404_v21 }
 0x55d   : > { %v6608_v55 = vadd.f32 %v6607_v2, %v6541_v20  ;;  %7145 = vmatmul.f32.gmra.mxu2 %v12468_v49 }
 0x55f   : > { %v6659_v36 = vadd.f32 %v6658_v33, %v6608_v55  ;;  %7224 = vmatmul.f32.gmra.mxu3 %v12404_v21 }
 0x560   : > { %v6484_v5 = vpop.f32.mrf.mxu0  ;;  %v6611_v37 = vpop.f32.mrf.mxu2 }
 0x561   : > { %v12614_v24 = vadd.f32 %v6659_v36, %v12244_v30  ;;  %v6485_v46 = vadd.f32 %v6484_v5, %v12481_v23  ;;  %v6552_v13 = vpop.f32.mrf.mxu1 }
 0x562   : > { %v6662_v35 = vpop.f32.mrf.mxu3 }
 0x563   : > { %v6547_v16 = vadd.f32 %v6546_v7, %v6485_v46  ;;  %7031 = vmatmul.f32.gmra.mxu0 %v12404_v21  ;;  %7086 = vmatmul.f32.gmra.mxu1 %v12431_v14 }
 0x565   : > { %v6612_v12 = vadd.f32 %v6611_v37, %v6547_v16  ;;  %7153 = vmatmul.f32.gmra.mxu2 %v12496_v62  ;;  %v7533_v37 = vld [vmem:[#allocation3 + $0x70] sm:$0xff] }
 0x567   : > { %v6663_v49 = vadd.f32 %v6662_v35, %v6612_v12  ;;  %7228 = vmatmul.f32.gmra.mxu3 %v12431_v14 }
 0x568   : > { %v6489_v45 = vpop.f32.mrf.mxu0  ;;  %v6615_v2 = vpop.f32.mrf.mxu2 }
 0x569   : > { %v12622_v30 = vadd.f32 %v6663_v49, %v12252_v4  ;;  %v6490_v23 = vadd.f32 %v6489_v45, %v12507_v44  ;;  %v6558_v3 = vpop.f32.mrf.mxu1 }
 0x56a   : > { %v6666_v33 = vpop.f32.mrf.mxu3 }
 0x56b   : > { %v6553_v7 = vadd.f32 %v6552_v13, %v6490_v23  ;;  %7035 = vmatmul.f32.gmra.mxu0 %v12431_v14  ;;  %7090 = vmatmul.f32.gmra.mxu1 %v12465_v22  ;;  %v12633_v13 = vand.u32 4294901760, %v7533_v37 }
 0x56d   : > { %v6616_v20 = vadd.f32 %v6615_v2, %v6553_v7  ;;  %7161 = vmatmul.f32.gmra.mxu2 %v12524_v1  ;;  %v12638_v1 = vsub.f32 %v7533_v37, %v12633_v13  ;;  %7574 = vmatpush.msra.mxu0 %v12633_v13 }
 0x56e   : > { %7777 = vmatpush.msra.mxu3 %v12633_v13 }
 0x56f   : > { %v6667_v62 = vadd.f32 %v6666_v33, %v6616_v20  ;;  %7232 = vmatmul.f32.gmra.mxu3 %v12465_v22  ;;  %7717 = vmatpush.msra.mxu2 %v12638_v1 }
 0x570   : > { %v6494_v55 = vpop.f32.mrf.mxu0  ;;  %v6619_v36 = vpop.f32.mrf.mxu2 }
 0x571   : > { %v12630_v4 = vadd.f32 %v6667_v62, %v12260_v25  ;;  %v6495_v44 = vadd.f32 %v6494_v55, %v12537_v50  ;;  %v6564_v5 = vpop.f32.mrf.mxu1  ;;  %v7658_v50 = vand.u32 4294901760, %v12638_v1 }
 0x572   : > { %v6670_v46 = vpop.f32.mrf.mxu3 }
 0x573   : > { %v6559_v35 = vadd.f32 %v6558_v3, %v6495_v44  ;;  %7039 = vmatmul.f32.gmra.mxu0 %v12465_v22  ;;  %7094 = vmatmul.f32.gmra.mxu1 %v12498_v15  ;;  %v7659_v45 = vsub.f32 %v12638_v1, %v7658_v50 }
 0x575   : > { %v6620_v25 = vadd.f32 %v6619_v36, %v6559_v35  ;;  %7169 = vmatmul.f32.gmra.mxu2 %v12552_v9  ;;  %v7660_v7 = vand.u32 4294901760, %v7659_v45 }
 0x577   : > { %v6671_v16 = vadd.f32 %v6670_v46, %v6620_v25  ;;  %7236 = vmatmul.f32.gmra.mxu3 %v12498_v15  ;;  %7661 = vmatpush.msra.mxu1 %v7660_v7 }
 0x578   : > { %v6499_v12 = vpop.f32.mrf.mxu0  ;;  %v6623_v49 = vpop.f32.mrf.mxu2 }
 0x579   : > { %v12648_v2 = vadd.f32 %v6671_v16, %v12278_v63  ;;  %v6500_v23 = vadd.f32 %v6499_v12, %v12560_v43  ;;  %v6570_v3 = vpop.f32.mrf.mxu1 }
 0x57a   : > { %v6674_v33 = vpop.f32.mrf.mxu3 }
 0x57b   : > { %v6565_v9 = vadd.f32 %v6564_v5, %v6500_v23  ;;  %7043 = vmatmul.f32.gmra.mxu0 %v12498_v15  ;;  %7098 = vmatmul.f32.gmra.mxu1 %v12521_v52 }
 0x57d   : > { %v6624_v20 = vadd.f32 %v6623_v49, %v6565_v9  ;;  %7177 = vmatmul.f32.gmra.mxu2 %v12571_v0 }
 0x57f   : > { %v6675_v62 = vadd.f32 %v6674_v33, %v6624_v20  ;;  %7240 = vmatmul.f32.gmra.mxu3 %v12521_v52  ;;  %v7531_v33 = vld [vmem:[#allocation3 + $0x60] sm:$0xff] }
 0x580   : > { %v6504_v55 = vpop.f32.mrf.mxu0  ;;  %v6627_v63 = vpop.f32.mrf.mxu2  ;;  %v7575_v9 = vand.u32 4294901760, %v7531_v33 }
 0x581   : > { %v12656_v36 = vadd.f32 %v6675_v62, %v12286_v11  ;;  %v6505_v43 = vadd.f32 %v6504_v55, %v12578_v54  ;;  %v6576_v44 = vpop.f32.mrf.mxu1 }
 0x582   : > { %v6678_v5 = vpop.f32.mrf.mxu3  ;;  %7576 = vmatpush.msra.mxu0 %v7575_v9  ;;  %7779 = vmatpush.msra.mxu3 %v7575_v9 }
 0x583   : > { %v6571_v37 = vadd.f32 %v6570_v3, %v6505_v43  ;;  %7047 = vmatmul.f32.gmra.mxu0 %v12521_v52  ;;  %7102 = vmatmul.f32.gmra.mxu1 %v12554_v42 }
 0x585   : > { %v6628_v46 = vadd.f32 %v6627_v63, %v6571_v37  ;;  %7185 = vmatmul.f32.gmra.mxu2 %v12588_v48 }
 0x587   : > { %v6679_v0 = vadd.f32 %v6678_v5, %v6628_v46  ;;  %7244 = vmatmul.f32.gmra.mxu3 %v12554_v42 }
 0x588   : > { %v6509_v35 = vpop.f32.mrf.mxu0  ;;  %v6631_v1 = vpop.f32.mrf.mxu2 }
 0x589   : > { %v12664_v11 = vadd.f32 %v6679_v0, %v12294_v41  ;;  %v6510_v54 = vadd.f32 %v6509_v35, %v12592_v51  ;;  %v6841_v25 = vpop.f32.mrf.mxu1 }
 0x58a   : > { %v6682_v16 = vpop.f32.mrf.mxu3 }
 0x58b   : > { %v6577_v12 = vadd.f32 %v6576_v44, %v6510_v54  ;;  %7051 = vmatmul.f32.gmra.mxu0 %v12554_v42  ;;  %7330 = vmatmul.f32.vlgmr.msrb.gmra.mxu1 %v12381_v10  ;;  %v7663_v10 = vsub.f32 %v7531_v33, %v7575_v9 }
 0x58d   : > { %v6632_v49 = vadd.f32 %v6631_v1, %v6577_v12  ;;  %7399 = vmatmul.f32.vlgmr.msrb.gmra.mxu2 %v12360_v32 }
 0x58e   : > { %7720 = vmatpush.msra.mxu2 %v7663_v10 }
 0x58f   : > { %v6683_v48 = vadd.f32 %v6682_v16, %v6632_v49  ;;  %7450 = vmatmul.f32.vlgmr.msrb.gmra.mxu3 %v12360_v32 }
 0x590   : > { %v6754_v45 = vpop.f32.mrf.mxu0  ;;  %v6895_v23 = vpop.f32.mrf.mxu2 }
 0x591   : > { %v12672_v41 = vadd.f32 %v6683_v48, %v12302_v31  ;;  %v6842_v3 = vadd.f32 %v6841_v25, %v6754_v45  ;;  %v6845_v51 = vpop.f32.mrf.mxu1  ;;  %v7664_v31 = vand.u32 4294901760, %v7663_v10 }
 0x592   : > { %v6955_v7 = vpop.f32.mrf.mxu3 }
 0x593   : > { %v6896_v20 = vadd.f32 %v6895_v23, %v6842_v3  ;;  %7270 = vmatmul.f32.vlgmr.msrb.gmra.mxu0 %v12368_v56  ;;  %7336 = vmatmul.f32.gmra.mxu1 %v12402_v38  ;;  %v7665_v63 = vsub.f32 %v7663_v10, %v7664_v31  ;;  %v7534_v3 = vld [vmem:[#allocation3 + $0x78] sm:$0xff] }
 0x594   : > { %7846 = vmatpush.msrb.mxu0 %v7658_v50 }
 0x595   : > { %v12676_v62 = vadd.f32 %v6955_v7, %v6896_v20  ;;  %7403 = vmatmul.f32.gmra.mxu2 %v12377_v60  ;;  %v7666_v38 = vand.u32 4294901760, %v7665_v63  ;;  %v14065_v7 = vld [vmem:[#allocation41_spill] sm:$0xff] }
 0x596   : > { %7850 = vmatpush.msrb.mxu0 %v7664_v31 }
 0x597   : > { %7454 = vmatmul.f32.gmra.mxu3 %v12377_v60  ;;  %7667 = vmatpush.msra.mxu1 %v7666_v38 }
 0x598   : > { %v6762_v32 = vpop.f32.mrf.mxu0  ;;  %v6900_v55 = vpop.f32.mrf.mxu2 }
 0x599   : > { %v6846_v43 = vadd.f32 %v6845_v51, %v6762_v32  ;;  %v6849_v56 = vpop.f32.mrf.mxu1  ;;  %7899 = vmatpush.msrb.mxu1 %v12633_v13  ;;  %v12706_v51 = vand.u32 4294901760, %v7534_v3 }
 0x59a   : > { %v6961_v44 = vpop.f32.mrf.mxu3 }
 0x59b   : > { %v6901_v5 = vadd.f32 %v6900_v55, %v6846_v43  ;;  %7275 = vmatmul.f32.gmra.mxu0 %v12387_v39  ;;  %7342 = vmatmul.f32.gmra.mxu1 %v12437_v34 }
 0x59c   : > { %7901 = vmatpush.msrb.mxu1 %v7575_v9  ;;  %7950 = vmatpush.msrb.mxu2 %v12706_v51 }
 0x59d   : > { %v12682_v37 = vadd.f32 %v6961_v44, %v6901_v5  ;;  %7407 = vmatmul.f32.gmra.mxu2 %v12404_v21 }
 0x59f   : > { %7458 = vmatmul.f32.gmra.mxu3 %v12404_v21 }
 0x5a0   : > { %v6770_v60 = vpop.f32.mrf.mxu0  ;;  %v6905_v50 = vpop.f32.mrf.mxu2 }
 0x5a1   : > { %v6850_v46 = vadd.f32 %v6849_v56, %v6770_v60  ;;  %v6853_v0 = vpop.f32.mrf.mxu1 }
 0x5a2   : > { %v6967_v35 = vpop.f32.mrf.mxu3 }
 0x5a3   : > { %v6906_v1 = vadd.f32 %v6905_v50, %v6850_v46  ;;  %7280 = vmatmul.f32.gmra.mxu0 %v12416_v40  ;;  %7348 = vmatmul.f32.gmra.mxu1 %v12463_v6 }
 0x5a5   : > { %v12689_v39 = vadd.f32 %v6967_v35, %v6906_v1  ;;  %7411 = vmatmul.f32.gmra.mxu2 %v12431_v14 }
 0x5a7   : > { %7462 = vmatmul.f32.gmra.mxu3 %v12431_v14 }
 0x5a8   : > { %v6778_v34 = vpop.f32.mrf.mxu0  ;;  %v6910_v13 = vpop.f32.mrf.mxu2 }
 0x5a9   : > { %v6854_v21 = vadd.f32 %v6853_v0, %v6778_v34  ;;  %v6857_v54 = vpop.f32.mrf.mxu1  ;;  %v14068_v34 = vld [vmem:[#allocation46_spill] sm:$0xff] }
 0x5aa   : > { %v6973_v25 = vpop.f32.mrf.mxu3 }
 0x5ab   : > { %v6911_v16 = vadd.f32 %v6910_v13, %v6854_v21  ;;  %7285 = vmatmul.f32.gmra.mxu0 %v12446_v8  ;;  %7354 = vmatmul.f32.gmra.mxu1 %v12493_v61  ;;  %v14064_v8 = vld [vmem:[#allocation14_spill] sm:$0xff]  ;;  %v7500_v13 = vmul.f32 %v14068_v34, %v11251_v59 }
 0x5ac   : > { %v7498_v23 = vmul.f32 %v14064_v8, %v11210_v26 }
 0x5ad   : > { %v12695_v12 = vadd.f32 %v6973_v25, %v6911_v16  ;;  %7415 = vmatmul.f32.gmra.mxu2 %v12465_v22 }
 0x5ae   : > { %v7506_v9 = vsub.f32 %v7498_v23, %v14065_v7  ;;  %v14070_v23 = vld [vmem:[#allocation28_spill] sm:$0xff] }
 0x5af   : > { %7466 = vmatmul.f32.gmra.mxu3 %v12465_v22 }
 0x5b0   : > { %v6786_v40 = vpop.f32.mrf.mxu0  ;;  %v6915_v6 = vpop.f32.mrf.mxu2  ;;  %v7536_v63 = vsel %vm2693_vm14, %v7506_v9, 0 }
 0x5b1   : > { %v6858_v49 = vadd.f32 %v6857_v54, %v6786_v40  ;;  %v6861_v14 = vpop.f32.mrf.mxu1  ;;  %v12727_v38 = vand.u32 4294901760, %v7536_v63 }
 0x5b2   : > { %v6979_v48 = vpop.f32.mrf.mxu3 }
 0x5b3   : > { %v6916_v45 = vadd.f32 %v6915_v6, %v6858_v49  ;;  %7290 = vmatmul.f32.gmra.mxu0 %v12478_v58  ;;  %7360 = vmatmul.f32.gmra.mxu1 %v12527_v17  ;;  %v12712_v58 = vsub.f32 %v7534_v3, %v12706_v51  ;;  %v12733_v1 = vsub.f32 %v7536_v63, %v12727_v38  ;;  %v14071_v3 = vld [vmem:[#allocation12_spill] sm:$0xff] }
 0x5b5   : > { %v12703_v61 = vadd.f32 %v6979_v48, %v6916_v45  ;;  %7419 = vmatmul.f32.gmra.mxu2 %v12498_v15  ;;  %v8034_v31 = vand.u32 4294901760, %v12712_v58 }
 0x5b7   : > { %7470 = vmatmul.f32.gmra.mxu3 %v12498_v15  ;;  %v14066_v15 = vld [vmem:[#allocation17_spill] sm:$0xff]  ;;  %v8035_v43 = vsub.f32 %v12712_v58, %v8034_v31 }
 0x5b8   : > { %v6794_v22 = vpop.f32.mrf.mxu0  ;;  %v6920_v33 = vpop.f32.mrf.mxu2  ;;  %v7499_v55 = vmul.f32 %v14066_v15, %v11229_v29 }
 0x5b9   : > { %v6862_v17 = vadd.f32 %v6861_v14, %v6794_v22  ;;  %v6865_v20 = vpop.f32.mrf.mxu1  ;;  %v8036_v44 = vand.u32 4294901760, %v8035_v43  ;;  %v7501_v22 = vmul.f32 %v14071_v3, %v14070_v23 }
 0x5ba   : > { %v6985_v10 = vpop.f32.mrf.mxu3 }
 0x5bb   : > { %v6921_v32 = vadd.f32 %v6920_v33, %v6862_v17  ;;  %7295 = vmatmul.f32.gmra.mxu0 %v12511_v57  ;;  %7366 = vmatmul.f32.gmra.mxu1 %v12549_v27  ;;  %v14067_v57 = vld [vmem:[#allocation37_spill] sm:$0xff]  ;;  %v14072_v17 = vld [vmem:[#allocation35_spill] sm:$0xff] }
 0x5bc   : > { %v7507_v27 = vsub.f32 %v7499_v55, %v14067_v57  ;;  %8037 = vmatpush.msrb.mxu3 %v8036_v44 }
 0x5bd   : > { %v12723_v56 = vadd.f32 %v6985_v10, %v6921_v32  ;;  %7423 = vmatmul.f32.gmra.mxu2 %v12521_v52 }
 0x5bf   : > { %7474 = vmatmul.f32.gmra.mxu3 %v12521_v52  ;;  %v7539_v52 = vsel %vm2693_vm14, %v7507_v27, 0 }
 0x5c0   : > { %v6802_v5 = vpop.f32.mrf.mxu0  ;;  %v6925_v60 = vpop.f32.mrf.mxu2  ;;  %v12741_v54 = vand.u32 4294901760, %v7539_v52 }
 0x5c1   : > { %v6866_v50 = vadd.f32 %v6865_v20, %v6802_v5  ;;  %v6869_v46 = vpop.f32.mrf.mxu1  ;;  %v7509_v20 = vsub.f32 %v7501_v22, %v14072_v17 }
 0x5c2   : > { %v6991_v0 = vpop.f32.mrf.mxu3  ;;  %v12749_v48 = vsub.f32 %v7539_v52, %v12741_v54 }
 0x5c3   : > { %v6926_v35 = vadd.f32 %v6925_v60, %v6866_v50  ;;  %7300 = vmatmul.f32.gmra.mxu0 %v12534_v53  ;;  %7372 = vmatmul.f32.gmra.mxu1 %v12574_v47  ;;  %v12745_v53 = vand.u32 4294901760, %v12733_v1  ;;  %v14069_v47 = vld [vmem:[#allocation30_spill] sm:$0xff]  ;;  %v7545_v5 = vsel %vm2693_vm14, %v7509_v20, 0  ;;  %v14073_v60 = vld [vmem:[#allocation27_spill] sm:$0xff]  ;;  %v14074_v50 = vld [vmem:[#allocation25_spill] sm:$0xff] }
 0x5c4   : > { %v7508_v25 = vsub.f32 %v7500_v13, %v14069_v47  ;;  %v12763_v7 = vand.u32 4294901760, %v12749_v48  ;;  %v12789_v52 = vand.u32 4294901760, %v7545_v5 }
 0x5c5   : > { %v12738_v21 = vadd.f32 %v6991_v0, %v6926_v35  ;;  %7427 = vmatmul.f32.gmra.mxu2 %v12554_v42  ;;  %v7580_v8 = vsub.f32 %v12733_v1, %v12745_v53  ;;  %v7532_v35 = vld [vmem:[#allocation3 + $0x68] sm:$0xff] }
 0x5c6   : > { %v7588_v43 = vsub.f32 %v12749_v48, %v12763_v7  ;;  %v7951_v34 = vand.u32 4294901760, %v7532_v35 }
 0x5c7   : > { %7478 = vmatmul.f32.gmra.mxu3 %v12554_v42  ;;  %v7542_v42 = vsel %vm2693_vm14, %v7508_v25, 0  ;;  %v12768_v9 = vand.u32 4294901760, %v7580_v8  ;;  %v14077_v25 = vld [vmem:[#allocation42_spill] sm:$0xff] }
 0x5c8   : > { %v6810_v16 = vpop.f32.mrf.mxu0  ;;  %v6930_v40 = vpop.f32.mrf.mxu2  ;;  %v12792_v13 = vand.u32 4294901760, %v7588_v43  ;;  %7952 = vmatpush.msrb.mxu2 %v7951_v34 }
 0x5c9   : > { %v6870_v6 = vadd.f32 %v6869_v46, %v6810_v16  ;;  %v7075_v49 = vpop.f32.mrf.mxu1  ;;  %v14075_v46 = vld [vmem:[#allocation18_spill] sm:$0xff] }
 0x5ca   : > { %v6997_v14 = vpop.f32.mrf.mxu3 }
 0x5cb   : > { %v6931_v45 = vadd.f32 %v6930_v40, %v6870_v6  ;;  %7305 = vmatmul.f32.gmra.mxu0 %v12564_v18  ;;  %7669 = vmatmul.f32.vlgmr.msra.gmra.mxu1 %v12727_v38  ;;  %v12765_v18 = vand.u32 4294901760, %v7542_v42 }
 0x5cc   : > { %8153 = vmatpush.msra.mxu1 %v12706_v51 }
 0x5cd   : > { %v12759_v33 = vadd.f32 %v6997_v14, %v6931_v45  ;;  %7723 = vmatmul.f32.vlgmr.msra.gmra.mxu2 %v12733_v1  ;;  %v12775_v44 = vsub.f32 %v7542_v42, %v12765_v18  ;;  %v12802_v42 = vsub.f32 %v7545_v5, %v12789_v52 }
 0x5ce   : > { %8155 = vmatpush.msra.mxu1 %v7951_v34  ;;  %8222 = vmatpush.msra.mxu2 %v8034_v31  ;;  %v14078_v31 = vld [vmem:[#allocation44_spill] sm:$0xff] }
 0x5cf   : > { %7783 = vmatmul.f32.vlgmr.msra.gmra.mxu3 %v12745_v53  ;;  %v12795_v47 = vand.u32 4294901760, %v12775_v44 }
 0x5d0   : > { %v7024_v10 = vpop.f32.mrf.mxu0  ;;  %v7130_v32 = vpop.f32.mrf.mxu2 }
 0x5d1   : > { %v7025_v15 = vadd.f32 %v7024_v10, %v12676_v62  ;;  %v7079_v55 = vpop.f32.mrf.mxu1  ;;  %v7502_v62 = vmul.f32 %v14074_v50, %v14073_v60  ;;  %v7596_v20 = vsub.f32 %v12775_v44, %v12795_v47  ;;  %v14079_v10 = vld [vmem:[#allocation51_spill] sm:$0xff] }
 0x5d2   : > { %v7217_v63 = vpop.f32.mrf.mxu3 }
 0x5d3   : > { %v7076_v57 = vadd.f32 %v7075_v49, %v7025_v15  ;;  %7582 = vmatmul.f32.vlgmr.msra.gmra.mxu0 %v12768_v9  ;;  %v12778_v27 = vadd.f32 %v7217_v63, %v7130_v32  ;;  %7673 = vmatmul.f32.gmra.mxu1 %v12741_v54  ;;  %v7510_v16 = vsub.f32 %v7502_v62, %v14077_v25  ;;  %v14080_v15 = vld [vmem:[#allocation32_spill] sm:$0xff]  ;;  %v12823_v5 = vand.u32 4294901760, %v7596_v20 }
 0x5d4   : > { %8093 = vmatpush.msra.mxu0 %v12712_v58  ;;  %v8039_v49 = vsub.f32 %v7532_v35, %v7951_v34  ;;  %v7503_v32 = vmul.f32 %v14079_v10, %v14078_v31 }
 0x5d5   : > { %v12786_v0 = vadd.f32 %v7076_v57, %v14075_v46  ;;  %7728 = vmatmul.f32.gmra.mxu2 %v12749_v48  ;;  %v14082_v46 = vld [vmem:[#allocation50_spill] sm:$0xff] }
 0x5d6   : > { %v8040_v3 = vand.u32 4294901760, %v8039_v49  ;;  %8096 = vmatpush.msra.mxu0 %v8039_v49  ;;  %v7511_v35 = vsub.f32 %v7503_v32, %v14082_v46  ;;  %v14087_v32 = vld [vmem:[#allocation31_spill] sm:$0xff] }
 0x5d7   : > { %14076 = vst [vmem:[#allocation47_spill] sm:$0xff] %v12786_v0  ;;  %7789 = vmatmul.f32.gmra.mxu3 %v12763_v7 }
 0x5d8   : > { %v7028_v40 = vpop.f32.mrf.mxu0  ;;  %v7138_v6 = vpop.f32.mrf.mxu2  ;;  %v8041_v58 = vsub.f32 %v8039_v49, %v8040_v3  ;;  %8226 = vmatpush.msra.mxu2 %v8040_v3  ;;  %v14083_v3 = vld [vmem:[#allocation43_spill] sm:$0xff]  ;;  %v7551_v20 = vsel %vm2693_vm14, %v7511_v35, 0 }
 0x5d9   : > { %v7029_v14 = vadd.f32 %v7028_v40, %v12682_v37  ;;  %v7083_v45 = vpop.f32.mrf.mxu1  ;;  %v7548_v37 = vsel %vm2693_vm14, %v7510_v16, 0  ;;  %v12850_v10 = vand.u32 4294901760, %v7551_v20 }
 0x5da   : > { %v7221_v8 = vpop.f32.mrf.mxu3  ;;  %v12820_v43 = vand.u32 4294901760, %v7548_v37  ;;  %v8042_v57 = vand.u32 4294901760, %v8041_v58 }
 0x5db   : > { %v7080_v22 = vadd.f32 %v7079_v55, %v7029_v14  ;;  %7590 = vmatmul.f32.gmra.mxu0 %v12792_v13  ;;  %v12805_v17 = vadd.f32 %v7221_v8, %v7138_v6  ;;  %7677 = vmatmul.f32.gmra.mxu1 %v12765_v18  ;;  %v12818_v55 = vand.u32 4294901760, %v12802_v42 }
 0x5dc   : > { %8043 = vmatpush.msrb.mxu3 %v8042_v57  ;;  %v12831_v49 = vsub.f32 %v7548_v37, %v12820_v43 }
 0x5dd   : > { %v12814_v63 = vadd.f32 %v7080_v22, %v14080_v15  ;;  %7733 = vmatmul.f32.gmra.mxu2 %v12775_v44  ;;  %v7604_v6 = vsub.f32 %v12802_v42, %v12818_v55  ;;  %v14084_v22 = vld [vmem:[#allocation59_spill] sm:$0xff] }
 0x5de   : > { %8275 = vmatpush.msra.mxu3 %v12706_v51  ;;  %v14085_v51 = vld [vmem:[#allocation36_spill] sm:$0xff]  ;;  %v12845_v37 = vand.u32 4294901760, %v12831_v49 }
 0x5df   : > { %14081 = vst [vmem:[#allocation53_spill] sm:$0xff] %v12814_v63  ;;  %7795 = vmatmul.f32.gmra.mxu3 %v12795_v47  ;;  %v14095_v63 = vld [vmem:[#allocation15_spill] sm:$0xff] }
 0x5e0   : > { %v7032_v50 = vpop.f32.mrf.mxu0  ;;  %v7146_v62 = vpop.f32.mrf.mxu2  ;;  %8277 = vmatpush.msra.mxu3 %v7951_v34  ;;  %v7612_v35 = vsub.f32 %v12831_v49, %v12845_v37 }
 0x5e1   : > { %v7033_v25 = vadd.f32 %v7032_v50, %v12689_v39  ;;  %v7087_v16 = vpop.f32.mrf.mxu1  ;;  %v7504_v39 = vmul.f32 %v14084_v22, %v14083_v3  ;;  %v14088_v22 = vld [vmem:[#allocation20_spill] sm:$0xff] }
 0x5e2   : > { %v7225_v40 = vpop.f32.mrf.mxu3 }
 0x5e3   : > { %v7084_v14 = vadd.f32 %v7083_v45, %v7033_v25  ;;  %7598 = vmatmul.f32.gmra.mxu0 %v12823_v5  ;;  %v12834_v8 = vadd.f32 %v7225_v40, %v7146_v62  ;;  %7681 = vmatmul.f32.gmra.mxu1 %v12789_v52  ;;  %v12848_v45 = vand.u32 4294901760, %v7604_v6  ;;  %v7512_v15 = vsub.f32 %v7504_v39, %v14087_v32  ;;  %v14089_v39 = vld [vmem:[#allocation54_spill] sm:$0xff] }
 0x5e4   : > { %v12861_v6 = vsub.f32 %v7551_v20, %v12850_v10 }
 0x5e5   : > { %v12841_v58 = vadd.f32 %v7084_v14, %v14085_v51  ;;  %7738 = vmatmul.f32.gmra.mxu2 %v12802_v42  ;;  %v7554_v14 = vsel %vm2693_vm14, %v7512_v15, 0  ;;  %v14090_v51 = vld [vmem:[#allocation38_spill] sm:$0xff]  ;;  %v14092_v15 = vld [vmem:[#allocation45_spill] sm:$0xff] }
 0x5e7   : > { %14086 = vst [vmem:[#allocation52_spill] sm:$0xff] %v12841_v58  ;;  %7801 = vmatmul.f32.gmra.mxu3 %v12818_v55 }
 0x5e8   : > { %v7036_v57 = vpop.f32.mrf.mxu0  ;;  %v7154_v50 = vpop.f32.mrf.mxu2 }
 0x5e9   : > { %v7037_v34 = vadd.f32 %v7036_v57, %v12695_v12  ;;  %v7091_v62 = vpop.f32.mrf.mxu1  ;;  %v7505_v12 = vmul.f32 %v14089_v39, %v14088_v22  ;;  %v12873_v57 = vand.u32 4294901760, %v7612_v35 }
 0x5ea   : > { %v7229_v46 = vpop.f32.mrf.mxu3 }
 0x5eb   : > { %v7088_v25 = vadd.f32 %v7087_v16, %v7037_v34  ;;  %7606 = vmatmul.f32.gmra.mxu0 %v12848_v45  ;;  %v12857_v40 = vadd.f32 %v7229_v46, %v7154_v50  ;;  %7685 = vmatmul.f32.gmra.mxu1 %v12820_v43  ;;  %v12870_v16 = vand.u32 4294901760, %v7554_v14  ;;  %v12876_v50 = vand.u32 4294901760, %v12861_v6 }
 0x5ec   : > { %v7513_v46 = vsub.f32 %v7505_v12, %v14092_v15  ;;  %v14093_v12 = vld [vmem:[#allocation39_spill] sm:$0xff] }
 0x5ed   : > { %v12867_v32 = vadd.f32 %v7088_v25, %v14090_v51  ;;  %7743 = vmatmul.f32.gmra.mxu2 %v12831_v49  ;;  %v12881_v51 = vsub.f32 %v7554_v14, %v12870_v16  ;;  %v7620_v35 = vsub.f32 %v12861_v6, %v12876_v50 }
 0x5ee   : > { %v7557_v3 = vsel %vm2693_vm14, %v7513_v46, 0 }
 0x5ef   : > { %14091 = vst [vmem:[#allocation14_spill] sm:$0xff] %v12867_v32  ;;  %7807 = vmatmul.f32.gmra.mxu3 %v12845_v37  ;;  %v12900_v14 = vand.u32 4294901760, %v7557_v3 }
 0x5f0   : > { %v7040_v20 = vpop.f32.mrf.mxu0  ;;  %v7162_v34 = vpop.f32.mrf.mxu2 }
 0x5f1   : > { %v7041_v39 = vadd.f32 %v7040_v20, %v12703_v61  ;;  %v7095_v22 = vpop.f32.mrf.mxu1  ;;  %v12895_v61 = vand.u32 4294901760, %v12881_v51 }
 0x5f2   : > { %v7233_v25 = vpop.f32.mrf.mxu3 }
 0x5f3   : > { %v7092_v32 = vadd.f32 %v7091_v62, %v7041_v39  ;;  %7614 = vmatmul.f32.gmra.mxu0 %v12873_v57  ;;  %v12884_v58 = vadd.f32 %v7233_v25, %v7162_v34  ;;  %7689 = vmatmul.f32.gmra.mxu1 %v12850_v10  ;;  %v12898_v62 = vand.u32 4294901760, %v7620_v35  ;;  %v12910_v35 = vsub.f32 %v7557_v3, %v12900_v14 }
 0x5f5   : > { %v12891_v15 = vadd.f32 %v7092_v32, %v14093_v12  ;;  %7748 = vmatmul.f32.gmra.mxu2 %v12861_v6  ;;  %v7628_v32 = vsub.f32 %v12881_v51, %v12895_v61 }
 0x5f7   : > { %14094 = vst [vmem:[#allocation41_spill] sm:$0xff] %v12891_v15  ;;  %7813 = vmatmul.f32.gmra.mxu3 %v12876_v50 }
 0x5f8   : > { %v7044_v20 = vpop.f32.mrf.mxu0  ;;  %v7170_v34 = vpop.f32.mrf.mxu2 }
 0x5f9   : > { %v7045_v39 = vadd.f32 %v7044_v20, %v12723_v56  ;;  %v7099_v25 = vpop.f32.mrf.mxu1  ;;  %v12917_v56 = vand.u32 4294901760, %v7628_v32  ;;  %v14097_v32 = vld [vmem:[#allocation40_spill] sm:$0xff] }
 0x5fa   : > { %v7237_v46 = vpop.f32.mrf.mxu3 }
 0x5fb   : > { %v7096_v12 = vadd.f32 %v7095_v22, %v7045_v39  ;;  %7622 = vmatmul.f32.gmra.mxu0 %v12898_v62  ;;  %v12906_v15 = vadd.f32 %v7237_v46, %v7170_v34  ;;  %7693 = vmatmul.f32.gmra.mxu1 %v12870_v16  ;;  %v12920_v22 = vand.u32 4294901760, %v12910_v35 }
 0x5fd   : > { %v12913_v31 = vadd.f32 %v7096_v12, %v14095_v63  ;;  %7753 = vmatmul.f32.gmra.mxu2 %v12881_v51  ;;  %v7636_v12 = vsub.f32 %v12910_v35, %v12920_v22 }
 0x5ff   : > { %14096 = vst [vmem:[#allocation17_spill] sm:$0xff] %v12913_v31  ;;  %7819 = vmatmul.f32.gmra.mxu3 %v12895_v61 }
 0x600   : > { %v7048_v20 = vpop.f32.mrf.mxu0  ;;  %v7178_v34 = vpop.f32.mrf.mxu2 }
 0x601   : > { %v7049_v39 = vadd.f32 %v7048_v20, %v12738_v21  ;;  %v7103_v46 = vpop.f32.mrf.mxu1  ;;  %v12934_v21 = vand.u32 4294901760, %v7636_v12 }
 0x602   : > { %v7241_v0 = vpop.f32.mrf.mxu3 }
 0x603   : > { %v7100_v3 = vadd.f32 %v7099_v25, %v7049_v39  ;;  %7630 = vmatmul.f32.gmra.mxu0 %v12917_v56  ;;  %v12924_v63 = vadd.f32 %v7241_v0, %v7178_v34  ;;  %7697 = vmatmul.f32.gmra.mxu1 %v12900_v14 }
 0x605   : > { %v12930_v31 = vadd.f32 %v7100_v3, %v14097_v32  ;;  %7758 = vmatmul.f32.gmra.mxu2 %v12910_v35 }
 0x607   : > { %14098 = vst [vmem:[#allocation37_spill] sm:$0xff] %v12930_v31  ;;  %7825 = vmatmul.f32.gmra.mxu3 %v12920_v22 }
 0x608   : > { %v7052_v20 = vpop.f32.mrf.mxu0  ;;  %v7186_v25 = vpop.f32.mrf.mxu2 }
 0x609   : > { %v7053_v39 = vadd.f32 %v7052_v20, %v12759_v33  ;;  %v7331_v0 = vpop.f32.mrf.mxu1 }
 0x60a   : > { %v7245_v34 = vpop.f32.mrf.mxu3 }
 0x60b   : > { %v7104_v60 = vadd.f32 %v7103_v46, %v7053_v39  ;;  %7638 = vmatmul.f32.gmra.mxu0 %v12934_v21  ;;  %v12938_v23 = vadd.f32 %v7245_v34, %v7186_v25  ;;  %7903 = vmatmul.f32.vlgmr.msrb.gmra.mxu1 %v12727_v38 }
 0x60d   : > { %v12942_v3 = vadd.f32 %v7104_v60, %v12596_v19  ;;  %7958 = vmatmul.f32.vlgmr.msrb.gmra.mxu2 %v12768_v9 }
 0x60f   : > { %8045 = vmatmul.f32.vlgmr.msrb.gmra.mxu3 %v12727_v38 }
 0x610   : > { %v7271_v12 = vpop.f32.mrf.mxu0  ;;  %v7400_v32 = vpop.f32.mrf.mxu2 }
 0x611   : > { %v7272_v33 = vadd.f32 %v7271_v12, %v12778_v27  ;;  %v7337_v20 = vpop.f32.mrf.mxu1 }
 0x612   : > { %v7451_v31 = vpop.f32.mrf.mxu3 }
 0x613   : > { %v7332_v46 = vadd.f32 %v7331_v0, %v7272_v33  ;;  %7852 = vmatmul.f32.vlgmr.msrb.gmra.mxu0 %v12727_v38  ;;  %7907 = vmatmul.f32.gmra.mxu1 %v12741_v54 }
 0x615   : > { %v7401_v25 = vadd.f32 %v7400_v32, %v7332_v46  ;;  %7966 = vmatmul.f32.gmra.mxu2 %v12792_v13 }
 0x617   : > { %v7452_v19 = vadd.f32 %v7451_v31, %v7401_v25  ;;  %8049 = vmatmul.f32.gmra.mxu3 %v12741_v54 }
 0x618   : > { %v7276_v9 = vpop.f32.mrf.mxu0  ;;  %v7404_v60 = vpop.f32.mrf.mxu2 }
 0x619   : > { %v12952_v39 = vadd.f32 %v7452_v19, %v12606_v28  ;;  %v7277_v27 = vadd.f32 %v7276_v9, %v12805_v17  ;;  %v7343_v34 = vpop.f32.mrf.mxu1 }
 0x61a   : > { %v7455_v12 = vpop.f32.mrf.mxu3 }
 0x61b   : > { %v7338_v0 = vadd.f32 %v7337_v20, %v7277_v27  ;;  %7856 = vmatmul.f32.gmra.mxu0 %v12741_v54  ;;  %7911 = vmatmul.f32.gmra.mxu1 %v12765_v18 }
 0x61d   : > { %v7405_v32 = vadd.f32 %v7404_v60, %v7338_v0  ;;  %7974 = vmatmul.f32.gmra.mxu2 %v12823_v5 }
 0x61f   : > { %v7456_v13 = vadd.f32 %v7455_v12, %v7405_v32  ;;  %8053 = vmatmul.f32.gmra.mxu3 %v12765_v18 }
 0x620   : > { %v7281_v31 = vpop.f32.mrf.mxu0  ;;  %v7408_v33 = vpop.f32.mrf.mxu2 }
 0x621   : > { %v12960_v28 = vadd.f32 %v7456_v13, %v12614_v24  ;;  %v7282_v17 = vadd.f32 %v7281_v31, %v12834_v8  ;;  %v7349_v46 = vpop.f32.mrf.mxu1 }
 0x622   : > { %v7459_v25 = vpop.f32.mrf.mxu3 }
 0x623   : > { %v7344_v20 = vadd.f32 %v7343_v34, %v7282_v17  ;;  %7860 = vmatmul.f32.gmra.mxu0 %v12765_v18  ;;  %7915 = vmatmul.f32.gmra.mxu1 %v12789_v52 }
 0x625   : > { %v7409_v19 = vadd.f32 %v7408_v33, %v7344_v20  ;;  %7982 = vmatmul.f32.gmra.mxu2 %v12848_v45  ;;  %v8330_v33 = vld [vmem:[#allocation3 + $0xf0] sm:$0xff] }
 0x627   : > { %v7460_v5 = vadd.f32 %v7459_v25, %v7409_v19  ;;  %8057 = vmatmul.f32.gmra.mxu3 %v12789_v52 }
 0x628   : > { %v7286_v9 = vpop.f32.mrf.mxu0  ;;  %v7412_v60 = vpop.f32.mrf.mxu2 }
 0x629   : > { %v12968_v24 = vadd.f32 %v7460_v5, %v12622_v30  ;;  %v7287_v8 = vadd.f32 %v7286_v9, %v12857_v40  ;;  %v7355_v27 = vpop.f32.mrf.mxu1 }
 0x62a   : > { %v7463_v12 = vpop.f32.mrf.mxu3 }
 0x62b   : > { %v7350_v34 = vadd.f32 %v7349_v46, %v7287_v8  ;;  %7864 = vmatmul.f32.gmra.mxu0 %v12789_v52  ;;  %7919 = vmatmul.f32.gmra.mxu1 %v12820_v43  ;;  %v12979_v46 = vand.u32 4294901760, %v8330_v33 }
 0x62d   : > { %v7413_v0 = vadd.f32 %v7412_v60, %v7350_v34  ;;  %7990 = vmatmul.f32.gmra.mxu2 %v12873_v57  ;;  %v12984_v57 = vsub.f32 %v8330_v33, %v12979_v46  ;;  %8371 = vmatpush.msrb.mxu0 %v12979_v46 }
 0x62e   : > { %8574 = vmatpush.msrb.mxu3 %v12979_v46 }
 0x62f   : > { %v7464_v45 = vadd.f32 %v7463_v12, %v7413_v0  ;;  %8061 = vmatmul.f32.gmra.mxu3 %v12820_v43  ;;  %8514 = vmatpush.msrb.mxu2 %v12984_v57 }
 0x630   : > { %v7291_v32 = vpop.f32.mrf.mxu0  ;;  %v7416_v13 = vpop.f32.mrf.mxu2 }
 0x631   : > { %v12976_v30 = vadd.f32 %v7464_v45, %v12630_v4  ;;  %v7292_v40 = vadd.f32 %v7291_v32, %v12884_v58  ;;  %v7361_v31 = vpop.f32.mrf.mxu1  ;;  %v8455_v58 = vand.u32 4294901760, %v12984_v57 }
 0x632   : > { %v7467_v17 = vpop.f32.mrf.mxu3 }
 0x633   : > { %v7356_v25 = vadd.f32 %v7355_v27, %v7292_v40  ;;  %7868 = vmatmul.f32.gmra.mxu0 %v12820_v43  ;;  %7923 = vmatmul.f32.gmra.mxu1 %v12850_v10  ;;  %v8456_v9 = vsub.f32 %v12984_v57, %v8455_v58 }
 0x635   : > { %v7417_v4 = vadd.f32 %v7416_v13, %v7356_v25  ;;  %7998 = vmatmul.f32.gmra.mxu2 %v12898_v62  ;;  %v8457_v34 = vand.u32 4294901760, %v8456_v9 }
 0x637   : > { %v7468_v20 = vadd.f32 %v7467_v17, %v7417_v4  ;;  %8065 = vmatmul.f32.gmra.mxu3 %v12850_v10  ;;  %8458 = vmatpush.msrb.mxu1 %v8457_v34 }
 0x638   : > { %v7296_v19 = vpop.f32.mrf.mxu0  ;;  %v7420_v5 = vpop.f32.mrf.mxu2 }
 0x639   : > { %v12994_v60 = vadd.f32 %v7468_v20, %v12648_v2  ;;  %v7297_v8 = vadd.f32 %v7296_v19, %v12906_v15  ;;  %v7367_v27 = vpop.f32.mrf.mxu1 }
 0x63a   : > { %v7471_v12 = vpop.f32.mrf.mxu3 }
 0x63b   : > { %v7362_v62 = vadd.f32 %v7361_v31, %v7297_v8  ;;  %7872 = vmatmul.f32.gmra.mxu0 %v12850_v10  ;;  %7927 = vmatmul.f32.gmra.mxu1 %v12870_v16 }
 0x63d   : > { %v7421_v0 = vadd.f32 %v7420_v5, %v7362_v62  ;;  %8006 = vmatmul.f32.gmra.mxu2 %v12917_v56 }
 0x63f   : > { %v7472_v45 = vadd.f32 %v7471_v12, %v7421_v0  ;;  %8069 = vmatmul.f32.gmra.mxu3 %v12870_v16  ;;  %v8328_v12 = vld [vmem:[#allocation3 + $0xe0] sm:$0xff] }
 0x640   : > { %v7301_v32 = vpop.f32.mrf.mxu0  ;;  %v7424_v2 = vpop.f32.mrf.mxu2  ;;  %v8372_v62 = vand.u32 4294901760, %v8328_v12 }
 0x641   : > { %v13002_v13 = vadd.f32 %v7472_v45, %v12656_v36  ;;  %v7302_v15 = vadd.f32 %v7301_v32, %v12924_v63  ;;  %v7373_v40 = vpop.f32.mrf.mxu1 }
 0x642   : > { %v7475_v31 = vpop.f32.mrf.mxu3  ;;  %8373 = vmatpush.msrb.mxu0 %v8372_v62  ;;  %8576 = vmatpush.msrb.mxu3 %v8372_v62 }
 0x643   : > { %v7368_v33 = vadd.f32 %v7367_v27, %v7302_v15  ;;  %7876 = vmatmul.f32.gmra.mxu0 %v12870_v16  ;;  %7931 = vmatmul.f32.gmra.mxu1 %v12900_v14 }
 0x645   : > { %v7425_v17 = vadd.f32 %v7424_v2, %v7368_v33  ;;  %8014 = vmatmul.f32.gmra.mxu2 %v12934_v21 }
 0x647   : > { %v7476_v56 = vadd.f32 %v7475_v31, %v7425_v17  ;;  %8073 = vmatmul.f32.gmra.mxu3 %v12900_v14 }
 0x648   : > { %v7306_v25 = vpop.f32.mrf.mxu0  ;;  %v7428_v57 = vpop.f32.mrf.mxu2 }
 0x649   : > { %v13010_v36 = vadd.f32 %v7476_v56, %v12664_v11  ;;  %v7307_v63 = vadd.f32 %v7306_v25, %v12938_v23  ;;  %v7670_v4 = vpop.f32.mrf.mxu1 }
 0x64a   : > { %v7479_v20 = vpop.f32.mrf.mxu3 }
 0x64b   : > { %v7374_v19 = vadd.f32 %v7373_v40, %v7307_v63  ;;  %7880 = vmatmul.f32.gmra.mxu0 %v12900_v14  ;;  %8159 = vmatmul.f32.vlgmr.msra.gmra.mxu1 %v12745_v53  ;;  %v8460_v53 = vsub.f32 %v8328_v12, %v8372_v62 }
 0x64d   : > { %v7429_v5 = vadd.f32 %v7428_v57, %v7374_v19  ;;  %8228 = vmatmul.f32.vlgmr.msra.gmra.mxu2 %v12727_v38 }
 0x64e   : > { %8517 = vmatpush.msrb.mxu2 %v8460_v53 }
 0x64f   : > { %v7480_v21 = vadd.f32 %v7479_v20, %v7429_v5  ;;  %8279 = vmatmul.f32.vlgmr.msra.gmra.mxu3 %v12727_v38 }
 0x650   : > { %v7583_v9 = vpop.f32.mrf.mxu0  ;;  %v7724_v8 = vpop.f32.mrf.mxu2 }
 0x651   : > { %v13018_v11 = vadd.f32 %v7480_v21, %v12672_v41  ;;  %v7671_v27 = vadd.f32 %v7670_v4, %v7583_v9  ;;  %v7674_v23 = vpop.f32.mrf.mxu1  ;;  %v8461_v41 = vand.u32 4294901760, %v8460_v53 }
 0x652   : > { %v7784_v34 = vpop.f32.mrf.mxu3 }
 0x653   : > { %v7725_v0 = vadd.f32 %v7724_v8, %v7671_v27  ;;  %8099 = vmatmul.f32.vlgmr.msra.gmra.mxu0 %v12733_v1  ;;  %8165 = vmatmul.f32.gmra.mxu1 %v12763_v7  ;;  %v8462_v2 = vsub.f32 %v8460_v53, %v8461_v41  ;;  %v8331_v27 = vld [vmem:[#allocation3 + $0xf8] sm:$0xff] }
 0x654   : > { %8643 = vmatpush.msra.mxu0 %v8455_v58 }
 0x655   : > { %v13022_v45 = vadd.f32 %v7784_v34, %v7725_v0  ;;  %8232 = vmatmul.f32.gmra.mxu2 %v12741_v54  ;;  %v8463_v7 = vand.u32 4294901760, %v8462_v2  ;;  %v14100_v34 = vld [vmem:[#allocation55_spill] sm:$0xff] }
 0x656   : > { %8647 = vmatpush.msra.mxu0 %v8461_v41 }
 0x657   : > { %8283 = vmatmul.f32.gmra.mxu3 %v12741_v54  ;;  %8464 = vmatpush.msrb.mxu1 %v8463_v7 }
 0x658   : > { %v7591_v38 = vpop.f32.mrf.mxu0  ;;  %v7729_v32 = vpop.f32.mrf.mxu2 }
 0x659   : > { %v7675_v15 = vadd.f32 %v7674_v23, %v7591_v38  ;;  %v7678_v1 = vpop.f32.mrf.mxu1  ;;  %8696 = vmatpush.msra.mxu1 %v12979_v46  ;;  %v13052_v23 = vand.u32 4294901760, %v8331_v27 }
 0x65a   : > { %v7790_v40 = vpop.f32.mrf.mxu3 }
 0x65b   : > { %v7730_v31 = vadd.f32 %v7729_v32, %v7675_v15  ;;  %8104 = vmatmul.f32.gmra.mxu0 %v12749_v48  ;;  %8171 = vmatmul.f32.gmra.mxu1 %v12795_v47 }
 0x65c   : > { %8698 = vmatpush.msra.mxu1 %v8372_v62  ;;  %8747 = vmatpush.msra.mxu2 %v13052_v23 }
 0x65d   : > { %v13028_v33 = vadd.f32 %v7790_v40, %v7730_v31  ;;  %8236 = vmatmul.f32.gmra.mxu2 %v12765_v18 }
 0x65f   : > { %8287 = vmatmul.f32.gmra.mxu3 %v12765_v18 }
 0x660   : > { %v7599_v54 = vpop.f32.mrf.mxu0  ;;  %v7734_v58 = vpop.f32.mrf.mxu2 }
 0x661   : > { %v7679_v17 = vadd.f32 %v7678_v1, %v7599_v54  ;;  %v7682_v56 = vpop.f32.mrf.mxu1 }
 0x662   : > { %v7796_v25 = vpop.f32.mrf.mxu3 }
 0x663   : > { %v7735_v57 = vadd.f32 %v7734_v58, %v7679_v17  ;;  %8109 = vmatmul.f32.gmra.mxu0 %v12775_v44  ;;  %8177 = vmatmul.f32.gmra.mxu1 %v12818_v55 }
 0x665   : > { %v13035_v48 = vadd.f32 %v7796_v25, %v7735_v57  ;;  %8240 = vmatmul.f32.gmra.mxu2 %v12789_v52  ;;  %v14103_v25 = vld [vmem:[#allocation24_spill] sm:$0xff] }
 0x666   : > { %v7516_v57 = vmul.f32 %v14103_v25, %v11251_v59  ;;  %v14111_v25 = vld [vmem:[#allocation21_spill] sm:$0xff] }
 0x667   : > { %8291 = vmatmul.f32.gmra.mxu3 %v12789_v52 }
 0x668   : > { %v7607_v47 = vpop.f32.mrf.mxu0  ;;  %v7739_v46 = vpop.f32.mrf.mxu2 }
 0x669   : > { %v7683_v18 = vadd.f32 %v7682_v56, %v7607_v47  ;;  %v7686_v63 = vpop.f32.mrf.mxu1 }
 0x66a   : > { %v7802_v4 = vpop.f32.mrf.mxu3 }
 0x66b   : > { %v7740_v20 = vadd.f32 %v7739_v46, %v7683_v18  ;;  %8114 = vmatmul.f32.gmra.mxu0 %v12802_v42  ;;  %8183 = vmatmul.f32.gmra.mxu1 %v12845_v37  ;;  %v14099_v42 = vld [vmem:[#allocation60_spill] sm:$0xff] }
 0x66c   : > { %v7514_v8 = vmul.f32 %v14099_v42, %v11210_v26 }
 0x66d   : > { %v13041_v19 = vadd.f32 %v7802_v4, %v7740_v20  ;;  %8244 = vmatmul.f32.gmra.mxu2 %v12820_v43 }
 0x66e   : > { %v7522_v62 = vsub.f32 %v7514_v8, %v14100_v34 }
 0x66f   : > { %8295 = vmatmul.f32.gmra.mxu3 %v12820_v43 }
 0x670   : > { %v7615_v44 = vpop.f32.mrf.mxu0  ;;  %v7744_v55 = vpop.f32.mrf.mxu2  ;;  %v8333_v32 = vsel %vm2693_vm14, %v7522_v62, 0 }
 0x671   : > { %v7687_v5 = vadd.f32 %v7686_v63, %v7615_v44  ;;  %v7690_v52 = vpop.f32.mrf.mxu1  ;;  %v13073_v40 = vand.u32 4294901760, %v8333_v32 }
 0x672   : > { %v7808_v21 = vpop.f32.mrf.mxu3 }
 0x673   : > { %v7745_v9 = vadd.f32 %v7744_v55, %v7687_v5  ;;  %8119 = vmatmul.f32.gmra.mxu0 %v12831_v49  ;;  %8189 = vmatmul.f32.gmra.mxu1 %v12876_v50  ;;  %v13058_v49 = vsub.f32 %v8331_v27, %v13052_v23  ;;  %v13079_v56 = vsub.f32 %v8333_v32, %v13073_v40 }
 0x675   : > { %v13049_v37 = vadd.f32 %v7808_v21, %v7745_v9  ;;  %8248 = vmatmul.f32.gmra.mxu2 %v12850_v10  ;;  %v8831_v53 = vand.u32 4294901760, %v13058_v49  ;;  %v14105_v21 = vld [vmem:[#allocation28_spill] sm:$0xff]  ;;  %v14106_v9 = vld [vmem:[#allocation13_spill] sm:$0xff] }
 0x676   : > { %v7517_v42 = vmul.f32 %v14106_v9, %v14105_v21  ;;  %v14113_v9 = vld [vmem:[#allocation9_spill] sm:$0xff] }
 0x677   : > { %8299 = vmatmul.f32.gmra.mxu3 %v12850_v10  ;;  %v14101_v10 = vld [vmem:[#allocation57_spill] sm:$0xff]  ;;  %v8832_v2 = vsub.f32 %v13058_v49, %v8831_v53 }
 0x678   : > { %v7623_v43 = vpop.f32.mrf.mxu0  ;;  %v7749_v12 = vpop.f32.mrf.mxu2  ;;  %v7515_v38 = vmul.f32 %v14101_v10, %v11229_v29 }
 0x679   : > { %v7691_v50 = vadd.f32 %v7690_v52, %v7623_v43  ;;  %v7694_v26 = vpop.f32.mrf.mxu1  ;;  %v8833_v1 = vand.u32 4294901760, %v8832_v2 }
 0x67a   : > { %v7814_v0 = vpop.f32.mrf.mxu3 }
 0x67b   : > { %v7750_v41 = vadd.f32 %v7749_v12, %v7691_v50  ;;  %8124 = vmatmul.f32.gmra.mxu0 %v12861_v6  ;;  %8195 = vmatmul.f32.gmra.mxu1 %v12895_v61  ;;  %v14102_v6 = vld [vmem:[#allocation34_spill] sm:$0xff]  ;;  %v14107_v12 = vld [vmem:[#allocation16_spill] sm:$0xff] }
 0x67c   : > { %v7523_v61 = vsub.f32 %v7515_v38, %v14102_v6  ;;  %8834 = vmatpush.msra.mxu3 %v8833_v1  ;;  %v7525_v34 = vsub.f32 %v7517_v42, %v14107_v12  ;;  %v14108_v6 = vld [vmem:[#allocation27_spill] sm:$0xff]  ;;  %v14114_v12 = vld [vmem:[#allocation53_spill] sm:$0xff] }
 0x67d   : > { %v13069_v15 = vadd.f32 %v7814_v0, %v7750_v41  ;;  %8252 = vmatmul.f32.gmra.mxu2 %v12870_v16 }
 0x67e   : > { %v8342_v1 = vsel %vm2693_vm14, %v7525_v34, 0 }
 0x67f   : > { %8303 = vmatmul.f32.gmra.mxu3 %v12870_v16  ;;  %v8336_v16 = vsel %vm2693_vm14, %v7523_v61, 0  ;;  %v14109_v61 = vld [vmem:[#allocation26_spill] sm:$0xff] }
 0x680   : > { %v7631_v7 = vpop.f32.mrf.mxu0  ;;  %v7754_v31 = vpop.f32.mrf.mxu2  ;;  %v13087_v46 = vand.u32 4294901760, %v8336_v16 }
 0x681   : > { %v7695_v29 = vadd.f32 %v7694_v26, %v7631_v7  ;;  %v7698_v54 = vpop.f32.mrf.mxu1  ;;  %v14110_v7 = vld [vmem:[#allocation47_spill] sm:$0xff] }
 0x682   : > { %v7820_v58 = vpop.f32.mrf.mxu3  ;;  %v13095_v59 = vsub.f32 %v8336_v16, %v13087_v46 }
 0x683   : > { %v7755_v17 = vadd.f32 %v7754_v31, %v7695_v29  ;;  %8129 = vmatmul.f32.gmra.mxu0 %v12881_v51  ;;  %8201 = vmatmul.f32.gmra.mxu1 %v12920_v22  ;;  %v13091_v51 = vand.u32 4294901760, %v13079_v56  ;;  %v14104_v22 = vld [vmem:[#allocation49_spill] sm:$0xff]  ;;  %v8329_v29 = vld [vmem:[#allocation3 + $0xe8] sm:$0xff] }
 0x684   : > { %v7524_v18 = vsub.f32 %v7516_v57, %v14104_v22  ;;  %v13109_v27 = vand.u32 4294901760, %v13095_v59 }
 0x685   : > { %v13084_v47 = vadd.f32 %v7820_v58, %v7755_v17  ;;  %8256 = vmatmul.f32.gmra.mxu2 %v12900_v14  ;;  %v8377_v52 = vsub.f32 %v13079_v56, %v13091_v51  ;;  %v8748_v58 = vand.u32 4294901760, %v8329_v29 }
 0x686   : > { %v8385_v10 = vsub.f32 %v13095_v59, %v13109_v27 }
 0x687   : > { %8307 = vmatmul.f32.gmra.mxu3 %v12900_v14  ;;  %v8339_v14 = vsel %vm2693_vm14, %v7524_v18, 0  ;;  %v13114_v43 = vand.u32 4294901760, %v8377_v52  ;;  %8749 = vmatpush.msra.mxu2 %v8748_v58 }
 0x688   : > { %v7639_v63 = vpop.f32.mrf.mxu0  ;;  %v7759_v4 = vpop.f32.mrf.mxu2  ;;  %v13138_v17 = vand.u32 4294901760, %v8385_v10 }
 0x689   : > { %v7699_v20 = vadd.f32 %v7698_v54, %v7639_v63  ;;  %v7904_v44 = vpop.f32.mrf.mxu1  ;;  %v13135_v54 = vand.u32 4294901760, %v8342_v1  ;;  %v8836_v63 = vsub.f32 %v8329_v29, %v8748_v58 }
 0x68a   : > { %v7826_v55 = vpop.f32.mrf.mxu3 }
 0x68b   : > { %v7760_v5 = vadd.f32 %v7759_v4, %v7699_v20  ;;  %8134 = vmatmul.f32.gmra.mxu0 %v12910_v35  ;;  %8466 = vmatmul.f32.vlgmr.msrb.gmra.mxu1 %v13073_v40  ;;  %v13111_v35 = vand.u32 4294901760, %v8339_v14 }
 0x68c   : > { %8950 = vmatpush.msrb.mxu1 %v13052_v23 }
 0x68d   : > { %v13105_v8 = vadd.f32 %v7826_v55, %v7760_v5  ;;  %8520 = vmatmul.f32.vlgmr.msrb.gmra.mxu2 %v13079_v56  ;;  %v13121_v38 = vsub.f32 %v8339_v14, %v13111_v35  ;;  %v13148_v55 = vsub.f32 %v8342_v1, %v13135_v54  ;;  %v8837_v5 = vand.u32 4294901760, %v8836_v63 }
 0x68e   : > { %8952 = vmatpush.msrb.mxu1 %v8748_v58  ;;  %9019 = vmatpush.msrb.mxu2 %v8831_v53  ;;  %v14112_v53 = vld [vmem:[#allocation44_spill] sm:$0xff] }
 0x68f   : > { %8580 = vmatmul.f32.vlgmr.msrb.gmra.mxu3 %v13091_v51  ;;  %v13141_v16 = vand.u32 4294901760, %v13121_v38  ;;  %v7519_v42 = vmul.f32 %v14113_v9, %v14112_v53 }
 0x690   : > { %v7853_v62 = vpop.f32.mrf.mxu0  ;;  %v7959_v50 = vpop.f32.mrf.mxu2  ;;  %9023 = vmatpush.msrb.mxu2 %v8837_v5 }
 0x691   : > { %v7854_v26 = vadd.f32 %v7853_v62, %v13022_v45  ;;  %v7908_v0 = vpop.f32.mrf.mxu1  ;;  %v7518_v45 = vmul.f32 %v14109_v61, %v14108_v6  ;;  %v8393_v21 = vsub.f32 %v13121_v38, %v13141_v16  ;;  %v13164_v62 = vand.u32 4294901760, %v13148_v55 }
 0x692   : > { %v8046_v41 = vpop.f32.mrf.mxu3 }
 0x693   : > { %v7905_v32 = vadd.f32 %v7904_v44, %v7854_v26  ;;  %8379 = vmatmul.f32.vlgmr.msrb.gmra.mxu0 %v13114_v43  ;;  %v13124_v2 = vadd.f32 %v8046_v41, %v7959_v50  ;;  %8470 = vmatmul.f32.gmra.mxu1 %v13087_v46  ;;  %v7526_v57 = vsub.f32 %v7518_v45, %v14111_v25 }
 0x694   : > { %8890 = vmatpush.msrb.mxu0 %v13058_v49  ;;  %v8838_v49 = vsub.f32 %v8836_v63, %v8837_v5 }
 0x695   : > { %v13132_v31 = vadd.f32 %v7905_v32, %v14110_v7  ;;  %8525 = vmatmul.f32.gmra.mxu2 %v13095_v59  ;;  %v14115_v32 = vld [vmem:[#allocation48_spill] sm:$0xff]  ;;  %v8401_v7 = vsub.f32 %v13148_v55, %v13164_v62 }
 0x696   : > { %8893 = vmatpush.msrb.mxu0 %v8836_v63  ;;  %v8839_v26 = vand.u32 4294901760, %v8838_v49  ;;  %v7527_v1 = vsub.f32 %v7519_v42, %v14115_v32  ;;  %v14120_v32 = vld [vmem:[#allocation20_spill] sm:$0xff] }
 0x697   : > { %8586 = vmatmul.f32.gmra.mxu3 %v13109_v27 }
 0x698   : > { %v7857_v22 = vpop.f32.mrf.mxu0  ;;  %v7967_v18 = vpop.f32.mrf.mxu2  ;;  %8840 = vmatpush.msra.mxu3 %v8839_v26  ;;  %v8348_v63 = vsel %vm2693_vm14, %v7527_v1, 0  ;;  %v14121_v1 = vld [vmem:[#allocation10_spill] sm:$0xff] }
 0x699   : > { %v7858_v4 = vadd.f32 %v7857_v22, %v13028_v33  ;;  %v7912_v20 = vpop.f32.mrf.mxu1  ;;  %v8345_v33 = vsel %vm2693_vm14, %v7526_v57, 0  ;;  %v14116_v22 = vld [vmem:[#allocation43_spill] sm:$0xff]  ;;  %v13196_v5 = vand.u32 4294901760, %v8348_v63 }
 0x69a   : > { %v8050_v44 = vpop.f32.mrf.mxu3  ;;  %v13166_v50 = vand.u32 4294901760, %v8345_v33  ;;  %9072 = vmatpush.msrb.mxu3 %v13052_v23  ;;  %v14118_v23 = vld [vmem:[#allocation52_spill] sm:$0xff] }
 0x69b   : > { %v7909_v52 = vadd.f32 %v7908_v0, %v7858_v4  ;;  %8387 = vmatmul.f32.gmra.mxu0 %v13138_v17  ;;  %v13151_v14 = vadd.f32 %v8050_v44, %v7967_v18  ;;  %8474 = vmatmul.f32.gmra.mxu1 %v13111_v35  ;;  %v13169_v0 = vand.u32 4294901760, %v8393_v21  ;;  %v14117_v18 = vld [vmem:[#allocation23_spill] sm:$0xff] }
 0x69c   : > { %v13177_v29 = vsub.f32 %v8345_v33, %v13166_v50  ;;  %9074 = vmatpush.msrb.mxu3 %v8748_v58 }
 0x69d   : > { %v13160_v34 = vadd.f32 %v7909_v52, %v14114_v12  ;;  %8530 = vmatmul.f32.gmra.mxu2 %v13121_v38  ;;  %v14119_v52 = vld [vmem:[#allocation56_spill] sm:$0xff] }
 0x69e   : > { %v13191_v44 = vand.u32 4294901760, %v13177_v29 }
 0x69f   : > { %8592 = vmatmul.f32.gmra.mxu3 %v13141_v16 }
 0x6a0   : > { %v7861_v41 = vpop.f32.mrf.mxu0  ;;  %v7975_v10 = vpop.f32.mrf.mxu2  ;;  %v8409_v42 = vsub.f32 %v13177_v29, %v13191_v44 }
 0x6a1   : > { %v7862_v6 = vadd.f32 %v7861_v41, %v13035_v48  ;;  %v7916_v61 = vpop.f32.mrf.mxu1  ;;  %v7520_v48 = vmul.f32 %v14117_v18, %v14116_v22  ;;  %v13207_v41 = vsub.f32 %v8348_v63, %v13196_v5 }
 0x6a2   : > { %v8054_v45 = vpop.f32.mrf.mxu3 }
 0x6a3   : > { %v7913_v25 = vadd.f32 %v7912_v20, %v7862_v6  ;;  %8395 = vmatmul.f32.gmra.mxu0 %v13169_v0  ;;  %v13180_v57 = vadd.f32 %v8054_v45, %v7975_v10  ;;  %8478 = vmatmul.f32.gmra.mxu1 %v13135_v54  ;;  %v13194_v20 = vand.u32 4294901760, %v8401_v7  ;;  %v7528_v21 = vsub.f32 %v7520_v48, %v14119_v52  ;;  %v14122_v6 = vld [vmem:[#allocation14_spill] sm:$0xff] }
 0x6a4   : > { %v13219_v7 = vand.u32 4294901760, %v8409_v42  ;;  %v14124_v48 = vld [vmem:[#allocation58_spill] sm:$0xff] }
 0x6a5   : > { %v13187_v4 = vadd.f32 %v7913_v25, %v14118_v23  ;;  %8535 = vmatmul.f32.gmra.mxu2 %v13148_v55  ;;  %v8351_v10 = vsel %vm2693_vm14, %v7528_v21, 0  ;;  %v13222_v25 = vand.u32 4294901760, %v13207_v41 }
 0x6a7   : > { %8598 = vmatmul.f32.gmra.mxu3 %v13164_v62 }
 0x6a8   : > { %v7865_v33 = vpop.f32.mrf.mxu0  ;;  %v7983_v49 = vpop.f32.mrf.mxu2 }
 0x6a9   : > { %v7866_v58 = vadd.f32 %v7865_v33, %v13041_v19  ;;  %v7920_v53 = vpop.f32.mrf.mxu1  ;;  %v7521_v19 = vmul.f32 %v14121_v1, %v14120_v32 }
 0x6aa   : > { %v8058_v9 = vpop.f32.mrf.mxu3 }
 0x6ab   : > { %v7917_v12 = vadd.f32 %v7916_v61, %v7866_v58  ;;  %8403 = vmatmul.f32.gmra.mxu0 %v13194_v20  ;;  %v13203_v26 = vadd.f32 %v8058_v9, %v7983_v49  ;;  %8482 = vmatmul.f32.gmra.mxu1 %v13166_v50  ;;  %v13216_v61 = vand.u32 4294901760, %v8351_v10  ;;  %v7529_v63 = vsub.f32 %v7521_v19, %v14124_v48 }
 0x6ac   : > { %v8417_v9 = vsub.f32 %v13207_v41, %v13222_v25 }
 0x6ad   : > { %v13213_v45 = vadd.f32 %v7917_v12, %v14122_v6  ;;  %8540 = vmatmul.f32.gmra.mxu2 %v13177_v29  ;;  %v13227_v33 = vsub.f32 %v8351_v10, %v13216_v61  ;;  %v8354_v42 = vsel %vm2693_vm14, %v7529_v63, 0  ;;  %v14125_v12 = vld [vmem:[#allocation41_spill] sm:$0xff] }
 0x6ae   : > { %v13246_v10 = vand.u32 4294901760, %v8354_v42 }
 0x6af   : > { %14123 = vst [vmem:[#allocation46_spill] sm:$0xff] %v13213_v45  ;;  %8604 = vmatmul.f32.gmra.mxu3 %v13191_v44 }
 0x6b0   : > { %v7869_v22 = vpop.f32.mrf.mxu0  ;;  %v7991_v18 = vpop.f32.mrf.mxu2 }
 0x6b1   : > { %v7870_v23 = vadd.f32 %v7869_v22, %v13049_v37  ;;  %v7924_v52 = vpop.f32.mrf.mxu1  ;;  %v13241_v37 = vand.u32 4294901760, %v13227_v33 }
 0x6b2   : > { %v8062_v21 = vpop.f32.mrf.mxu3 }
 0x6b3   : > { %v7921_v49 = vadd.f32 %v7920_v53, %v7870_v23  ;;  %8411 = vmatmul.f32.gmra.mxu0 %v13219_v7  ;;  %v13230_v58 = vadd.f32 %v8062_v21, %v7991_v18  ;;  %8486 = vmatmul.f32.gmra.mxu1 %v13196_v5  ;;  %v13244_v53 = vand.u32 4294901760, %v8417_v9  ;;  %v8425_v48 = vsub.f32 %v13227_v33, %v13241_v37 }
 0x6b4   : > { %v13256_v21 = vsub.f32 %v8354_v42, %v13246_v10 }
 0x6b5   : > { %v13237_v32 = vadd.f32 %v7921_v49, %v14125_v12  ;;  %8545 = vmatmul.f32.gmra.mxu2 %v13207_v41  ;;  %v14127_v49 = vld [vmem:[#allocation17_spill] sm:$0xff] }
 0x6b7   : > { %14126 = vst [vmem:[#allocation30_spill] sm:$0xff] %v13237_v32  ;;  %8610 = vmatmul.f32.gmra.mxu3 %v13222_v25 }
 0x6b8   : > { %v7873_v1 = vpop.f32.mrf.mxu0  ;;  %v7999_v19 = vpop.f32.mrf.mxu2 }
 0x6b9   : > { %v7874_v6 = vadd.f32 %v7873_v1, %v13069_v15  ;;  %v7928_v22 = vpop.f32.mrf.mxu1  ;;  %v13263_v15 = vand.u32 4294901760, %v8425_v48  ;;  %v14129_v48 = vld [vmem:[#allocation37_spill] sm:$0xff] }
 0x6ba   : > { %v8066_v18 = vpop.f32.mrf.mxu3 }
 0x6bb   : > { %v7925_v63 = vadd.f32 %v7924_v52, %v7874_v6  ;;  %8419 = vmatmul.f32.gmra.mxu0 %v13244_v53  ;;  %v13252_v23 = vadd.f32 %v8066_v18, %v7999_v19  ;;  %8490 = vmatmul.f32.gmra.mxu1 %v13216_v61  ;;  %v13266_v52 = vand.u32 4294901760, %v13256_v21 }
 0x6bd   : > { %v13259_v9 = vadd.f32 %v7925_v63, %v14127_v49  ;;  %8550 = vmatmul.f32.gmra.mxu2 %v13227_v33  ;;  %v8433_v49 = vsub.f32 %v13256_v21, %v13266_v52 }
 0x6bf   : > { %14128 = vst [vmem:[#allocation12_spill] sm:$0xff] %v13259_v9  ;;  %8616 = vmatmul.f32.gmra.mxu3 %v13241_v37 }
 0x6c0   : > { %v7877_v12 = vpop.f32.mrf.mxu0  ;;  %v8007_v1 = vpop.f32.mrf.mxu2 }
 0x6c1   : > { %v7878_v19 = vadd.f32 %v7877_v12, %v13084_v47  ;;  %v7932_v6 = vpop.f32.mrf.mxu1  ;;  %v13280_v47 = vand.u32 4294901760, %v8433_v49 }
 0x6c2   : > { %v8070_v18 = vpop.f32.mrf.mxu3 }
 0x6c3   : > { %v7929_v42 = vadd.f32 %v7928_v22, %v7878_v19  ;;  %8427 = vmatmul.f32.gmra.mxu0 %v13263_v15  ;;  %v13270_v63 = vadd.f32 %v8070_v18, %v8007_v1  ;;  %8494 = vmatmul.f32.gmra.mxu1 %v13246_v10 }
 0x6c5   : > { %v13276_v9 = vadd.f32 %v7929_v42, %v14129_v48  ;;  %8555 = vmatmul.f32.gmra.mxu2 %v13256_v21 }
 0x6c7   : > { %14130 = vst [vmem:[#allocation35_spill] sm:$0xff] %v13276_v9  ;;  %8622 = vmatmul.f32.gmra.mxu3 %v13266_v52 }
 0x6c8   : > { %v7881_v12 = vpop.f32.mrf.mxu0  ;;  %v8015_v22 = vpop.f32.mrf.mxu2 }
 0x6c9   : > { %v7882_v19 = vadd.f32 %v7881_v12, %v13105_v8  ;;  %v8160_v1 = vpop.f32.mrf.mxu1 }
 0x6ca   : > { %v8074_v18 = vpop.f32.mrf.mxu3 }
 0x6cb   : > { %v7933_v32 = vadd.f32 %v7932_v6, %v7882_v19  ;;  %8435 = vmatmul.f32.gmra.mxu0 %v13280_v47  ;;  %v13284_v45 = vadd.f32 %v8074_v18, %v8015_v22  ;;  %8700 = vmatmul.f32.vlgmr.msra.gmra.mxu1 %v13073_v40 }
 0x6cd   : > { %v13288_v42 = vadd.f32 %v7933_v32, %v12942_v3  ;;  %8755 = vmatmul.f32.vlgmr.msra.gmra.mxu2 %v13114_v43 }
 0x6cf   : > { %8842 = vmatmul.f32.vlgmr.msra.gmra.mxu3 %v13073_v40 }
 0x6d0   : > { %v8100_v49 = vpop.f32.mrf.mxu0  ;;  %v8229_v48 = vpop.f32.mrf.mxu2 }
 0x6d1   : > { %v8101_v8 = vadd.f32 %v8100_v49, %v13124_v2  ;;  %v8166_v12 = vpop.f32.mrf.mxu1 }
 0x6d2   : > { %v8280_v9 = vpop.f32.mrf.mxu3 }
 0x6d3   : > { %v8161_v6 = vadd.f32 %v8160_v1, %v8101_v8  ;;  %8649 = vmatmul.f32.vlgmr.msra.gmra.mxu0 %v13073_v40  ;;  %8704 = vmatmul.f32.gmra.mxu1 %v13087_v46 }
 0x6d5   : > { %v8230_v22 = vadd.f32 %v8229_v48, %v8161_v6  ;;  %8763 = vmatmul.f32.gmra.mxu2 %v13138_v17 }
 0x6d7   : > { %v8281_v3 = vadd.f32 %v8280_v9, %v8230_v22  ;;  %8846 = vmatmul.f32.gmra.mxu3 %v13087_v46 }
 0x6d8   : > { %v8105_v43 = vpop.f32.mrf.mxu0  ;;  %v8233_v32 = vpop.f32.mrf.mxu2 }
 0x6d9   : > { %v13298_v19 = vadd.f32 %v8281_v3, %v12952_v39  ;;  %v8106_v2 = vadd.f32 %v8105_v43, %v13151_v14  ;;  %v8172_v18 = vpop.f32.mrf.mxu1 }
 0x6da   : > { %v8284_v49 = vpop.f32.mrf.mxu3 }
 0x6db   : > { %v8167_v1 = vadd.f32 %v8166_v12, %v8106_v2  ;;  %8653 = vmatmul.f32.gmra.mxu0 %v13087_v46  ;;  %8708 = vmatmul.f32.gmra.mxu1 %v13111_v35 }
 0x6dd   : > { %v8234_v48 = vadd.f32 %v8233_v32, %v8167_v1  ;;  %8771 = vmatmul.f32.gmra.mxu2 %v13169_v0 }
 0x6df   : > { %v8285_v17 = vadd.f32 %v8284_v49, %v8234_v48  ;;  %8850 = vmatmul.f32.gmra.mxu3 %v13111_v35 }
 0x6e0   : > { %v8110_v9 = vpop.f32.mrf.mxu0  ;;  %v8237_v8 = vpop.f32.mrf.mxu2 }
 0x6e1   : > { %v13306_v39 = vadd.f32 %v8285_v17, %v12960_v28  ;;  %v8111_v14 = vadd.f32 %v8110_v9, %v13180_v57  ;;  %v8178_v6 = vpop.f32.mrf.mxu1 }
 0x6e2   : > { %v8288_v22 = vpop.f32.mrf.mxu3 }
 0x6e3   : > { %v8173_v12 = vadd.f32 %v8172_v18, %v8111_v14  ;;  %8657 = vmatmul.f32.gmra.mxu0 %v13111_v35  ;;  %8712 = vmatmul.f32.gmra.mxu1 %v13135_v54 }
 0x6e5   : > { %v8238_v3 = vadd.f32 %v8237_v8, %v8173_v12  ;;  %8779 = vmatmul.f32.gmra.mxu2 %v13194_v20 }
 0x6e7   : > { %v8289_v0 = vadd.f32 %v8288_v22, %v8238_v3  ;;  %8854 = vmatmul.f32.gmra.mxu3 %v13135_v54 }
 0x6e8   : > { %v8115_v43 = vpop.f32.mrf.mxu0  ;;  %v8241_v32 = vpop.f32.mrf.mxu2 }
 0x6e9   : > { %v13314_v28 = vadd.f32 %v8289_v0, %v12968_v24  ;;  %v8116_v57 = vadd.f32 %v8115_v43, %v13203_v26  ;;  %v8184_v2 = vpop.f32.mrf.mxu1 }
 0x6ea   : > { %v8292_v49 = vpop.f32.mrf.mxu3 }
 0x6eb   : > { %v8179_v18 = vadd.f32 %v8178_v6, %v8116_v57  ;;  %8661 = vmatmul.f32.gmra.mxu0 %v13135_v54  ;;  %8716 = vmatmul.f32.gmra.mxu1 %v13166_v50 }
 0x6ed   : > { %v8242_v1 = vadd.f32 %v8241_v32, %v8179_v18  ;;  %8787 = vmatmul.f32.gmra.mxu2 %v13219_v7 }
 0x6ef   : > { %v8293_v20 = vadd.f32 %v8292_v49, %v8242_v1  ;;  %8858 = vmatmul.f32.gmra.mxu3 %v13166_v50 }
 0x6f0   : > { %v8120_v48 = vpop.f32.mrf.mxu0  ;;  %v8245_v17 = vpop.f32.mrf.mxu2 }
 0x6f1   : > { %v13322_v24 = vadd.f32 %v8293_v20, %v12976_v30  ;;  %v8121_v26 = vadd.f32 %v8120_v48, %v13230_v58  ;;  %v8190_v9 = vpop.f32.mrf.mxu1 }
 0x6f2   : > { %v8296_v8 = vpop.f32.mrf.mxu3 }
 0x6f3   : > { %v8185_v14 = vadd.f32 %v8184_v2, %v8121_v26  ;;  %8665 = vmatmul.f32.gmra.mxu0 %v13166_v50  ;;  %8720 = vmatmul.f32.gmra.mxu1 %v13196_v5 }
 0x6f5   : > { %v8246_v6 = vadd.f32 %v8245_v17, %v8185_v14  ;;  %8795 = vmatmul.f32.gmra.mxu2 %v13244_v53 }
 0x6f7   : > { %v8297_v7 = vadd.f32 %v8296_v8, %v8246_v6  ;;  %8862 = vmatmul.f32.gmra.mxu3 %v13196_v5 }
 0x6f8   : > { %v8125_v22 = vpop.f32.mrf.mxu0  ;;  %v8249_v12 = vpop.f32.mrf.mxu2 }
 0x6f9   : > { %v13330_v30 = vadd.f32 %v8297_v7, %v12994_v60  ;;  %v8126_v58 = vadd.f32 %v8125_v22, %v13252_v23  ;;  %v8196_v3 = vpop.f32.mrf.mxu1 }
 0x6fa   : > { %v8300_v0 = vpop.f32.mrf.mxu3 }
 0x6fb   : > { %v8191_v43 = vadd.f32 %v8190_v9, %v8126_v58  ;;  %8669 = vmatmul.f32.gmra.mxu0 %v13196_v5  ;;  %8724 = vmatmul.f32.gmra.mxu1 %v13216_v61 }
 0x6fd   : > { %v8250_v32 = vadd.f32 %v8249_v12, %v8191_v43  ;;  %8803 = vmatmul.f32.gmra.mxu2 %v13263_v15 }
 0x6ff   : > { %v8301_v53 = vadd.f32 %v8300_v0, %v8250_v32  ;;  %8866 = vmatmul.f32.gmra.mxu3 %v13216_v61 }
 0x700   : > { %v8130_v57 = vpop.f32.mrf.mxu0  ;;  %v8253_v2 = vpop.f32.mrf.mxu2 }
 0x701   : > { %v13338_v60 = vadd.f32 %v8301_v53, %v13002_v13  ;;  %v8131_v23 = vadd.f32 %v8130_v57, %v13270_v63  ;;  %v8202_v49 = vpop.f32.mrf.mxu1 }
 0x702   : > { %v8304_v18 = vpop.f32.mrf.mxu3 }
 0x703   : > { %v8197_v1 = vadd.f32 %v8196_v3, %v8131_v23  ;;  %8673 = vmatmul.f32.gmra.mxu0 %v13216_v61  ;;  %8728 = vmatmul.f32.gmra.mxu1 %v13246_v10 }
 0x705   : > { %v8254_v20 = vadd.f32 %v8253_v2, %v8197_v1  ;;  %8811 = vmatmul.f32.gmra.mxu2 %v13280_v47 }
 0x707   : > { %v8305_v15 = vadd.f32 %v8304_v18, %v8254_v20  ;;  %8870 = vmatmul.f32.gmra.mxu3 %v13246_v10 }
 0x708   : > { %v8135_v48 = vpop.f32.mrf.mxu0  ;;  %v8257_v17 = vpop.f32.mrf.mxu2 }
 0x709   : > { %v13346_v13 = vadd.f32 %v8305_v15, %v13010_v36  ;;  %v8136_v63 = vadd.f32 %v8135_v48, %v13284_v45  ;;  %v13349_v26 = vpop.f32.mrf.mxu1 }
 0x70a   : > { %v8308_v9 = vpop.f32.mrf.mxu3 }
 0x70b   : > { %v8203_v8 = vadd.f32 %v8202_v49, %v8136_v63  ;;  %8677 = vmatmul.f32.gmra.mxu0 %v13246_v10  ;;  %8956 = vmatmul.f32.vlgmr.msrb.gmra.mxu1 %v13091_v51  ;;  %v14131_v63 = vld [vmem:[#allocation6_spill] sm:$0xff] }
 0x70d   : > { %v8258_v14 = vadd.f32 %v8257_v17, %v8203_v8  ;;  %9025 = vmatmul.f32.vlgmr.msrb.gmra.mxu2 %v13073_v40 }
 0x70f   : > { %v8309_v47 = vadd.f32 %v8308_v9, %v8258_v14  ;;  %9076 = vmatmul.f32.vlgmr.msrb.gmra.mxu3 %v13073_v40 }
 0x710   : > { %v8380_v6 = vpop.f32.mrf.mxu0  ;;  %v8521_v7 = vpop.f32.mrf.mxu2 }
 0x711   : > { %v13356_v36 = vadd.f32 %v8309_v47, %v13018_v11  ;;  %v8471_v45 = vpop.f32.mrf.mxu1 }
 0x712   : > { %v8581_v22 = vpop.f32.mrf.mxu3 }
 0x713   : > { %8896 = vmatmul.f32.vlgmr.msrb.gmra.mxu0 %v13079_v56  ;;  %8962 = vmatmul.f32.gmra.mxu1 %v13109_v27 }
 0x715   : > { %9029 = vmatmul.f32.gmra.mxu2 %v13087_v46 }
 0x717   : > { %9080 = vmatmul.f32.gmra.mxu3 %v13087_v46 }
 0x718   : > { %v8388_v51 = vpop.f32.mrf.mxu0  ;;  %v8526_v12 = vpop.f32.mrf.mxu2 }
 0x719   : > { %v13362_v58 = vpop.f32.mrf.mxu1 }
 0x71a   : > { %v13364_v40 = vpop.f32.mrf.mxu3 }
 0x71b   : > { %8901 = vmatmul.f32.gmra.mxu0 %v13095_v59  ;;  %8968 = vmatmul.f32.gmra.mxu1 %v13141_v16 }
 0x71d   : > { %9033 = vmatmul.f32.gmra.mxu2 %v13111_v35 }
 0x71f   : > { %9084 = vmatmul.f32.gmra.mxu3 %v13111_v35 }
 0x720   : > { %v8396_v11 = vpop.f32.mrf.mxu0  ;;  %v13370_v56 = vpop.f32.mrf.mxu2 }
 0x721   : > { %v13372_v27 = vpop.f32.mrf.mxu1  ;;  %v8476_v17 = vadd.f32 %v13362_v58, %v8396_v11 }
 0x722   : > { %v13374_v46 = vpop.f32.mrf.mxu3 }
 0x723   : > { %8906 = vmatmul.f32.gmra.mxu0 %v13121_v38  ;;  %8974 = vmatmul.f32.gmra.mxu1 %v13164_v62 }
 0x725   : > { %9037 = vmatmul.f32.gmra.mxu2 %v13135_v54 }
 0x727   : > { %9088 = vmatmul.f32.gmra.mxu3 %v13135_v54 }
 0x728   : > { %v13380_v59 = vpop.f32.mrf.mxu0  ;;  %v13382_v16 = vpop.f32.mrf.mxu2 }
 0x729   : > { %v13384_v35 = vpop.f32.mrf.mxu1 }
 0x72a   : > { %v13386_v3 = vpop.f32.mrf.mxu3 }
 0x72b   : > { %8911 = vmatmul.f32.gmra.mxu0 %v13148_v55  ;;  %8980 = vmatmul.f32.gmra.mxu1 %v13191_v44 }
 0x72d   : > { %9041 = vmatmul.f32.gmra.mxu2 %v13166_v50 }
 0x72f   : > { %9092 = vmatmul.f32.gmra.mxu3 %v13166_v50 }
 0x730   : > { %v13392_v38 = vpop.f32.mrf.mxu0  ;;  %v13394_v62 = vpop.f32.mrf.mxu2 }
 0x731   : > { %v13396_v54 = vpop.f32.mrf.mxu1 }
 0x732   : > { %v13398_v0 = vpop.f32.mrf.mxu3 }
 0x733   : > { %8916 = vmatmul.f32.gmra.mxu0 %v13177_v29  ;;  %8986 = vmatmul.f32.gmra.mxu1 %v13222_v25 }
 0x735   : > { %9045 = vmatmul.f32.gmra.mxu2 %v13196_v5 }
 0x737   : > { %9096 = vmatmul.f32.gmra.mxu3 %v13196_v5 }
 0x738   : > { %v13404_v55 = vpop.f32.mrf.mxu0  ;;  %v13406_v44 = vpop.f32.mrf.mxu2 }
 0x739   : > { %v13408_v50 = vpop.f32.mrf.mxu1 }
 0x73a   : > { %v13410_v43 = vpop.f32.mrf.mxu3 }
 0x73b   : > { %8921 = vmatmul.f32.gmra.mxu0 %v13207_v41  ;;  %8992 = vmatmul.f32.gmra.mxu1 %v13241_v37  ;;  %v8468_v41 = vadd.f32 %v13349_v26, %v8380_v6  ;;  %v8532_v6 = vadd.f32 %v13370_v56, %v8476_v17 }
 0x73d   : > { %9049 = vmatmul.f32.gmra.mxu2 %v13216_v61  ;;  %v8522_v2 = vadd.f32 %v8521_v7, %v8468_v41 }
 0x73f   : > { %9100 = vmatmul.f32.gmra.mxu3 %v13216_v61  ;;  %v8582_v23 = vadd.f32 %v8581_v22, %v8522_v2  ;;  %v8480_v22 = vadd.f32 %v13372_v27, %v13380_v59  ;;  %v8484_v59 = vadd.f32 %v13384_v35, %v13392_v38  ;;  %v8488_v38 = vadd.f32 %v13396_v54, %v13404_v55 }
 0x740   : > { %v13416_v29 = vpop.f32.mrf.mxu0  ;;  %v13418_v25 = vpop.f32.mrf.mxu2 }
 0x741   : > { %v13420_v5 = vpop.f32.mrf.mxu1  ;;  %v8537_v41 = vadd.f32 %v13382_v16, %v8480_v22  ;;  %v8492_v55 = vadd.f32 %v13408_v50, %v13416_v29 }
 0x742   : > { %v13422_v32 = vpop.f32.mrf.mxu3 }
 0x743   : > { %8926 = vmatmul.f32.gmra.mxu0 %v13227_v33  ;;  %8998 = vmatmul.f32.gmra.mxu1 %v13266_v52  ;;  %v8472_v33 = vadd.f32 %v8471_v45, %v8388_v51  ;;  %v8594_v45 = vadd.f32 %v13374_v46, %v8532_v6  ;;  %v14132_v51 = vld [vmem:[#allocation7_spill] sm:$0xff]  ;;  %v8600_v27 = vadd.f32 %v13386_v3, %v8537_v41 }
 0x744   : > { %v8552_v22 = vadd.f32 %v13418_v25, %v8492_v55 }
 0x745   : > { %9053 = vmatmul.f32.gmra.mxu2 %v13246_v10 }
 0x746   : > { %v8618_v50 = vadd.f32 %v13422_v32, %v8552_v22  ;;  %v14140_v32 = vld [vmem:[#allocation35_spill] sm:$0xff] }
 0x747   : > { %9104 = vmatmul.f32.gmra.mxu3 %v13246_v10  ;;  %v8527_v10 = vadd.f32 %v8526_v12, %v8472_v33 }
 0x748   : > { %v13429_v61 = vpop.f32.mrf.mxu0  ;;  %v13431_v37 = vpop.f32.mrf.mxu2 }
 0x749   : > { %v8701_v53 = vpop.f32.mrf.mxu1  ;;  %v8588_v48 = vadd.f32 %v13364_v40, %v8527_v10  ;;  %v14135_v10 = vld [vmem:[#allocation11_spill] sm:$0xff]  ;;  %v8496_v29 = vadd.f32 %v13420_v5, %v13429_v61  ;;  %v14141_v61 = vld [vmem:[#allocation29_spill] sm:$0xff] }
 0x74a   : > { %v13433_v57 = vpop.f32.mrf.mxu3 }
 0x74b   : > { %8931 = vmatmul.f32.gmra.mxu0 %v13256_v21 }
 0x750   : > { %v8650_v49 = vpop.f32.mrf.mxu0  ;;  %v13436_v52 = vpop.f32.mrf.mxu2 }
 0x751   : > { %v8651_v18 = vadd.f32 %v8650_v49, %v8582_v23  ;;  %v8705_v1 = vpop.f32.mrf.mxu1 }
 0x752   : > { %v13439_v20 = vpop.f32.mrf.mxu3 }
 0x753   : > { %v8702_v15 = vadd.f32 %v8701_v53, %v8651_v18  ;;  %v14133_v53 = vld [vmem:[#allocation8_spill] sm:$0xff]  ;;  %v8542_v18 = vadd.f32 %v13394_v62, %v8484_v59 }
 0x755   : > { %v9108_v21 = vadd.f32 %v8702_v15, %v13132_v31  ;;  %v8606_v35 = vadd.f32 %v13398_v0, %v8542_v18 }
 0x757   : > { %9124 = vst [vmem:[%s13444_s4] sm:$0xff] %v9108_v21 }
 0x758   : > { %9140 = vst.msk [vmem:[%s13444_s4] sm:$0xff] %vm2693_vm14, %v14131_v63  ;;  %v8654_v26 = vpop.f32.mrf.mxu0  ;;  %v13453_v9 = vpop.f32.mrf.mxu2  ;;  %v8547_v63 = vadd.f32 %v13406_v44, %v8488_v38 }
 0x759   : > { %v8655_v8 = vadd.f32 %v8654_v26, %v8588_v48  ;;  %v8709_v14 = vpop.f32.mrf.mxu1 }
 0x75a   : > { %v13455_v47 = vpop.f32.mrf.mxu3  ;;  %v8612_v54 = vadd.f32 %v13410_v43, %v8547_v63 }
 0x75b   : > { %v8706_v7 = vadd.f32 %v8705_v1, %v8655_v8  ;;  %v14134_v1 = vld [vmem:[#allocation46_spill] sm:$0xff] }
 0x75c   : > { %v14136_v8 = vld [vmem:[#allocation30_spill] sm:$0xff] }
 0x75d   : > { %v9110_v31 = vadd.f32 %v8706_v7, %v13160_v34 }
 0x75f   : > { %9126 = vst [vmem:[%s13444_s4 + $0x10] sm:$0xff] %v9110_v31 }
 0x760   : > { %9141 = vst.msk [vmem:[%s13444_s4 + $0x10] sm:$0xff] %vm2693_vm14, %v14132_v51  ;;  %v8658_v12 = vpop.f32.mrf.mxu0  ;;  %v13466_v58 = vpop.f32.mrf.mxu2 }
 0x761   : > { %v8659_v40 = vadd.f32 %v8658_v12, %v8594_v45  ;;  %v8713_v11 = vpop.f32.mrf.mxu1  ;;  %v14138_v12 = vld [vmem:[#allocation12_spill] sm:$0xff] }
 0x762   : > { %v13468_v56 = vpop.f32.mrf.mxu3 }
 0x763   : > { %v8710_v34 = vadd.f32 %v8709_v14, %v8659_v40  ;;  %v14137_v14 = vld [vmem:[#allocation19_spill] sm:$0xff]  ;;  %v14139_v40 = vld [vmem:[#allocation22_spill] sm:$0xff] }
 0x765   : > { %v9112_v46 = vadd.f32 %v8710_v34, %v13187_v4 }
 0x767   : > { %9128 = vst [vmem:[%s13444_s4 + $0x20] sm:$0xff] %v9112_v46 }
 0x768   : > { %9142 = vst.msk [vmem:[%s13444_s4 + $0x20] sm:$0xff] %vm2693_vm14, %v14133_v53  ;;  %v8662_v2 = vpop.f32.mrf.mxu0  ;;  %v13479_v23 = vpop.f32.mrf.mxu2 }
 0x769   : > { %v8663_v33 = vadd.f32 %v8662_v2, %v8600_v27  ;;  %v8717_v49 = vpop.f32.mrf.mxu1  ;;  %v8557_v27 = vadd.f32 %v13431_v37, %v8496_v29  ;;  %v8844_v37 = vadd.f32 %v13439_v20, %v13436_v52 }
 0x76a   : > { %v13481_v16 = vpop.f32.mrf.mxu3 }
 0x76b   : > { %v8714_v4 = vadd.f32 %v8713_v11, %v8663_v33  ;;  %v8624_v5 = vadd.f32 %v13433_v57, %v8557_v27  ;;  %v8856_v29 = vadd.f32 %v13481_v16, %v13479_v23 }
 0x76d   : > { %v9114_v3 = vadd.f32 %v8714_v4, %v14134_v1 }
 0x76f   : > { %9130 = vst [vmem:[%s13444_s4 + $0x30] sm:$0xff] %v9114_v3 }
 0x770   : > { %9143 = vst.msk [vmem:[%s13444_s4 + $0x30] sm:$0xff] %vm2693_vm14, %v14135_v10  ;;  %v8666_v15 = vpop.f32.mrf.mxu0  ;;  %v13492_v21 = vpop.f32.mrf.mxu2 }
 0x771   : > { %v8667_v48 = vadd.f32 %v8666_v15, %v8606_v35  ;;  %v8721_v17 = vpop.f32.mrf.mxu1  ;;  %v14142_v35 = vld [vmem:[#allocation33_spill] sm:$0xff] }
 0x772   : > { %v13494_v62 = vpop.f32.mrf.mxu3 }
 0x773   : > { %v8718_v26 = vadd.f32 %v8717_v49, %v8667_v48 }
 0x775   : > { %v9116_v0 = vadd.f32 %v8718_v26, %v14136_v8  ;;  %v8848_v26 = vadd.f32 %v13455_v47, %v13453_v9 }
 0x777   : > { %9132 = vst [vmem:[%s13444_s4 + $0x40] sm:$0xff] %v9116_v0 }
 0x778   : > { %9144 = vst.msk [vmem:[%s13444_s4 + $0x40] sm:$0xff] %vm2693_vm14, %v14137_v14  ;;  %v8670_v6 = vpop.f32.mrf.mxu0  ;;  %v13505_v7 = vpop.f32.mrf.mxu2 }
 0x779   : > { %v8671_v31 = vadd.f32 %v8670_v6, %v8612_v54  ;;  %v8725_v45 = vpop.f32.mrf.mxu1 }
 0x77a   : > { %v13507_v44 = vpop.f32.mrf.mxu3 }
 0x77b   : > { %v8722_v51 = vadd.f32 %v8721_v17, %v8671_v31  ;;  %v8852_v31 = vadd.f32 %v13468_v56, %v13466_v58 }
 0x77d   : > { %v9118_v43 = vadd.f32 %v8722_v51, %v14138_v12 }
 0x77f   : > { %9134 = vst [vmem:[%s13444_s4 + $0x50] sm:$0xff] %v9118_v43 }
 0x780   : > { %9145 = vst.msk [vmem:[%s13444_s4 + $0x50] sm:$0xff] %vm2693_vm14, %v14139_v40  ;;  %v8674_v11 = vpop.f32.mrf.mxu0  ;;  %v13518_v41 = vpop.f32.mrf.mxu2 }
 0x781   : > { %v8675_v34 = vadd.f32 %v8674_v11, %v8618_v50  ;;  %v8729_v46 = vpop.f32.mrf.mxu1 }
 0x782   : > { %v13520_v25 = vpop.f32.mrf.mxu3 }
 0x783   : > { %v8726_v59 = vadd.f32 %v8725_v45, %v8675_v34 }
 0x785   : > { %v9120_v53 = vadd.f32 %v8726_v59, %v14140_v32  ;;  %v8860_v32 = vadd.f32 %v13494_v62, %v13492_v21 }
 0x787   : > { %9136 = vst [vmem:[%s13444_s4 + $0x60] sm:$0xff] %v9120_v53 }
 0x788   : > { %9146 = vst.msk [vmem:[%s13444_s4 + $0x60] sm:$0xff] %vm2693_vm14, %v14141_v61  ;;  %v8678_v2 = vpop.f32.mrf.mxu0  ;;  %v13529_v33 = vpop.f32.mrf.mxu2 }
 0x789   : > { %v8679_v49 = vadd.f32 %v8678_v2, %v8624_v5  ;;  %v8957_v18 = vpop.f32.mrf.mxu1 }
 0x78a   : > { %v13531_v4 = vpop.f32.mrf.mxu3 }
 0x78b   : > { %v8730_v1 = vadd.f32 %v8729_v46, %v8679_v49 }
 0x78d   : > { %v9122_v3 = vadd.f32 %v8730_v1, %v13288_v42  ;;  %v8864_v1 = vadd.f32 %v13507_v44, %v13505_v7 }
 0x78f   : > { %9138 = vst [vmem:[%s13444_s4 + $0x70] sm:$0xff] %v9122_v3 }
 0x790   : > { %9147 = vst.msk [vmem:[%s13444_s4 + $0x70] sm:$0xff] %vm2693_vm14, %v14142_v35  ;;  %v8897_v57 = vpop.f32.mrf.mxu0  ;;  %v9026_v38 = vpop.f32.mrf.mxu2 }
 0x791   : > { %v8898_v10 = vadd.f32 %v8897_v57, %v8844_v37  ;;  %v8963_v15 = vpop.f32.mrf.mxu1 }
 0x792   : > { %v9077_v48 = vpop.f32.mrf.mxu3 }
 0x793   : > { %v8958_v17 = vadd.f32 %v8957_v18, %v8898_v10 }
 0x795   : > { %v9027_v63 = vadd.f32 %v9026_v38, %v8958_v17 }
 0x797   : > { %v9078_v8 = vadd.f32 %v9077_v48, %v9027_v63 }
 0x798   : > { %v8902_v42 = vpop.f32.mrf.mxu0  ;;  %v9030_v0 = vpop.f32.mrf.mxu2 }
 0x799   : > { %v9109_v52 = vadd.f32 %v9078_v8, %v13298_v19  ;;  %v8903_v20 = vadd.f32 %v8902_v42, %v8848_v26  ;;  %v8969_v54 = vpop.f32.mrf.mxu1  ;;  %v8872_v42 = vadd.f32 %v13531_v4, %v13529_v33 }
 0x79a   : > { %v9081_v55 = vpop.f32.mrf.mxu3 }
 0x79b   : > { %9125 = vst.msk [vmem:[%s13444_s4 + $0x8] sm:$0xff] %vm2693_vm14, %v9109_v52  ;;  %v8964_v14 = vadd.f32 %v8963_v15, %v8903_v20  ;;  %v8868_v15 = vadd.f32 %v13520_v25, %v13518_v41 }
 0x79d   : > { %v9031_v6 = vadd.f32 %v9030_v0, %v8964_v14 }
 0x79f   : > { %v9082_v45 = vadd.f32 %v9081_v55, %v9031_v6 }
 0x7a0   : > { %v8907_v22 = vpop.f32.mrf.mxu0  ;;  %v9034_v51 = vpop.f32.mrf.mxu2 }
 0x7a1   : > { %v9111_v9 = vadd.f32 %v9082_v45, %v13306_v39  ;;  %v8908_v47 = vadd.f32 %v8907_v22, %v8852_v31  ;;  %v8975_v12 = vpop.f32.mrf.mxu1 }
 0x7a2   : > { %v9085_v43 = vpop.f32.mrf.mxu3 }
 0x7a3   : > { %9127 = vst.msk [vmem:[%s13444_s4 + $0x18] sm:$0xff] %vm2693_vm14, %v9111_v9  ;;  %v8970_v19 = vadd.f32 %v8969_v54, %v8908_v47 }
 0x7a5   : > { %v9035_v50 = vadd.f32 %v9034_v51, %v8970_v19 }
 0x7a7   : > { %v9086_v40 = vadd.f32 %v9085_v43, %v9035_v50 }
 0x7a8   : > { %v8912_v11 = vpop.f32.mrf.mxu0  ;;  %v9038_v58 = vpop.f32.mrf.mxu2 }
 0x7a9   : > { %v9113_v56 = vadd.f32 %v9086_v40, %v13314_v28  ;;  %v8913_v34 = vadd.f32 %v8912_v11, %v8856_v29  ;;  %v8981_v27 = vpop.f32.mrf.mxu1 }
 0x7aa   : > { %v9089_v46 = vpop.f32.mrf.mxu3 }
 0x7ab   : > { %9129 = vst.msk [vmem:[%s13444_s4 + $0x28] sm:$0xff] %vm2693_vm14, %v9113_v56  ;;  %v8976_v39 = vadd.f32 %v8975_v12, %v8913_v34 }
 0x7ad   : > { %v9039_v59 = vadd.f32 %v9038_v58, %v8976_v39 }
 0x7af   : > { %v9090_v53 = vadd.f32 %v9089_v46, %v9039_v59 }
 0x7b0   : > { %v8917_v5 = vpop.f32.mrf.mxu0  ;;  %v9042_v23 = vpop.f32.mrf.mxu2 }
 0x7b1   : > { %v9115_v16 = vadd.f32 %v9090_v53, %v13322_v24  ;;  %v8918_v61 = vadd.f32 %v8917_v5, %v8860_v32  ;;  %v8987_v49 = vpop.f32.mrf.mxu1 }
 0x7b2   : > { %v9093_v2 = vpop.f32.mrf.mxu3 }
 0x7b3   : > { %9131 = vst.msk [vmem:[%s13444_s4 + $0x38] sm:$0xff] %vm2693_vm14, %v9115_v16  ;;  %v8982_v28 = vadd.f32 %v8981_v27, %v8918_v61 }
 0x7b5   : > { %v9043_v18 = vadd.f32 %v9042_v23, %v8982_v28 }
 0x7b7   : > { %v9094_v3 = vadd.f32 %v9093_v2, %v9043_v18 }
 0x7b8   : > { %v8922_v37 = vpop.f32.mrf.mxu0  ;;  %v9046_v21 = vpop.f32.mrf.mxu2 }
 0x7b9   : > { %v9117_v62 = vadd.f32 %v9094_v3, %v13330_v30  ;;  %v8923_v35 = vadd.f32 %v8922_v37, %v8864_v1  ;;  %v8993_v10 = vpop.f32.mrf.mxu1 }
 0x7ba   : > { %v9097_v57 = vpop.f32.mrf.mxu3 }
 0x7bb   : > { %9133 = vst.msk [vmem:[%s13444_s4 + $0x48] sm:$0xff] %vm2693_vm14, %v9117_v62  ;;  %v8988_v24 = vadd.f32 %v8987_v49, %v8923_v35 }
 0x7bd   : > { %v9047_v38 = vadd.f32 %v9046_v21, %v8988_v24 }
 0x7bf   : > { %v9098_v48 = vadd.f32 %v9097_v57, %v9047_v38 }
 0x7c0   : > { %v8927_v17 = vpop.f32.mrf.mxu0  ;;  %v9050_v7 = vpop.f32.mrf.mxu2 }
 0x7c1   : > { %v9119_v44 = vadd.f32 %v9098_v48, %v13338_v60  ;;  %v8928_v63 = vadd.f32 %v8927_v17, %v8868_v15  ;;  %v8999_v20 = vpop.f32.mrf.mxu1 }
 0x7c2   : > { %v9101_v26 = vpop.f32.mrf.mxu3 }
 0x7c3   : > { %9135 = vst.msk [vmem:[%s13444_s4 + $0x58] sm:$0xff] %vm2693_vm14, %v9119_v44  ;;  %v8994_v30 = vadd.f32 %v8993_v10, %v8928_v63 }
 0x7c5   : > { %v9051_v8 = vadd.f32 %v9050_v7, %v8994_v30 }
 0x7c7   : > { %v9102_v0 = vadd.f32 %v9101_v26, %v9051_v8 }
 0x7c8   : > { %v8932_v52 = vpop.f32.mrf.mxu0  ;;  %v9054_v54 = vpop.f32.mrf.mxu2 }
 0x7c9   : > { %v9121_v41 = vadd.f32 %v9102_v0, %v13346_v13  ;;  %v8933_v25 = vadd.f32 %v8932_v52, %v8872_v42 }
 0x7ca   : > { %v9105_v55 = vpop.f32.mrf.mxu3 }
 0x7cb   : > { %9137 = vst.msk [vmem:[%s13444_s4 + $0x68] sm:$0xff] %vm2693_vm14, %v9121_v41  ;;  %v9000_v60 = vadd.f32 %v8999_v20, %v8933_v25 }
 0x7cd   : > { %v9055_v14 = vadd.f32 %v9054_v54, %v9000_v60 }
 0x7cf   : > { %v9106_v6 = vadd.f32 %v9105_v55, %v9055_v14 }
 0x7d1   : > { %v9123_v31 = vadd.f32 %v9106_v6, %v13356_v36 }
 0x7d3   : > { %9139 = vst.msk [vmem:[%s13444_s4 + $0x78] sm:$0xff] %vm2693_vm14, %v9123_v31 }
 0x7d4 PF: > { %s15_s14 = sadd.s32 1, %s9357_s14  }
 0x7d5   : > { %p12_p7 = scmp.ge.s32.totalorder %s15_s14, 4  }
 0x7d7   :  { %14 = sbr.rel (!%p12_p7) target bundleno = 3 (0x3), region = 74 }
 0x7dc   :  { %9172 = vsyncpa [#allocation4], 1 }
 0x7dd   :  { %9174 = vsyncpa [#allocation4 + $0x1], 1 }

</bundles_post_ra>
